<compile_context>
chip_gen: v7x
topology: tpu7x:2x2x1
jax: 0.10.0
libtpu: 0.0.40
codegen_flags: <defaults>
</compile_context>

<pallas_src>
import functools

import jax
import jax.numpy as jnp
from jax import lax
from jax.experimental import pallas as pl
from jax.experimental.pallas import tpu as pltpu

C_PAD = 128          # every channel dim is zero-padded to 128 lanes
HALF = C_PAD // 2    # lane split used for tap pairing / channel duplication
NUM_CLASSES = 10


def _round8(v):
    return ((v + 7) // 8) * 8


def _round16(v):
    return ((v + 15) // 16) * 16


def _layout(h, w):
    """Static row layout of the single bf16 VMEM scratch buffer."""
    h2, w2 = h // 2, w // 2
    m1, m2 = h * w, h2 * w2
    ph = _round16(w)             # zero halo around the full-res slabs (>= w)
    ps = _round8(w2)             # zero rows embedded between parity planes (>= w2)

    a1 = ph                      # slab1 (act | act shifted right) image rows
    a2 = a1 + m1 + ph            # slab2 (act | act shifted left)  image rows
    b = a2 + m1 + ph             # parity-plane block (written by the selector matmul)
    p_ee, p_eo, p_eol = 0, m2, 2 * m2
    p_oe = 3 * m2 + ps
    p_oo = p_oe + m2 + ps
    p_ool = p_oo + m2 + ps
    nb = p_ool + m2              # rows in the parity-plane block
    c0 = _round16(b + nb + w2)   # three shifted copies for the 8x8 conv
    c1 = c0 + m2 + _round16(w2)
    c2 = c1 + m2 + _round16(w2)
    tot = c2 + m2 + _round16(w2)
    zero_rows = (
        (0, a1),
        (a1 + m1, a2 - (a1 + m1)),
        (a2 + m1, b - (a2 + m1)),
        (b + nb, c0 - (b + nb)),
        (c0 + m2, c1 - (c0 + m2)),
        (c1 + m2, c2 - (c1 + m2)),
        (c2 + m2, tot - (c2 + m2)),
    )
    return dict(m1=m1, m2=m2, w2=w2, ps=ps, a1=a1, a2=a2, b=b, nb=nb,
                p_ee=p_ee, p_eo=p_eo, p_eol=p_eol, p_oe=p_oe, p_oo=p_oo,
                p_ool=p_ool, c0=c0, c1=c1, c2=c2, tot=tot, zero_rows=zero_rows)


# ---------------------------------------------------------------------------
# Fused whole-network kernel (one grid step == one image).
# ---------------------------------------------------------------------------
def _resnet_kernel(h, w,
                   x_ref,
                   w1_ref, b1_ref,
                   w11_ref, b11_ref, w12_ref, b12_ref,
                   sel_ref, w21_ref, b21_ref, wsc_ref, bsc_ref,
                   w22_ref, b22_ref,
                   wfc_ref, bfc_ref,
                   out_ref,
                   pad_ref):
    f32, bf16 = jnp.float32, jnp.bfloat16
    L = _layout(h, w)
    m1, m2, w2 = L["m1"], L["m2"], L["w2"]
    a1, a2, b_off = L["a1"], L["a2"], L["b"]
    c0, c1, c2 = L["c0"], L["c1"], L["c2"]

    # ---- zero the halo / gap rows once per grid step ---------------------
    for start, length in L["zero_rows"]:
        pad_ref[start:start + length, :] = jnp.zeros((length, C_PAD), bf16)

    # ---- hoisted lane / border masks (trace-time constants) --------------
    lane_lo = lax.broadcasted_iota(jnp.int32, (1, C_PAD), 1) < HALF
    col1 = lax.broadcasted_iota(jnp.int32, (m1, 1), 0) % w
    m_l1 = col1 != 0              # a pixel to the LEFT exists
    m_r1 = col1 != (w - 1)        # a pixel to the RIGHT exists
    col2 = lax.broadcasted_iota(jnp.int32, (m2, 1), 0) % w2
    m_l2 = col2 != 0
    m_r2 = col2 != (w2 - 1)

    def shift_up(v):              # v[r] -> v[r + 1] (zero for the last row)
        return jnp.concatenate([v[1:], jnp.zeros((1, C_PAD), f32)], axis=0)

    def shift_down(v):            # v[r] -> v[r - 1] (zero for the first row)
        return jnp.concatenate([jnp.zeros((1, C_PAD), f32), v[:-1]], axis=0)

    # ---- full-resolution 3x3/s1/p1 conv, dx-paired: 6 MXU calls ----------
    # slab1 lanes 0:64 = act, lanes 64:128 = act shifted one pixel right
    # slab2 lanes 0:64 = act, lanes 64:128 = act shifted one pixel left
    # Reading slab1/slab2 at row offsets dy*w (dy = -1,0,+1; vertical borders
    # covered by the zero halos) yields taps (dy,0)+(dy,+1) resp. (dy,-1) per
    # matmul; horizontal border masks are baked into the slab hi-lanes.
    def conv_full(act, w6_ref):
        slab1 = jnp.where(lane_lo, act, jnp.where(m_r1, shift_up(act), 0.0))
        slab2 = jnp.where(lane_lo, act, jnp.where(m_l1, shift_down(act), 0.0))
        pad_ref[a1:a1 + m1, :] = slab1.astype(bf16)   # single downcast / conv
        pad_ref[a2:a2 + m1, :] = slab2.astype(bf16)
        acc = jnp.zeros((m1, C_PAD), f32)
        for j, base in enumerate((a1, a1, a1, a2, a2, a2)):
            start = base + ((j % 3) - 1) * w
            acc = acc + jnp.dot(pad_ref[start:start + m1, :], w6_ref[j],
                                preferred_element_type=f32)
        return acc

    # ---- 8x8 3x3/s1/p1 conv with 128 in-channels: 9 MXU calls ------------
    # Three pre-shifted copies (center / right / left) keep every read aligned
    # and border-mask free; vertical borders via the zero gaps.
    def conv_small(act, w9_ref):
        pad_ref[c0:c0 + m2, :] = act.astype(bf16)
        pad_ref[c1:c1 + m2, :] = jnp.where(m_r2, shift_up(act), 0.0).astype(bf16)
        pad_ref[c2:c2 + m2, :] = jnp.where(m_l2, shift_down(act), 0.0).astype(bf16)
        acc = jnp.zeros((m2, C_PAD), f32)
        for dy in (-1, 0, 1):
            for dx, base in ((-1, c2), (0, c0), (1, c1)):
                k = (dy + 1) * 3 + (dx + 1)
                start = base + dy * w2
                acc = acc + jnp.dot(pad_ref[start:start + m2, :], w9_ref[k],
                                    preferred_element_type=f32)
        return acc

    # ---- stride-2 conv on parity planes (layer2 conv1): 9 small matmuls ---
    # (tap index in the 9-tap weight pack, row offset inside the plane block)
    plane_taps = (
        (4, L["p_ee"]),          # ( 0,  0)
        (5, L["p_eo"]),          # ( 0, +1)
        (3, L["p_eol"]),         # ( 0, -1)
        (7, L["p_oe"]),          # (+1,  0)
        (8, L["p_oo"]),          # (+1, +1)
        (6, L["p_ool"]),         # (+1, -1)
        (1, L["p_oe"] - w2),     # (-1,  0)  (zero rows embedded in the selector)
        (2, L["p_oo"] - w2),     # (-1, +1)
        (0, L["p_ool"] - w2),    # (-1, -1)
    )

    def conv_planes(w9_ref):
        acc = jnp.zeros((m2, C_PAD), f32)
        for k, off in plane_taps:
            acc = acc + jnp.dot(pad_ref[b_off + off:b_off + off + m2, :],
                                w9_ref[k], preferred_element_type=f32)
        return acc

    # ======================= network =======================
    # stem: conv1 + folded BN + ReLU (input already channel-duplicated)
    y0 = jnp.maximum(conv_full(x_ref[0].astype(f32), w1_ref) + b1_ref[...], 0.0)

    # layer1: BasicBlock(64 -> 64, stride 1, identity shortcut)
    t = jnp.maximum(conv_full(y0, w11_ref) + b11_ref[...], 0.0)
    y1 = jnp.maximum(conv_full(t, w12_ref) + b12_ref[...] + y0, 0.0)

    # layer2: BasicBlock(64 -> 128, stride 2, 1x1 projection shortcut)
    # One 0/1 selector matmul gathers every stride-2 conv operand block from
    # the flattened y1 (replaces the 4x over-computed full-res conv + the two
    # row-selection matmuls of the previous version).
    planes = jnp.dot(sel_ref[...], y1.astype(bf16), preferred_element_type=f32)
    pad_ref[b_off:b_off + L["nb"], :] = planes.astype(bf16)

    # projection shortcut: EE plane (== stride-2 downsample of y1) @ 1x1 conv
    sc = jnp.dot(pad_ref[b_off + L["p_ee"]:b_off + L["p_ee"] + m2, :],
                 wsc_ref[...], preferred_element_type=f32) + bsc_ref[...]

    t2 = jnp.maximum(conv_planes(w21_ref) + b21_ref[...], 0.0)
    y2 = jnp.maximum(conv_small(t2, w22_ref) + b22_ref[...] + sc, 0.0)

    # head: global average pool (XLU reduction) + linear, dense (8,128) store
    pooled = jnp.sum(y2, axis=0, keepdims=True) * (1.0 / m2)
    pooled = jnp.broadcast_to(pooled, (8, C_PAD)).astype(bf16)
    logits = jnp.dot(pooled, wfc_ref[...], preferred_element_type=f32) + bfc_ref[...]
    out_ref[0] = logits


# ---------------------------------------------------------------------------
# Host-side wrapper: layout prep + the single pallas_call.
# ---------------------------------------------------------------------------
def _make_plane_selector(h, w):
    """0/1 matrix (NB, h*w) gathering all stride-2 conv operand blocks of y1:
    [EE][EO][EOl][0][OE][0][OO][0][OOl]  (zero rows provide the oy==0 halo)."""
    L = _layout(h, w)
    w2 = w // 2
    m1, m2 = h * w, L["m2"]
    r2 = jnp.arange(m2)
    oy, ox = r2 // w2, r2 % w2
    cols = jnp.arange(m1)[None, :]

    def plane(py, dx):
        x = 2 * ox + dx
        src = (2 * oy + py) * w + x
        valid = (x >= 0) & (x < w)
        return ((cols == src[:, None]) & valid[:, None]).astype(jnp.float32)

    z = jnp.zeros((L["ps"], m1), jnp.float32)
    sel = jnp.concatenate([plane(0, 0), plane(0, 1), plane(0, -1), z,
                           plane(1, 0), z, plane(1, 1), z, plane(1, -1)], axis=0)
    assert sel.shape == (L["nb"], m1)
    return sel.astype(jnp.bfloat16)


def resnet_very_small_forward(packed, x_nchw):
    """packed: dict from pack_params(); x_nchw: (N, 3, H, W) float32 (PyTorch)."""
    n, cin, h, w = x_nchw.shape
    assert h % 2 == 0 and w % 2 == 0 and cin <= HALF
    L = _layout(h, w)
    m1 = L["m1"]
    assert m1 % 16 == 0 and L["m2"] % 8 == 0

    # NCHW -> flattened (N, H*W, 128) bf16 rows; the RGB channels live in
    # lanes 0:cin and are duplicated into lanes 64:64+cin so the kernel can
    # build its shifted dual slab with a single lane select.
    x = jnp.transpose(x_nchw, (0, 2, 3, 1)).astype(jnp.float32).reshape(n, m1, cin)
    x = jnp.pad(x, ((0, 0), (0, 0), (0, HALF - cin)))
    x = jnp.concatenate([x, x], axis=-1).astype(jnp.bfloat16)

    sel = _make_plane_selector(h, w)

    def _whole(shape):
        return pl.BlockSpec(shape, lambda i: (0,) * len(shape))

    w6_spec = _whole((6, C_PAD, C_PAD))
    w9_spec = _whole((9, C_PAD, C_PAD))
    b_spec = _whole((1, C_PAD))

    out = pl.pallas_call(
        functools.partial(_resnet_kernel, h, w),
        out_shape=jax.ShapeDtypeStruct((n, 8, C_PAD), jnp.float32),
        grid=(n,),
        in_specs=[
            pl.BlockSpec((1, m1, C_PAD), lambda i: (i, 0, 0)),   # per-image input
            w6_spec, b_spec,                      # stem conv1 + bn1 (paired)
            w6_spec, b_spec, w6_spec, b_spec,     # layer1 block (paired)
            _whole((L["nb"], m1)),                # stride-2 operand selector
            w9_spec, b_spec,                      # layer2 conv1 (parity planes)
            _whole((C_PAD, C_PAD)), b_spec,       # layer2 projection shortcut
            w9_spec, b_spec,                      # layer2 conv2
            _whole((C_PAD, C_PAD)), b_spec,       # fc weight / bias
        ],
        out_specs=pl.BlockSpec((1, 8, C_PAD), lambda i: (i, 0, 0)),
        scratch_shapes=[pltpu.VMEM((L["tot"], C_PAD), jnp.bfloat16)],
        compiler_params=pltpu.CompilerParams(
            # batch images split across TensorCores where available (v7x).
            dimension_semantics=("parallel",),
        ),
    )(x,
      packed["w1"], packed["b1"],
      packed["w11"], packed["b11"], packed["w12"], packed["b12"],
      sel,
      packed["w21"], packed["b21"], packed["wsc"], packed["bsc"],
      packed["w22"], packed["b22"],
      packed["wfc"], packed["bfc"])
    return out[:, 0, :NUM_CLASSES]


# ---------------------------------------------------------------------------
# Parameters: synthetic PyTorch-layout weights + eval-mode BN folding/packing.
# ---------------------------------------------------------------------------
def make_torch_like_params(key, num_classes=NUM_CLASSES):
    ks = iter(jax.random.split(key, 40))

    def conv_w(cout, cin, k):
        fan_in = cin * k * k
        return jax.random.normal(next(ks), (cout, cin, k, k), jnp.float32) * (2.0 / fan_in) ** 0.5

    def bn(c):
        return dict(
            gamma=1.0 + 0.1 * jax.random.normal(next(ks), (c,), jnp.float32),
            beta=0.1 * jax.random.normal(next(ks), (c,), jnp.float32),
            mean=0.1 * jax.random.normal(next(ks), (c,), jnp.float32),
            var=jax.random.uniform(next(ks), (c,), jnp.float32, minval=0.5, maxval=1.5),
        )

    return dict(
        conv1_w=conv_w(64, 3, 3), bn1=bn(64),
        layer1=dict(conv1_w=conv_w(64, 64, 3), bn1=bn(64),
                    conv2_w=conv_w(64, 64, 3), bn2=bn(64)),
        layer2=dict(conv1_w=conv_w(128, 64, 3), bn1=bn(128),
                    conv2_w=conv_w(128, 128, 3), bn2=bn(128),
                    sc_w=conv_w(128, 64, 1), sc_bn=bn(128)),
        fc_w=jax.random.normal(next(ks), (num_classes, 128), jnp.float32) * 0.05,
        fc_b=jax.random.normal(next(ks), (num_classes,), jnp.float32) * 0.05,
    )


def _fold_bn(bn, eps=1e-5):
    scale = bn["gamma"] * lax.rsqrt(bn["var"] + eps)
    return scale, bn["beta"] - bn["mean"] * scale


def _pack_conv3x3_pairs(w_oihw, bn, dup_out):
    """BN-folded, dx-paired weights for the full-resolution convs.

    Returns (6, 128, 128) bf16:
      j = 0..2: slab1 read at dy=j-1 -> K[0:64]=tap(dy,0), K[64:128]=tap(dy,+1)
      j = 3..5: slab2 read at dy=j-4 -> K[64:128]=tap(dy,-1)
    and a (1, 128) f32 bias.  dup_out duplicates the (<=64) output channels
    into lanes 64:128 so the next conv can build its slabs with a lane select.
    """
    cout, cin = w_oihw.shape[:2]
    assert cin <= HALF and (not dup_out or cout <= HALF)
    scale, bias = _fold_bn(bn)
    tap = jnp.transpose(w_oihw * scale[:, None, None, None], (2, 3, 1, 0))  # (kh,kw,cin,cout)
    w6 = jnp.zeros((6, C_PAD, C_PAD), jnp.float32)
    for kh in range(3):
        w6 = w6.at[kh, 0:cin, 0:cout].set(tap[kh, 1])                 # tap (dy, 0)
        w6 = w6.at[kh, HALF:HALF + cin, 0:cout].set(tap[kh, 2])       # tap (dy,+1)
        w6 = w6.at[3 + kh, HALF:HALF + cin, 0:cout].set(tap[kh, 0])   # tap (dy,-1)
    b = jnp.zeros((C_PAD,), jnp.float32).at[0:cout].set(bias)
    if dup_out:
        w6 = w6.at[:, :, HALF:HALF + cout].set(w6[:, :, 0:cout])
        b = b.at[HALF:HALF + cout].set(bias)
    return w6.astype(jnp.bfloat16), b.reshape(1, C_PAD)


def _pack_conv3x3(w_oihw, bn):
    """Standard 9-tap packing (layer2 convs): [kh*3+kw, cin->128, cout->128]."""
    cout, cin = w_oihw.shape[:2]
    scale, bias = _fold_bn(bn)
    wf = w_oihw * scale[:, None, None, None]
    wf = jnp.transpose(wf, (2, 3, 1, 0)).reshape(9, cin, cout)
    wf = jnp.pad(wf, ((0, 0), (0, C_PAD - cin), (0, C_PAD - cout)))
    b = jnp.pad(bias, (0, C_PAD - cout)).reshape(1, C_PAD)
    return wf.astype(jnp.bfloat16), b.astype(jnp.float32)


def _pack_conv1x1(w_oihw, bn):
    cout, cin = w_oihw.shape[:2]
    scale, bias = _fold_bn(bn)
    wf = (w_oihw[:, :, 0, 0] * scale[:, None]).T                      # (cin, cout)
    wf = jnp.pad(wf, ((0, C_PAD - cin), (0, C_PAD - cout)))
    b = jnp.pad(bias, (0, C_PAD - cout)).reshape(1, C_PAD)
    return wf.astype(jnp.bfloat16), b.astype(jnp.float32)


def pack_params(raw):
    """Fold eval-mode BN into the conv weights and lay everything out for the kernel."""
    p = {}
    p["w1"], p["b1"] = _pack_conv3x3_pairs(raw["conv1_w"], raw["bn1"], dup_out=True)
    l1, l2 = raw["layer1"], raw["layer2"]
    p["w11"], p["b11"] = _pack_conv3x3_pairs(l1["conv1_w"], l1["bn1"], dup_out=True)
    p["w12"], p["b12"] = _pack_conv3x3_pairs(l1["conv2_w"], l1["bn2"], dup_out=True)
    p["w21"], p["b21"] = _pack_conv3x3(l2["conv1_w"], l2["bn1"])
    p["wsc"], p["bsc"] = _pack_conv1x1(l2["sc_w"], l2["sc_bn"])
    p["w22"], p["b22"] = _pack_conv3x3(l2["conv2_w"], l2["bn2"])
    ncls, cfc = raw["fc_w"].shape
    p["wfc"] = jnp.pad(raw["fc_w"].T, ((0, C_PAD - cfc), (0, C_PAD - ncls))).astype(jnp.bfloat16)
    p["bfc"] = jnp.pad(raw["fc_b"], (0, C_PAD - ncls)).reshape(1, C_PAD).astype(jnp.float32)
    return p


# ---------------------------------------------------------------------------
if __name__ == "__main__":
    key = jax.random.PRNGKey(0)
    pkey, xkey = jax.random.split(key)
    packed = pack_params(make_torch_like_params(pkey))
    x = jax.random.normal(xkey, (2, 3, 16, 16), jnp.float32)

    fwd = jax.jit(resnet_very_small_forward)
    logits = fwd(packed, x)
    jax.block_until_ready(logits)

    assert logits.shape == (2, NUM_CLASSES), logits.shape
    assert bool(jnp.all(jnp.isfinite(logits)))
    print("KERNEL_OK")
</pallas_src>

<mosaic_0001>
module attributes {stable_mosaic.version = 11 : i64} {
  func.func @_resnet_kernel(%arg0: i32, %arg1: memref<1x256x128xbf16, #tpu.memory_space<vmem>>, %arg2: memref<6x128x128xbf16, #tpu.memory_space<vmem>>, %arg3: memref<1x128xf32, #tpu.memory_space<vmem>>, %arg4: memref<6x128x128xbf16, #tpu.memory_space<vmem>>, %arg5: memref<1x128xf32, #tpu.memory_space<vmem>>, %arg6: memref<6x128x128xbf16, #tpu.memory_space<vmem>>, %arg7: memref<1x128xf32, #tpu.memory_space<vmem>>, %arg8: memref<408x256xbf16, #tpu.memory_space<vmem>>, %arg9: memref<9x128x128xbf16, #tpu.memory_space<vmem>>, %arg10: memref<1x128xf32, #tpu.memory_space<vmem>>, %arg11: memref<128x128xbf16, #tpu.memory_space<vmem>>, %arg12: memref<1x128xf32, #tpu.memory_space<vmem>>, %arg13: memref<9x128x128xbf16, #tpu.memory_space<vmem>>, %arg14: memref<1x128xf32, #tpu.memory_space<vmem>>, %arg15: memref<128x128xbf16, #tpu.memory_space<vmem>>, %arg16: memref<1x128xf32, #tpu.memory_space<vmem>>, %arg17: memref<1x8x128xf32, #tpu.memory_space<vmem>>, %arg18: memref<1216x128xbf16, #tpu.memory_space<vmem>>) attributes {dimension_semantics = [#tpu.dimension_semantics<parallel>], iteration_bounds = array<i64: 2>, scalar_prefetch = 0 : i64, scratch_operands = 1 : i64, tpu.core_type = #tpu.core_type<tc>, window_params = [{transform_indices = @transform_0, window_bounds = array<i64: 1, 256, 128>}, {pipeline_mode = #tpu.pipeline_mode<synchronous>, transform_indices = @transform_1, window_bounds = array<i64: 6, 128, 128>}, {pipeline_mode = #tpu.pipeline_mode<synchronous>, transform_indices = @transform_2, window_bounds = array<i64: 1, 128>}, {pipeline_mode = #tpu.pipeline_mode<synchronous>, transform_indices = @transform_3, window_bounds = array<i64: 6, 128, 128>}, {pipeline_mode = #tpu.pipeline_mode<synchronous>, transform_indices = @transform_4, window_bounds = array<i64: 1, 128>}, {pipeline_mode = #tpu.pipeline_mode<synchronous>, transform_indices = @transform_5, window_bounds = array<i64: 6, 128, 128>}, {pipeline_mode = #tpu.pipeline_mode<synchronous>, transform_indices = @transform_6, window_bounds = array<i64: 1, 128>}, {pipeline_mode = #tpu.pipeline_mode<synchronous>, transform_indices = @transform_7, window_bounds = array<i64: 408, 256>}, {pipeline_mode = #tpu.pipeline_mode<synchronous>, transform_indices = @transform_8, window_bounds = array<i64: 9, 128, 128>}, {pipeline_mode = #tpu.pipeline_mode<synchronous>, transform_indices = @transform_9, window_bounds = array<i64: 1, 128>}, {pipeline_mode = #tpu.pipeline_mode<synchronous>, transform_indices = @transform_10, window_bounds = array<i64: 128, 128>}, {pipeline_mode = #tpu.pipeline_mode<synchronous>, transform_indices = @transform_11, window_bounds = array<i64: 1, 128>}, {pipeline_mode = #tpu.pipeline_mode<synchronous>, transform_indices = @transform_12, window_bounds = array<i64: 9, 128, 128>}, {pipeline_mode = #tpu.pipeline_mode<synchronous>, transform_indices = @transform_13, window_bounds = array<i64: 1, 128>}, {pipeline_mode = #tpu.pipeline_mode<synchronous>, transform_indices = @transform_14, window_bounds = array<i64: 128, 128>}, {pipeline_mode = #tpu.pipeline_mode<synchronous>, transform_indices = @transform_15, window_bounds = array<i64: 1, 128>}, {transform_indices = @transform_16, window_bounds = array<i64: 1, 8, 128>}]} {
    %cst = arith.constant 0.000000e+00 : bf16
    %0 = vector.broadcast %cst : bf16 to vector<16x128xbf16>
    %c0 = arith.constant 0 : index
    %c0_0 = arith.constant 0 : index
    %1 = vector.load %arg18[%c0, %c0_0] : memref<1216x128xbf16, #tpu.memory_space<vmem>>, vector<16x128xbf16>
    tpu.vector_store %arg18[%c0, %c0_0], %0 {strides = array<i32>} : memref<1216x128xbf16, #tpu.memory_space<vmem>>, vector<16x128xbf16>,
    %cst_1 = arith.constant 0.000000e+00 : bf16
    %2 = vector.broadcast %cst_1 : bf16 to vector<16x128xbf16>
    %c272 = arith.constant 272 : index
    %c0_2 = arith.constant 0 : index
    %3 = vector.load %arg18[%c272, %c0_2] : memref<1216x128xbf16, #tpu.memory_space<vmem>>, vector<16x128xbf16>
    tpu.vector_store %arg18[%c272, %c0_2], %2 {strides = array<i32>} : memref<1216x128xbf16, #tpu.memory_space<vmem>>, vector<16x128xbf16>,
    %cst_3 = arith.constant 0.000000e+00 : bf16
    %4 = vector.broadcast %cst_3 : bf16 to vector<16x128xbf16>
    %c544 = arith.constant 544 : index
    %c0_4 = arith.constant 0 : index
    %5 = vector.load %arg18[%c544, %c0_4] : memref<1216x128xbf16, #tpu.memory_space<vmem>>, vector<16x128xbf16>
    tpu.vector_store %arg18[%c544, %c0_4], %4 {strides = array<i32>} : memref<1216x128xbf16, #tpu.memory_space<vmem>>, vector<16x128xbf16>,
    %cst_5 = arith.constant 0.000000e+00 : bf16
    %6 = vector.broadcast %cst_5 : bf16 to vector<8x128xbf16>
    %c968 = arith.constant 968 : index
    %c0_6 = arith.constant 0 : index
    %7 = vector.load %arg18[%c968, %c0_6] : memref<1216x128xbf16, #tpu.memory_space<vmem>>, vector<8x128xbf16>
    tpu.vector_store %arg18[%c968, %c0_6], %6 {strides = array<i32>} : memref<1216x128xbf16, #tpu.memory_space<vmem>>, vector<8x128xbf16>,
    %cst_7 = arith.constant 0.000000e+00 : bf16
    %8 = vector.broadcast %cst_7 : bf16 to vector<16x128xbf16>
    %c1040 = arith.constant 1040 : index
    %c0_8 = arith.constant 0 : index
    %9 = vector.load %arg18[%c1040, %c0_8] : memref<1216x128xbf16, #tpu.memory_space<vmem>>, vector<16x128xbf16>
    tpu.vector_store %arg18[%c1040, %c0_8], %8 {strides = array<i32>} : memref<1216x128xbf16, #tpu.memory_space<vmem>>, vector<16x128xbf16>,
    %cst_9 = arith.constant 0.000000e+00 : bf16
    %10 = vector.broadcast %cst_9 : bf16 to vector<16x128xbf16>
    %c1120 = arith.constant 1120 : index
    %c0_10 = arith.constant 0 : index
    %11 = vector.load %arg18[%c1120, %c0_10] : memref<1216x128xbf16, #tpu.memory_space<vmem>>, vector<16x128xbf16>
    tpu.vector_store %arg18[%c1120, %c0_10], %10 {strides = array<i32>} : memref<1216x128xbf16, #tpu.memory_space<vmem>>, vector<16x128xbf16>,
    %cst_11 = arith.constant 0.000000e+00 : bf16
    %12 = vector.broadcast %cst_11 : bf16 to vector<16x128xbf16>
    %c1200 = arith.constant 1200 : index
    %c0_12 = arith.constant 0 : index
    %13 = vector.load %arg18[%c1200, %c0_12] : memref<1216x128xbf16, #tpu.memory_space<vmem>>, vector<16x128xbf16>
    tpu.vector_store %arg18[%c1200, %c0_12], %12 {strides = array<i32>} : memref<1216x128xbf16, #tpu.memory_space<vmem>>, vector<16x128xbf16>,
    %14 = tpu.iota {dimensions = array<i32: 1>} : vector<1x128xi32>
    %c64_i32 = arith.constant 64 : i32
    %15 = vector.broadcast %c64_i32 : i32 to vector<1x128xi32>
    %16 = arith.cmpi slt, %14, %15 : vector<1x128xi32>
    %17 = tpu.iota {dimensions = array<i32: 0>} : vector<256x1xi32>
    %c16_i32 = arith.constant 16 : i32
    %c0_i32 = arith.constant 0 : i32
    %18 = arith.cmpi eq, %c16_i32, %c0_i32 : i32
    %c1_i32 = arith.constant 1 : i32
    %19 = arith.select %18, %c1_i32, %c16_i32 : i32
    %20 = vector.broadcast %19 : i32 to vector<256x1xi32>
    %21 = arith.remsi %17, %20 : vector<256x1xi32>
    %c0_i32_13 = arith.constant 0 : i32
    %22 = vector.broadcast %c0_i32_13 : i32 to vector<256x1xi32>
    %23 = arith.cmpi ne, %21, %22 : vector<256x1xi32>
    %c0_i32_14 = arith.constant 0 : i32
    %24 = vector.broadcast %c0_i32_14 : i32 to vector<256x1xi32>
    %25 = arith.cmpi slt, %21, %24 : vector<256x1xi32>
    %c0_i32_15 = arith.constant 0 : i32
    %26 = arith.cmpi slt, %19, %c0_i32_15 : i32
    %27 = vector.broadcast %26 : i1 to vector<256x1xi1>
    %28 = vector.broadcast %27 : vector<256x1xi1> to vector<256x1xi1>
    %29 = arith.xori %25, %28 : vector<256x1xi1>
    %30 = arith.andi %29, %23 : vector<256x1xi1>
    %31 = vector.broadcast %19 : i32 to vector<256x1xi32>
    %32 = arith.addi %21, %31 : vector<256x1xi32>
    %33 = arith.select %30, %32, %21 : vector<256x1xi1>, vector<256x1xi32>
    %c0_i32_16 = arith.constant 0 : i32
    %34 = vector.broadcast %c0_i32_16 : i32 to vector<256x1xi32>
    %35 = arith.cmpi ne, %33, %34 : vector<256x1xi32>
    %c15_i32 = arith.constant 15 : i32
    %36 = vector.broadcast %c15_i32 : i32 to vector<256x1xi32>
    %37 = arith.cmpi ne, %33, %36 : vector<256x1xi32>
    %38 = tpu.iota {dimensions = array<i32: 0>} : vector<64x1xi32>
    %c8_i32 = arith.constant 8 : i32
    %c0_i32_17 = arith.constant 0 : i32
    %39 = arith.cmpi eq, %c8_i32, %c0_i32_17 : i32
    %c1_i32_18 = arith.constant 1 : i32
    %40 = arith.select %39, %c1_i32_18, %c8_i32 : i32
    %41 = vector.broadcast %40 : i32 to vector<64x1xi32>
    %42 = arith.remsi %38, %41 : vector<64x1xi32>
    %c0_i32_19 = arith.constant 0 : i32
    %43 = vector.broadcast %c0_i32_19 : i32 to vector<64x1xi32>
    %44 = arith.cmpi ne, %42, %43 : vector<64x1xi32>
    %c0_i32_20 = arith.constant 0 : i32
    %45 = vector.broadcast %c0_i32_20 : i32 to vector<64x1xi32>
    %46 = arith.cmpi slt, %42, %45 : vector<64x1xi32>
    %c0_i32_21 = arith.constant 0 : i32
    %47 = arith.cmpi slt, %40, %c0_i32_21 : i32
    %48 = vector.broadcast %47 : i1 to vector<64x1xi1>
    %49 = vector.broadcast %48 : vector<64x1xi1> to vector<64x1xi1>
    %50 = arith.xori %46, %49 : vector<64x1xi1>
    %51 = arith.andi %50, %44 : vector<64x1xi1>
    %52 = vector.broadcast %40 : i32 to vector<64x1xi32>
    %53 = arith.addi %42, %52 : vector<64x1xi32>
    %54 = arith.select %51, %53, %42 : vector<64x1xi1>, vector<64x1xi32>
    %c0_i32_22 = arith.constant 0 : i32
    %55 = vector.broadcast %c0_i32_22 : i32 to vector<64x1xi32>
    %56 = arith.cmpi ne, %54, %55 : vector<64x1xi32>
    %c7_i32 = arith.constant 7 : i32
    %57 = vector.broadcast %c7_i32 : i32 to vector<64x1xi32>
    %58 = arith.cmpi ne, %54, %57 : vector<64x1xi32>
    %c0_23 = arith.constant 0 : index
    %c0_24 = arith.constant 0 : index
    %c0_25 = arith.constant 0 : index
    %59 = vector.load %arg1[%c0_23, %c0_24, %c0_25] : memref<1x256x128xbf16, #tpu.memory_space<vmem>>, vector<1x256x128xbf16>
    %60 = vector.shape_cast %59 : vector<1x256x128xbf16> to vector<256x128xbf16>
    %61 = arith.extf %60 : vector<256x128xbf16> to vector<256x128xf32>
    %62 = vector.extract_strided_slice %61 {offsets = [1, 0], sizes = [255, 128], strides = [1, 1]} : vector<256x128xf32> to vector<255x128xf32>
    %cst_26 = arith.constant 0.000000e+00 : f32
    %63 = vector.broadcast %cst_26 : f32 to vector<1x128xf32>
    %64 = tpu.concatenate %62, %63 in 0 : vector<255x128xf32>, vector<1x128xf32> -> vector<256x128xf32>
    %cst_27 = arith.constant 0.000000e+00 : f32
    %65 = vector.shape_cast %37 : vector<256x1xi1> to vector<256x1xi1>
    %66 = vector.broadcast %65 : vector<256x1xi1> to vector<256x128xi1>
    %67 = vector.broadcast %cst_27 : f32 to vector<256x128xf32>
    %68 = arith.select %66, %64, %67 : vector<256x128xi1>, vector<256x128xf32>
    %69 = vector.shape_cast %16 : vector<1x128xi1> to vector<1x128xi1>
    %70 = vector.broadcast %69 : vector<1x128xi1> to vector<256x128xi1>
    %71 = arith.select %70, %61, %68 : vector<256x128xi1>, vector<256x128xf32>
    %cst_28 = arith.constant 0.000000e+00 : f32
    %72 = vector.broadcast %cst_28 : f32 to vector<1x128xf32>
    %73 = vector.extract_strided_slice %61 {offsets = [0, 0], sizes = [255, 128], strides = [1, 1]} : vector<256x128xf32> to vector<255x128xf32>
    %74 = tpu.concatenate %72, %73 in 0 : vector<1x128xf32>, vector<255x128xf32> -> vector<256x128xf32>
    %cst_29 = arith.constant 0.000000e+00 : f32
    %75 = vector.shape_cast %35 : vector<256x1xi1> to vector<256x1xi1>
    %76 = vector.broadcast %75 : vector<256x1xi1> to vector<256x128xi1>
    %77 = vector.broadcast %cst_29 : f32 to vector<256x128xf32>
    %78 = arith.select %76, %74, %77 : vector<256x128xi1>, vector<256x128xf32>
    %79 = vector.shape_cast %16 : vector<1x128xi1> to vector<1x128xi1>
    %80 = vector.broadcast %79 : vector<1x128xi1> to vector<256x128xi1>
    %81 = arith.select %80, %61, %78 : vector<256x128xi1>, vector<256x128xf32>
    %82 = arith.truncf %71 : vector<256x128xf32> to vector<256x128xbf16>
    %c16 = arith.constant 16 : index
    %c0_30 = arith.constant 0 : index
    %83 = vector.load %arg18[%c16, %c0_30] : memref<1216x128xbf16, #tpu.memory_space<vmem>>, vector<256x128xbf16>
    tpu.vector_store %arg18[%c16, %c0_30], %82 {strides = array<i32>} : memref<1216x128xbf16, #tpu.memory_space<vmem>>, vector<256x128xbf16>,
    %84 = arith.truncf %81 : vector<256x128xf32> to vector<256x128xbf16>
    %c288 = arith.constant 288 : index
    %c0_31 = arith.constant 0 : index
    %85 = vector.load %arg18[%c288, %c0_31] : memref<1216x128xbf16, #tpu.memory_space<vmem>>, vector<256x128xbf16>
    tpu.vector_store %arg18[%c288, %c0_31], %84 {strides = array<i32>} : memref<1216x128xbf16, #tpu.memory_space<vmem>>, vector<256x128xbf16>,
    %cst_32 = arith.constant 0.000000e+00 : f32
    %86 = vector.broadcast %cst_32 : f32 to vector<256x128xf32>
    %c0_33 = arith.constant 0 : index
    %c0_34 = arith.constant 0 : index
    %87 = vector.load %arg18[%c0_33, %c0_34] : memref<1216x128xbf16, #tpu.memory_space<vmem>>, vector<256x128xbf16>
    %c0_35 = arith.constant 0 : index
    %c0_36 = arith.constant 0 : index
    %c0_37 = arith.constant 0 : index
    %88 = vector.load %arg2[%c0_35, %c0_36, %c0_37] : memref<6x128x128xbf16, #tpu.memory_space<vmem>>, vector<1x128x128xbf16>
    %89 = vector.shape_cast %88 : vector<1x128x128xbf16> to vector<128x128xbf16>
    %cst_38 = arith.constant dense<0.000000e+00> : vector<256x128xf32>
    %90 = tpu.matmul %87, %89, %cst_38 {dimension_numbers = #tpu.dot_dimension_numbers<[1], [0], [0], [1], [0, 0, 1, 1], [], []>} : vector<256x128xbf16>, vector<128x128xbf16>, vector<256x128xf32> -> vector<256x128xf32>
    %91 = arith.addf %86, %90 : vector<256x128xf32>
    %c16_39 = arith.constant 16 : index
    %c0_40 = arith.constant 0 : index
    %92 = vector.load %arg18[%c16_39, %c0_40] : memref<1216x128xbf16, #tpu.memory_space<vmem>>, vector<256x128xbf16>
    %c1 = arith.constant 1 : index
    %c0_41 = arith.constant 0 : index
    %c0_42 = arith.constant 0 : index
    %93 = vector.load %arg2[%c1, %c0_41, %c0_42] : memref<6x128x128xbf16, #tpu.memory_space<vmem>>, vector<1x128x128xbf16>
    %94 = vector.shape_cast %93 : vector<1x128x128xbf16> to vector<128x128xbf16>
    %cst_43 = arith.constant dense<0.000000e+00> : vector<256x128xf32>
    %95 = tpu.matmul %92, %94, %cst_43 {dimension_numbers = #tpu.dot_dimension_numbers<[1], [0], [0], [1], [0, 0, 1, 1], [], []>} : vector<256x128xbf16>, vector<128x128xbf16>, vector<256x128xf32> -> vector<256x128xf32>
    %96 = arith.addf %91, %95 : vector<256x128xf32>
    %c32 = arith.constant 32 : index
    %c0_44 = arith.constant 0 : index
    %97 = vector.load %arg18[%c32, %c0_44] : memref<1216x128xbf16, #tpu.memory_space<vmem>>, vector<256x128xbf16>
    %c2 = arith.constant 2 : index
    %c0_45 = arith.constant 0 : index
    %c0_46 = arith.constant 0 : index
    %98 = vector.load %arg2[%c2, %c0_45, %c0_46] : memref<6x128x128xbf16, #tpu.memory_space<vmem>>, vector<1x128x128xbf16>
    %99 = vector.shape_cast %98 : vector<1x128x128xbf16> to vector<128x128xbf16>
    %cst_47 = arith.constant dense<0.000000e+00> : vector<256x128xf32>
    %100 = tpu.matmul %97, %99, %cst_47 {dimension_numbers = #tpu.dot_dimension_numbers<[1], [0], [0], [1], [0, 0, 1, 1], [], []>} : vector<256x128xbf16>, vector<128x128xbf16>, vector<256x128xf32> -> vector<256x128xf32>
    %101 = arith.addf %96, %100 : vector<256x128xf32>
    %c272_48 = arith.constant 272 : index
    %c0_49 = arith.constant 0 : index
    %102 = vector.load %arg18[%c272_48, %c0_49] : memref<1216x128xbf16, #tpu.memory_space<vmem>>, vector<256x128xbf16>
    %c3 = arith.constant 3 : index
    %c0_50 = arith.constant 0 : index
    %c0_51 = arith.constant 0 : index
    %103 = vector.load %arg2[%c3, %c0_50, %c0_51] : memref<6x128x128xbf16, #tpu.memory_space<vmem>>, vector<1x128x128xbf16>
    %104 = vector.shape_cast %103 : vector<1x128x128xbf16> to vector<128x128xbf16>
    %cst_52 = arith.constant dense<0.000000e+00> : vector<256x128xf32>
    %105 = tpu.matmul %102, %104, %cst_52 {dimension_numbers = #tpu.dot_dimension_numbers<[1], [0], [0], [1], [0, 0, 1, 1], [], []>} : vector<256x128xbf16>, vector<128x128xbf16>, vector<256x128xf32> -> vector<256x128xf32>
    %106 = arith.addf %101, %105 : vector<256x128xf32>
    %c288_53 = arith.constant 288 : index
    %c0_54 = arith.constant 0 : index
    %107 = vector.load %arg18[%c288_53, %c0_54] : memref<1216x128xbf16, #tpu.memory_space<vmem>>, vector<256x128xbf16>
    %c4 = arith.constant 4 : index
    %c0_55 = arith.constant 0 : index
    %c0_56 = arith.constant 0 : index
    %108 = vector.load %arg2[%c4, %c0_55, %c0_56] : memref<6x128x128xbf16, #tpu.memory_space<vmem>>, vector<1x128x128xbf16>
    %109 = vector.shape_cast %108 : vector<1x128x128xbf16> to vector<128x128xbf16>
    %cst_57 = arith.constant dense<0.000000e+00> : vector<256x128xf32>
    %110 = tpu.matmul %107, %109, %cst_57 {dimension_numbers = #tpu.dot_dimension_numbers<[1], [0], [0], [1], [0, 0, 1, 1], [], []>} : vector<256x128xbf16>, vector<128x128xbf16>, vector<256x128xf32> -> vector<256x128xf32>
    %111 = arith.addf %106, %110 : vector<256x128xf32>
    %c304 = arith.constant 304 : index
    %c0_58 = arith.constant 0 : index
    %112 = vector.load %arg18[%c304, %c0_58] : memref<1216x128xbf16, #tpu.memory_space<vmem>>, vector<256x128xbf16>
    %c5 = arith.constant 5 : index
    %c0_59 = arith.constant 0 : index
    %c0_60 = arith.constant 0 : index
    %113 = vector.load %arg2[%c5, %c0_59, %c0_60] : memref<6x128x128xbf16, #tpu.memory_space<vmem>>, vector<1x128x128xbf16>
    %114 = vector.shape_cast %113 : vector<1x128x128xbf16> to vector<128x128xbf16>
    %cst_61 = arith.constant dense<0.000000e+00> : vector<256x128xf32>
    %115 = tpu.matmul %112, %114, %cst_61 {dimension_numbers = #tpu.dot_dimension_numbers<[1], [0], [0], [1], [0, 0, 1, 1], [], []>} : vector<256x128xbf16>, vector<128x128xbf16>, vector<256x128xf32> -> vector<256x128xf32>
    %116 = arith.addf %111, %115 : vector<256x128xf32>
    %c0_62 = arith.constant 0 : index
    %c0_63 = arith.constant 0 : index
    %117 = vector.load %arg3[%c0_62, %c0_63] : memref<1x128xf32, #tpu.memory_space<vmem>>, vector<1x128xf32>
    %118 = vector.broadcast %117 : vector<1x128xf32> to vector<256x128xf32>
    %119 = arith.addf %116, %118 : vector<256x128xf32>
    %cst_64 = arith.constant 0.000000e+00 : f32
    %120 = vector.broadcast %cst_64 : f32 to vector<256x128xf32>
    %121 = arith.maximumf %119, %120 : vector<256x128xf32>
    %122 = vector.extract_strided_slice %121 {offsets = [1, 0], sizes = [255, 128], strides = [1, 1]} : vector<256x128xf32> to vector<255x128xf32>
    %cst_65 = arith.constant 0.000000e+00 : f32
    %123 = vector.broadcast %cst_65 : f32 to vector<1x128xf32>
    %124 = tpu.concatenate %122, %123 in 0 : vector<255x128xf32>, vector<1x128xf32> -> vector<256x128xf32>
    %cst_66 = arith.constant 0.000000e+00 : f32
    %125 = vector.shape_cast %37 : vector<256x1xi1> to vector<256x1xi1>
    %126 = vector.broadcast %125 : vector<256x1xi1> to vector<256x128xi1>
    %127 = vector.broadcast %cst_66 : f32 to vector<256x128xf32>
    %128 = arith.select %126, %124, %127 : vector<256x128xi1>, vector<256x128xf32>
    %129 = vector.shape_cast %16 : vector<1x128xi1> to vector<1x128xi1>
    %130 = vector.broadcast %129 : vector<1x128xi1> to vector<256x128xi1>
    %131 = arith.select %130, %121, %128 : vector<256x128xi1>, vector<256x128xf32>
    %cst_67 = arith.constant 0.000000e+00 : f32
    %132 = vector.broadcast %cst_67 : f32 to vector<1x128xf32>
    %133 = vector.extract_strided_slice %121 {offsets = [0, 0], sizes = [255, 128], strides = [1, 1]} : vector<256x128xf32> to vector<255x128xf32>
    %134 = tpu.concatenate %132, %133 in 0 : vector<1x128xf32>, vector<255x128xf32> -> vector<256x128xf32>
    %cst_68 = arith.constant 0.000000e+00 : f32
    %135 = vector.shape_cast %35 : vector<256x1xi1> to vector<256x1xi1>
    %136 = vector.broadcast %135 : vector<256x1xi1> to vector<256x128xi1>
    %137 = vector.broadcast %cst_68 : f32 to vector<256x128xf32>
    %138 = arith.select %136, %134, %137 : vector<256x128xi1>, vector<256x128xf32>
    %139 = vector.shape_cast %16 : vector<1x128xi1> to vector<1x128xi1>
    %140 = vector.broadcast %139 : vector<1x128xi1> to vector<256x128xi1>
    %141 = arith.select %140, %121, %138 : vector<256x128xi1>, vector<256x128xf32>
    %142 = arith.truncf %131 : vector<256x128xf32> to vector<256x128xbf16>
    %c16_69 = arith.constant 16 : index
    %c0_70 = arith.constant 0 : index
    %143 = vector.load %arg18[%c16_69, %c0_70] : memref<1216x128xbf16, #tpu.memory_space<vmem>>, vector<256x128xbf16>
    tpu.vector_store %arg18[%c16_69, %c0_70], %142 {strides = array<i32>} : memref<1216x128xbf16, #tpu.memory_space<vmem>>, vector<256x128xbf16>,
    %144 = arith.truncf %141 : vector<256x128xf32> to vector<256x128xbf16>
    %c288_71 = arith.constant 288 : index
    %c0_72 = arith.constant 0 : index
    %145 = vector.load %arg18[%c288_71, %c0_72] : memref<1216x128xbf16, #tpu.memory_space<vmem>>, vector<256x128xbf16>
    tpu.vector_store %arg18[%c288_71, %c0_72], %144 {strides = array<i32>} : memref<1216x128xbf16, #tpu.memory_space<vmem>>, vector<256x128xbf16>,
    %cst_73 = arith.constant 0.000000e+00 : f32
    %146 = vector.broadcast %cst_73 : f32 to vector<256x128xf32>
    %c0_74 = arith.constant 0 : index
    %c0_75 = arith.constant 0 : index
    %147 = vector.load %arg18[%c0_74, %c0_75] : memref<1216x128xbf16, #tpu.memory_space<vmem>>, vector<256x128xbf16>
    %c0_76 = arith.constant 0 : index
    %c0_77 = arith.constant 0 : index
    %c0_78 = arith.constant 0 : index
    %148 = vector.load %arg4[%c0_76, %c0_77, %c0_78] : memref<6x128x128xbf16, #tpu.memory_space<vmem>>, vector<1x128x128xbf16>
    %149 = vector.shape_cast %148 : vector<1x128x128xbf16> to vector<128x128xbf16>
    %cst_79 = arith.constant dense<0.000000e+00> : vector<256x128xf32>
    %150 = tpu.matmul %147, %149, %cst_79 {dimension_numbers = #tpu.dot_dimension_numbers<[1], [0], [0], [1], [0, 0, 1, 1], [], []>} : vector<256x128xbf16>, vector<128x128xbf16>, vector<256x128xf32> -> vector<256x128xf32>
    %151 = arith.addf %146, %150 : vector<256x128xf32>
    %c16_80 = arith.constant 16 : index
    %c0_81 = arith.constant 0 : index
    %152 = vector.load %arg18[%c16_80, %c0_81] : memref<1216x128xbf16, #tpu.memory_space<vmem>>, vector<256x128xbf16>
    %c1_82 = arith.constant 1 : index
    %c0_83 = arith.constant 0 : index
    %c0_84 = arith.constant 0 : index
    %153 = vector.load %arg4[%c1_82, %c0_83, %c0_84] : memref<6x128x128xbf16, #tpu.memory_space<vmem>>, vector<1x128x128xbf16>
    %154 = vector.shape_cast %153 : vector<1x128x128xbf16> to vector<128x128xbf16>
    %cst_85 = arith.constant dense<0.000000e+00> : vector<256x128xf32>
    %155 = tpu.matmul %152, %154, %cst_85 {dimension_numbers = #tpu.dot_dimension_numbers<[1], [0], [0], [1], [0, 0, 1, 1], [], []>} : vector<256x128xbf16>, vector<128x128xbf16>, vector<256x128xf32> -> vector<256x128xf32>
    %156 = arith.addf %151, %155 : vector<256x128xf32>
    %c32_86 = arith.constant 32 : index
    %c0_87 = arith.constant 0 : index
    %157 = vector.load %arg18[%c32_86, %c0_87] : memref<1216x128xbf16, #tpu.memory_space<vmem>>, vector<256x128xbf16>
    %c2_88 = arith.constant 2 : index
    %c0_89 = arith.constant 0 : index
    %c0_90 = arith.constant 0 : index
    %158 = vector.load %arg4[%c2_88, %c0_89, %c0_90] : memref<6x128x128xbf16, #tpu.memory_space<vmem>>, vector<1x128x128xbf16>
    %159 = vector.shape_cast %158 : vector<1x128x128xbf16> to vector<128x128xbf16>
    %cst_91 = arith.constant dense<0.000000e+00> : vector<256x128xf32>
    %160 = tpu.matmul %157, %159, %cst_91 {dimension_numbers = #tpu.dot_dimension_numbers<[1], [0], [0], [1], [0, 0, 1, 1], [], []>} : vector<256x128xbf16>, vector<128x128xbf16>, vector<256x128xf32> -> vector<256x128xf32>
    %161 = arith.addf %156, %160 : vector<256x128xf32>
    %c272_92 = arith.constant 272 : index
    %c0_93 = arith.constant 0 : index
    %162 = vector.load %arg18[%c272_92, %c0_93] : memref<1216x128xbf16, #tpu.memory_space<vmem>>, vector<256x128xbf16>
    %c3_94 = arith.constant 3 : index
    %c0_95 = arith.constant 0 : index
    %c0_96 = arith.constant 0 : index
    %163 = vector.load %arg4[%c3_94, %c0_95, %c0_96] : memref<6x128x128xbf16, #tpu.memory_space<vmem>>, vector<1x128x128xbf16>
    %164 = vector.shape_cast %163 : vector<1x128x128xbf16> to vector<128x128xbf16>
    %cst_97 = arith.constant dense<0.000000e+00> : vector<256x128xf32>
    %165 = tpu.matmul %162, %164, %cst_97 {dimension_numbers = #tpu.dot_dimension_numbers<[1], [0], [0], [1], [0, 0, 1, 1], [], []>} : vector<256x128xbf16>, vector<128x128xbf16>, vector<256x128xf32> -> vector<256x128xf32>
    %166 = arith.addf %161, %165 : vector<256x128xf32>
    %c288_98 = arith.constant 288 : index
    %c0_99 = arith.constant 0 : index
    %167 = vector.load %arg18[%c288_98, %c0_99] : memref<1216x128xbf16, #tpu.memory_space<vmem>>, vector<256x128xbf16>
    %c4_100 = arith.constant 4 : index
    %c0_101 = arith.constant 0 : index
    %c0_102 = arith.constant 0 : index
    %168 = vector.load %arg4[%c4_100, %c0_101, %c0_102] : memref<6x128x128xbf16, #tpu.memory_space<vmem>>, vector<1x128x128xbf16>
    %169 = vector.shape_cast %168 : vector<1x128x128xbf16> to vector<128x128xbf16>
    %cst_103 = arith.constant dense<0.000000e+00> : vector<256x128xf32>
    %170 = tpu.matmul %167, %169, %cst_103 {dimension_numbers = #tpu.dot_dimension_numbers<[1], [0], [0], [1], [0, 0, 1, 1], [], []>} : vector<256x128xbf16>, vector<128x128xbf16>, vector<256x128xf32> -> vector<256x128xf32>
    %171 = arith.addf %166, %170 : vector<256x128xf32>
    %c304_104 = arith.constant 304 : index
    %c0_105 = arith.constant 0 : index
    %172 = vector.load %arg18[%c304_104, %c0_105] : memref<1216x128xbf16, #tpu.memory_space<vmem>>, vector<256x128xbf16>
    %c5_106 = arith.constant 5 : index
    %c0_107 = arith.constant 0 : index
    %c0_108 = arith.constant 0 : index
    %173 = vector.load %arg4[%c5_106, %c0_107, %c0_108] : memref<6x128x128xbf16, #tpu.memory_space<vmem>>, vector<1x128x128xbf16>
    %174 = vector.shape_cast %173 : vector<1x128x128xbf16> to vector<128x128xbf16>
    %cst_109 = arith.constant dense<0.000000e+00> : vector<256x128xf32>
    %175 = tpu.matmul %172, %174, %cst_109 {dimension_numbers = #tpu.dot_dimension_numbers<[1], [0], [0], [1], [0, 0, 1, 1], [], []>} : vector<256x128xbf16>, vector<128x128xbf16>, vector<256x128xf32> -> vector<256x128xf32>
    %176 = arith.addf %171, %175 : vector<256x128xf32>
    %c0_110 = arith.constant 0 : index
    %c0_111 = arith.constant 0 : index
    %177 = vector.load %arg5[%c0_110, %c0_111] : memref<1x128xf32, #tpu.memory_space<vmem>>, vector<1x128xf32>
    %178 = vector.broadcast %177 : vector<1x128xf32> to vector<256x128xf32>
    %179 = arith.addf %176, %178 : vector<256x128xf32>
    %cst_112 = arith.constant 0.000000e+00 : f32
    %180 = vector.broadcast %cst_112 : f32 to vector<256x128xf32>
    %181 = arith.maximumf %179, %180 : vector<256x128xf32>
    %182 = vector.extract_strided_slice %181 {offsets = [1, 0], sizes = [255, 128], strides = [1, 1]} : vector<256x128xf32> to vector<255x128xf32>
    %cst_113 = arith.constant 0.000000e+00 : f32
    %183 = vector.broadcast %cst_113 : f32 to vector<1x128xf32>
    %184 = tpu.concatenate %182, %183 in 0 : vector<255x128xf32>, vector<1x128xf32> -> vector<256x128xf32>
    %cst_114 = arith.constant 0.000000e+00 : f32
    %185 = vector.shape_cast %37 : vector<256x1xi1> to vector<256x1xi1>
    %186 = vector.broadcast %185 : vector<256x1xi1> to vector<256x128xi1>
    %187 = vector.broadcast %cst_114 : f32 to vector<256x128xf32>
    %188 = arith.select %186, %184, %187 : vector<256x128xi1>, vector<256x128xf32>
    %189 = vector.shape_cast %16 : vector<1x128xi1> to vector<1x128xi1>
    %190 = vector.broadcast %189 : vector<1x128xi1> to vector<256x128xi1>
    %191 = arith.select %190, %181, %188 : vector<256x128xi1>, vector<256x128xf32>
    %cst_115 = arith.constant 0.000000e+00 : f32
    %192 = vector.broadcast %cst_115 : f32 to vector<1x128xf32>
    %193 = vector.extract_strided_slice %181 {offsets = [0, 0], sizes = [255, 128], strides = [1, 1]} : vector<256x128xf32> to vector<255x128xf32>
    %194 = tpu.concatenate %192, %193 in 0 : vector<1x128xf32>, vector<255x128xf32> -> vector<256x128xf32>
    %cst_116 = arith.constant 0.000000e+00 : f32
    %195 = vector.shape_cast %35 : vector<256x1xi1> to vector<256x1xi1>
    %196 = vector.broadcast %195 : vector<256x1xi1> to vector<256x128xi1>
    %197 = vector.broadcast %cst_116 : f32 to vector<256x128xf32>
    %198 = arith.select %196, %194, %197 : vector<256x128xi1>, vector<256x128xf32>
    %199 = vector.shape_cast %16 : vector<1x128xi1> to vector<1x128xi1>
    %200 = vector.broadcast %199 : vector<1x128xi1> to vector<256x128xi1>
    %201 = arith.select %200, %181, %198 : vector<256x128xi1>, vector<256x128xf32>
    %202 = arith.truncf %191 : vector<256x128xf32> to vector<256x128xbf16>
    %c16_117 = arith.constant 16 : index
    %c0_118 = arith.constant 0 : index
    %203 = vector.load %arg18[%c16_117, %c0_118] : memref<1216x128xbf16, #tpu.memory_space<vmem>>, vector<256x128xbf16>
    tpu.vector_store %arg18[%c16_117, %c0_118], %202 {strides = array<i32>} : memref<1216x128xbf16, #tpu.memory_space<vmem>>, vector<256x128xbf16>,
    %204 = arith.truncf %201 : vector<256x128xf32> to vector<256x128xbf16>
    %c288_119 = arith.constant 288 : index
    %c0_120 = arith.constant 0 : index
    %205 = vector.load %arg18[%c288_119, %c0_120] : memref<1216x128xbf16, #tpu.memory_space<vmem>>, vector<256x128xbf16>
    tpu.vector_store %arg18[%c288_119, %c0_120], %204 {strides = array<i32>} : memref<1216x128xbf16, #tpu.memory_space<vmem>>, vector<256x128xbf16>,
    %cst_121 = arith.constant 0.000000e+00 : f32
    %206 = vector.broadcast %cst_121 : f32 to vector<256x128xf32>
    %c0_122 = arith.constant 0 : index
    %c0_123 = arith.constant 0 : index
    %207 = vector.load %arg18[%c0_122, %c0_123] : memref<1216x128xbf16, #tpu.memory_space<vmem>>, vector<256x128xbf16>
    %c0_124 = arith.constant 0 : index
    %c0_125 = arith.constant 0 : index
    %c0_126 = arith.constant 0 : index
    %208 = vector.load %arg6[%c0_124, %c0_125, %c0_126] : memref<6x128x128xbf16, #tpu.memory_space<vmem>>, vector<1x128x128xbf16>
    %209 = vector.shape_cast %208 : vector<1x128x128xbf16> to vector<128x128xbf16>
    %cst_127 = arith.constant dense<0.000000e+00> : vector<256x128xf32>
    %210 = tpu.matmul %207, %209, %cst_127 {dimension_numbers = #tpu.dot_dimension_numbers<[1], [0], [0], [1], [0, 0, 1, 1], [], []>} : vector<256x128xbf16>, vector<128x128xbf16>, vector<256x128xf32> -> vector<256x128xf32>
    %211 = arith.addf %206, %210 : vector<256x128xf32>
    %c16_128 = arith.constant 16 : index
    %c0_129 = arith.constant 0 : index
    %212 = vector.load %arg18[%c16_128, %c0_129] : memref<1216x128xbf16, #tpu.memory_space<vmem>>, vector<256x128xbf16>
    %c1_130 = arith.constant 1 : index
    %c0_131 = arith.constant 0 : index
    %c0_132 = arith.constant 0 : index
    %213 = vector.load %arg6[%c1_130, %c0_131, %c0_132] : memref<6x128x128xbf16, #tpu.memory_space<vmem>>, vector<1x128x128xbf16>
    %214 = vector.shape_cast %213 : vector<1x128x128xbf16> to vector<128x128xbf16>
    %cst_133 = arith.constant dense<0.000000e+00> : vector<256x128xf32>
    %215 = tpu.matmul %212, %214, %cst_133 {dimension_numbers = #tpu.dot_dimension_numbers<[1], [0], [0], [1], [0, 0, 1, 1], [], []>} : vector<256x128xbf16>, vector<128x128xbf16>, vector<256x128xf32> -> vector<256x128xf32>
    %216 = arith.addf %211, %215 : vector<256x128xf32>
    %c32_134 = arith.constant 32 : index
    %c0_135 = arith.constant 0 : index
    %217 = vector.load %arg18[%c32_134, %c0_135] : memref<1216x128xbf16, #tpu.memory_space<vmem>>, vector<256x128xbf16>
    %c2_136 = arith.constant 2 : index
    %c0_137 = arith.constant 0 : index
    %c0_138 = arith.constant 0 : index
    %218 = vector.load %arg6[%c2_136, %c0_137, %c0_138] : memref<6x128x128xbf16, #tpu.memory_space<vmem>>, vector<1x128x128xbf16>
    %219 = vector.shape_cast %218 : vector<1x128x128xbf16> to vector<128x128xbf16>
    %cst_139 = arith.constant dense<0.000000e+00> : vector<256x128xf32>
    %220 = tpu.matmul %217, %219, %cst_139 {dimension_numbers = #tpu.dot_dimension_numbers<[1], [0], [0], [1], [0, 0, 1, 1], [], []>} : vector<256x128xbf16>, vector<128x128xbf16>, vector<256x128xf32> -> vector<256x128xf32>
    %221 = arith.addf %216, %220 : vector<256x128xf32>
    %c272_140 = arith.constant 272 : index
    %c0_141 = arith.constant 0 : index
    %222 = vector.load %arg18[%c272_140, %c0_141] : memref<1216x128xbf16, #tpu.memory_space<vmem>>, vector<256x128xbf16>
    %c3_142 = arith.constant 3 : index
    %c0_143 = arith.constant 0 : index
    %c0_144 = arith.constant 0 : index
    %223 = vector.load %arg6[%c3_142, %c0_143, %c0_144] : memref<6x128x128xbf16, #tpu.memory_space<vmem>>, vector<1x128x128xbf16>
    %224 = vector.shape_cast %223 : vector<1x128x128xbf16> to vector<128x128xbf16>
    %cst_145 = arith.constant dense<0.000000e+00> : vector<256x128xf32>
    %225 = tpu.matmul %222, %224, %cst_145 {dimension_numbers = #tpu.dot_dimension_numbers<[1], [0], [0], [1], [0, 0, 1, 1], [], []>} : vector<256x128xbf16>, vector<128x128xbf16>, vector<256x128xf32> -> vector<256x128xf32>
    %226 = arith.addf %221, %225 : vector<256x128xf32>
    %c288_146 = arith.constant 288 : index
    %c0_147 = arith.constant 0 : index
    %227 = vector.load %arg18[%c288_146, %c0_147] : memref<1216x128xbf16, #tpu.memory_space<vmem>>, vector<256x128xbf16>
    %c4_148 = arith.constant 4 : index
    %c0_149 = arith.constant 0 : index
    %c0_150 = arith.constant 0 : index
    %228 = vector.load %arg6[%c4_148, %c0_149, %c0_150] : memref<6x128x128xbf16, #tpu.memory_space<vmem>>, vector<1x128x128xbf16>
    %229 = vector.shape_cast %228 : vector<1x128x128xbf16> to vector<128x128xbf16>
    %cst_151 = arith.constant dense<0.000000e+00> : vector<256x128xf32>
    %230 = tpu.matmul %227, %229, %cst_151 {dimension_numbers = #tpu.dot_dimension_numbers<[1], [0], [0], [1], [0, 0, 1, 1], [], []>} : vector<256x128xbf16>, vector<128x128xbf16>, vector<256x128xf32> -> vector<256x128xf32>
    %231 = arith.addf %226, %230 : vector<256x128xf32>
    %c304_152 = arith.constant 304 : index
    %c0_153 = arith.constant 0 : index
    %232 = vector.load %arg18[%c304_152, %c0_153] : memref<1216x128xbf16, #tpu.memory_space<vmem>>, vector<256x128xbf16>
    %c5_154 = arith.constant 5 : index
    %c0_155 = arith.constant 0 : index
    %c0_156 = arith.constant 0 : index
    %233 = vector.load %arg6[%c5_154, %c0_155, %c0_156] : memref<6x128x128xbf16, #tpu.memory_space<vmem>>, vector<1x128x128xbf16>
    %234 = vector.shape_cast %233 : vector<1x128x128xbf16> to vector<128x128xbf16>
    %cst_157 = arith.constant dense<0.000000e+00> : vector<256x128xf32>
    %235 = tpu.matmul %232, %234, %cst_157 {dimension_numbers = #tpu.dot_dimension_numbers<[1], [0], [0], [1], [0, 0, 1, 1], [], []>} : vector<256x128xbf16>, vector<128x128xbf16>, vector<256x128xf32> -> vector<256x128xf32>
    %236 = arith.addf %231, %235 : vector<256x128xf32>
    %c0_158 = arith.constant 0 : index
    %c0_159 = arith.constant 0 : index
    %237 = vector.load %arg7[%c0_158, %c0_159] : memref<1x128xf32, #tpu.memory_space<vmem>>, vector<1x128xf32>
    %238 = vector.broadcast %237 : vector<1x128xf32> to vector<256x128xf32>
    %239 = arith.addf %236, %238 : vector<256x128xf32>
    %240 = arith.addf %239, %121 : vector<256x128xf32>
    %cst_160 = arith.constant 0.000000e+00 : f32
    %241 = vector.broadcast %cst_160 : f32 to vector<256x128xf32>
    %242 = arith.maximumf %240, %241 : vector<256x128xf32>
    %c0_161 = arith.constant 0 : index
    %c0_162 = arith.constant 0 : index
    %243 = vector.load %arg8[%c0_161, %c0_162] : memref<408x256xbf16, #tpu.memory_space<vmem>>, vector<408x256xbf16>
    %244 = arith.truncf %242 : vector<256x128xf32> to vector<256x128xbf16>
    %cst_163 = arith.constant dense<0.000000e+00> : vector<408x128xf32>
    %245 = tpu.matmul %243, %244, %cst_163 {dimension_numbers = #tpu.dot_dimension_numbers<[1], [0], [0], [1], [0, 0, 1, 1], [], []>} : vector<408x256xbf16>, vector<256x128xbf16>, vector<408x128xf32> -> vector<408x128xf32>
    %246 = arith.truncf %245 : vector<408x128xf32> to vector<408x128xbf16>
    %c560 = arith.constant 560 : index
    %c0_164 = arith.constant 0 : index
    %247 = vector.load %arg18[%c560, %c0_164] : memref<1216x128xbf16, #tpu.memory_space<vmem>>, vector<408x128xbf16>
    tpu.vector_store %arg18[%c560, %c0_164], %246 {strides = array<i32>} : memref<1216x128xbf16, #tpu.memory_space<vmem>>, vector<408x128xbf16>,
    %c560_165 = arith.constant 560 : index
    %c0_166 = arith.constant 0 : index
    %248 = vector.load %arg18[%c560_165, %c0_166] : memref<1216x128xbf16, #tpu.memory_space<vmem>>, vector<64x128xbf16>
    %c0_167 = arith.constant 0 : index
    %c0_168 = arith.constant 0 : index
    %249 = vector.load %arg11[%c0_167, %c0_168] : memref<128x128xbf16, #tpu.memory_space<vmem>>, vector<128x128xbf16>
    %cst_169 = arith.constant dense<0.000000e+00> : vector<64x128xf32>
    %250 = tpu.matmul %248, %249, %cst_169 {dimension_numbers = #tpu.dot_dimension_numbers<[1], [0], [0], [1], [0, 0, 1, 1], [], []>} : vector<64x128xbf16>, vector<128x128xbf16>, vector<64x128xf32> -> vector<64x128xf32>
    %c0_170 = arith.constant 0 : index
    %c0_171 = arith.constant 0 : index
    %251 = vector.load %arg12[%c0_170, %c0_171] : memref<1x128xf32, #tpu.memory_space<vmem>>, vector<1x128xf32>
    %252 = vector.broadcast %251 : vector<1x128xf32> to vector<64x128xf32>
    %253 = arith.addf %250, %252 : vector<64x128xf32>
    %cst_172 = arith.constant 0.000000e+00 : f32
    %254 = vector.broadcast %cst_172 : f32 to vector<64x128xf32>
    %c560_173 = arith.constant 560 : index
    %c0_174 = arith.constant 0 : index
    %255 = vector.load %arg18[%c560_173, %c0_174] : memref<1216x128xbf16, #tpu.memory_space<vmem>>, vector<64x128xbf16>
    %c4_175 = arith.constant 4 : index
    %c0_176 = arith.constant 0 : index
    %c0_177 = arith.constant 0 : index
    %256 = vector.load %arg9[%c4_175, %c0_176, %c0_177] : memref<9x128x128xbf16, #tpu.memory_space<vmem>>, vector<1x128x128xbf16>
    %257 = vector.shape_cast %256 : vector<1x128x128xbf16> to vector<128x128xbf16>
    %cst_178 = arith.constant dense<0.000000e+00> : vector<64x128xf32>
    %258 = tpu.matmul %255, %257, %cst_178 {dimension_numbers = #tpu.dot_dimension_numbers<[1], [0], [0], [1], [0, 0, 1, 1], [], []>} : vector<64x128xbf16>, vector<128x128xbf16>, vector<64x128xf32> -> vector<64x128xf32>
    %259 = arith.addf %254, %258 : vector<64x128xf32>
    %c624 = arith.constant 624 : index
    %c0_179 = arith.constant 0 : index
    %260 = vector.load %arg18[%c624, %c0_179] : memref<1216x128xbf16, #tpu.memory_space<vmem>>, vector<64x128xbf16>
    %c5_180 = arith.constant 5 : index
    %c0_181 = arith.constant 0 : index
    %c0_182 = arith.constant 0 : index
    %261 = vector.load %arg9[%c5_180, %c0_181, %c0_182] : memref<9x128x128xbf16, #tpu.memory_space<vmem>>, vector<1x128x128xbf16>
    %262 = vector.shape_cast %261 : vector<1x128x128xbf16> to vector<128x128xbf16>
    %cst_183 = arith.constant dense<0.000000e+00> : vector<64x128xf32>
    %263 = tpu.matmul %260, %262, %cst_183 {dimension_numbers = #tpu.dot_dimension_numbers<[1], [0], [0], [1], [0, 0, 1, 1], [], []>} : vector<64x128xbf16>, vector<128x128xbf16>, vector<64x128xf32> -> vector<64x128xf32>
    %264 = arith.addf %259, %263 : vector<64x128xf32>
    %c688 = arith.constant 688 : index
    %c0_184 = arith.constant 0 : index
    %265 = vector.load %arg18[%c688, %c0_184] : memref<1216x128xbf16, #tpu.memory_space<vmem>>, vector<64x128xbf16>
    %c3_185 = arith.constant 3 : index
    %c0_186 = arith.constant 0 : index
    %c0_187 = arith.constant 0 : index
    %266 = vector.load %arg9[%c3_185, %c0_186, %c0_187] : memref<9x128x128xbf16, #tpu.memory_space<vmem>>, vector<1x128x128xbf16>
    %267 = vector.shape_cast %266 : vector<1x128x128xbf16> to vector<128x128xbf16>
    %cst_188 = arith.constant dense<0.000000e+00> : vector<64x128xf32>
    %268 = tpu.matmul %265, %267, %cst_188 {dimension_numbers = #tpu.dot_dimension_numbers<[1], [0], [0], [1], [0, 0, 1, 1], [], []>} : vector<64x128xbf16>, vector<128x128xbf16>, vector<64x128xf32> -> vector<64x128xf32>
    %269 = arith.addf %264, %268 : vector<64x128xf32>
    %c760 = arith.constant 760 : index
    %c0_189 = arith.constant 0 : index
    %270 = vector.load %arg18[%c760, %c0_189] : memref<1216x128xbf16, #tpu.memory_space<vmem>>, vector<64x128xbf16>
    %c7 = arith.constant 7 : index
    %c0_190 = arith.constant 0 : index
    %c0_191 = arith.constant 0 : index
    %271 = vector.load %arg9[%c7, %c0_190, %c0_191] : memref<9x128x128xbf16, #tpu.memory_space<vmem>>, vector<1x128x128xbf16>
    %272 = vector.shape_cast %271 : vector<1x128x128xbf16> to vector<128x128xbf16>
    %cst_192 = arith.constant dense<0.000000e+00> : vector<64x128xf32>
    %273 = tpu.matmul %270, %272, %cst_192 {dimension_numbers = #tpu.dot_dimension_numbers<[1], [0], [0], [1], [0, 0, 1, 1], [], []>} : vector<64x128xbf16>, vector<128x128xbf16>, vector<64x128xf32> -> vector<64x128xf32>
    %274 = arith.addf %269, %273 : vector<64x128xf32>
    %c832 = arith.constant 832 : index
    %c0_193 = arith.constant 0 : index
    %275 = vector.load %arg18[%c832, %c0_193] : memref<1216x128xbf16, #tpu.memory_space<vmem>>, vector<64x128xbf16>
    %c8 = arith.constant 8 : index
    %c0_194 = arith.constant 0 : index
    %c0_195 = arith.constant 0 : index
    %276 = vector.load %arg9[%c8, %c0_194, %c0_195] : memref<9x128x128xbf16, #tpu.memory_space<vmem>>, vector<1x128x128xbf16>
    %277 = vector.shape_cast %276 : vector<1x128x128xbf16> to vector<128x128xbf16>
    %cst_196 = arith.constant dense<0.000000e+00> : vector<64x128xf32>
    %278 = tpu.matmul %275, %277, %cst_196 {dimension_numbers = #tpu.dot_dimension_numbers<[1], [0], [0], [1], [0, 0, 1, 1], [], []>} : vector<64x128xbf16>, vector<128x128xbf16>, vector<64x128xf32> -> vector<64x128xf32>
    %279 = arith.addf %274, %278 : vector<64x128xf32>
    %c904 = arith.constant 904 : index
    %c0_197 = arith.constant 0 : index
    %280 = vector.load %arg18[%c904, %c0_197] : memref<1216x128xbf16, #tpu.memory_space<vmem>>, vector<64x128xbf16>
    %c6 = arith.constant 6 : index
    %c0_198 = arith.constant 0 : index
    %c0_199 = arith.constant 0 : index
    %281 = vector.load %arg9[%c6, %c0_198, %c0_199] : memref<9x128x128xbf16, #tpu.memory_space<vmem>>, vector<1x128x128xbf16>
    %282 = vector.shape_cast %281 : vector<1x128x128xbf16> to vector<128x128xbf16>
    %cst_200 = arith.constant dense<0.000000e+00> : vector<64x128xf32>
    %283 = tpu.matmul %280, %282, %cst_200 {dimension_numbers = #tpu.dot_dimension_numbers<[1], [0], [0], [1], [0, 0, 1, 1], [], []>} : vector<64x128xbf16>, vector<128x128xbf16>, vector<64x128xf32> -> vector<64x128xf32>
    %284 = arith.addf %279, %283 : vector<64x128xf32>
    %c752 = arith.constant 752 : index
    %c0_201 = arith.constant 0 : index
    %285 = vector.load %arg18[%c752, %c0_201] : memref<1216x128xbf16, #tpu.memory_space<vmem>>, vector<64x128xbf16>
    %c1_202 = arith.constant 1 : index
    %c0_203 = arith.constant 0 : index
    %c0_204 = arith.constant 0 : index
    %286 = vector.load %arg9[%c1_202, %c0_203, %c0_204] : memref<9x128x128xbf16, #tpu.memory_space<vmem>>, vector<1x128x128xbf16>
    %287 = vector.shape_cast %286 : vector<1x128x128xbf16> to vector<128x128xbf16>
    %cst_205 = arith.constant dense<0.000000e+00> : vector<64x128xf32>
    %288 = tpu.matmul %285, %287, %cst_205 {dimension_numbers = #tpu.dot_dimension_numbers<[1], [0], [0], [1], [0, 0, 1, 1], [], []>} : vector<64x128xbf16>, vector<128x128xbf16>, vector<64x128xf32> -> vector<64x128xf32>
    %289 = arith.addf %284, %288 : vector<64x128xf32>
    %c824 = arith.constant 824 : index
    %c0_206 = arith.constant 0 : index
    %290 = vector.load %arg18[%c824, %c0_206] : memref<1216x128xbf16, #tpu.memory_space<vmem>>, vector<64x128xbf16>
    %c2_207 = arith.constant 2 : index
    %c0_208 = arith.constant 0 : index
    %c0_209 = arith.constant 0 : index
    %291 = vector.load %arg9[%c2_207, %c0_208, %c0_209] : memref<9x128x128xbf16, #tpu.memory_space<vmem>>, vector<1x128x128xbf16>
    %292 = vector.shape_cast %291 : vector<1x128x128xbf16> to vector<128x128xbf16>
    %cst_210 = arith.constant dense<0.000000e+00> : vector<64x128xf32>
    %293 = tpu.matmul %290, %292, %cst_210 {dimension_numbers = #tpu.dot_dimension_numbers<[1], [0], [0], [1], [0, 0, 1, 1], [], []>} : vector<64x128xbf16>, vector<128x128xbf16>, vector<64x128xf32> -> vector<64x128xf32>
    %294 = arith.addf %289, %293 : vector<64x128xf32>
    %c896 = arith.constant 896 : index
    %c0_211 = arith.constant 0 : index
    %295 = vector.load %arg18[%c896, %c0_211] : memref<1216x128xbf16, #tpu.memory_space<vmem>>, vector<64x128xbf16>
    %c0_212 = arith.constant 0 : index
    %c0_213 = arith.constant 0 : index
    %c0_214 = arith.constant 0 : index
    %296 = vector.load %arg9[%c0_212, %c0_213, %c0_214] : memref<9x128x128xbf16, #tpu.memory_space<vmem>>, vector<1x128x128xbf16>
    %297 = vector.shape_cast %296 : vector<1x128x128xbf16> to vector<128x128xbf16>
    %cst_215 = arith.constant dense<0.000000e+00> : vector<64x128xf32>
    %298 = tpu.matmul %295, %297, %cst_215 {dimension_numbers = #tpu.dot_dimension_numbers<[1], [0], [0], [1], [0, 0, 1, 1], [], []>} : vector<64x128xbf16>, vector<128x128xbf16>, vector<64x128xf32> -> vector<64x128xf32>
    %299 = arith.addf %294, %298 : vector<64x128xf32>
    %c0_216 = arith.constant 0 : index
    %c0_217 = arith.constant 0 : index
    %300 = vector.load %arg10[%c0_216, %c0_217] : memref<1x128xf32, #tpu.memory_space<vmem>>, vector<1x128xf32>
    %301 = vector.broadcast %300 : vector<1x128xf32> to vector<64x128xf32>
    %302 = arith.addf %299, %301 : vector<64x128xf32>
    %cst_218 = arith.constant 0.000000e+00 : f32
    %303 = vector.broadcast %cst_218 : f32 to vector<64x128xf32>
    %304 = arith.maximumf %302, %303 : vector<64x128xf32>
    %305 = arith.truncf %304 : vector<64x128xf32> to vector<64x128xbf16>
    %c976 = arith.constant 976 : index
    %c0_219 = arith.constant 0 : index
    %306 = vector.load %arg18[%c976, %c0_219] : memref<1216x128xbf16, #tpu.memory_space<vmem>>, vector<64x128xbf16>
    tpu.vector_store %arg18[%c976, %c0_219], %305 {strides = array<i32>} : memref<1216x128xbf16, #tpu.memory_space<vmem>>, vector<64x128xbf16>,
    %307 = vector.extract_strided_slice %304 {offsets = [1, 0], sizes = [63, 128], strides = [1, 1]} : vector<64x128xf32> to vector<63x128xf32>
    %cst_220 = arith.constant 0.000000e+00 : f32
    %308 = vector.broadcast %cst_220 : f32 to vector<1x128xf32>
    %309 = tpu.concatenate %307, %308 in 0 : vector<63x128xf32>, vector<1x128xf32> -> vector<64x128xf32>
    %cst_221 = arith.constant 0.000000e+00 : f32
    %310 = vector.shape_cast %58 : vector<64x1xi1> to vector<64x1xi1>
    %311 = vector.broadcast %310 : vector<64x1xi1> to vector<64x128xi1>
    %312 = vector.broadcast %cst_221 : f32 to vector<64x128xf32>
    %313 = arith.select %311, %309, %312 : vector<64x128xi1>, vector<64x128xf32>
    %314 = arith.truncf %313 : vector<64x128xf32> to vector<64x128xbf16>
    %c1056 = arith.constant 1056 : index
    %c0_222 = arith.constant 0 : index
    %315 = vector.load %arg18[%c1056, %c0_222] : memref<1216x128xbf16, #tpu.memory_space<vmem>>, vector<64x128xbf16>
    tpu.vector_store %arg18[%c1056, %c0_222], %314 {strides = array<i32>} : memref<1216x128xbf16, #tpu.memory_space<vmem>>, vector<64x128xbf16>,
    %cst_223 = arith.constant 0.000000e+00 : f32
    %316 = vector.broadcast %cst_223 : f32 to vector<1x128xf32>
    %317 = vector.extract_strided_slice %304 {offsets = [0, 0], sizes = [63, 128], strides = [1, 1]} : vector<64x128xf32> to vector<63x128xf32>
    %318 = tpu.concatenate %316, %317 in 0 : vector<1x128xf32>, vector<63x128xf32> -> vector<64x128xf32>
    %cst_224 = arith.constant 0.000000e+00 : f32
    %319 = vector.shape_cast %56 : vector<64x1xi1> to vector<64x1xi1>
    %320 = vector.broadcast %319 : vector<64x1xi1> to vector<64x128xi1>
    %321 = vector.broadcast %cst_224 : f32 to vector<64x128xf32>
    %322 = arith.select %320, %318, %321 : vector<64x128xi1>, vector<64x128xf32>
    %323 = arith.truncf %322 : vector<64x128xf32> to vector<64x128xbf16>
    %c1136 = arith.constant 1136 : index
    %c0_225 = arith.constant 0 : index
    %324 = vector.load %arg18[%c1136, %c0_225] : memref<1216x128xbf16, #tpu.memory_space<vmem>>, vector<64x128xbf16>
    tpu.vector_store %arg18[%c1136, %c0_225], %323 {strides = array<i32>} : memref<1216x128xbf16, #tpu.memory_space<vmem>>, vector<64x128xbf16>,
    %cst_226 = arith.constant 0.000000e+00 : f32
    %325 = vector.broadcast %cst_226 : f32 to vector<64x128xf32>
    %c1128 = arith.constant 1128 : index
    %c0_227 = arith.constant 0 : index
    %326 = vector.load %arg18[%c1128, %c0_227] : memref<1216x128xbf16, #tpu.memory_space<vmem>>, vector<64x128xbf16>
    %c0_228 = arith.constant 0 : index
    %c0_229 = arith.constant 0 : index
    %c0_230 = arith.constant 0 : index
    %327 = vector.load %arg13[%c0_228, %c0_229, %c0_230] : memref<9x128x128xbf16, #tpu.memory_space<vmem>>, vector<1x128x128xbf16>
    %328 = vector.shape_cast %327 : vector<1x128x128xbf16> to vector<128x128xbf16>
    %cst_231 = arith.constant dense<0.000000e+00> : vector<64x128xf32>
    %329 = tpu.matmul %326, %328, %cst_231 {dimension_numbers = #tpu.dot_dimension_numbers<[1], [0], [0], [1], [0, 0, 1, 1], [], []>} : vector<64x128xbf16>, vector<128x128xbf16>, vector<64x128xf32> -> vector<64x128xf32>
    %330 = arith.addf %325, %329 : vector<64x128xf32>
    %c968_232 = arith.constant 968 : index
    %c0_233 = arith.constant 0 : index
    %331 = vector.load %arg18[%c968_232, %c0_233] : memref<1216x128xbf16, #tpu.memory_space<vmem>>, vector<64x128xbf16>
    %c1_234 = arith.constant 1 : index
    %c0_235 = arith.constant 0 : index
    %c0_236 = arith.constant 0 : index
    %332 = vector.load %arg13[%c1_234, %c0_235, %c0_236] : memref<9x128x128xbf16, #tpu.memory_space<vmem>>, vector<1x128x128xbf16>
    %333 = vector.shape_cast %332 : vector<1x128x128xbf16> to vector<128x128xbf16>
    %cst_237 = arith.constant dense<0.000000e+00> : vector<64x128xf32>
    %334 = tpu.matmul %331, %333, %cst_237 {dimension_numbers = #tpu.dot_dimension_numbers<[1], [0], [0], [1], [0, 0, 1, 1], [], []>} : vector<64x128xbf16>, vector<128x128xbf16>, vector<64x128xf32> -> vector<64x128xf32>
    %335 = arith.addf %330, %334 : vector<64x128xf32>
    %c1048 = arith.constant 1048 : index
    %c0_238 = arith.constant 0 : index
    %336 = vector.load %arg18[%c1048, %c0_238] : memref<1216x128xbf16, #tpu.memory_space<vmem>>, vector<64x128xbf16>
    %c2_239 = arith.constant 2 : index
    %c0_240 = arith.constant 0 : index
    %c0_241 = arith.constant 0 : index
    %337 = vector.load %arg13[%c2_239, %c0_240, %c0_241] : memref<9x128x128xbf16, #tpu.memory_space<vmem>>, vector<1x128x128xbf16>
    %338 = vector.shape_cast %337 : vector<1x128x128xbf16> to vector<128x128xbf16>
    %cst_242 = arith.constant dense<0.000000e+00> : vector<64x128xf32>
    %339 = tpu.matmul %336, %338, %cst_242 {dimension_numbers = #tpu.dot_dimension_numbers<[1], [0], [0], [1], [0, 0, 1, 1], [], []>} : vector<64x128xbf16>, vector<128x128xbf16>, vector<64x128xf32> -> vector<64x128xf32>
    %340 = arith.addf %335, %339 : vector<64x128xf32>
    %c1136_243 = arith.constant 1136 : index
    %c0_244 = arith.constant 0 : index
    %341 = vector.load %arg18[%c1136_243, %c0_244] : memref<1216x128xbf16, #tpu.memory_space<vmem>>, vector<64x128xbf16>
    %c3_245 = arith.constant 3 : index
    %c0_246 = arith.constant 0 : index
    %c0_247 = arith.constant 0 : index
    %342 = vector.load %arg13[%c3_245, %c0_246, %c0_247] : memref<9x128x128xbf16, #tpu.memory_space<vmem>>, vector<1x128x128xbf16>
    %343 = vector.shape_cast %342 : vector<1x128x128xbf16> to vector<128x128xbf16>
    %cst_248 = arith.constant dense<0.000000e+00> : vector<64x128xf32>
    %344 = tpu.matmul %341, %343, %cst_248 {dimension_numbers = #tpu.dot_dimension_numbers<[1], [0], [0], [1], [0, 0, 1, 1], [], []>} : vector<64x128xbf16>, vector<128x128xbf16>, vector<64x128xf32> -> vector<64x128xf32>
    %345 = arith.addf %340, %344 : vector<64x128xf32>
    %c976_249 = arith.constant 976 : index
    %c0_250 = arith.constant 0 : index
    %346 = vector.load %arg18[%c976_249, %c0_250] : memref<1216x128xbf16, #tpu.memory_space<vmem>>, vector<64x128xbf16>
    %c4_251 = arith.constant 4 : index
    %c0_252 = arith.constant 0 : index
    %c0_253 = arith.constant 0 : index
    %347 = vector.load %arg13[%c4_251, %c0_252, %c0_253] : memref<9x128x128xbf16, #tpu.memory_space<vmem>>, vector<1x128x128xbf16>
    %348 = vector.shape_cast %347 : vector<1x128x128xbf16> to vector<128x128xbf16>
    %cst_254 = arith.constant dense<0.000000e+00> : vector<64x128xf32>
    %349 = tpu.matmul %346, %348, %cst_254 {dimension_numbers = #tpu.dot_dimension_numbers<[1], [0], [0], [1], [0, 0, 1, 1], [], []>} : vector<64x128xbf16>, vector<128x128xbf16>, vector<64x128xf32> -> vector<64x128xf32>
    %350 = arith.addf %345, %349 : vector<64x128xf32>
    %c1056_255 = arith.constant 1056 : index
    %c0_256 = arith.constant 0 : index
    %351 = vector.load %arg18[%c1056_255, %c0_256] : memref<1216x128xbf16, #tpu.memory_space<vmem>>, vector<64x128xbf16>
    %c5_257 = arith.constant 5 : index
    %c0_258 = arith.constant 0 : index
    %c0_259 = arith.constant 0 : index
    %352 = vector.load %arg13[%c5_257, %c0_258, %c0_259] : memref<9x128x128xbf16, #tpu.memory_space<vmem>>, vector<1x128x128xbf16>
    %353 = vector.shape_cast %352 : vector<1x128x128xbf16> to vector<128x128xbf16>
    %cst_260 = arith.constant dense<0.000000e+00> : vector<64x128xf32>
    %354 = tpu.matmul %351, %353, %cst_260 {dimension_numbers = #tpu.dot_dimension_numbers<[1], [0], [0], [1], [0, 0, 1, 1], [], []>} : vector<64x128xbf16>, vector<128x128xbf16>, vector<64x128xf32> -> vector<64x128xf32>
    %355 = arith.addf %350, %354 : vector<64x128xf32>
    %c1144 = arith.constant 1144 : index
    %c0_261 = arith.constant 0 : index
    %356 = vector.load %arg18[%c1144, %c0_261] : memref<1216x128xbf16, #tpu.memory_space<vmem>>, vector<64x128xbf16>
    %c6_262 = arith.constant 6 : index
    %c0_263 = arith.constant 0 : index
    %c0_264 = arith.constant 0 : index
    %357 = vector.load %arg13[%c6_262, %c0_263, %c0_264] : memref<9x128x128xbf16, #tpu.memory_space<vmem>>, vector<1x128x128xbf16>
    %358 = vector.shape_cast %357 : vector<1x128x128xbf16> to vector<128x128xbf16>
    %cst_265 = arith.constant dense<0.000000e+00> : vector<64x128xf32>
    %359 = tpu.matmul %356, %358, %cst_265 {dimension_numbers = #tpu.dot_dimension_numbers<[1], [0], [0], [1], [0, 0, 1, 1], [], []>} : vector<64x128xbf16>, vector<128x128xbf16>, vector<64x128xf32> -> vector<64x128xf32>
    %360 = arith.addf %355, %359 : vector<64x128xf32>
    %c984 = arith.constant 984 : index
    %c0_266 = arith.constant 0 : index
    %361 = vector.load %arg18[%c984, %c0_266] : memref<1216x128xbf16, #tpu.memory_space<vmem>>, vector<64x128xbf16>
    %c7_267 = arith.constant 7 : index
    %c0_268 = arith.constant 0 : index
    %c0_269 = arith.constant 0 : index
    %362 = vector.load %arg13[%c7_267, %c0_268, %c0_269] : memref<9x128x128xbf16, #tpu.memory_space<vmem>>, vector<1x128x128xbf16>
    %363 = vector.shape_cast %362 : vector<1x128x128xbf16> to vector<128x128xbf16>
    %cst_270 = arith.constant dense<0.000000e+00> : vector<64x128xf32>
    %364 = tpu.matmul %361, %363, %cst_270 {dimension_numbers = #tpu.dot_dimension_numbers<[1], [0], [0], [1], [0, 0, 1, 1], [], []>} : vector<64x128xbf16>, vector<128x128xbf16>, vector<64x128xf32> -> vector<64x128xf32>
    %365 = arith.addf %360, %364 : vector<64x128xf32>
    %c1064 = arith.constant 1064 : index
    %c0_271 = arith.constant 0 : index
    %366 = vector.load %arg18[%c1064, %c0_271] : memref<1216x128xbf16, #tpu.memory_space<vmem>>, vector<64x128xbf16>
    %c8_272 = arith.constant 8 : index
    %c0_273 = arith.constant 0 : index
    %c0_274 = arith.constant 0 : index
    %367 = vector.load %arg13[%c8_272, %c0_273, %c0_274] : memref<9x128x128xbf16, #tpu.memory_space<vmem>>, vector<1x128x128xbf16>
    %368 = vector.shape_cast %367 : vector<1x128x128xbf16> to vector<128x128xbf16>
    %cst_275 = arith.constant dense<0.000000e+00> : vector<64x128xf32>
    %369 = tpu.matmul %366, %368, %cst_275 {dimension_numbers = #tpu.dot_dimension_numbers<[1], [0], [0], [1], [0, 0, 1, 1], [], []>} : vector<64x128xbf16>, vector<128x128xbf16>, vector<64x128xf32> -> vector<64x128xf32>
    %370 = arith.addf %365, %369 : vector<64x128xf32>
    %c0_276 = arith.constant 0 : index
    %c0_277 = arith.constant 0 : index
    %371 = vector.load %arg14[%c0_276, %c0_277] : memref<1x128xf32, #tpu.memory_space<vmem>>, vector<1x128xf32>
    %372 = vector.broadcast %371 : vector<1x128xf32> to vector<64x128xf32>
    %373 = arith.addf %370, %372 : vector<64x128xf32>
    %374 = arith.addf %373, %253 : vector<64x128xf32>
    %cst_278 = arith.constant 0.000000e+00 : f32
    %375 = vector.broadcast %cst_278 : f32 to vector<64x128xf32>
    %376 = arith.maximumf %374, %375 : vector<64x128xf32>
    %cst_279 = arith.constant dense<0.000000e+00> : vector<128xf32>
    %377 = vector.multi_reduction <add>, %376, %cst_279 [0] : vector<64x128xf32> to vector<128xf32>
    %378 = vector.shape_cast %377 : vector<128xf32> to vector<1x128xf32>
    %cst_280 = arith.constant 1.562500e-02 : f32
    %379 = vector.broadcast %cst_280 : f32 to vector<1x128xf32>
    %380 = arith.mulf %378, %379 : vector<1x128xf32>
    %381 = vector.shape_cast %380 : vector<1x128xf32> to vector<1x128xf32>
    %382 = vector.broadcast %381 : vector<1x128xf32> to vector<8x128xf32>
    %383 = arith.truncf %382 : vector<8x128xf32> to vector<8x128xbf16>
    %c0_281 = arith.constant 0 : index
    %c0_282 = arith.constant 0 : index
    %384 = vector.load %arg15[%c0_281, %c0_282] : memref<128x128xbf16, #tpu.memory_space<vmem>>, vector<128x128xbf16>
    %cst_283 = arith.constant dense<0.000000e+00> : vector<8x128xf32>
    %385 = tpu.matmul %383, %384, %cst_283 {dimension_numbers = #tpu.dot_dimension_numbers<[1], [0], [0], [1], [0, 0, 1, 1], [], []>} : vector<8x128xbf16>, vector<128x128xbf16>, vector<8x128xf32> -> vector<8x128xf32>
    %c0_284 = arith.constant 0 : index
    %c0_285 = arith.constant 0 : index
    %386 = vector.load %arg16[%c0_284, %c0_285] : memref<1x128xf32, #tpu.memory_space<vmem>>, vector<1x128xf32>
    %387 = vector.broadcast %386 : vector<1x128xf32> to vector<8x128xf32>
    %388 = arith.addf %385, %387 : vector<8x128xf32>
    %c0_286 = arith.constant 0 : index
    %c0_287 = arith.constant 0 : index
    %c0_288 = arith.constant 0 : index
    %389 = vector.load %arg17[%c0_286, %c0_287, %c0_288] : memref<1x8x128xf32, #tpu.memory_space<vmem>>, vector<1x8x128xf32>
    %390 = vector.shape_cast %389 : vector<1x8x128xf32> to vector<8x128xf32>
    %391 = vector.shape_cast %388 : vector<8x128xf32> to vector<1x8x128xf32>
    tpu.vector_store %arg17[%c0_286, %c0_287, %c0_288], %391 {strides = array<i32>} : memref<1x8x128xf32, #tpu.memory_space<vmem>>, vector<1x8x128xf32>,
    return
  }
  func.func @transform_0(%arg0: i32) -> (i32, i32, i32) {
    %c0_i32 = arith.constant 0 : i32
    %c0_i32_0 = arith.constant 0 : i32
    %c0_i32_1 = arith.constant 0 : i32
    return %arg0, %c0_i32, %c0_i32_0 : i32, i32, i32
  }
  func.func @transform_1(%arg0: i32) -> (i32, i32, i32) {
    %c0_i32 = arith.constant 0 : i32
    %c0_i32_0 = arith.constant 0 : i32
    %c0_i32_1 = arith.constant 0 : i32
    %c0_i32_2 = arith.constant 0 : i32
    return %c0_i32, %c0_i32_0, %c0_i32_1 : i32, i32, i32
  }
  func.func @transform_2(%arg0: i32) -> (i32, i32) {
    %c0_i32 = arith.constant 0 : i32
    %c0_i32_0 = arith.constant 0 : i32
    %c0_i32_1 = arith.constant 0 : i32
    return %c0_i32, %c0_i32_0 : i32, i32
  }
  func.func @transform_3(%arg0: i32) -> (i32, i32, i32) {
    %c0_i32 = arith.constant 0 : i32
    %c0_i32_0 = arith.constant 0 : i32
    %c0_i32_1 = arith.constant 0 : i32
    %c0_i32_2 = arith.constant 0 : i32
    return %c0_i32, %c0_i32_0, %c0_i32_1 : i32, i32, i32
  }
  func.func @transform_4(%arg0: i32) -> (i32, i32) {
    %c0_i32 = arith.constant 0 : i32
    %c0_i32_0 = arith.constant 0 : i32
    %c0_i32_1 = arith.constant 0 : i32
    return %c0_i32, %c0_i32_0 : i32, i32
  }
  func.func @transform_5(%arg0: i32) -> (i32, i32, i32) {
    %c0_i32 = arith.constant 0 : i32
    %c0_i32_0 = arith.constant 0 : i32
    %c0_i32_1 = arith.constant 0 : i32
    %c0_i32_2 = arith.constant 0 : i32
    return %c0_i32, %c0_i32_0, %c0_i32_1 : i32, i32, i32
  }
  func.func @transform_6(%arg0: i32) -> (i32, i32) {
    %c0_i32 = arith.constant 0 : i32
    %c0_i32_0 = arith.constant 0 : i32
    %c0_i32_1 = arith.constant 0 : i32
    return %c0_i32, %c0_i32_0 : i32, i32
  }
  func.func @transform_7(%arg0: i32) -> (i32, i32) {
    %c0_i32 = arith.constant 0 : i32
    %c0_i32_0 = arith.constant 0 : i32
    %c0_i32_1 = arith.constant 0 : i32
    return %c0_i32, %c0_i32_0 : i32, i32
  }
  func.func @transform_8(%arg0: i32) -> (i32, i32, i32) {
    %c0_i32 = arith.constant 0 : i32
    %c0_i32_0 = arith.constant 0 : i32
    %c0_i32_1 = arith.constant 0 : i32
    %c0_i32_2 = arith.constant 0 : i32
    return %c0_i32, %c0_i32_0, %c0_i32_1 : i32, i32, i32
  }
  func.func @transform_9(%arg0: i32) -> (i32, i32) {
    %c0_i32 = arith.constant 0 : i32
    %c0_i32_0 = arith.constant 0 : i32
    %c0_i32_1 = arith.constant 0 : i32
    return %c0_i32, %c0_i32_0 : i32, i32
  }
  func.func @transform_10(%arg0: i32) -> (i32, i32) {
    %c0_i32 = arith.constant 0 : i32
    %c0_i32_0 = arith.constant 0 : i32
    %c0_i32_1 = arith.constant 0 : i32
    return %c0_i32, %c0_i32_0 : i32, i32
  }
  func.func @transform_11(%arg0: i32) -> (i32, i32) {
    %c0_i32 = arith.constant 0 : i32
    %c0_i32_0 = arith.constant 0 : i32
    %c0_i32_1 = arith.constant 0 : i32
    return %c0_i32, %c0_i32_0 : i32, i32
  }
  func.func @transform_12(%arg0: i32) -> (i32, i32, i32) {
    %c0_i32 = arith.constant 0 : i32
    %c0_i32_0 = arith.constant 0 : i32
    %c0_i32_1 = arith.constant 0 : i32
    %c0_i32_2 = arith.constant 0 : i32
    return %c0_i32, %c0_i32_0, %c0_i32_1 : i32, i32, i32
  }
  func.func @transform_13(%arg0: i32) -> (i32, i32) {
    %c0_i32 = arith.constant 0 : i32
    %c0_i32_0 = arith.constant 0 : i32
    %c0_i32_1 = arith.constant 0 : i32
    return %c0_i32, %c0_i32_0 : i32, i32
  }
  func.func @transform_14(%arg0: i32) -> (i32, i32) {
    %c0_i32 = arith.constant 0 : i32
    %c0_i32_0 = arith.constant 0 : i32
    %c0_i32_1 = arith.constant 0 : i32
    return %c0_i32, %c0_i32_0 : i32, i32
  }
  func.func @transform_15(%arg0: i32) -> (i32, i32) {
    %c0_i32 = arith.constant 0 : i32
    %c0_i32_0 = arith.constant 0 : i32
    %c0_i32_1 = arith.constant 0 : i32
    return %c0_i32, %c0_i32_0 : i32, i32
  }
  func.func @transform_16(%arg0: i32) -> (i32, i32, i32) {
    %c0_i32 = arith.constant 0 : i32
    %c0_i32_0 = arith.constant 0 : i32
    %c0_i32_1 = arith.constant 0 : i32
    return %arg0, %c0_i32, %c0_i32_0 : i32, i32, i32
  }
}

</mosaic_0001>

<bundles_post_ra>
// kernel: resnet_very_small_forward.1
= control target key start
LH: loop header
LB: loop body
LE: loop exit
PB: predicated region body
PF: predicated region fallthrough
CT: control target
= control target key end

     0   :  { %s19109_s0 = inlined_call_operand.vmem [shape: bf16[2,256,128], index: 0, kind: input, shape index: {}]   ;;  %s19110_s1 = inlined_call_operand.vmem [shape: bf16[6,128,128], index: 1, kind: input, shape index: {}]   ;;  %s19111_s2 = inlined_call_operand.vmem [shape: f32[1,128], index: 2, kind: input, shape index: {}]   ;;  %s19112_s3 = inlined_call_operand.hbm [shape: bf16[6,128,128], index: 3, kind: input, shape index: {}]   ;;  %s19113_s4 = inlined_call_operand.vmem [shape: f32[1,128], index: 4, kind: input, shape index: {}]   ;;  %s19114_s5 = inlined_call_operand.hbm [shape: bf16[6,128,128], index: 5, kind: input, shape index: {}]   ;;  %s19115_s6 = inlined_call_operand.vmem [shape: f32[1,128], index: 6, kind: input, shape index: {}]   ;;  %s19116_s7 = inlined_call_operand.vmem [shape: bf16[408,256], index: 7, kind: input, shape index: {}]   ;;  %s19117_s8 = inlined_call_operand.vmem [shape: bf16[9,128,128], index: 8, kind: input, shape index: {}]   ;;  %s19118_s9 = inlined_call_operand.vmem [shape: f32[1,128], index: 9, kind: input, shape index: {}]   ;;  %s19119_s10 = inlined_call_operand.vmem [shape: bf16[128,128], index: 10, kind: input, shape index: {}]   ;;  %s19120_s11 = inlined_call_operand.vmem [shape: f32[1,128], index: 11, kind: input, shape index: {}]   ;;  %s19121_s12 = inlined_call_operand.vmem [shape: bf16[9,128,128], index: 12, kind: input, shape index: {}]   ;;  %s19122_s13 = inlined_call_operand.vmem [shape: f32[1,128], index: 13, kind: input, shape index: {}]   ;;  %s19123_s14 = inlined_call_operand.vmem [shape: bf16[128,128], index: 14, kind: input, shape index: {}]   ;;  %s19124_s15 = inlined_call_operand.vmem [shape: f32[1,128], index: 15, kind: input, shape index: {}]   ;;  %s19125_s16 = inlined_call_operand.vmem [shape: f32[2,8,128], index: 16, kind: output, shape index: {}]  }
   0x1   :  { %19292 = sst [smem:[#allocation65_spill]] %s19109_s0 }
   0x2   :  { %19293 = sst [smem:[#allocation66_spill]] %s19125_s16 }
   0x3   :  { %21 = vsyncpa [#allocation4], 0 }
   0x4   :  { %22 = vsyncpa [#allocation6], 0  ;;  %s15393_s21 = smov 0  }
   0x5 LB: > { %19294 = sst [smem:[#allocation9_spill]] %s15299_s21  ;;  %s15399_s22 = sadd.s32 4294967295, %s15299_s21   ;;  %s15299_s21 = sphi %s15393_s21, %s28_s21  }
   0x6   : > { %p11355_p0 = scmp.ge.s32.totalorder %s15299_s21, 1  ;;  %p400_p1 = scmp.lt.s32.totalorder %s15299_s21, 3 }
   0x7   : > { %s15301_s23 = smov [#allocation3]   ;;  %p19126_p3 = scmp.eq.s32.totalorder %s15399_s22, 0 }
   0x8   : > { %s418_s24 = sshll.u32 %s15301_s23, 4  ;;  %p15403_p2 = pnand %p11355_p0, %p400_p1  ;;  %s419_s24 = int_to_ptr.vmem [resolvable:$true] %s418_s24 }
   0x9   : > { %s15302_s26 = smov [#allocation5]   ;;  %s15229_s0 = scalar_lea.hbm %s19112_s3, 6144 }
   0xa   : > { %s19295_s25 = scalar_select %p15403_p2, 1, 0 }
   0xb   : > { %p14795_p4 = pneg %p15403_p2  ;;  %s434_s27 = sshll.u32 %s15302_s26, 4  ;;  %s15416_s27 = int_to_ptr.vmem [resolvable:$true] %s434_s27 }
   0xc   : > { %p15230_p6 = scmp.ne.s32.totalorder %s19112_s3, %s15229_s0  ;;  %p15236_p10 = scmp.lt.u32.totalorder %s15229_s0, %s19112_s3 }
   0xd   : > { %p15412_p5 = pnand %p19126_p3, %p14795_p4 }
   0xf   : > { %p15231_p7 = pneg %p15412_p5 }
  0x11   : > { %p15232_p8 = pnand %p15231_p7, %p15230_p6 }
  0x13   : > { %p15233_p9 = pneg %p15232_p8 }
  0x15   : > { %p15238_p11 = pnand %p15236_p10, %p15233_p9 }
  0x17   : > { %15241 = shalt.err (!%p15238_p11)
}
  0x18   : > { %s15242_s23 = scalar_lea.vmem %s419_s24, 6144  ;;  %p15250_p1 = scmp.lt.s32.totalorder %s419_s24, %s419_s24 }
  0x19   : > { %p15243_p12 = scmp.ne.s32.totalorder %s419_s24, %s15242_s23  ;;  %p15251_p4 = scmp.lt.s32.totalorder %s15242_s23, %s15242_s23 }
  0x1b   : > { %p15245_p13 = pnand %p15243_p12, %p15231_p7  ;;  %p15252_p3 = por %p15251_p4, %p15250_p1 }
  0x1d   : > { %p15246_p0 = pneg %p15245_p13 }
  0x1f   : > { %p15253_p2 = pnand %p15252_p3, %p15246_p0 }
  0x21   : > { %15256 = shalt.err (!%p15253_p2)
}
  0x22   : > { %s15303_s26 = smov 64   ;;  %s15304_s29 = smov 4  }
  0x23   : > { %14798 = dma.hbm_to_vmem [thread:$0]  (!%p15412_p5), %s19112_s3, 6144, %s419_s24, [#allocation4], %s15303_s26, %s15303_s26, %s15304_s29  }
  0x24   : > { %s15257_s19 = scalar_lea.hbm %s19114_s5, 6144 }
  0x25   : > { %p15258_p6 = scmp.ne.s32.totalorder %s19114_s5, %s15257_s19  ;;  %p15264_p8 = scmp.lt.u32.totalorder %s15257_s19, %s19114_s5 }
  0x27   : > { %p15260_p2 = pnand %p15258_p6, %p15231_p7 }
  0x29   : > { %p15261_p3 = pneg %p15260_p2 }
  0x2b   : > { %p15266_p9 = pnand %p15264_p8, %p15261_p3 }
  0x2d   : > { %15269 = shalt.err (!%p15266_p9)
}
  0x2e   : > { %s15270_s24 = scalar_lea.vmem %s15416_s27, 6144  ;;  %p15278_p13 = scmp.lt.s32.totalorder %s15416_s27, %s15416_s27 }
  0x2f   : > { %p15271_p10 = scmp.ne.s32.totalorder %s15416_s27, %s15270_s24  ;;  %p15279_p0 = scmp.lt.s32.totalorder %s15270_s24, %s15270_s24 }
  0x31   : > { %p15273_p11 = pnand %p15271_p10, %p15231_p7  ;;  %p15280_p1 = por %p15279_p0, %p15278_p13 }
  0x33   : > { %p15274_p12 = pneg %p15273_p11 }
  0x35   : > { %p15281_p4 = pnand %p15280_p1, %p15274_p12 }
  0x37   : > { %15284 = shalt.err (!%p15281_p4)
}
  0x38   : > { %14801 = dma.hbm_to_vmem [thread:$0]  (!%p15412_p5), %s19114_s5, 6144, %s15416_s27, [#allocation6], %s15303_s26, %s15303_s26, %s15304_s29  }
  0x39   : > { %p19297_p6 = scmp.ne.s32.totalorder %s19295_s25, 0 }
  0x3b   : > { %488 = sbr.rel (%p19297_p6) target bundleno = 3347 (0xd13), region = 84 }
  0x42   : > { %p19298_p2 = scmp.eq.s32.totalorder %s15399_s22, 0 }
  0x44   : > { %15290 = dma.done.wait (%p19298_p2), [#allocation4], 6144   ;;  %p19299_p7 = pmov %p19298_p2 }
  0x45   : > { %p19300_p3 = pmov %p19298_p2 }
  0x46   : > { %15292 = vsyncadd (%p19299_p7), [#allocation4], 4294961152 }
  0x47   : > { %15294 = dma.done.wait (%p19300_p3), [#allocation6], 6144   ;;  %p19301_p8 = pmov %p19298_p2 }
  0x48   : > { %p541_p9 = scmp.lt.s32.totalorder %s15399_s22, 1  ;;  %v558_v0 = vlaneseq  ;;  %v19129_v1 = vmov 0   ;;  %v14821_v3 = vld [vmem:[%s19110_s1 + $0x40] sm:$0xff]   ;;  %v14822_v4 = vld [vmem:[%s19110_s1 + $0x48] sm:$0xff]   ;;  %v14823_v6 = vld [vmem:[%s19110_s1 + $0x50] sm:$0xff]   ;;  %s19304_s19 = sld [smem:[#allocation65_spill]] }
  0x49   : > { %15296 = vsyncadd (%p19301_p8), [#allocation6], 4294961152  ;;  %551 = vst [vmem:[#allocation2] sm:$0xff] %v19129_v1  ;;  %12815 = vmatprep.subr.bf16.mxu0 %v14821_v3  ;;  %v14824_v9 = vld [vmem:[%s19110_s1 + $0x58] sm:$0xff]   ;;  %vm19169_vm0 = vcmask 1046528   ;;  %v19308_v19 = vmov 0 }
  0x4a   : > { %554 = vst [vmem:[#allocation2 + $0x1e0] sm:$0xf0] %v19129_v1  ;;  %555 = vst [vmem:[#allocation2 + $0x208] sm:$0xff] %v19129_v1  ;;  %s20012_s22 = smov (!%p541_p9, %s15399_s22), 1  ;;  %v15484_v2 = vshrl.u32 %v558_v0, 7  ;;  %12816 = vmatpush3.bf16.msra.mxu0 %v14821_v3  ;;  %v15499_v7 = vand.u32 127, %v558_v0 }
  0x4b   : > { %556 = vst [vmem:[#allocation2 + $0x230] sm:$0xff] %v19129_v1  ;;  %557 = vst [vmem:[#allocation2 + $0x258] sm:$0xff] %v19129_v1  ;;  %s12066_s29 = sshll.u32 %s20012_s22, 7  ;;  %12817 = vmatprep.subr.bf16.mxu0 %v14822_v4  ;;  %v14825_v28 = vld [vmem:[%s19110_s1 + $0x60] sm:$0xff]   ;;  %v14826_v46 = vld [vmem:[%s19110_s1 + $0x68] sm:$0xff]   ;;  %v19311_v52 = vmov 0 }
  0x4c   : > { %19302 = vst [vmem:[#allocation10_spill] sm:$0xff] %v15484_v2  ;;  %v15494_v5 = vadd.s32 8, %v15484_v2  ;;  %vm19162_vm1 = vcmp.lt.s32.totalorder %v15499_v7, 64  ;;  %v15514_v12 = vadd.s32 24, %v15484_v2  ;;  %v15518_v14 = vadd.s32 40, %v15484_v2  ;;  %v14827_v60 = vld [vmem:[%s19110_s1 + $0x70] sm:$0xff]  }
  0x4d   : > { %v15527_v18 = vadd.s32 56, %v15484_v2  ;;  %v571_v23 = vadd.s32 72, %v15484_v2  ;;  %v573_v31 = vadd.s32 88, %v15484_v2  ;;  %v15552_v32 = vadd.s32 104, %v15484_v2  ;;  %s11364_s23 = sshll.u32 %s20012_s22, 3  ;;  %s20009_s27 = sld [smem:[#allocation66_spill]] }
  0x4e   : > { %19303 = vst [vmem:[#allocation11_spill] sm:$0xff] %v15494_v5  ;;  %s15504_s20 = scalar_lea.vmem %s19304_s19, %s12066_s29  ;;  %v605_v8 = vand.u32 15, %v15494_v5  ;;  %12818 = vmatpush3.bf16.msra.mxu0 %v14822_v4  ;;  %19305 = vst [vmem:[#allocation12_spill] sm:$0xff] %v15514_v12  ;;  %v619_v29 = vand.u32 15, %v15514_v12  ;;  %v633_v35 = vand.u32 15, %v15518_v14  ;;  %v577_v51 = vadd.s32 120, %v15484_v2 }
  0x4f   : > { %12819 = vmatprep.subr.bf16.mxu0 %v14823_v6  ;;  %v12068_v10 = vld [vmem:[%s15504_s20] sm:$0xff]   ;;  %v12131_v11 = vld [vmem:[%s15504_s20 + $0x8] sm:$0xff]   ;;  %v12132_v13 = vld [vmem:[%s15504_s20 + $0x10] sm:$0xff]   ;;  %19306 = vst [vmem:[#allocation13_spill] sm:$0xff] %v15518_v14  ;;  %v647_v43 = vand.u32 15, %v15527_v18  ;;  %v661_v44 = vand.u32 15, %v571_v23 }
  0x50   : > { %v15520_v15 = vunpack.c.l.bf16 %v12068_v10  ;;  %v15522_v16 = vunpack.c.h.bf16 %v12068_v10  ;;  %v15524_v17 = vunpack.c.l.bf16 %v12131_v11  ;;  %19307 = vst [vmem:[#allocation14_spill] sm:$0xff] %v15527_v18  ;;  %vm15529_vm2 = vcmp.ne.s32.totalorder %v605_v8, 15  ;;  %v12133_v22 = vld [vmem:[%s15504_s20 + $0x18] sm:$0xff]   ;;  %v12134_v36 = vld [vmem:[%s15504_s20 + $0x20] sm:$0xff]   ;;  %v12135_v45 = vld [vmem:[%s15504_s20 + $0x28] sm:$0xff]  }
  0x51   : > { %v19309_v19 = vsel %vm15529_vm2, 4294967295, %v19308_v19  ;;  %v15533_v20 = vunpack.c.h.bf16 %v12131_v11  ;;  %v15535_v21 = vunpack.c.l.bf16 %v12132_v13  ;;  %v15542_v27 = vunpack.c.h.bf16 %v12132_v13  ;;  %v12136_v4 = vld [vmem:[%s15504_s20 + $0x30] sm:$0xff]   ;;  %v12137_v23 = vld [vmem:[%s15504_s20 + $0x38] sm:$0xff]   ;;  %v12143_v14 = vld [vmem:[%s15504_s20 + $0x68] sm:$0xff]  }
  0x52   : > { %19310 = vst [vmem:[#allocation15_spill] sm:$0xff] %v19309_v19  ;;  %12820 = vmatpush3.bf16.msra.mxu0 %v14823_v6  ;;  %v1251_v24 = vrot.slane %v15520_v15, 1  ;;  %v1252_v25 = vrot.slane %v15522_v16, 1  ;;  %v1254_v26 = vrot.slane %v15524_v17, 1  ;;  %v15548_v30 = vunpack.c.l.bf16 %v12133_v22  ;;  %v14828_v6 = vld [vmem:[%s19110_s1 + $0x78] sm:$0xff]  }
  0x53   : > { %12821 = vmatprep.subr.bf16.mxu0 %v14824_v9  ;;  %v1256_v39 = vrot.slane %v15533_v20, 1  ;;  %v1258_v40 = vrot.slane %v15535_v21, 1  ;;  %v1260_v42 = vrot.slane %v15542_v27, 1  ;;  %v15577_v49 = vunpack.c.h.bf16 %v12133_v22  ;;  %s549_s28 = scalar_lea.vmem %s20009_s27, %s11364_s23 }
  0x54   : > { %v1253_v33 = vsel %vm19169_vm0, %v1251_v24, %v1252_v25  ;;  %v1255_v34 = vsel %vm19169_vm0, %v1252_v25, %v1254_v26  ;;  %v1262_v48 = vrot.slane %v15548_v30, 1  ;;  %v15579_v50 = vunpack.c.l.bf16 %v12134_v36 }
  0x55   : > { %v1412_v37 = vsel %vm15529_vm2, %v1255_v34, 0.0  ;;  %v1445_v38 = vsel %vm19162_vm1, %v15520_v15, %v1253_v33  ;;  %vm15583_vm3 = vcmp.ne.s32.totalorder %v619_v29, 15  ;;  %v1259_v53 = vsel %vm19169_vm0, %v1256_v39, %v1258_v40 }
  0x56   : > { %12822 = vmatpush3.bf16.msra.mxu0 %v14824_v9  ;;  %v1446_v41 = vsel %vm19162_vm1, %v15522_v16, %v1412_v37  ;;  %v19312_v52 = vsel %vm15583_vm3, 4294967295, %v19311_v52  ;;  %v15588_v54 = vunpack.c.h.bf16 %v12134_v36  ;;  %v15590_v55 = vunpack.c.l.bf16 %v12135_v45 }
  0x57   : > { %12823 = vmatprep.subr.bf16.mxu0 %v14825_v28  ;;  %v15574_v47 = vpack.c.bf16 %v1446_v41, %v1445_v38  ;;  %19313 = vst [vmem:[#allocation16_spill] sm:$0xff] %v19312_v52  ;;  %vm15592_vm4 = vcmp.ne.s32.totalorder %v633_v35, 15  ;;  %v19314_v56 = vmov 0  ;;  %vm15596_vm5 = vcmp.ne.s32.totalorder %v647_v43, 15  ;;  %v14829_v35 = vld [vmem:[%s19110_s1] sm:$0xff]  }
  0x58   : > { %v19315_v56 = vsel %vm15592_vm4, 4294967295, %v19314_v56  ;;  %v19317_v57 = vmov 0  ;;  %vm15600_vm6 = vcmp.ne.s32.totalorder %v661_v44, 15  ;;  %v19320_v58 = vmov 0 }
  0x59   : > { %12831 = vmatprep.mubr.bf16.mxu0 %v15574_v47  ;;  %19316 = vst [vmem:[#allocation17_spill] sm:$0xff] %v19315_v56  ;;  %v19318_v57 = vsel %vm15596_vm5, 4294967295, %v19317_v57  ;;  %v19321_v58 = vsel %vm15600_vm6, 4294967295, %v19320_v58  ;;  %v675_v59 = vand.u32 15, %v573_v31  ;;  %v1263_v61 = vsel %vm19169_vm0, %v1260_v42, %v1262_v48 }
  0x5a   : > { %12824 = vmatpush3.bf16.msra.mxu0 %v14825_v28  ;;  %19319 = vst [vmem:[#allocation18_spill] sm:$0xff] %v19318_v57  ;;  %19322 = vst [vmem:[#allocation19_spill] sm:$0xff] %v19321_v58  ;;  %v1264_v62 = vrot.slane %v15577_v49, 1  ;;  %v1266_v63 = vrot.slane %v15579_v50, 1  ;;  %v689_v0 = vand.u32 15, %v15552_v32  ;;  %v1414_v3 = vsel %vm15583_vm3, %v1259_v53, 0.0 }
  0x5b   : > { %12825 = vmatprep.subr.bf16.mxu0 %v14826_v46  ;;  %v1257_v8 = vsel %vm19169_vm0, %v1254_v26, %v1256_v39  ;;  %v1261_v9 = vsel %vm19169_vm0, %v1258_v40, %v1260_v42  ;;  %v1268_v10 = vrot.slane %v15588_v54, 1  ;;  %v1270_v11 = vrot.slane %v15590_v55, 1  ;;  %v12138_v28 = vld [vmem:[%s15504_s20 + $0x40] sm:$0xff]   ;;  %v12139_v40 = vld [vmem:[%s15504_s20 + $0x48] sm:$0xff]  }
  0x5c   : > { %v1416_v13 = vsel %vm15592_vm4, %v1263_v61, 0.0  ;;  %v15623_v22 = vunpack.c.h.bf16 %v12135_v45  ;;  %v1267_v24 = vsel %vm19169_vm0, %v1264_v62, %v1266_v63  ;;  %v15627_v25 = vunpack.c.l.bf16 %v12136_v4 }
  0x5d   : > { %v703_v26 = vand.u32 15, %v577_v51  ;;  %v1447_v29 = vsel %vm19162_vm1, %v15524_v17, %v1257_v8  ;;  %v1448_v31 = vsel %vm19162_vm1, %v15533_v20, %v1414_v3  ;;  %v1449_v32 = vsel %vm19162_vm1, %v15535_v21, %v1261_v9  ;;  %v12140_v3 = vld [vmem:[%s15504_s20 + $0x50] sm:$0xff]   ;;  %v14830_v8 = vld [vmem:[%s19110_s1 + $0x8] sm:$0xff]  }
  0x5e   : > { %12826 = vmatpush3.bf16.msra.mxu0 %v14826_v46  ;;  %19323 = vst [vmem:[#allocation20_spill] sm:$0xff] %v15627_v25  ;;  %vm15639_vm7 = vcmp.ne.s32.totalorder %v675_v59, 15  ;;  %v19324_v33 = vmov 0  ;;  %v15643_v34 = vunpack.c.h.bf16 %v12136_v4  ;;  %v1450_v36 = vsel %vm19162_vm1, %v15542_v27, %v1416_v13  ;;  %v12141_v13 = vld [vmem:[%s15504_s20 + $0x58] sm:$0xff]  }
  0x5f   : > { %12827 = vmatprep.subr.bf16.mxu0 %v14827_v60  ;;  %v19325_v33 = vsel %vm15639_vm7, 4294967295, %v19324_v33  ;;  %v1265_v37 = vsel %vm19169_vm0, %v1262_v48, %v1264_v62  ;;  %v1271_v38 = vsel %vm19169_vm0, %v1268_v10, %v1270_v11  ;;  %v15653_v39 = vunpack.c.l.bf16 %v12137_v23 }
  0x60   : > { %19326 = vst [vmem:[#allocation21_spill] sm:$0xff] %v19325_v33  ;;  %19327 = vst [vmem:[#allocation22_spill] sm:$0xff] %v15643_v34  ;;  %v1418_v41 = vsel %vm15596_vm5, %v1267_v24, 0.0  ;;  %v1272_v42 = vrot.slane %v15623_v22, 1  ;;  %vm15659_vm8 = vcmp.ne.s32.totalorder %v689_v0, 15  ;;  %v19329_v43 = vmov 0 }
  0x61   : > { %19328 = vst [vmem:[#allocation23_spill] sm:$0xff] %v15653_v39  ;;  %v19330_v43 = vsel %vm15659_vm8, 4294967295, %v19329_v43  ;;  %v15663_v44 = vunpack.c.h.bf16 %v12137_v23  ;;  %v15665_v45 = vunpack.c.l.bf16 %v12138_v28  ;;  %v15667_v46 = vpack.c.bf16 %v1448_v31, %v1447_v29 }
  0x62   : > { %12828 = vmatpush3.bf16.msra.mxu0 %v14827_v60  ;;  %19331 = vst [vmem:[#allocation24_spill] sm:$0xff] %v19330_v43  ;;  %v1269_v48 = vsel %vm19169_vm0, %v1266_v63, %v1268_v10  ;;  %v1274_v51 = vrot.slane %v15627_v25, 1  ;;  %v579_v53 = vadd.s32 136, %v15484_v2  ;;  %v1420_v59 = vsel %vm15600_vm6, %v1271_v38, 0.0  ;;  %v12142_v38 = vld [vmem:[%s15504_s20 + $0x60] sm:$0xff]  }
  0x63   : > { %19332 = vst [vmem:[#allocation25_spill] sm:$0xff] %v15663_v44  ;;  %12829 = vmatprep.subr.bf16.mxu0 %v14828_v6  ;;  %v1276_v60 = vrot.slane %v15643_v34, 1  ;;  %vm15675_vm9 = vcmp.ne.s32.totalorder %v703_v26, 15  ;;  %v19333_v61 = vmov 0  ;;  %v15679_v62 = vunpack.c.h.bf16 %v12138_v28 }
  0x64   : > { %v19334_v61 = vsel %vm15675_vm9, 4294967295, %v19333_v61  ;;  %v15681_v0 = vunpack.c.l.bf16 %v12139_v40  ;;  %v15684_v4 = vpack.c.bf16 %v1450_v36, %v1449_v32  ;;  %v1451_v63 = vsel %vm19162_vm1, %v15548_v30, %v1265_v37 }
  0x65   : > { %19335 = vst [vmem:[#allocation26_spill] sm:$0xff] %v19334_v61  ;;  %v19130_v9 = vrot.slane %v15653_v39, 1  ;;  %v581_v10 = vadd.s32 152, %v15484_v2  ;;  %v1452_v23 = vsel %vm19162_vm1, %v15577_v49, %v1418_v41  ;;  %v19132_v26 = vrot.slane %v15665_v45, 1  ;;  %v14831_v41 = vld [vmem:[%s19110_s1 + $0x10] sm:$0xff]   ;;  %v12145_v61 = vld [vmem:[%s15504_s20 + $0x78] sm:$0xff]  }
  0x66   : > { %12830 = vmatpush3.bf16.msra.mxu0 %v14828_v6  ;;  %v15700_v28 = vunpack.c.h.bf16 %v12139_v40  ;;  %v1453_v29 = vsel %vm19162_vm1, %v15579_v50, %v1269_v48  ;;  %v1454_v31 = vsel %vm19162_vm1, %v15588_v54, %v1420_v59  ;;  %v1273_v6 = vsel %vm19169_vm0, %v1270_v11, %v1272_v42 }
  0x67   : > { %12863 = vmatprep.subr.bf16.mxu0 %v14829_v35  ;;  %v717_v32 = vand.u32 15, %v579_v53  ;;  %v1275_v36 = vsel %vm19169_vm0, %v1272_v42, %v1274_v51  ;;  %v15712_v40 = vunpack.c.l.bf16 %v12140_v3  ;;  %v731_v48 = vand.u32 15, %v581_v10 }
  0x68   : > { %v583_v11 = vadd.s32 168, %v15484_v2  ;;  %v15720_v53 = vunpack.c.h.bf16 %v12140_v3  ;;  %v1279_v42 = vsel %vm19169_vm0, %v1276_v60, %v19130_v9  ;;  %v15727_v37 = vunpack.c.l.bf16 %v12141_v13 }
  0x69   : > { %12832 = vmatmul.mubr.bf16.vlgmr.msra.gmra.mrb[0].mxu0 %v15667_v46  ;;  %v15730_v10 = vpack.c.bf16 %v1452_v23, %v1451_v63  ;;  %v1422_v3 = vsel %vm15639_vm7, %v1275_v36, 0.0  ;;  %v15735_v24 = vpack.c.bf16 %v1454_v31, %v1453_v29  ;;  %v1455_v9 = vsel %vm19162_vm1, %v15590_v55, %v1273_v6  ;;  %v14832_v31 = vld [vmem:[%s19110_s1 + $0x18] sm:$0xff]  }
  0x6a   : > { %12864 = vmatpush3.bf16.msra.mxu0 %v14829_v35  ;;  %12835 = vmatprep.mubr.bf16.mxu0 %v15684_v4  ;;  %v745_v59 = vand.u32 15, %v583_v11  ;;  %v19336_v1 = vrot.slane %v15663_v44, 1  ;;  %v1277_v36 = vsel %vm19169_vm0, %v1274_v51, %v1276_v60  ;;  %v1424_v29 = vsel %vm15659_vm8, %v1279_v42, 0.0 }
  0x6b   : > { %12865 = vmatprep.subr.bf16.mxu0 %v14830_v8  ;;  %vm15755_vm10 = vcmp.ne.s32.totalorder %v717_v32, 15  ;;  %v19337_v6 = vmov 0  ;;  %vm15759_vm11 = vcmp.ne.s32.totalorder %v731_v48, 15  ;;  %v19343_v11 = vrot.slane %v15681_v0, 1 }
  0x6c   : > { %v15745_v63 = vsel %vm19169_vm0, %v19336_v1, %v19132_v26  ;;  %v19338_v6 = vsel %vm15755_vm10, 4294967295, %v19337_v6  ;;  %v19340_v1 = vmov 0  ;;  %v19344_v51 = vrot.slane %v15679_v62, 1 }
  0x6d   : > { %19339 = vst [vmem:[#allocation27_spill] sm:$0xff] %v19338_v6  ;;  %v19341_v1 = vsel %vm15759_vm11, 4294967295, %v19340_v1  ;;  %v19345_v42 = vrot.slane %v15712_v40, 1  ;;  %v19346_v26 = vrot.slane %v15700_v28, 1  ;;  %v585_v48 = vadd.s32 184, %v15484_v2 }
  0x6e   : > { %19342 = vst [vmem:[#allocation28_spill] sm:$0xff] %v19341_v1  ;;  %12866 = vmatpush3.bf16.msra.mxu0 %v14830_v8  ;;  %v15768_v60 = vsel %vm19169_vm0, %v19344_v51, %v19343_v11  ;;  %v15778_v35 = vunpack.c.h.bf16 %v12141_v13  ;;  %v1426_v8 = vsel %vm15675_vm9, %v15745_v63, 0.0  ;;  %vm15783_vm12 = vcmp.ne.s32.totalorder %v745_v59, 15  ;;  %v12144_v13 = vld [vmem:[%s15504_s20 + $0x70] sm:$0xff]  }
  0x6f   : > { %v15775_v32 = vsel %vm19169_vm0, %v19346_v26, %v19345_v42  ;;  %12867 = vmatprep.subr.bf16.mxu0 %v14831_v41  ;;  %v19347_v23 = vmov 0  ;;  %v19350_v11 = vrot.slane %v15727_v37, 1  ;;  %v19351_v51 = vrot.slane %v15720_v53, 1 }
  0x70   : > { %v19348_v23 = vsel %vm15783_vm12, 4294967295, %v19347_v23  ;;  %v15794_v42 = vunpack.c.l.bf16 %v12142_v38  ;;  %v1456_v18 = vsel %vm19162_vm1, %v15623_v22, %v1422_v3  ;;  %v1457_v59 = vsel %vm19162_vm1, %v15627_v25, %v1277_v36  ;;  %v14833_v36 = vld [vmem:[%s19110_s1 + $0x20] sm:$0xff]  }
  0x71   : > { %19349 = vst [vmem:[#allocation29_spill] sm:$0xff] %v19348_v23  ;;  %v15792_v26 = vsel %vm19169_vm0, %v19351_v51, %v19350_v11  ;;  %v587_v63 = vadd.s32 200, %v15484_v2  ;;  %v15804_v5 = vunpack.c.h.bf16 %v12142_v38  ;;  %12836 = vmatmul.mubr.bf16.gmra.mrb[4].mxu0 %v15730_v10  ;;  %v1458_v11 = vsel %vm19162_vm1, %v15643_v34, %v1424_v29 }
  0x72   : > { %v1428_v51 = vsel %vm15755_vm10, %v15768_v60, 0.0  ;;  %v15819_v38 = vunpack.c.l.bf16 %v12143_v14  ;;  %12839 = vmatprep.mubr.bf16.mxu0 %v15735_v24  ;;  %12868 = vmatpush3.bf16.msra.mxu0 %v14831_v41  ;;  %v759_v12 = vand.u32 15, %v585_v48  ;;  %v589_v6 = vadd.s32 216, %v15484_v2  ;;  %v14834_v48 = vld [vmem:[%s19110_s1 + $0x28] sm:$0xff]  }
  0x73   : > { %19352 = vst [vmem:[#allocation30_spill] sm:$0xff] %v15804_v5  ;;  %12869 = vmatprep.subr.bf16.mxu0 %v14832_v31  ;;  %v15829_v43 = vunpack.c.h.bf16 %v12143_v14  ;;  %v15831_v33 = vunpack.c.l.bf16 %v12144_v13  ;;  %v773_v58 = vand.u32 15, %v587_v63  ;;  %v15834_v57 = vpack.c.bf16 %v1456_v18, %v1455_v9 }
  0x74   : > { %19353 = vst [vmem:[#allocation31_spill] sm:$0xff] %v15819_v38  ;;  %v15836_v56 = vpack.c.bf16 %v1458_v11, %v1457_v59  ;;  %v787_v60 = vand.u32 15, %v589_v6  ;;  %v591_v63 = vadd.s32 232, %v15484_v2  ;;  %v15845_v52 = vunpack.c.h.bf16 %v12144_v13 }
  0x75   : > { %19354 = vst [vmem:[#allocation32_spill] sm:$0xff] %v15829_v43  ;;  %19355 = vst [vmem:[#allocation33_spill] sm:$0xff] %v15831_v33  ;;  %v19357_v18 = vrot.slane %v15663_v44, 1  ;;  %v19358_v9 = vrot.slane %v15653_v39, 1  ;;  %v15852_v11 = vunpack.c.l.bf16 %v12145_v61  ;;  %v19360_v6 = vrot.slane %v15679_v62, 1 }
  0x76   : > { %12870 = vmatpush3.bf16.msra.mxu0 %v14832_v31  ;;  %19356 = vst [vmem:[#allocation34_spill] sm:$0xff] %v15845_v52  ;;  %v19361_v31 = vrot.slane %v15665_v45, 1  ;;  %vm15859_vm13 = vcmp.ne.s32.totalorder %v759_v12, 15  ;;  %v19362_v3 = vmov 0  ;;  %v19365_v13 = vrot.slane %v15794_v42, 1 }
  0x77   : > { %v1281_v59 = vsel %vm19169_vm0, %v19358_v9, %v19357_v18  ;;  %12871 = vmatprep.subr.bf16.mxu0 %v14833_v36  ;;  %19359 = vst [vmem:[#allocation35_spill] sm:$0xff] %v15852_v11  ;;  %v19363_v3 = vsel %vm15859_vm13, 4294967295, %v19362_v3  ;;  %v19366_v41 = vrot.slane %v15778_v35, 1  ;;  %vm15868_vm14 = vcmp.ne.s32.totalorder %v773_v58, 15 }
  0x78   : > { %v1285_v14 = vsel %vm19169_vm0, %v19361_v31, %v19360_v6  ;;  %19364 = vst [vmem:[#allocation36_spill] sm:$0xff] %v19363_v3  ;;  %v19367_v18 = vmov 0  ;;  %v19370_v9 = vrot.slane %v15819_v38, 1  ;;  %v19371_v6 = vrot.slane %v15804_v5, 1 }
  0x79   : > { %v1299_v29 = vsel %vm19169_vm0, %v19366_v41, %v19365_v13  ;;  %v19368_v18 = vsel %vm15868_vm14, 4294967295, %v19367_v18  ;;  %12840 = vmatmul.mubr.bf16.gmra.mrb[8].mxu0 %v15834_v57  ;;  %vm15878_vm15 = vcmp.ne.s32.totalorder %v787_v60, 15  ;;  %v19372_v31 = vmov 0  ;;  %v14835_v41 = vld [vmem:[%s19110_s1 + $0x30] sm:$0xff]  }
  0x7a   : > { %19369 = vst [vmem:[#allocation37_spill] sm:$0xff] %v19368_v18  ;;  %v1303_v12 = vsel %vm19169_vm0, %v19371_v6, %v19370_v9  ;;  %v19373_v31 = vsel %vm15878_vm15, 4294967295, %v19372_v31  ;;  %v801_v58 = vand.u32 15, %v591_v63  ;;  %v1308_v13 = vrot.slane %v15845_v52, 1  ;;  %12843 = vmatprep.mubr.bf16.mxu0 %v15836_v56  ;;  %12872 = vmatpush3.bf16.msra.mxu0 %v14833_v36 }
  0x7b   : > { %19374 = vst [vmem:[#allocation38_spill] sm:$0xff] %v19373_v31  ;;  %v1459_v19 = vsel %vm19162_vm1, %v15653_v39, %v1281_v59  ;;  %v1460_v60 = vsel %vm19162_vm1, %v15663_v44, %v1426_v8  ;;  %v19375_v9 = vrot.slane %v15831_v33, 1  ;;  %v19376_v6 = vrot.slane %v15829_v43, 1  ;;  %12873 = vmatprep.subr.bf16.mxu0 %v14834_v48  ;;  %v14837_v31 = vld [vmem:[%s19110_s1 + $0x80] sm:$0xff]  }
  0x7c   : > { %v1310_v63 = vrot.slane %v15852_v11, 1  ;;  %v1461_v25 = vsel %vm19162_vm1, %v15665_v45, %v1285_v14  ;;  %v1462_v59 = vsel %vm19162_vm1, %v15679_v62, %v1428_v51  ;;  %v593_v8 = vadd.s32 248, %v15484_v2  ;;  %v14836_v51 = vld [vmem:[%s19110_s1 + $0x38] sm:$0xff]  }
  0x7d   : > { %v1307_v34 = vsel %vm19169_vm0, %v19376_v6, %v19375_v9  ;;  %v1434_v36 = vsel %vm15859_vm13, %v1299_v29, 0.0  ;;  %v1436_v44 = vsel %vm15868_vm14, %v1303_v12, 0.0  ;;  %v15910_v9 = vpack.c.bf16 %v1460_v60, %v1459_v19 }
  0x7e   : > { %v1438_v6 = vsel %vm15878_vm15, %v1307_v34, 0.0  ;;  %v15914_v39 = vunpack.c.h.bf16 %v12145_v61  ;;  %v15919_v14 = vpack.c.bf16 %v1462_v59, %v1461_v25  ;;  %12874 = vmatpush3.bf16.msra.mxu0 %v14834_v48  ;;  %vm15921_vm1 = vcmp.ne.s32.totalorder %v801_v58, 15 }
  0x7f   : > { %v19378_v3 = vmov 0  ;;  %v1311_v29 = vsel %vm19169_vm0, %v1308_v13, %v1310_v63  ;;  %v19381_v19 = vrot.slane %v15700_v28, 1  ;;  %v19382_v12 = vrot.slane %v15681_v0, 1  ;;  %12875 = vmatprep.subr.bf16.mxu0 %v14835_v41 }
  0x80   : > { %19377 = vst [vmem:[#allocation39_spill] sm:$0xff] %v15914_v39  ;;  %v19379_v3 = vsel %vm15921_vm1, 4294967295, %v19378_v3  ;;  %v815_v61 = vand.u32 15, %v593_v8  ;;  %v19383_v60 = vrot.slane %v15720_v53, 1  ;;  %v19384_v25 = vrot.slane %v15712_v40, 1 }
  0x81   : > { %19380 = vst [vmem:[#allocation40_spill] sm:$0xff] %v19379_v3  ;;  %v1289_v34 = vsel %vm19169_vm0, %v19382_v12, %v19381_v19  ;;  %12844 = vmatmul.mubr.bf16.gmra.mrb[12].mxu0 %v15910_v9  ;;  %v1440_v58 = vsel %vm15921_vm1, %v1311_v29, 0.0  ;;  %v1312_v59 = vrot.slane %v15914_v39, 1  ;;  %vm19385_vm15 = vcmp.lt.s32.totalorder %v15499_v7, 64 }
  0x82   : > { %v1293_v48 = vsel %vm19169_vm0, %v19384_v25, %v19383_v60  ;;  %12847 = vmatprep.mubr.bf16.mxu0 %v15919_v14  ;;  %v1463_v8 = vsel %vm19385_vm15, %v15681_v0, %v1289_v34  ;;  %v19386_v19 = vsel %vm15759_vm11, %v15775_v32, 0.0  ;;  %vm19387_vm0 = vmmov %vm19385_vm15  ;;  %12876 = vmatpush3.bf16.msra.mxu0 %v14835_v41  ;;  %v19389_v60 = vsel %vm15783_vm12, %v15792_v26, 0.0 }
  0x83   : > { %v1464_v29 = vsel %vm19387_vm0, %v15700_v28, %v19386_v19  ;;  %vm19388_vm1 = vmmov %vm19387_vm0  ;;  %12877 = vmatprep.subr.bf16.mxu0 %v14836_v51  ;;  %v19391_v41 = vrot.slane %v15778_v35, 1  ;;  %v19392_v19 = vrot.slane %v15727_v37, 1  ;;  %v19394_v3 = vrot.slane %v15804_v5, 1 }
  0x84   : > { %v1465_v12 = vsel %vm19388_vm1, %v15712_v40, %v1293_v48  ;;  %vm19390_vm15 = vmmov %vm19387_vm0  ;;  %v15964_v25 = vpack.c.bf16 %v1464_v29, %v1463_v8  ;;  %vm19393_vm0 = vcmask 1046528   ;;  %v19395_v26 = vrot.slane %v15794_v42, 1 }
  0x85   : > { %v1466_v34 = vsel %vm19390_vm15, %v15720_v53, %v19389_v60  ;;  %v1297_v48 = vsel %vm19393_vm0, %v19392_v19, %v19391_v41  ;;  %vm19396_vm1 = vmmov %vm19393_vm0  ;;  %vm15979_vm15 = vcmp.ne.s32.totalorder %v815_v61, 15  ;;  %v19397_v8 = vmov 0 }
  0x86   : > { %v15966_v32 = vpack.c.bf16 %v1466_v34, %v1465_v12  ;;  %12878 = vmatpush3.bf16.msra.mxu0 %v14836_v51  ;;  %v1301_v18 = vsel %vm19396_vm1, %v19395_v26, %v19394_v3  ;;  %v19398_v8 = vsel %vm15979_vm15, 4294967295, %v19397_v8  ;;  %vm19400_vm14 = vmmov %vm19393_vm0  ;;  %vm19401_vm0 = vcmp.lt.s32.totalorder %v15499_v7, 64 }
  0x87   : > { %12911 = vmatprep.subr.bf16.mxu0 %v14837_v31  ;;  %19399 = vst [vmem:[#allocation41_spill] sm:$0xff] %v19398_v8  ;;  %v1346_v51 = vsel %vm19400_vm14, %v1312_v59, 0.0  ;;  %v1467_v29 = vsel %vm19401_vm0, %v15727_v37, %v1297_v48  ;;  %vm19402_vm13 = vmmov %vm19401_vm0  ;;  %v19405_v41 = vrot.slane %v15829_v43, 1  ;;  %v19406_v19 = vrot.slane %v15819_v38, 1 }
  0x88   : > { %v1468_v12 = vsel %vm19402_vm13, %v15778_v35, %v1434_v36  ;;  %vm19403_vm1 = vmmov %vm19401_vm0  ;;  %v19407_v36 = vrot.slane %v15831_v33, 1  ;;  %v19439_v23 = vrot.slane %v15579_v50, 7  ;;  %v19440_v1 = vrot.slane %v15577_v49, 7 }
  0x89   : > { %12848 = vmatmul.mubr.bf16.gmra.mrb[16].mxu0 %v15964_v25  ;;  %v1469_v3 = vsel %vm19403_vm1, %v15794_v42, %v1301_v18  ;;  %vm19404_vm12 = vmmov %vm19401_vm0  ;;  %v15997_v60 = vpack.c.bf16 %v1468_v12, %v1467_v29  ;;  %v1305_v48 = vsel %vm19400_vm14, %v19406_v19, %v19405_v41  ;;  %v1442_v18 = vsel %vm15979_vm15, %v1346_v51, 0.0 }
  0x8a   : > { %12851 = vmatprep.mubr.bf16.mxu0 %v15966_v32  ;;  %v1470_v61 = vsel %vm19404_vm12, %v15804_v5, %v1436_v44  ;;  %vm19408_vm13 = vmmov %vm19400_vm14  ;;  %v1472_v29 = vsel %vm19401_vm0, %v15829_v43, %v1438_v6  ;;  %v1476_v41 = vsel %vm19401_vm0, %v15914_v39, %v1442_v18  ;;  %v16074_v18 = vld [vmem:[%s19110_s1 + $0xc0] sm:$0xff]   ;;  %vm19432_vm15 = vcmask 1040384  }
  0x8b   : > { %v15999_v34 = vpack.c.bf16 %v1470_v61, %v1469_v3  ;;  %v1309_v26 = vsel %vm19408_vm13, %v19407_v36, %v1308_v13  ;;  %vm19409_vm12 = vmmov %vm19401_vm0  ;;  %v1313_v61 = vsel %vm19408_vm13, %v1310_v63, %v1312_v59  ;;  %v14838_v63 = vld [vmem:[%s19110_s1 + $0x88] sm:$0xff]   ;;  %v14839_v59 = vld [vmem:[%s19110_s1 + $0x90] sm:$0xff]   ;;  %v576_v43 = vadd.s32 112, %v15484_v2 }
  0x8c   : > { %v1471_v44 = vsel %vm19409_vm12, %v15819_v38, %v1305_v48  ;;  %vm19410_vm1 = vmmov %vm19401_vm0  ;;  %v14840_v48 = vld [vmem:[%s19110_s1 + $0x98] sm:$0xff]   ;;  %v14843_v36 = vld [vmem:[%s19110_s1 + $0xb0] sm:$0xff]   ;;  %vm19460_vm7 = vcmask 1040384  }
  0x8d   : > { %v1473_v12 = vsel %vm19410_vm1, %v15831_v33, %v1309_v26  ;;  %vm19411_vm14 = vmmov %vm19401_vm0  ;;  %v16025_v3 = vpack.c.bf16 %v1472_v29, %v1471_v44  ;;  %v14844_v26 = vld [vmem:[%s19110_s1 + $0xb8] sm:$0xff]   ;;  %v19182_v44 = vrot.slane %v15520_v15, 7  ;;  %v16078_v29 = vadd.s32 16, %v15484_v2 }
  0x8e   : > { %v1474_v13 = vsel %vm19411_vm14, %v15845_v52, %v1440_v58  ;;  %vm19412_vm12 = vmmov %vm19401_vm0  ;;  %v19413_v58 = vmov 0   ;;  %vm19185_vm1 = vcmask 1040384   ;;  %v19443_v52 = vld [vmem:[#allocation22_spill] sm:$0xff]  ;;  %v696_v5 = vand.u32 15, %v576_v43  ;;  %v19445_v33 = vld [vmem:[#allocation25_spill] sm:$0xff] }
  0x8f   : > { %v16027_v51 = vpack.c.bf16 %v1474_v13, %v1473_v12  ;;  %v1475_v6 = vsel %vm19412_vm12, %v15852_v11, %v1313_v61  ;;  %19414 = vst [vmem:[#allocation42_spill] sm:$0xff] %v16078_v29  ;;  %v598_v12 = vand.u32 15, %v15484_v2  ;;  %v16084_v13 = vadd.s32 32, %v15484_v2  ;;  %vm19435_vm11 = vmmov %vm19432_vm15  ;;  %v19442_v11 = vld [vmem:[#allocation20_spill] sm:$0xff]  ;;  %v14848_v43 = vld [vmem:[%s19110_s1 + $0xd8] sm:$0xff]  }
  0x90   : > { %v16038_v19 = vpack.c.bf16 %v1476_v41, %v1475_v6  ;;  %v16091_v6 = vsel %vm19185_vm1, 0.0, %v19182_v44  ;;  %v612_v41 = vand.u32 15, %v16078_v29  ;;  %v19427_v44 = vmov 0  ;;  %vm19438_vm10 = vmmov %vm19435_vm11 }
  0x91   : > { %12852 = vmatmul.mubr.bf16.gmra.mrb[20].mxu0 %v15997_v60  ;;  %19415 = vst [vmem:[#allocation43_spill] sm:$0xff] %v16084_v13  ;;  %vm16100_vm14 = vcmp.ne.s32.totalorder %v598_v12, 0  ;;  %v19421_v12 = vmov 0  ;;  %v19431_v61 = vrot.slane %v15522_v16, 7  ;;  %v19437_v29 = vrot.slane %v15542_v27, 7  ;;  %vm19463_vm6 = vmmov %vm19460_vm7 }
  0x92   : > { %12855 = vmatprep.mubr.bf16.mxu0 %v15999_v34  ;;  %vm16106_vm13 = vcmp.ne.s32.totalorder %v612_v41, 0  ;;  %v1507_v39 = vrot.slane %v19445_v33, 7  ;;  %vm19465_vm5 = vmmov %vm19463_vm6 }
  0x93   : > { %vm19466_vm4 = vmmov %vm19465_vm5 }
  0x99   : > { %12856 = vmatmul.mubr.bf16.gmra.mrb[24].mxu0 %v16025_v3 }
  0x9a   : > { %12859 = vmatprep.mubr.bf16.mxu0 %v16027_v51 }
  0xa1   : > { %12860 = vmatmul.mubr.bf16.gmra.mrb[28].mxu0 %v16038_v19 }
  0xa2   : > { %12879 = vmatprep.mubr.bf16.mxu0 %v19413_v58  ;;  %v16095_v58 = vadd.s32 48, %v15484_v2 }
  0xa4   : > { %19416 = vst [vmem:[#allocation44_spill] sm:$0xff] %v16095_v58 }
  0xa9   : > { %12880 = vmatmul.mubr.bf16.vlgmr.msra.gmra.mrb[0].mxu0 %v15574_v47  ;;  %v14841_v47 = vld [vmem:[%s19110_s1 + $0xa0] sm:$0xff]  }
  0xaa   : > { %12912 = vmatpush3.bf16.msra.mxu0 %v14837_v31  ;;  %12883 = vmatprep.mubr.bf16.mxu0 %v15667_v46  ;;  %v14842_v31 = vld [vmem:[%s19110_s1 + $0xa8] sm:$0xff]  }
  0xab   : > { %12913 = vmatprep.subr.bf16.mxu0 %v14838_v63 }
  0xae   : > { %12914 = vmatpush3.bf16.msra.mxu0 %v14838_v63  ;;  %v16130_v63 = vadd.s32 80, %v15484_v2 }
  0xaf   : > { %12915 = vmatprep.subr.bf16.mxu0 %v14839_v59 }
  0xb1   : > { %12884 = vmatmul.mubr.bf16.gmra.mrb[4].mxu0 %v15684_v4 }
  0xb2   : > { %12887 = vmatprep.mubr.bf16.mxu0 %v15730_v10  ;;  %12916 = vmatpush3.bf16.msra.mxu0 %v14839_v59  ;;  %v570_v59 = vadd.s32 64, %v15484_v2 }
  0xb3   : > { %12917 = vmatprep.subr.bf16.mxu0 %v14840_v48 }
  0xb6   : > { %12918 = vmatpush3.bf16.msra.mxu0 %v14840_v48  ;;  %v626_v48 = vand.u32 15, %v16084_v13  ;;  %v19424_v13 = vmov 0 }
  0xb7   : > { %12919 = vmatprep.subr.bf16.mxu0 %v14841_v47 }
  0xb8   : > { %vm16114_vm12 = vcmp.ne.s32.totalorder %v626_v48, 0  ;;  %v19430_v48 = vrot.slane %v15524_v17, 7 }
  0xb9   : > { %12888 = vmatmul.mubr.bf16.gmra.mrb[8].mxu0 %v15735_v24  ;;  %v19422_v12 = vsel %vm16114_vm12, 4294967295, %v19421_v12 }
  0xba   : > { %12891 = vmatprep.mubr.bf16.mxu0 %v15834_v57  ;;  %12920 = vmatpush3.bf16.msra.mxu0 %v14841_v47  ;;  %v19417_v47 = vmov 0  ;;  %19423 = vst [vmem:[#allocation45_spill] sm:$0xff] %v19422_v12 }
  0xbb   : > { %12921 = vmatprep.subr.bf16.mxu0 %v14842_v31  ;;  %v19418_v47 = vsel %vm16100_vm14, 4294967295, %v19417_v47 }
  0xbe   : > { %12922 = vmatpush3.bf16.msra.mxu0 %v14842_v31  ;;  %v640_v31 = vand.u32 15, %v16095_v58  ;;  %v19433_v58 = vrot.slane %v15535_v21, 7 }
  0xbf   : > { %12923 = vmatprep.subr.bf16.mxu0 %v14843_v36 }
  0xc0   : > { %vm16121_vm0 = vcmp.ne.s32.totalorder %v640_v31, 0  ;;  %v19434_v31 = vrot.slane %v15533_v20, 7 }
  0xc1   : > { %12892 = vmatmul.mubr.bf16.gmra.mrb[12].mxu0 %v15836_v56  ;;  %v19425_v13 = vsel %vm16121_vm0, 4294967295, %v19424_v13 }
  0xc2   : > { %12895 = vmatprep.mubr.bf16.mxu0 %v15910_v9  ;;  %12924 = vmatpush3.bf16.msra.mxu0 %v14843_v36  ;;  %v654_v36 = vand.u32 15, %v570_v59  ;;  %19426 = vst [vmem:[#allocation46_spill] sm:$0xff] %v19425_v13  ;;  %v16137_v59 = vsel %vm19432_vm15, %v19431_v61, %v19430_v48  ;;  %v16144_v41 = vsel %vm19435_vm11, %v19434_v31, %v19433_v58  ;;  %vm19441_vm15 = vmmov %vm19438_vm10  ;;  %v16161_v48 = vadd.s32 96, %v15484_v2 }
  0xc3   : > { %12925 = vmatprep.subr.bf16.mxu0 %v14844_v26  ;;  %v16158_v61 = vsel %vm19441_vm15, %v19440_v1, %v19439_v23  ;;  %v668_v58 = vand.u32 15, %v16130_v63  ;;  %v578_v1 = vadd.s32 128, %v15484_v2  ;;  %v14846_v63 = vld [vmem:[%s19110_s1 + $0xc8] sm:$0xff]   ;;  %vm16242_vm15 = vcmp.ne.s32.totalorder %v696_v5, 0 }
  0xc4   : > { %vm16125_vm1 = vcmp.ne.s32.totalorder %v654_v36, 0  ;;  %v19436_v36 = vrot.slane %v15548_v30, 7  ;;  %v682_v31 = vand.u32 15, %v16161_v48  ;;  %v14847_v48 = vld [vmem:[%s19110_s1 + $0xd0] sm:$0xff]   ;;  %v19459_v5 = vrot.slane %v15588_v54, 7 }
  0xc5   : > { %v19428_v44 = vsel %vm16125_vm1, 4294967295, %v19427_v44  ;;  %v710_v23 = vand.u32 15, %v578_v1  ;;  %v19229_v1 = vrot.slane %v15679_v62, 7 }
  0xc6   : > { %12926 = vmatpush3.bf16.msra.mxu0 %v14844_v26  ;;  %19429 = vst [vmem:[#allocation47_spill] sm:$0xff] %v19428_v44  ;;  %v16151_v8 = vsel %vm19438_vm10, %v19437_v29, %v19436_v36  ;;  %v1497_v29 = vrot.slane %v15590_v55, 7  ;;  %v19444_v36 = vld [vmem:[#allocation23_spill] sm:$0xff]  ;;  %vm16234_vm10 = vcmp.ne.s32.totalorder %v668_v58, 0  ;;  %vm16238_vm11 = vcmp.ne.s32.totalorder %v682_v31, 0 }
  0xc7   : > { %12959 = vmatprep.subr.bf16.mxu0 %v16074_v18  ;;  %v19232_v38 = vrot.slane %v19444_v36, 7  ;;  %vm16246_vm9 = vcmp.ne.s32.totalorder %v710_v23, 0  ;;  %v19461_v31 = vrot.slane %v19442_v11, 7  ;;  %v19462_v23 = vrot.slane %v15623_v22, 7 }
  0xc8   : > { %v1498_v58 = vsel %vm19460_vm7, %v19459_v5, %v1497_v29  ;;  %vm19472_vm7 = vmmov %vm19466_vm4 }
  0xc9   : > { %12896 = vmatmul.mubr.bf16.gmra.mrb[16].mxu0 %v15919_v14 }
  0xca   : > { %12899 = vmatprep.mubr.bf16.mxu0 %v15964_v25 }
  0xd1   : > { %12900 = vmatmul.mubr.bf16.gmra.mrb[20].mxu0 %v15966_v32 }
  0xd2   : > { %12903 = vmatprep.mubr.bf16.mxu0 %v15997_v60 }
  0xd9   : > { %12904 = vmatmul.mubr.bf16.gmra.mrb[24].mxu0 %v15999_v34 }
  0xda   : > { %12907 = vmatprep.mubr.bf16.mxu0 %v16025_v3 }
  0xe1   : > { %12908 = vmatmul.mubr.bf16.gmra.mrb[28].mxu0 %v16027_v51 }
  0xe2   : > { %12927 = vmatprep.mubr.bf16.mxu0 %v15667_v46  ;;  %v14849_v46 = vld [vmem:[%s19110_s1 + $0xe0] sm:$0xff]  }
  0xe9   : > { %12928 = vmatmul.mubr.bf16.vlgmr.msra.gmra.mrb[0].mxu0 %v15684_v4  ;;  %v19228_v4 = vrot.slane %v15665_v45, 7 }
  0xea   : > { %12960 = vmatpush3.bf16.msra.mxu0 %v16074_v18  ;;  %12931 = vmatprep.mubr.bf16.mxu0 %v15730_v10  ;;  %v14850_v10 = vld [vmem:[%s19110_s1 + $0xe8] sm:$0xff]   ;;  %v580_v18 = vadd.s32 144, %v15484_v2 }
  0xeb   : > { %12961 = vmatprep.subr.bf16.mxu0 %v14846_v63 }
  0xee   : > { %12962 = vmatpush3.bf16.msra.mxu0 %v14846_v63  ;;  %v582_v63 = vadd.s32 160, %v15484_v2 }
  0xef   : > { %12963 = vmatprep.subr.bf16.mxu0 %v14847_v48 }
  0xf1   : > { %12932 = vmatmul.mubr.bf16.gmra.mrb[4].mxu0 %v15735_v24  ;;  %v14851_v24 = vld [vmem:[%s19110_s1 + $0xf0] sm:$0xff]  }
  0xf2   : > { %12935 = vmatprep.mubr.bf16.mxu0 %v15834_v57  ;;  %12964 = vmatpush3.bf16.msra.mxu0 %v14847_v48  ;;  %v14852_v57 = vld [vmem:[%s19110_s1 + $0xf8] sm:$0xff]   ;;  %v724_v48 = vand.u32 15, %v580_v18  ;;  %v19464_v18 = vrot.slane %v19443_v52, 7 }
  0xf3   : > { %12965 = vmatprep.subr.bf16.mxu0 %v14848_v43 }
  0xf4   : > { %vm16251_vm8 = vcmp.ne.s32.totalorder %v724_v48, 0  ;;  %v1648_v48 = vsel %vm16234_vm10, %v1498_v58, 0.0  ;;  %v19473_v58 = vrot.slane %v15533_v20, 7 }
  0xf6   : > { %12966 = vmatpush3.bf16.msra.mxu0 %v14848_v43  ;;  %v19226_v43 = vrot.slane %v15681_v0, 7 }
  0xf7   : > { %12967 = vmatprep.subr.bf16.mxu0 %v14849_v46 }
  0xf9   : > { %12936 = vmatmul.mubr.bf16.gmra.mrb[8].mxu0 %v15836_v56  ;;  %v14853_v56 = vld [vmem:[%s19110_s1 + $0x100] sm:$0xff]  }
  0xfa   : > { %12939 = vmatprep.mubr.bf16.mxu0 %v15910_v9  ;;  %12968 = vmatpush3.bf16.msra.mxu0 %v14849_v46  ;;  %v19227_v9 = vrot.slane %v15700_v28, 7  ;;  %v738_v46 = vand.u32 15, %v582_v63  ;;  %v16274_v63 = vsel %vm19465_vm5, %v19464_v18, %v19232_v38  ;;  %v16308_v18 = vadd.s32 176, %v15484_v2 }
  0xfb   : > { %12969 = vmatprep.subr.bf16.mxu0 %v14850_v10 }
  0xfc   : > { %vm16296_vm5 = vcmp.ne.s32.totalorder %v738_v46, 0  ;;  %v19471_v46 = vrot.slane %v15520_v15, 7 }
  0xfe   : > { %12970 = vmatpush3.bf16.msra.mxu0 %v14850_v10  ;;  %v19449_v10 = vmov 0 }
  0xff   : > { %12971 = vmatprep.subr.bf16.mxu0 %v14851_v24  ;;  %v19450_v10 = vsel %vm16238_vm11, 4294967295, %v19449_v10 }
 0x100   : > { %19451 = vst [vmem:[#allocation22_spill] sm:$0xff] %v19450_v10 }
 0x101   : > { %12940 = vmatmul.mubr.bf16.gmra.mrb[12].mxu0 %v15919_v14  ;;  %v19446_v14 = vmov 0 }
 0x102   : > { %12943 = vmatprep.mubr.bf16.mxu0 %v15964_v25  ;;  %12972 = vmatpush3.bf16.msra.mxu0 %v14851_v24  ;;  %v19447_v14 = vsel %vm16234_vm10, 4294967295, %v19446_v14  ;;  %v19452_v25 = vmov 0  ;;  %v19455_v24 = vmov 0 }
 0x103   : > { %12973 = vmatprep.subr.bf16.mxu0 %v14852_v57  ;;  %19448 = vst [vmem:[#allocation20_spill] sm:$0xff] %v19447_v14  ;;  %v19453_v25 = vsel %vm16242_vm15, 4294967295, %v19452_v25  ;;  %v19456_v24 = vsel %vm16246_vm9, 4294967295, %v19455_v24 }
 0x104   : > { %19454 = vst [vmem:[#allocation23_spill] sm:$0xff] %v19453_v25 }
 0x106   : > { %12974 = vmatpush3.bf16.msra.mxu0 %v14852_v57 }
 0x107   : > { %13007 = vmatprep.subr.bf16.mxu0 %v14853_v56 }
 0x109   : > { %12944 = vmatmul.mubr.bf16.gmra.mrb[16].mxu0 %v15966_v32  ;;  %v19457_v32 = vmov 0 }
 0x10a   : > { %12947 = vmatprep.mubr.bf16.mxu0 %v15997_v60  ;;  %v19458_v32 = vsel %vm16251_vm8, 4294967295, %v19457_v32  ;;  %v19225_v60 = vrot.slane %v15712_v40, 7 }
 0x111   : > { %12948 = vmatmul.mubr.bf16.gmra.mrb[20].mxu0 %v15999_v34  ;;  %v16267_v34 = vsel %vm19463_vm6, %v19462_v23, %v19461_v31  ;;  %vm19467_vm6 = vmmov %vm19466_vm4  ;;  %v19468_v31 = vmov 0  ;;  %v16305_v23 = vsel %vm19466_vm4, %v19227_v9, %v19225_v60  ;;  %v752_v9 = vand.u32 15, %v16308_v18 }
 0x112   : > { %12951 = vmatprep.mubr.bf16.mxu0 %v16025_v3  ;;  %v16281_v3 = vsel %vm19466_vm4, %v1507_v39, %v19228_v4  ;;  %v16288_v57 = vsel %vm19467_vm6, %v19229_v1, %v19226_v43  ;;  %v19469_v31 = vsel %vm16296_vm5, 4294967295, %v19468_v31  ;;  %v19470_v1 = vrot.slane %v15522_v16, 7  ;;  %vm19475_vm6 = vmmov %vm19466_vm4  ;;  %v16339_v43 = vld [vmem:[#allocation2] sm:$0xff] }
 0x113   : > { %v19474_v60 = vrot.slane %v15524_v17, 7  ;;  %v16344_v4 = vadd.s32 208, %v15484_v2  ;;  %vm19477_vm4 = vcmp.lt.s32.totalorder %v15499_v7, 64 }
 0x114   : > { %vm19481_vm10 = vmmov %vm19477_vm4 }
 0x115   : > { %v1484_v5 = vsel %vm19475_vm6, %v19474_v60, %v19473_v58  ;;  %v19479_v58 = vsel %vm16106_vm13, %v16137_v59, 0.0  ;;  %vm19480_vm6 = vmmov %vm19477_vm4  ;;  %v19483_v59 = vrot.slane %v15535_v21, 7 }
 0x116   : > { %v1672_v18 = vsel %vm19480_vm6, %v15524_v17, %v19479_v58  ;;  %v19485_v17 = vrot.slane %v15577_v49, 7  ;;  %v19486_v58 = vrot.slane %v15548_v30, 7 }
 0x119   : > { %12952 = vmatmul.mubr.bf16.gmra.mrb[24].mxu0 %v16027_v51  ;;  %v1480_v51 = vsel %vm19472_vm7, %v19471_v46, %v19470_v1  ;;  %v19476_v1 = vsel %vm16100_vm14, %v16091_v6, 0.0  ;;  %vm19478_vm7 = vmmov %vm19477_vm4  ;;  %v1673_v6 = vsel %vm19481_vm10, %v15533_v20, %v1484_v5  ;;  %v14855_v5 = vld [vmem:[%s19110_s1 + $0x110] sm:$0xff]  }
 0x11a   : > { %12955 = vmatprep.mubr.bf16.mxu0 %v16038_v19  ;;  %v16325_v19 = vadd.s32 192, %v15484_v2  ;;  %v1670_v46 = vsel %vm19477_vm4, %v15520_v15, %v19476_v1  ;;  %v1671_v60 = vsel %vm19478_vm7, %v15522_v16, %v1480_v51  ;;  %v14854_v15 = vld [vmem:[%s19110_s1 + $0x108] sm:$0xff]   ;;  %v16372_v1 = vpack.c.bf16 %v1673_v6, %v1672_v18  ;;  %vm19489_vm10 = vmmov %vm19480_vm6 }
 0x11b   : > { %v16367_v38 = vpack.c.bf16 %v1671_v60, %v1670_v46  ;;  %v19482_v16 = vrot.slane %v15542_v27, 7  ;;  %vm19484_vm4 = vcmask 1040384   ;;  %v19488_v18 = vsel %vm16114_vm12, %v16144_v41, 0.0 }
 0x11c   : > { %vm19487_vm7 = vmmov %vm19484_vm4  ;;  %v1674_v46 = vsel %vm19489_vm10, %v15535_v21, %v19488_v18  ;;  %v19490_v6 = vsel %vm16121_vm0, %v16151_v8, 0.0  ;;  %v14856_v21 = vld [vmem:[%s19110_s1 + $0x118] sm:$0xff]   ;;  %v19494_v8 = vrot.slane %v15579_v50, 7  ;;  %vm19495_vm10 = vcmask 1040384  }
 0x11d   : > { %v1488_v51 = vsel %vm19484_vm4, %v19483_v59, %v19482_v16  ;;  %v1492_v20 = vsel %vm19487_vm7, %v19486_v58, %v19485_v17  ;;  %vm19491_vm4 = vmmov %vm19480_vm6  ;;  %v19493_v59 = vrot.slane %v15588_v54, 7  ;;  %v19498_v17 = vsel %vm16125_vm1, %v16158_v61, 0.0 }
 0x11e   : > { %v1675_v60 = vsel %vm19480_vm6, %v15542_v27, %v1488_v51  ;;  %vm19492_vm7 = vmmov %vm19491_vm4  ;;  %v1678_v58 = vsel %vm19491_vm4, %v15579_v50, %v19498_v17  ;;  %v14858_v50 = vld [vmem:[%s19110_s1 + $0x128] sm:$0xff]  }
 0x11f   : > { %v1677_v41 = vsel %vm19492_vm7, %v15577_v49, %v1492_v20  ;;  %v16409_v16 = vpack.c.bf16 %v1675_v60, %v1674_v46  ;;  %v1496_v51 = vsel %vm19495_vm10, %v19494_v8, %v19493_v59  ;;  %vm19497_vm6 = vmmov %vm19495_vm10  ;;  %v14859_v60 = vld [vmem:[%s19110_s1 + $0x130] sm:$0xff]   ;;  %v19515_v8 = vrot.slane %v15665_v45, 7 }
 0x120   : > { %vm19499_vm7 = vmmov %vm19491_vm4 }
 0x121   : > { %12956 = vmatmul.mubr.bf16.gmra.mrb[28].mxu0 %v16339_v43  ;;  %vm19500_vm10 = vmmov %vm19491_vm4 }
 0x122   : > { %12975 = vmatprep.mubr.bf16.mxu0 %v16339_v43  ;;  %v1680_v20 = vsel %vm19500_vm10, %v15590_v55, %v1648_v48 }
 0x129   : > { %12976 = vmatmul.mubr.bf16.vlgmr.msra.gmra.mrb[0].mxu0 %v16367_v38 }
 0x12a   : > { %13008 = vmatpush3.bf16.msra.mxu0 %v14853_v56  ;;  %12979 = vmatprep.mubr.bf16.mxu0 %v16372_v1  ;;  %v1676_v56 = vsel %vm19491_vm4, %v15548_v30, %v19490_v6  ;;  %v19496_v30 = vrot.slane %v15623_v22, 7  ;;  %v19507_v6 = vsel %vm16238_vm11, %v16267_v34, 0.0 }
 0x12b   : > { %13009 = vmatprep.subr.bf16.mxu0 %v14854_v15  ;;  %v16414_v27 = vpack.c.bf16 %v1677_v41, %v1676_v56  ;;  %v19509_v41 = vsel %vm16242_vm15, %v16274_v63, 0.0 }
 0x12c   : > { %v1500_v49 = vsel %vm19497_vm6, %v1497_v29, %v19496_v30  ;;  %v1679_v29 = vsel %vm19499_vm7, %v15588_v54, %v1496_v51  ;;  %vm19501_vm6 = vmmov %vm19491_vm4  ;;  %v19502_v54 = vrot.slane %v19443_v52, 7  ;;  %vm19504_vm4 = vcmask 1040384  }
 0x12d   : > { %v1681_v18 = vsel %vm19501_vm6, %v15623_v22, %v1500_v49  ;;  %v16447_v46 = vpack.c.bf16 %v1679_v29, %v1678_v58  ;;  %v19505_v22 = vrot.slane %v19444_v36, 7  ;;  %vm19506_vm7 = vmmov %vm19504_vm4  ;;  %v19517_v51 = vrot.slane %v15700_v28, 7  ;;  %v16514_v49 = vld [vmem:[%s19110_s1 + $0x140] sm:$0xff]  }
 0x12e   : > { %13010 = vmatpush3.bf16.msra.mxu0 %v14854_v15  ;;  %v14857_v15 = vld [vmem:[%s19110_s1 + $0x120] sm:$0xff]   ;;  %v16452_v61 = vpack.c.bf16 %v1681_v18, %v1680_v20  ;;  %vm19508_vm10 = vmmov %vm19501_vm6  ;;  %v19522_v29 = vsel %vm16251_vm8, %v16288_v57, 0.0 }
 0x12f   : > { %13011 = vmatprep.subr.bf16.mxu0 %v14855_v5  ;;  %v1508_v48 = vsel %vm19506_vm7, %v19505_v22, %v1507_v39  ;;  %v1682_v56 = vsel %vm19508_vm10, %v19442_v11, %v19507_v6  ;;  %vm16491_vm10 = vcmp.ne.s32.totalorder %v752_v9, 0  ;;  %v19518_v9 = vrot.slane %v15681_v0, 7 }
 0x130   : > { %v1525_v6 = vrot.slane %v15794_v42, 7 }
 0x131   : > { %12980 = vmatmul.mubr.bf16.gmra.mrb[4].mxu0 %v16409_v16 }
 0x132   : > { %12983 = vmatprep.mubr.bf16.mxu0 %v16414_v27  ;;  %13012 = vmatpush3.bf16.msra.mxu0 %v14855_v5  ;;  %v19503_v5 = vrot.slane %v19442_v11, 7  ;;  %v19512_v11 = vmov 0 }
 0x133   : > { %13013 = vmatprep.subr.bf16.mxu0 %v14856_v21  ;;  %v19513_v11 = vsel %vm16491_vm10, 4294967295, %v19512_v11 }
 0x134   : > { %v1504_v55 = vsel %vm19504_vm4, %v19503_v5, %v19502_v54  ;;  %vm19510_vm4 = vmmov %vm19501_vm6 }
 0x135   : > { %v1683_v39 = vsel %vm19501_vm6, %v19443_v52, %v1504_v55  ;;  %vm19511_vm7 = vmmov %vm19510_vm4  ;;  %v14860_v52 = vld [vmem:[%s19110_s1 + $0x138] sm:$0xff]   ;;  %vm19516_vm6 = vcmask 1040384  }
 0x136   : > { %13014 = vmatpush3.bf16.msra.mxu0 %v14856_v21  ;;  %v1684_v21 = vsel %vm19510_vm4, %v19444_v36, %v19509_v41  ;;  %v1685_v34 = vsel %vm19511_vm7, %v19445_v33, %v1508_v48  ;;  %v16489_v59 = vpack.c.bf16 %v1683_v39, %v1682_v56  ;;  %v19514_v36 = vrot.slane %v15679_v62, 7  ;;  %vm19519_vm4 = vmmov %vm19516_vm6  ;;  %v19534_v39 = vld [vmem:[#allocation31_spill] sm:$0xff] }
 0x137   : > { %13015 = vmatprep.subr.bf16.mxu0 %v14857_v15  ;;  %v16498_v63 = vpack.c.bf16 %v1685_v34, %v1684_v21  ;;  %v1516_v30 = vsel %vm19519_vm4, %v19518_v9, %v19517_v51  ;;  %v780_v56 = vand.u32 15, %v16344_v4  ;;  %v1529_v41 = vrot.slane %v19534_v39, 7  ;;  %v19544_v51 = vld [vmem:[#allocation32_spill] sm:$0xff] }
 0x138   : > { %v1512_v33 = vsel %vm19516_vm6, %v19515_v8, %v19514_v36  ;;  %vm19521_vm6 = vmmov %vm19511_vm7  ;;  %v19535_v21 = vsel %vm16296_vm5, %v16305_v23, 0.0  ;;  %v19539_v36 = vld [vmem:[#allocation30_spill] sm:$0xff]  ;;  %v19540_v23 = vmov 0  ;;  %v590_v9 = vadd.s32 224, %v15484_v2 }
 0x139   : > { %12984 = vmatmul.mubr.bf16.gmra.mrb[8].mxu0 %v16447_v46  ;;  %v1687_v58 = vsel %vm19521_vm6, %v15679_v62, %v1512_v33  ;;  %vm19523_vm4 = vmmov %vm19521_vm6  ;;  %v19526_v62 = vrot.slane %v15720_v53, 7  ;;  %v1527_v8 = vrot.slane %v19539_v36, 7  ;;  %vm19557_vm5 = vcmask 1040384  }
 0x13a   : > { %12987 = vmatprep.mubr.bf16.mxu0 %v16452_v61  ;;  %13016 = vmatpush3.bf16.msra.mxu0 %v14857_v15  ;;  %v19520_v15 = vsel %vm16246_vm9, %v16281_v3, 0.0  ;;  %v1688_v20 = vsel %vm19523_vm4, %v15681_v0, %v19522_v29  ;;  %vm19524_vm9 = vmmov %vm19523_vm4  ;;  %v19529_v0 = vrot.slane %v15712_v40, 7  ;;  %v1690_v34 = vsel %vm19523_vm4, %v15712_v40, %v19535_v21 }
 0x13b   : > { %13017 = vmatprep.subr.bf16.mxu0 %v14858_v50  ;;  %v1686_v17 = vsel %vm19511_vm7, %v15665_v45, %v19520_v15  ;;  %v1689_v3 = vsel %vm19524_vm9, %v15700_v28, %v1516_v30  ;;  %v19525_v45 = vrot.slane %v15727_v37, 7  ;;  %vm19527_vm7 = vcmask 1040384  }
 0x13c   : > { %v16537_v18 = vpack.c.bf16 %v1687_v58, %v1686_v17  ;;  %v16544_v54 = vpack.c.bf16 %v1689_v3, %v1688_v20  ;;  %v19528_v57 = vmov %v19526_v62  ;;  %vm19530_vm6 = vmmov %vm19527_vm7  ;;  %v19531_v28 = vrot.slane %v15778_v35, 7 }
 0x13d   : > { %v1520_v5 = vsel %vm19530_vm6, %v19529_v0, %v19528_v57  ;;  %v19532_v55 = vmov %v19525_v45  ;;  %vm19533_vm9 = vmmov %vm19530_vm6  ;;  %v794_v3 = vand.u32 15, %v590_v9  ;;  %v19562_v9 = vld [vmem:[#allocation39_spill] sm:$0xff] }
 0x13e   : > { %13018 = vmatpush3.bf16.msra.mxu0 %v14858_v50  ;;  %v1522_v50 = vsel %vm19527_vm7, %v19526_v62, %v19525_v45  ;;  %v1524_v22 = vsel %vm19533_vm9, %v19532_v55, %v19531_v28  ;;  %vm19536_vm7 = vmmov %vm19523_vm4  ;;  %v19542_v40 = vmov %v19531_v28  ;;  %v19549_v45 = vld [vmem:[#allocation33_spill] sm:$0xff]  ;;  %v19554_v28 = vld [vmem:[#allocation34_spill] sm:$0xff] }
 0x13f   : > { %13019 = vmatprep.subr.bf16.mxu0 %v14859_v60  ;;  %v1660_v48 = vsel %vm16491_vm10, %v1522_v50, 0.0  ;;  %vm19537_vm6 = vmmov %vm19523_vm4  ;;  %v1533_v62 = vrot.slane %v19549_v45, 7  ;;  %v1535_v55 = vrot.slane %v19554_v28, 7 }
 0x140   : > { %v1692_v4 = vsel %vm19537_vm6, %v15727_v37, %v1660_v48  ;;  %vm19538_vm9 = vmmov %vm19523_vm4  ;;  %vm19543_vm4 = vcmask 1040384   ;;  %v19545_v37 = vmov 0 }
 0x141   : > { %12988 = vmatmul.mubr.bf16.gmra.mrb[12].mxu0 %v16489_v59  ;;  %v1526_v33 = vsel %vm19543_vm4, %v19542_v40, %v1525_v6  ;;  %vm19547_vm6 = vmmov %vm19543_vm4  ;;  %v592_v40 = vadd.s32 240, %v15484_v2  ;;  %v14881_v2 = vld [vmem:[#allocation3 + $0x20] sm:$0xff]  }
 0x142   : > { %12991 = vmatprep.mubr.bf16.mxu0 %v16498_v63  ;;  %13020 = vmatpush3.bf16.msra.mxu0 %v14859_v60  ;;  %v766_v60 = vand.u32 15, %v16325_v19  ;;  %v1691_v19 = vsel %vm19536_vm7, %v15720_v53, %v1520_v5  ;;  %v1531_v53 = vrot.slane %v19544_v51, 7  ;;  %vm16593_vm7 = vcmp.ne.s32.totalorder %v780_v56, 0 }
 0x143   : > { %13021 = vmatprep.subr.bf16.mxu0 %v14860_v52  ;;  %v16591_v30 = vpack.c.bf16 %v1691_v19, %v1690_v34  ;;  %v19546_v37 = vsel %vm16593_vm7, 4294967295, %v19545_v37  ;;  %v1530_v15 = vsel %vm19547_vm6, %v1527_v8, %v1529_v41  ;;  %vm19550_vm6 = vcmp.lt.s32.totalorder %v15499_v7, 64  ;;  %v14869_v34 = vld [vmem:[#allocation3 + $0x40] sm:$0xff]   ;;  %v14862_v19 = vld [vmem:[%s19110_s1 + $0x148] sm:$0xff]   ;;  %v14935_v7 = vld [vmem:[#allocation5 + $0x90] sm:$0xff]  }
 0x144   : > { %vm16582_vm10 = vcmp.ne.s32.totalorder %v766_v60, 0  ;;  %v1532_v29 = vsel %vm19543_vm4, %v1529_v41, %v1531_v53  ;;  %v1664_v20 = vsel %vm16593_vm7, %v1530_v15, 0.0  ;;  %13103 = vmatprep.subr.bf16.mxu1 %v14869_v34  ;;  %v1539_v15 = vrot.slane %v19562_v9, 7 }
 0x145   : > { %v19541_v23 = vsel %vm16582_vm10, 4294967295, %v19540_v23  ;;  %13104 = vmatpush3.bf16.msra.mxu1 %v14869_v34 }
 0x146   : > { %13022 = vmatpush3.bf16.msra.mxu0 %v14860_v52  ;;  %v1693_v52 = vsel %vm19538_vm9, %v15778_v35, %v1524_v22  ;;  %vm19548_vm9 = vmmov %vm19543_vm4  ;;  %v1662_v35 = vsel %vm16582_vm10, %v1526_v33, 0.0  ;;  %vm16622_vm10 = vcmp.ne.s32.totalorder %v794_v3, 0  ;;  %v19555_v22 = vmov 0 }
 0x147   : > { %13055 = vmatprep.subr.bf16.mxu0 %v16514_v49  ;;  %v16598_v17 = vpack.c.bf16 %v1693_v52, %v1692_v4  ;;  %v1528_v58 = vsel %vm19548_vm9, %v1525_v6, %v1527_v8  ;;  %v1694_v50 = vsel %vm19550_vm6, %v15794_v42, %v1662_v35  ;;  %vm19551_vm9 = vmmov %vm19550_vm6  ;;  %v19556_v22 = vsel %vm16622_vm10, 4294967295, %v19555_v22  ;;  %v14863_v4 = vld [vmem:[%s19110_s1 + $0x150] sm:$0xff]   ;;  %v14866_v52 = vld [vmem:[%s19110_s1 + $0x168] sm:$0xff]  }
 0x148   : > { %v1695_v57 = vsel %vm19551_vm9, %v19539_v36, %v1528_v58  ;;  %vm19552_vm4 = vmmov %vm19550_vm6  ;;  %v1534_v42 = vsel %vm19557_vm5, %v1531_v53, %v1533_v62  ;;  %v14867_v36 = vld [vmem:[%s19110_s1 + $0x170] sm:$0xff]   ;;  %v14868_v8 = vld [vmem:[%s19110_s1 + $0x178] sm:$0xff]   ;;  %v808_v33 = vand.u32 15, %v592_v40  ;;  %v19563_v58 = vmov 0 }
 0x149   : > { %12992 = vmatmul.mubr.bf16.gmra.mrb[16].mxu0 %v16537_v18  ;;  %v1696_v0 = vsel %vm19552_vm4, %v19534_v39, %v1664_v20  ;;  %vm19553_vm7 = vmmov %vm19552_vm4  ;;  %v16627_v48 = vpack.c.bf16 %v1695_v57, %v1694_v50  ;;  %v1666_v56 = vsel %vm16622_vm10, %v1534_v42, 0.0 }
 0x14a   : > { %12995 = vmatprep.mubr.bf16.mxu0 %v16544_v54  ;;  %v1697_v5 = vsel %vm19553_vm7, %v19544_v51, %v1532_v29  ;;  %vm19558_vm6 = vmmov %vm19557_vm5  ;;  %v19561_v51 = vld [vmem:[#allocation35_spill] sm:$0xff]  ;;  %vm16683_vm9 = vcmp.ne.s32.totalorder %v808_v33, 0 }
 0x14b   : > { %v16629_v60 = vpack.c.bf16 %v1697_v5, %v1696_v0  ;;  %v1536_v6 = vsel %vm19558_vm6, %v1533_v62, %v1535_v55  ;;  %vm19559_vm7 = vmmov %vm19552_vm4  ;;  %v1537_v53 = vrot.slane %v19561_v51, 7  ;;  %v19564_v58 = vsel %vm16683_vm9, 4294967295, %v19563_v58 }
 0x14c   : > { %v1698_v39 = vsel %vm19559_vm7, %v19549_v45, %v1666_v56  ;;  %vm19560_vm5 = vmmov %vm19552_vm4 }
 0x14d   : > { %v1699_v41 = vsel %vm19560_vm5, %v19554_v28, %v1536_v6  ;;  %vm19565_vm4 = vmmov %vm19558_vm6 }
 0x14e   : > { %v16642_v21 = vpack.c.bf16 %v1699_v41, %v1698_v39  ;;  %v1538_v35 = vsel %vm19565_vm4, %v1535_v55, %v1537_v53  ;;  %vm19566_vm6 = vmmov %vm19565_vm4 }
 0x14f   : > { %v1540_v29 = vsel %vm19566_vm6, %v1537_v53, %v1539_v15  ;;  %v1668_v20 = vsel %vm16683_vm9, %v1538_v35, 0.0  ;;  %vm19567_vm7 = vmmov %vm19560_vm5 }
 0x150   : > { %v1700_v3 = vsel %vm19567_vm7, %v19561_v51, %v1668_v20  ;;  %v1701_v45 = vsel %vm19560_vm5, %v19562_v9, %v1540_v29  ;;  %vm19572_vm6 = vmmov %vm19565_vm4 }
 0x151   : > { %12996 = vmatmul.mubr.bf16.gmra.mrb[20].mxu0 %v16591_v30  ;;  %v1749_v62 = vpack.c.bf16 %v1701_v45, %v1700_v3  ;;  %vm19573_vm7 = vmmov %vm19560_vm5  ;;  %vm19574_vm5 = vcmask 1046528  }
 0x152   : > { %12999 = vmatprep.mubr.bf16.mxu0 %v16598_v17  ;;  %vm19576_vm9 = vmmov %vm19573_vm7 }
 0x159   : > { %13000 = vmatmul.mubr.bf16.gmra.mrb[24].mxu0 %v16627_v48 }
 0x15a   : > { %13003 = vmatprep.mubr.bf16.mxu0 %v16629_v60 }
 0x161   : > { %13004 = vmatmul.mubr.bf16.gmra.mrb[28].mxu0 %v16642_v21 }
 0x162   : > { %13023 = vmatprep.mubr.bf16.mxu0 %v16367_v38  ;;  %v14864_v38 = vld [vmem:[%s19110_s1 + $0x158] sm:$0xff]  }
 0x169   : > { %13024 = vmatmul.mubr.bf16.vlgmr.msra.gmra.mrb[0].mxu0 %v16372_v1 }
 0x16a   : > { %13056 = vmatpush3.bf16.msra.mxu0 %v16514_v49  ;;  %13027 = vmatprep.mubr.bf16.mxu0 %v16409_v16  ;;  %v14865_v49 = vld [vmem:[%s19110_s1 + $0x160] sm:$0xff]  }
 0x16b   : > { %13057 = vmatprep.subr.bf16.mxu0 %v14862_v19 }
 0x16e   : > { %13058 = vmatpush3.bf16.msra.mxu0 %v14862_v19 }
 0x16f   : > { %13059 = vmatprep.subr.bf16.mxu0 %v14863_v4 }
 0x171   : > { %13028 = vmatmul.mubr.bf16.gmra.mrb[4].mxu0 %v16414_v27 }
 0x172   : > { %13031 = vmatprep.mubr.bf16.mxu0 %v16447_v46  ;;  %13060 = vmatpush3.bf16.msra.mxu0 %v14863_v4 }
 0x173   : > { %13061 = vmatprep.subr.bf16.mxu0 %v14864_v38 }
 0x176   : > { %13062 = vmatpush3.bf16.msra.mxu0 %v14864_v38 }
 0x177   : > { %13063 = vmatprep.subr.bf16.mxu0 %v14865_v49 }
 0x179   : > { %13032 = vmatmul.mubr.bf16.gmra.mrb[8].mxu0 %v16452_v61 }
 0x17a   : > { %13035 = vmatprep.mubr.bf16.mxu0 %v16489_v59  ;;  %13064 = vmatpush3.bf16.msra.mxu0 %v14865_v49 }
 0x17b   : > { %13065 = vmatprep.subr.bf16.mxu0 %v14866_v52 }
 0x17e   : > { %13066 = vmatpush3.bf16.msra.mxu0 %v14866_v52 }
 0x17f   : > { %13067 = vmatprep.subr.bf16.mxu0 %v14867_v36 }
 0x181   : > { %13036 = vmatmul.mubr.bf16.gmra.mrb[12].mxu0 %v16498_v63 }
 0x182   : > { %13039 = vmatprep.mubr.bf16.mxu0 %v16537_v18  ;;  %13068 = vmatpush3.bf16.msra.mxu0 %v14867_v36 }
 0x183   : > { %13069 = vmatprep.subr.bf16.mxu0 %v14868_v8 }
 0x186   : > { %13070 = vmatpush3.bf16.msra.mxu0 %v14868_v8 }
 0x189   : > { %13040 = vmatmul.mubr.bf16.gmra.mrb[16].mxu0 %v16544_v54 }
 0x18a   : > { %13043 = vmatprep.mubr.bf16.mxu0 %v16591_v30 }
 0x191   : > { %13044 = vmatmul.mubr.bf16.gmra.mrb[20].mxu0 %v16598_v17 }
 0x192   : > { %13047 = vmatprep.mubr.bf16.mxu0 %v16627_v48 }
 0x199   : > { %13048 = vmatmul.mubr.bf16.gmra.mrb[24].mxu0 %v16629_v60 }
 0x19a   : > { %13051 = vmatprep.mubr.bf16.mxu0 %v16642_v21 }
 0x1a1   : > { %13052 = vmatmul.mubr.bf16.gmra.mrb[28].mxu0 %v1749_v62 }
 0x1a2   : > { %13071 = vmatprep.mubr.bf16.mxu0 %v16372_v1  ;;  %v14870_v1 = vld [vmem:[#allocation3 + $0x48] sm:$0xff]  }
 0x1a3   : > { %13105 = vmatprep.subr.bf16.mxu1 %v14870_v1 }
 0x1a4   : > { %13106 = vmatpush3.bf16.msra.mxu1 %v14870_v1 }
 0x1a9   : > { %13072 = vmatmul.mubr.bf16.vlgmr.msra.gmra.mrb[0].mxu0 %v16409_v16  ;;  %v14871_v16 = vld [vmem:[#allocation3 + $0x50] sm:$0xff]  }
 0x1aa   : > { %13075 = vmatprep.mubr.bf16.mxu0 %v16414_v27  ;;  %13107 = vmatprep.subr.bf16.mxu1 %v14871_v16  ;;  %v14872_v27 = vld [vmem:[#allocation3 + $0x58] sm:$0xff]  }
 0x1ab   : > { %13108 = vmatpush3.bf16.msra.mxu1 %v14871_v16 }
 0x1ac   : > { %13109 = vmatprep.subr.bf16.mxu1 %v14872_v27 }
 0x1af   : > { %13110 = vmatpush3.bf16.msra.mxu1 %v14872_v27 }
 0x1b1   : > { %13076 = vmatmul.mubr.bf16.gmra.mrb[4].mxu0 %v16447_v46  ;;  %v14873_v46 = vld [vmem:[#allocation3 + $0x60] sm:$0xff]  }
 0x1b2   : > { %13079 = vmatprep.mubr.bf16.mxu0 %v16452_v61  ;;  %13111 = vmatprep.subr.bf16.mxu1 %v14873_v46  ;;  %v14874_v61 = vld [vmem:[#allocation3 + $0x68] sm:$0xff]  }
 0x1b3   : > { %13112 = vmatpush3.bf16.msra.mxu1 %v14873_v46 }
 0x1b4   : > { %13113 = vmatprep.subr.bf16.mxu1 %v14874_v61 }
 0x1b7   : > { %13114 = vmatpush3.bf16.msra.mxu1 %v14874_v61 }
 0x1b9   : > { %13080 = vmatmul.mubr.bf16.gmra.mrb[8].mxu0 %v16489_v59  ;;  %v14875_v59 = vld [vmem:[#allocation3 + $0x70] sm:$0xff]  }
 0x1ba   : > { %13083 = vmatprep.mubr.bf16.mxu0 %v16498_v63  ;;  %13115 = vmatprep.subr.bf16.mxu1 %v14875_v59  ;;  %v14876_v63 = vld [vmem:[#allocation3 + $0x78] sm:$0xff]  }
 0x1bb   : > { %13116 = vmatpush3.bf16.msra.mxu1 %v14875_v59 }
 0x1bc   : > { %13117 = vmatprep.subr.bf16.mxu1 %v14876_v63 }
 0x1bf   : > { %13118 = vmatpush3.bf16.msra.mxu1 %v14876_v63 }
 0x1c1   : > { %13084 = vmatmul.mubr.bf16.gmra.mrb[12].mxu0 %v16537_v18  ;;  %v16720_v18 = vld [vmem:[%s19111_s2] ss:$0 sm:$0xff] }
 0x1c2   : > { %13087 = vmatprep.mubr.bf16.mxu0 %v16544_v54 }
 0x1c9   : > { %13088 = vmatmul.mubr.bf16.gmra.mrb[16].mxu0 %v16591_v30 }
 0x1ca   : > { %13091 = vmatprep.mubr.bf16.mxu0 %v16598_v17 }
 0x1d1   : > { %13092 = vmatmul.mubr.bf16.gmra.mrb[20].mxu0 %v16627_v48 }
 0x1d2   : > { %13095 = vmatprep.mubr.bf16.mxu0 %v16629_v60 }
 0x1d9   : > { %13096 = vmatmul.mubr.bf16.gmra.mrb[24].mxu0 %v16642_v21 }
 0x1da   : > { %13099 = vmatprep.mubr.bf16.mxu0 %v1749_v62 }
 0x1e1   : > { %13100 = vmatmul.mubr.bf16.gmra.mrb[28].mxu0 %v16339_v43  ;;  %v16714_v43 = vld [vmem:[#allocation3] sm:$0xff]  }
 0x1e2   : > { %13151 = vmatprep.subr.bf16.mxu1 %v16714_v43 }
 0x27c   : > { %v13073_v54 = vpop.f32.mrb[0].mxu0 }
 0x27d   : > { %v3339_v30 = vadd.f32 %v13073_v54, %v16720_v18  ;;  %v3171_v17 = vpop.f32.mrb[1].mxu0 }
 0x27e   : > { %v3337_v50 = vadd.f32 %v16720_v18, %v3171_v17  ;;  %v13074_v57 = vpop.f32.mrb[2].mxu0 }
 0x27f   : > { %v16724_v0 = vmax.f32 %v3339_v30, 0.0  ;;  %v3340_v5 = vadd.f32 %v13074_v57, %v16720_v18  ;;  %v3174_v28 = vpop.f32.mrb[3].mxu0 }
 0x280   : > { %v16727_v55 = vmax.f32 %v3337_v50, 0.0  ;;  %v3338_v42 = vadd.f32 %v16720_v18, %v3174_v28 }
 0x281   : > { %19568 = vst [vmem:[#allocation25_spill] sm:$0xff] %v16724_v0  ;;  %v16730_v48 = vmax.f32 %v3340_v5, 0.0  ;;  %v3596_v56 = vrot.slane %v16724_v0, 7  ;;  %v3436_v38 = vrot.slane %v16724_v0, 1 }
 0x282   : > { %19569 = vst [vmem:[#allocation31_spill] sm:$0xff] %v16727_v55  ;;  %v3593_v60 = vrot.slane %v16727_v55, 7  ;;  %v16733_v6 = vmax.f32 %v3338_v42, 0.0  ;;  %v3433_v41 = vrot.slane %v16727_v55, 1 }
 0x283   : > { %19570 = vst [vmem:[#allocation30_spill] sm:$0xff] %v16730_v48  ;;  %v3598_v39 = vrot.slane %v16730_v48, 7  ;;  %v3438_v40 = vrot.slane %v16730_v48, 1 }
 0x284   : > { %19571 = vst [vmem:[#allocation32_spill] sm:$0xff] %v16733_v6  ;;  %v3688_v21 = vsel %vm19565_vm4, 0.0, %v3593_v60  ;;  %v3434_v34 = vrot.slane %v16733_v6, 1  ;;  %v3594_v19 = vrot.slane %v16733_v6, 7  ;;  %v13077_v4 = vpop.f32.mrb[4].mxu0  ;;  %vm19575_vm4 = vmmov %vm19574_vm5 }
 0x285   : > { %v3689_v49 = vsel %vm16100_vm14, %v3688_v21, 0.0  ;;  %v3599_v52 = vsel %vm19572_vm6, %v3596_v56, %v3598_v39  ;;  %v3187_v36 = vpop.f32.mrb[5].mxu0  ;;  %v3343_v51 = vadd.f32 %v13077_v4, %v16720_v18  ;;  %vm19577_vm14 = vmmov %vm19572_vm6  ;;  %v3439_v17 = vsel %vm19575_vm4, %v3436_v38, %v3438_v40 }
 0x286   : > { %v3721_v8 = vsel %vm19573_vm7, %v16727_v55, %v3689_v49  ;;  %v3435_v33 = vsel %vm19574_vm5, %v3433_v41, %v3434_v34  ;;  %v13078_v53 = vpop.f32.mrb[6].mxu0  ;;  %v3437_v9 = vsel %vm19575_vm4, %v3434_v34, %v3436_v38  ;;  %v3595_v35 = vsel %vm19577_vm14, %v3593_v60, %v3594_v19  ;;  %vm19579_vm5 = vmmov %vm19573_vm7 }
 0x287   : > { %v3561_v15 = vsel %vm19576_vm9, %v16727_v55, %v3435_v33  ;;  %v3597_v29 = vsel %vm19572_vm6, %v3594_v19, %v3596_v56  ;;  %v3190_v20 = vpop.f32.mrb[7].mxu0  ;;  %v3724_v3 = vsel %vm19573_vm7, %v16730_v48, %v3599_v52  ;;  %v3530_v62 = vsel %vm15529_vm2, %v3437_v9, 0.0  ;;  %vm19580_vm14 = vmmov %vm19579_vm5 }
 0x288   : > { %v3691_v1 = vsel %vm16106_vm13, %v3597_v29, 0.0  ;;  %v3722_v16 = vsel %vm19579_vm5, %v16733_v6, %v3595_v35  ;;  %v3562_v27 = vsel %vm19580_vm14, %v16733_v6, %v3530_v62  ;;  %vm19581_vm9 = vmmov %vm19579_vm5  ;;  %v3341_v59 = vadd.f32 %v16720_v18, %v3187_v36  ;;  %v19640_v6 = vld [vmem:[#allocation24_spill] sm:$0xff] }
 0x289   : > { %v3723_v46 = vsel %vm19581_vm9, %v16724_v0, %v3691_v1  ;;  %v3785_v61 = vpack.c.bf16 %v3722_v16, %v3721_v8  ;;  %v16774_v63 = vpack.c.bf16 %v3562_v27, %v3561_v15  ;;  %v16776_v30 = vmax.f32 %v3343_v51, 0.0  ;;  %vm19586_vm6 = vmmov %vm19579_vm5 }
 0x28a   : > { %v3786_v54 = vpack.c.bf16 %v3724_v3, %v3723_v46  ;;  %v16779_v50 = vmax.f32 %v3341_v59, 0.0  ;;  %v3344_v57 = vadd.f32 %v13078_v53, %v16720_v18  ;;  %v3342_v5 = vadd.f32 %v16720_v18, %v3190_v20  ;;  %vm19587_vm7 = vmmov %vm19575_vm4  ;;  %v19589_v53 = vld [vmem:[#allocation16_spill] sm:$0xff]  ;;  %v14878_v46 = vld [vmem:[#allocation3 + $0x8] sm:$0xff]  }
 0x28b   : > { %19582 = vst [vmem:[#allocation33_spill] sm:$0xff] %v16776_v30  ;;  %3801 = vst [vmem:[#allocation2 + $0x90] sm:$0xff] %v3785_v61  ;;  %13119 = vmatprep.mubr.bf16.mxu1 %v16774_v63  ;;  %v3563_v34 = vsel %vm19586_vm6, %v16724_v0, %v3439_v17  ;;  %v3444_v19 = vrot.slane %v16776_v30, 1  ;;  %v3604_v4 = vrot.slane %v16776_v30, 7  ;;  %vm19588_vm5 = vcmask 1040384  }
 0x28c   : > { %19583 = vst [vmem:[#allocation34_spill] sm:$0xff] %v16779_v50  ;;  %3802 = vst [vmem:[#allocation2 + $0x98] sm:$0xff] %v3786_v54  ;;  %v13081_v28 = vpop.f32.mrb[8].mxu0  ;;  %v3440_v42 = vrot.slane %v16779_v50, 1  ;;  %v3600_v60 = vrot.slane %v16779_v50, 7  ;;  %v16786_v56 = vmax.f32 %v3344_v57, 0.0 }
 0x28d   : > { %v16788_v41 = vmax.f32 %v3342_v5, 0.0  ;;  %v3203_v21 = vpop.f32.mrb[9].mxu0  ;;  %v3347_v38 = vadd.f32 %v13081_v28, %v16720_v18  ;;  %vm19590_vm14 = vmmov %vm19586_vm6  ;;  %v19599_v57 = vld [vmem:[#allocation17_spill] sm:$0xff] }
 0x28e   : > { %19584 = vst [vmem:[#allocation35_spill] sm:$0xff] %v16786_v56  ;;  %v13082_v49 = vpop.f32.mrb[10].mxu0  ;;  %v3441_v52 = vsel %vm19587_vm7, %v3438_v40, %v3440_v42  ;;  %v3601_v36 = vsel %vm19588_vm5, %v3598_v39, %v3600_v60  ;;  %v3446_v8 = vrot.slane %v16786_v56, 1  ;;  %v3606_v33 = vrot.slane %v16786_v56, 7  ;;  %vm19591_vm9 = vmmov %vm19586_vm6 }
 0x28f   : > { %19585 = vst [vmem:[#allocation39_spill] sm:$0xff] %v16788_v41  ;;  %v3206_v51 = vpop.f32.mrb[11].mxu0  ;;  %v3532_v9 = vsel %vm15583_vm3, %v3441_v52, 0.0  ;;  %v3693_v15 = vsel %vm16114_vm12, %v3601_v36, 0.0  ;;  %v3442_v35 = vrot.slane %v16788_v41, 1  ;;  %v3602_v29 = vrot.slane %v16788_v41, 7  ;;  %vm19592_vm4 = vmmov %vm19588_vm5 }
 0x290   : > { %v3564_v40 = vsel %vm19590_vm14, %v16730_v48, %v3532_v9  ;;  %v3725_v39 = vsel %vm19591_vm9, %v16779_v50, %v3693_v15  ;;  %v3607_v20 = vsel %vm19592_vm4, %v3604_v4, %v3606_v33  ;;  %v3345_v3 = vadd.f32 %v16720_v18, %v3203_v21  ;;  %vm19593_vm6 = vmmov %vm19587_vm7 }
 0x291   : > { %v16814_v62 = vpack.c.bf16 %v3564_v40, %v3563_v34  ;;  %v3447_v1 = vsel %vm19593_vm6, %v3444_v19, %v3446_v8  ;;  %vm19594_vm7 = vmmov %vm19591_vm9  ;;  %v3603_v54 = vsel %vm19592_vm4, %v3600_v60, %v3602_v29  ;;  %vm19600_vm3 = vnez %v19599_v57  ;;  %v19697_v57 = vld [vmem:[#allocation40_spill] sm:$0xff] }
 0x292   : > { %v3728_v16 = vsel %vm19594_vm7, %v16786_v56, %v3607_v20  ;;  %vm19595_vm5 = vmmov %vm19593_vm6  ;;  %v16834_v21 = vmax.f32 %v3347_v38, 0.0  ;;  %v16843_v52 = vmax.f32 %v3345_v3, 0.0  ;;  %v3348_v20 = vadd.f32 %v13082_v49, %v16720_v18 }
 0x293   : > { %v3443_v27 = vsel %vm19595_vm5, %v3440_v42, %v3442_v35  ;;  %vm19596_vm14 = vmmov %vm19595_vm5  ;;  %13120 = vmatmul.mubr.bf16.vlgmr.msra.gmra.mrb[0].mxu1 %v16814_v62  ;;  %v3346_v3 = vadd.f32 %v16720_v18, %v3206_v51  ;;  %v19610_v51 = vld [vmem:[#allocation18_spill] sm:$0xff] }
 0x294   : > { %v3445_v61 = vsel %vm19596_vm14, %v3442_v35, %v3444_v19  ;;  %vm19597_vm9 = vmmov %vm19594_vm7  ;;  %19602 = vst [vmem:[#allocation15_spill] sm:$0xff] %v16834_v21  ;;  %v13085_v34 = vpop.f32.mrb[12].mxu0  ;;  %13152 = vmatpush3.bf16.msra.mxu1 %v16714_v43  ;;  %v3448_v40 = vrot.slane %v16843_v52, 1 }
 0x295   : > { %v3565_v59 = vsel %vm19597_vm9, %v16779_v50, %v3443_v27  ;;  %vm19598_vm12 = vmmov %vm19592_vm4  ;;  %v3534_v5 = vsel %vm19600_vm3, %v3445_v61, 0.0  ;;  %19605 = vst [vmem:[#allocation16_spill] sm:$0xff] %v16843_v52  ;;  %v3219_v36 = vpop.f32.mrb[13].mxu0  ;;  %13153 = vmatprep.subr.bf16.mxu1 %v14878_v46  ;;  %v3452_v27 = vrot.slane %v16834_v21, 1  ;;  %v16864_v49 = vmax.f32 %v3346_v3, 0.0 }
 0x296   : > { %v3605_v17 = vsel %vm19598_vm12, %v3602_v29, %v3604_v4  ;;  %vm19601_vm6 = vmmov %vm19594_vm7  ;;  %v13086_v35 = vpop.f32.mrb[14].mxu0  ;;  %v14879_v29 = vld [vmem:[#allocation3 + $0x10] sm:$0xff]   ;;  %v3349_v61 = vadd.f32 %v16720_v18, %v3219_v36 }
 0x297   : > { %v3695_v28 = vsel %vm16121_vm0, %v3605_v17, 0.0  ;;  %v3726_v42 = vsel %vm19601_vm6, %v16788_v41, %v3603_v54  ;;  %vm19603_vm7 = vmmov %vm19601_vm6  ;;  %v3222_v43 = vpop.f32.mrb[15].mxu0  ;;  %v16862_v17 = vmax.f32 %v3348_v20, 0.0  ;;  %19609 = vst [vmem:[#allocation49_spill] sm:$0xff] %v16864_v49  ;;  %v3450_v36 = vrot.slane %v16864_v49, 1 }
 0x298   : > { %v3566_v60 = vsel %vm19603_vm7, %v16788_v41, %v3534_v5  ;;  %vm19604_vm12 = vmmov %vm19601_vm6  ;;  %v3787_v4 = vpack.c.bf16 %v3726_v42, %v3725_v39  ;;  %v3608_v39 = vrot.slane %v16843_v52, 7  ;;  %13154 = vmatpush3.bf16.msra.mxu1 %v14878_v46  ;;  %v16870_v42 = vmax.f32 %v3349_v61, 0.0  ;;  %v19622_v41 = vld [vmem:[#allocation19_spill] sm:$0xff] }
 0x299   : > { %v3727_v19 = vsel %vm19604_vm12, %v16776_v30, %v3695_v28  ;;  %vm19606_vm5 = vmmov %vm19601_vm6  ;;  %v16849_v9 = vpack.c.bf16 %v3566_v60, %v3565_v59  ;;  %v3449_v59 = vsel %vm19596_vm14, %v3446_v8, %v3448_v40  ;;  %19608 = vst [vmem:[#allocation48_spill] sm:$0xff] %v16862_v17  ;;  %13155 = vmatprep.subr.bf16.mxu1 %v14879_v29  ;;  %v3614_v60 = vrot.slane %v16862_v17, 7 }
 0x29a   : > { %v3567_v38 = vsel %vm19606_vm5, %v16776_v30, %v3447_v1  ;;  %v3788_v15 = vpack.c.bf16 %v3728_v16, %v3727_v19  ;;  %3803 = vst [vmem:[#allocation2 + $0xa0] sm:$0xff] %v3787_v4  ;;  %v3612_v1 = vrot.slane %v16834_v21, 7  ;;  %v3351_v16 = vadd.f32 %v13085_v34, %v16720_v18  ;;  %vm19607_vm9 = vmmov %vm19592_vm4  ;;  %v14880_v19 = vld [vmem:[#allocation3 + $0x18] sm:$0xff]  }
 0x29b   : > { %13123 = vmatprep.mubr.bf16.mxu1 %v16849_v9  ;;  %v3609_v54 = vsel %vm19607_vm9, %v3606_v33, %v3608_v39  ;;  %vm19611_vm4 = vnez %v19610_v51  ;;  %19612 = vst [vmem:[#allocation50_spill] sm:$0xff] %v16870_v42  ;;  %v3352_v34 = vadd.f32 %v13086_v35, %v16720_v18  ;;  %vm19613_vm6 = vmmov %vm19606_vm5  ;;  %v3454_v33 = vrot.slane %v16862_v17, 1 }
 0x29c   : > { %3804 = vst [vmem:[#allocation2 + $0xa8] sm:$0xff] %v3788_v15  ;;  %v3536_v5 = vsel %vm19611_vm4, %v3449_v59, 0.0  ;;  %v3697_v28 = vsel %vm16125_vm1, %v3609_v54, 0.0  ;;  %v3350_v46 = vadd.f32 %v16720_v18, %v3222_v43  ;;  %v3610_v15 = vrot.slane %v16864_v49, 7  ;;  %v13089_v35 = vpop.f32.mrb[16].mxu0  ;;  %vm19615_vm7 = vmmov %vm19606_vm5  ;;  %13156 = vmatpush3.bf16.msra.mxu1 %v14879_v29 }
 0x29d   : > { %v3568_v8 = vsel %vm19613_vm6, %v16786_v56, %v3536_v5  ;;  %v16883_v20 = vmax.f32 %v3351_v16, 0.0  ;;  %v3729_v3 = vsel %vm19615_vm7, %v16843_v52, %v3697_v28  ;;  %vm19616_vm12 = vmmov %vm19596_vm14  ;;  %v3456_v43 = vrot.slane %v16870_v42, 1  ;;  %v3235_v54 = vpop.f32.mrb[17].mxu0  ;;  %13157 = vmatprep.subr.bf16.mxu1 %v14880_v19 }
 0x29e   : > { %v16879_v4 = vpack.c.bf16 %v3568_v8, %v3567_v38  ;;  %v3455_v61 = vsel %vm19616_vm12, %v3452_v27, %v3454_v33  ;;  %vm19617_vm5 = vmmov %vm19607_vm9  ;;  %v13090_v8 = vpop.f32.mrb[18].mxu0  ;;  %vm19623_vm7 = vnez %v19622_v41 }
 0x29f   : > { %19614 = vst [vmem:[#allocation51_spill] sm:$0xff] %v16883_v20  ;;  %v3615_v59 = vsel %vm19617_vm5, %v3612_v1, %v3614_v60  ;;  %vm19618_vm14 = vmmov %vm19613_vm6 }
 0x2a0   : > { %v3571_v38 = vsel %vm19618_vm14, %v16834_v21, %v3455_v61  ;;  %vm19619_vm9 = vmmov %vm19613_vm6  ;;  %13124 = vmatmul.mubr.bf16.gmra.mrb[4].mxu1 %v16879_v4  ;;  %v3611_v61 = vsel %vm19617_vm5, %v3608_v39, %v3610_v15 }
 0x2a1   : > { %v3732_v16 = vsel %vm19619_vm9, %v16862_v17, %v3615_v59  ;;  %vm19620_vm6 = vmmov %vm19616_vm12  ;;  %v16907_v59 = vpop.f32.mrb[19].mxu0  ;;  %13158 = vmatpush3.bf16.msra.mxu1 %v14880_v19  ;;  %v3353_v19 = vadd.f32 %v16720_v18, %v3235_v54 }
 0x2a2   : > { %v3451_v5 = vsel %vm19620_vm6, %v3448_v40, %v3450_v36  ;;  %vm19621_vm1 = vmmov %vm19620_vm6  ;;  %13159 = vmatprep.subr.bf16.mxu1 %v14881_v2 }
 0x2a3   : > { %v3453_v28 = vsel %vm19621_vm1, %v3450_v36, %v3452_v27  ;;  %vm19624_vm12 = vmmov %vm19619_vm9  ;;  %v16966_v30 = vmax.f32 %v3353_v19, 0.0 }
 0x2a4   : > { %v3538_v56 = vsel %vm19623_vm7, %v3453_v28, 0.0  ;;  %v3569_v29 = vsel %vm19624_vm12, %v16843_v52, %v3451_v5  ;;  %vm19625_vm14 = vmmov %vm19617_vm5  ;;  %vm19629_vm7 = vcmask 1046528   ;;  %v19631_v28 = vld [vmem:[#allocation21_spill] sm:$0xff] }
 0x2a5   : > { %v3613_v50 = vsel %vm19625_vm14, %v3610_v15, %v3612_v1  ;;  %vm19626_vm1 = vmmov %vm19619_vm9  ;;  %vm19627_vm9 = vnez %v19447_v14  ;;  %v3457_v5 = vsel %vm19629_vm7, %v3454_v33, %v3456_v43  ;;  %vm19632_vm5 = vnez %v19631_v28  ;;  %13160 = vmatpush3.bf16.msra.mxu1 %v14881_v2 }
 0x2a6   : > { %v3570_v40 = vsel %vm19626_vm1, %v16864_v49, %v3538_v56  ;;  %v3699_v27 = vsel %vm19627_vm9, %v3613_v50, 0.0  ;;  %vm19628_vm6 = vmmov %vm19626_vm1  ;;  %v3540_v56 = vsel %vm19632_vm5, %v3457_v5, 0.0  ;;  %v3616_v33 = vrot.slane %v16870_v42, 7 }
 0x2a7   : > { %v3730_v36 = vsel %vm19628_vm6, %v16864_v49, %v3611_v61  ;;  %vm19630_vm12 = vmmov %vm19626_vm1  ;;  %v16921_v1 = vpack.c.bf16 %v3570_v40, %v3569_v29  ;;  %v16933_v61 = vmax.f32 %v3352_v34, 0.0  ;;  %v16938_v29 = vmax.f32 %v3350_v46, 0.0 }
 0x2a8   : > { %v3731_v39 = vsel %vm19630_vm12, %v16834_v21, %v3699_v27  ;;  %v16923_v15 = vpack.c.bf16 %v3730_v36, %v3729_v3  ;;  %vm19633_vm14 = vmmov %vm19626_vm1  ;;  %v14882_v27 = vld [vmem:[#allocation3 + $0x28] sm:$0xff]   ;;  %vm19635_vm7 = vcmask 1040384   ;;  %v16946_v36 = vpop.f32.mrb[20].mxu0  ;;  %v3620_v5 = vrot.slane %v16883_v20, 7 }
 0x2a9   : > { %v16927_v52 = vpack.c.bf16 %v3732_v16, %v3731_v39  ;;  %v3572_v50 = vsel %vm19633_vm14, %v16862_v17, %v3540_v56  ;;  %19634 = vst [vmem:[#allocation52_spill] sm:$0xff] %v16938_v29  ;;  %13127 = vmatprep.mubr.bf16.mxu1 %v16921_v1  ;;  %v3460_v16 = vrot.slane %v16883_v20, 1  ;;  %v3617_v40 = vsel %vm19635_vm7, %v3614_v60, %v3616_v33  ;;  %v3251_v39 = vpop.f32.mrb[21].mxu0  ;;  %vm19637_vm6 = vmmov %vm19635_vm7 }
 0x2aa   : > { %3805 = vst [vmem:[#allocation2 + $0xb0] sm:$0xff] %v16923_v15  ;;  %v16936_v3 = vpack.c.bf16 %v3572_v50, %v3571_v38  ;;  %v3701_v46 = vsel %vm16238_vm11, %v3617_v40, 0.0  ;;  %v3458_v38 = vrot.slane %v16938_v29, 1  ;;  %v3618_v54 = vrot.slane %v16938_v29, 7  ;;  %v16958_v34 = vpop.f32.mrb[22].mxu0  ;;  %13161 = vmatprep.subr.bf16.mxu1 %v14882_v27  ;;  %v14883_v40 = vld [vmem:[#allocation3 + $0x30] sm:$0xff]   ;;  %vm19642_vm11 = vmmov %vm19637_vm6 }
 0x2ab   : > { %3806 = vst [vmem:[#allocation2 + $0xb8] sm:$0xff] %v16927_v52  ;;  %v3733_v56 = vsel %vm19626_vm1, %v16870_v42, %v3701_v46  ;;  %v3462_v60 = vrot.slane %v16933_v61, 1  ;;  %v3355_v50 = vadd.f32 %v13089_v35, %v16720_v18  ;;  %v19636_v49 = vrot.slane %v16933_v61, 7  ;;  %v3254_v46 = vpop.f32.mrb[23].mxu0  ;;  %vm19643_vm5 = vmmov %vm19637_vm6  ;;  %13162 = vmatpush3.bf16.msra.mxu1 %v14882_v27 }
 0x2ac   : > { %13128 = vmatmul.mubr.bf16.gmra.mrb[8].mxu1 %v16936_v3  ;;  %vm19638_vm12 = vcmask 1046528   ;;  %vm19641_vm7 = vnez %v19640_v6  ;;  %v3619_v55 = vsel %vm19642_vm11, %v3616_v33, %v3618_v54  ;;  %v3621_v0 = vsel %vm19643_vm5, %v3618_v54, %v3620_v5  ;;  %vm19647_vm11 = vmmov %vm19626_vm1  ;;  %13163 = vmatprep.subr.bf16.mxu1 %v14883_v40  ;;  %v19662_v6 = vld [vmem:[#allocation28_spill] sm:$0xff] }
 0x2ad   : > { %v3623_v17 = vsel %vm19637_vm6, %v3620_v5, %v19636_v49  ;;  %v3459_v2 = vsel %vm19638_vm12, %v3456_v43, %v3458_v38  ;;  %vm19639_vm14 = vmmov %vm19638_vm12  ;;  %v3703_v43 = vsel %vm16242_vm15, %v3621_v0, 0.0  ;;  %v14884_v0 = vld [vmem:[#allocation3 + $0x38] sm:$0xff]   ;;  %vm19648_vm5 = vcmask 1046528  }
 0x2ae   : > { %v3461_v21 = vsel %vm19639_vm14, %v3458_v38, %v3460_v16  ;;  %v3573_v48 = vsel %vm19626_vm1, %v16870_v42, %v3459_v2  ;;  %vm19644_vm6 = vmmov %vm19626_vm1  ;;  %v3735_v5 = vsel %vm19647_vm11, %v16883_v20, %v3703_v43  ;;  %v16999_v27 = vmax.f32 %v3355_v50, 0.0 }
 0x2af   : > { %v3542_v35 = vsel %vm19641_vm7, %v3461_v21, 0.0  ;;  %vm19645_vm12 = vmmov %vm19626_vm1  ;;  %v3356_v21 = vadd.f32 %v13090_v8, %v16720_v18  ;;  %v3463_v8 = vsel %vm19648_vm5, %v3460_v16, %v3462_v60  ;;  %13164 = vmatpush3.bf16.msra.mxu1 %v14883_v40  ;;  %v19650_v16 = vld [vmem:[#allocation26_spill] sm:$0xff]  ;;  %vm19698_vm15 = vnez %v19697_v57 }
 0x2b0   : > { %v3574_v49 = vsel %vm19644_vm6, %v16938_v29, %v3542_v35  ;;  %v3734_v19 = vsel %vm19645_vm12, %v16938_v29, %v3619_v55  ;;  %vm19646_vm14 = vmmov %vm19626_vm1  ;;  %v3464_v55 = vrot.slane %v16966_v30, 1  ;;  %vm19651_vm6 = vnez %v19650_v16  ;;  %13165 = vmatprep.subr.bf16.mxu1 %v14884_v0 }
 0x2b1   : > { %v3736_v33 = vsel %vm19646_vm14, %v16933_v61, %v3623_v17  ;;  %v16990_v38 = vpack.c.bf16 %v3574_v49, %v3573_v48  ;;  %v16992_v54 = vpack.c.bf16 %v3734_v19, %v3733_v56  ;;  %v3354_v17 = vadd.f32 %v16720_v18, %v16907_v59  ;;  %v13097_v48 = vpop.f32.mrb[24].mxu0  ;;  %vm19649_vm1 = vmmov %vm19648_vm5  ;;  %v17013_v59 = vld [vmem:[#allocation3 + $0x80] sm:$0xff]  }
 0x2b2   : > { %v16994_v2 = vpack.c.bf16 %v3736_v33, %v3735_v5  ;;  %v3465_v56 = vsel %vm19649_vm1, %v3462_v60, %v3464_v55  ;;  %v17006_v35 = vmax.f32 %v3356_v21, 0.0  ;;  %v3357_v49 = vadd.f32 %v16720_v18, %v3251_v39  ;;  %v3267_v43 = vpop.f32.mrb[25].mxu0  ;;  %vm19652_vm12 = vmmov %vm19647_vm11 }
 0x2b3   : > { %3807 = vst [vmem:[#allocation2 + $0xc0] sm:$0xff] %v16992_v54  ;;  %13131 = vmatprep.mubr.bf16.mxu1 %v16990_v38  ;;  %v3544_v50 = vsel %vm19651_vm6, %v3465_v56, 0.0  ;;  %v17011_v19 = vmax.f32 %v3354_v17, 0.0  ;;  %v13098_v33 = vpop.f32.mrb[26].mxu0  ;;  %v3575_v5 = vsel %vm19652_vm12, %v16883_v20, %v3463_v8  ;;  %vm19653_vm14 = vmmov %vm19647_vm11  ;;  %v3468_v40 = vrot.slane %v16999_v27, 1  ;;  %13166 = vmatpush3.bf16.msra.mxu1 %v14884_v0 }
 0x2b4   : > { %3808 = vst [vmem:[#allocation2 + $0xc8] sm:$0xff] %v16994_v2  ;;  %v3576_v60 = vsel %vm19653_vm14, %v16933_v61, %v3544_v50  ;;  %v3270_v39 = vpop.f32.mrb[27].mxu0  ;;  %v3470_v56 = vrot.slane %v17006_v35, 1  ;;  %v17026_v29 = vmax.f32 %v3357_v49, 0.0  ;;  %vm19655_vm11 = vmmov %vm19649_vm1  ;;  %v3359_v20 = vadd.f32 %v16946_v36, %v16720_v18  ;;  %13199 = vmatprep.subr.bf16.mxu1 %v17013_v59  ;;  %v19657_v50 = vld [vmem:[#allocation27_spill] sm:$0xff] }
 0x2b5   : > { %v17022_v21 = vpack.c.bf16 %v3576_v60, %v3575_v5  ;;  %v3466_v17 = vrot.slane %v17011_v19, 1  ;;  %vm19656_vm5 = vmmov %vm19649_vm1  ;;  %vm19658_vm1 = vnez %v19657_v50  ;;  %v3358_v0 = vadd.f32 %v16720_v18, %v3254_v46  ;;  %v13101_v36 = vpop.f32.mrb[28].mxu0 }
 0x2b6   : > { %19654 = vst [vmem:[#allocation53_spill] sm:$0xff] %v17026_v29  ;;  %vm19659_vm14 = vmmov %vm19652_vm12  ;;  %v3472_v60 = vrot.slane %v17026_v29, 1  ;;  %v3283_v50 = vpop.f32.mrb[29].mxu0  ;;  %v17049_v25 = vmax.f32 %v3359_v20, 0.0 }
 0x2b7   : > { %v3467_v42 = vsel %vm19655_vm11, %v3464_v55, %v3466_v17  ;;  %v3469_v8 = vsel %vm19656_vm5, %v3466_v17, %v3468_v40  ;;  %13132 = vmatmul.mubr.bf16.gmra.mrb[12].mxu1 %v17022_v21  ;;  %vm19660_vm11 = vmmov %vm19656_vm5  ;;  %v13102_v46 = vpop.f32.mrb[30].mxu0 }
 0x2b8   : > { %v3546_v5 = vsel %vm19658_vm1, %v3469_v8, 0.0  ;;  %v3577_v49 = vsel %vm19652_vm12, %v16966_v30, %v3467_v42  ;;  %v3471_v17 = vsel %vm19660_vm11, %v3468_v40, %v3470_v56  ;;  %v3360_v8 = vadd.f32 %v16958_v34, %v16720_v18  ;;  %19661 = vst [vmem:[#allocation54_spill] sm:$0xff] %v17049_v25  ;;  %v3286_v28 = vpop.f32.mrb[31].mxu0  ;;  %vm19665_vm11 = vmmov %vm19659_vm14 }
 0x2b9   : > { %v3578_v55 = vsel %vm19659_vm14, %v17011_v19, %v3546_v5  ;;  %v3473_v42 = vsel %vm19656_vm5, %v3470_v56, %v3472_v60  ;;  %vm19663_vm12 = vnez %v19662_v6  ;;  %v17054_v5 = vmax.f32 %v3358_v0, 0.0 }
 0x2ba   : > { %v17045_v16 = vpack.c.bf16 %v3578_v55, %v3577_v49  ;;  %v3548_v10 = vsel %vm19663_vm12, %v3473_v42, 0.0  ;;  %v3579_v40 = vsel %vm19659_vm14, %v16999_v27, %v3471_v17  ;;  %v17065_v56 = vmax.f32 %v3360_v8, 0.0  ;;  %vm19667_vm12 = vmmov %vm19656_vm5  ;;  %v19668_v8 = vld [vmem:[#allocation29_spill] sm:$0xff] }
 0x2bb   : > { %19664 = vst [vmem:[#allocation55_spill] sm:$0xff] %v17054_v5  ;;  %v3580_v20 = vsel %vm19665_vm11, %v17006_v35, %v3548_v10  ;;  %v3476_v49 = vrot.slane %v17049_v25, 1  ;;  %v3474_v0 = vrot.slane %v17054_v5, 1  ;;  %v3361_v55 = vadd.f32 %v16720_v18, %v3267_v43 }
 0x2bc   : > { %13135 = vmatprep.mubr.bf16.mxu1 %v17045_v16  ;;  %v17063_v34 = vpack.c.bf16 %v3580_v20, %v3579_v40  ;;  %19666 = vst [vmem:[#allocation56_spill] sm:$0xff] %v17065_v56  ;;  %v3363_v6 = vadd.f32 %v13097_v48, %v16720_v18  ;;  %v3362_v10 = vadd.f32 %v16720_v18, %v3270_v39  ;;  %v3478_v40 = vrot.slane %v17065_v56, 1 }
 0x2bd   : > { %v3475_v42 = vsel %vm19656_vm5, %v3472_v60, %v3474_v0  ;;  %v3477_v17 = vsel %vm19667_vm12, %v3474_v0, %v3476_v49  ;;  %vm19669_vm14 = vnez %v19668_v8  ;;  %v3364_v43 = vadd.f32 %v13098_v33, %v16720_v18  ;;  %vm19670_vm5 = vmmov %vm19665_vm11 }
 0x2be   : > { %v3550_v20 = vsel %vm19669_vm14, %v3477_v17, 0.0  ;;  %v3581_v14 = vsel %vm19665_vm11, %v17026_v29, %v3475_v42  ;;  %v17087_v48 = vmax.f32 %v3361_v55, 0.0  ;;  %v17089_v39 = vmax.f32 %v3363_v6, 0.0  ;;  %vm19675_vm11 = vmmov %vm19667_vm12 }
 0x2bf   : > { %13136 = vmatmul.mubr.bf16.gmra.mrb[16].mxu1 %v17063_v34  ;;  %v3582_v60 = vsel %vm19670_vm5, %v17054_v5, %v3550_v20  ;;  %v17091_v41 = vmax.f32 %v3362_v10, 0.0  ;;  %v3365_v17 = vadd.f32 %v16720_v18, %v3283_v50  ;;  %v3479_v8 = vsel %vm19667_vm12, %v3476_v49, %v3478_v40  ;;  %v19676_v10 = vld [vmem:[#allocation36_spill] sm:$0xff]  ;;  %vm19679_vm12 = vmmov %vm19670_vm5 }
 0x2c0   : > { %v17085_v0 = vpack.c.bf16 %v3582_v60, %v3581_v14  ;;  %19671 = vst [vmem:[#allocation57_spill] sm:$0xff] %v17087_v48  ;;  %19672 = vst [vmem:[#allocation58_spill] sm:$0xff] %v17089_v39  ;;  %v3480_v42 = vrot.slane %v17087_v48, 1  ;;  %v17096_v44 = vmax.f32 %v3364_v43, 0.0  ;;  %v3583_v6 = vsel %vm19670_vm5, %v17049_v25, %v3479_v8 }
 0x2c1   : > { %19673 = vst [vmem:[#allocation59_spill] sm:$0xff] %v17091_v41  ;;  %v3482_v33 = vrot.slane %v17091_v41, 1  ;;  %v3484_v55 = vrot.slane %v17089_v39, 1  ;;  %vm19677_vm14 = vnez %v19676_v10  ;;  %v17107_v49 = vmax.f32 %v3365_v17, 0.0  ;;  %vm19680_vm5 = vmmov %vm19675_vm11  ;;  %v19681_v17 = vld [vmem:[#allocation37_spill] sm:$0xff] }
 0x2c2   : > { %19674 = vst [vmem:[#allocation60_spill] sm:$0xff] %v17096_v44  ;;  %13139 = vmatprep.mubr.bf16.mxu1 %v17085_v0  ;;  %v3481_v14 = vsel %vm19675_vm11, %v3478_v40, %v3480_v42  ;;  %v3486_v43 = vrot.slane %v17096_v44, 1  ;;  %v3367_v60 = vadd.f32 %v13101_v36, %v16720_v18  ;;  %v3368_v40 = vadd.f32 %v13102_v46, %v16720_v18  ;;  %vm19683_vm1 = vmmov %vm19679_vm12 }
 0x2c3   : > { %v3552_v50 = vsel %vm19677_vm14, %v3481_v14, 0.0  ;;  %19678 = vst [vmem:[#allocation61_spill] sm:$0xff] %v17107_v49  ;;  %v3483_v8 = vsel %vm19675_vm11, %v3480_v42, %v3482_v33  ;;  %v3485_v13 = vsel %vm19680_vm5, %v3482_v33, %v3484_v55  ;;  %v3366_v14 = vadd.f32 %v16720_v18, %v3286_v28  ;;  %vm19684_vm11 = vmmov %vm19680_vm5 }
 0x2c4   : > { %v3584_v20 = vsel %vm19679_vm12, %v17065_v56, %v3552_v50  ;;  %vm19682_vm14 = vnez %v19681_v17  ;;  %v3585_v50 = vsel %vm19679_vm12, %v17087_v48, %v3483_v8  ;;  %v3488_v46 = vrot.slane %v17107_v49, 1  ;;  %vm19693_vm6 = vmmov %vm19683_vm1  ;;  %v19695_v17 = vld [vmem:[#allocation41_spill] sm:$0xff] }
 0x2c5   : > { %v17115_v51 = vpack.c.bf16 %v3584_v20, %v3583_v6  ;;  %v3554_v10 = vsel %vm19682_vm14, %v3485_v13, 0.0  ;;  %v3487_v42 = vsel %vm19684_vm11, %v3484_v55, %v3486_v43  ;;  %v17133_v18 = vmax.f32 %v3367_v60, 0.0  ;;  %v19688_v20 = vld [vmem:[#allocation38_spill] sm:$0xff]  ;;  %vm19690_vm11 = vmmov %vm19683_vm1 }
 0x2c6   : > { %v3586_v36 = vsel %vm19683_vm1, %v17091_v41, %v3554_v10  ;;  %v17135_v28 = vmax.f32 %v3368_v40, 0.0  ;;  %v3489_v13 = vsel %vm19680_vm5, %v3486_v43, %v3488_v46  ;;  %v17138_v6 = vmax.f32 %v3366_v14, 0.0  ;;  %vm19692_vm14 = vmmov %vm19680_vm5 }
 0x2c7   : > { %13140 = vmatmul.mubr.bf16.gmra.mrb[20].mxu1 %v17115_v51  ;;  %v17131_v33 = vpack.c.bf16 %v3586_v36, %v3585_v50  ;;  %19685 = vst [vmem:[#allocation62_spill] sm:$0xff] %v17133_v18  ;;  %vm19689_vm12 = vnez %v19688_v20  ;;  %v3587_v55 = vsel %vm19683_vm1, %v17089_v39, %v3487_v42  ;;  %v3492_v43 = vrot.slane %v17133_v18, 1  ;;  %vm19694_vm1 = vmmov %vm19680_vm5 }
 0x2c8   : > { %19686 = vst [vmem:[#allocation63_spill] sm:$0xff] %v17135_v28  ;;  %19687 = vst [vmem:[#allocation64_spill] sm:$0xff] %v17138_v6  ;;  %v3556_v8 = vsel %vm19689_vm12, %v3489_v13, 0.0  ;;  %v3494_v10 = vrot.slane %v17135_v28, 1  ;;  %v3490_v40 = vrot.slane %v17138_v6, 1 }
 0x2c9   : > { %13143 = vmatprep.mubr.bf16.mxu1 %v17131_v33  ;;  %v3588_v60 = vsel %vm19690_vm11, %v17096_v44, %v3556_v8  ;;  %vm19691_vm12 = vmmov %vm19680_vm5  ;;  %vm19696_vm11 = vnez %v19695_v17 }
 0x2ca   : > { %v17152_v14 = vpack.c.bf16 %v3588_v60, %v3587_v55  ;;  %v3528_v50 = vsel %vm19680_vm5, %v3494_v10, 0.0  ;;  %v3491_v36 = vsel %vm19691_vm12, %v3488_v46, %v3490_v40  ;;  %v3493_v13 = vsel %vm19692_vm14, %v3490_v40, %v3492_v43  ;;  %vm19699_vm5 = vmmov %vm19693_vm6 }
 0x2cb   : > { %v3589_v42 = vsel %vm19693_vm6, %v17107_v49, %v3491_v36  ;;  %v3495_v20 = vsel %vm19694_vm1, %v3492_v43, %v3494_v10  ;;  %v3560_v8 = vsel %vm19696_vm11, %v3528_v50, 0.0  ;;  %v3558_v12 = vsel %vm19698_vm15, %v3493_v13, 0.0  ;;  %vm19700_vm14 = vmmov %vm19699_vm5  ;;  %v17181_v43 = vld [vmem:[#allocation2] sm:$0xff]  ;;  %v14888_v50 = vld [vmem:[#allocation3 + $0x98] sm:$0xff]  }
 0x2cc   : > { %v3590_v46 = vsel %vm19699_vm5, %v17138_v6, %v3558_v12  ;;  %v3591_v60 = vsel %vm19700_vm14, %v17133_v18, %v3495_v20  ;;  %vm19701_vm6 = vmmov %vm19699_vm5  ;;  %v14886_v12 = vld [vmem:[#allocation3 + $0x88] sm:$0xff]   ;;  %v14887_v20 = vld [vmem:[#allocation3 + $0x90] sm:$0xff]   ;;  %vm19703_vm12 = vcmask 1040384   ;;  %vm19705_vm5 = vnez %v19456_v24 }
 0x2cd   : > { %v17169_v55 = vpack.c.bf16 %v3590_v46, %v3589_v42  ;;  %v3592_v10 = vsel %vm19701_vm6, %v17135_v28, %v3560_v8  ;;  %v14889_v36 = vld [vmem:[#allocation3 + $0xa0] sm:$0xff]   ;;  %v14890_v13 = vld [vmem:[#allocation3 + $0xa8] sm:$0xff]   ;;  %v14895_v46 = vld [vmem:[#allocation3 + $0xd0] sm:$0xff]  }
 0x2ce   : > { %v17178_v40 = vpack.c.bf16 %v3592_v10, %v3591_v60  ;;  %v14893_v42 = vld [vmem:[#allocation3 + $0xc0] sm:$0xff]   ;;  %v14894_v8 = vld [vmem:[#allocation3 + $0xc8] sm:$0xff]   ;;  %v14896_v60 = vld [vmem:[#allocation3 + $0xd8] sm:$0xff]  }
 0x2cf   : > { %13144 = vmatmul.mubr.bf16.gmra.mrb[24].mxu1 %v17152_v14  ;;  %v14897_v10 = vld [vmem:[#allocation3 + $0xe0] sm:$0xff]   ;;  %vm19704_vm1 = vmmov %vm19703_vm12 }
 0x2d0   : > { %13147 = vmatprep.mubr.bf16.mxu1 %v17169_v55  ;;  %vm19706_vm14 = vmmov %vm19704_vm1 }
 0x2d7   : > { %13148 = vmatmul.mubr.bf16.gmra.mrb[28].mxu1 %v17178_v40 }
 0x2d8   : > { %13167 = vmatprep.mubr.bf16.mxu1 %v17181_v43 }
 0x2df   : > { %13168 = vmatmul.mubr.bf16.vlgmr.msra.gmra.mrb[0].mxu1 %v16774_v63  ;;  %v14891_v63 = vld [vmem:[#allocation3 + $0xb0] sm:$0xff]  }
 0x2e0   : > { %13171 = vmatprep.mubr.bf16.mxu1 %v16814_v62  ;;  %13200 = vmatpush3.bf16.msra.mxu1 %v17013_v59  ;;  %v14892_v59 = vld [vmem:[#allocation3 + $0xb8] sm:$0xff]  }
 0x2e1   : > { %13201 = vmatprep.subr.bf16.mxu1 %v14886_v12 }
 0x2e4   : > { %13202 = vmatpush3.bf16.msra.mxu1 %v14886_v12  ;;  %v14907_v12 = vld [vmem:[#allocation3 + $0x130] sm:$0xff]  }
 0x2e5   : > { %13203 = vmatprep.subr.bf16.mxu1 %v14887_v20 }
 0x2e7   : > { %13172 = vmatmul.mubr.bf16.gmra.mrb[4].mxu1 %v16849_v9 }
 0x2e8   : > { %13175 = vmatprep.mubr.bf16.mxu1 %v16879_v4  ;;  %13204 = vmatpush3.bf16.msra.mxu1 %v14887_v20  ;;  %v3628_v20 = vrot.slane %v16999_v27, 7 }
 0x2e9   : > { %13205 = vmatprep.subr.bf16.mxu1 %v14888_v50 }
 0x2ec   : > { %13206 = vmatpush3.bf16.msra.mxu1 %v14888_v50  ;;  %v19702_v50 = vrot.slane %v16933_v61, 7 }
 0x2ed   : > { %13207 = vmatprep.subr.bf16.mxu1 %v14889_v36 }
 0x2ef   : > { %13176 = vmatmul.mubr.bf16.gmra.mrb[8].mxu1 %v16921_v1 }
 0x2f0   : > { %13179 = vmatprep.mubr.bf16.mxu1 %v16936_v3  ;;  %13208 = vmatpush3.bf16.msra.mxu1 %v14889_v36 }
 0x2f1   : > { %13209 = vmatprep.subr.bf16.mxu1 %v14890_v13 }
 0x2f4   : > { %13210 = vmatpush3.bf16.msra.mxu1 %v14890_v13 }
 0x2f5   : > { %13211 = vmatprep.subr.bf16.mxu1 %v14891_v63 }
 0x2f7   : > { %13180 = vmatmul.mubr.bf16.gmra.mrb[12].mxu1 %v16990_v38 }
 0x2f8   : > { %13183 = vmatprep.mubr.bf16.mxu1 %v17022_v21  ;;  %13212 = vmatpush3.bf16.msra.mxu1 %v14891_v63  ;;  %v3630_v63 = vrot.slane %v17006_v35, 7 }
 0x2f9   : > { %13213 = vmatprep.subr.bf16.mxu1 %v14892_v59 }
 0x2fc   : > { %13214 = vmatpush3.bf16.msra.mxu1 %v14892_v59 }
 0x2fd   : > { %13247 = vmatprep.subr.bf16.mxu1 %v14893_v42 }
 0x2ff   : > { %13184 = vmatmul.mubr.bf16.gmra.mrb[16].mxu1 %v17045_v16 }
 0x300   : > { %13187 = vmatprep.mubr.bf16.mxu1 %v17063_v34 }
 0x307   : > { %13188 = vmatmul.mubr.bf16.gmra.mrb[20].mxu1 %v17085_v0 }
 0x308   : > { %13191 = vmatprep.mubr.bf16.mxu1 %v17115_v51 }
 0x30f   : > { %13192 = vmatmul.mubr.bf16.gmra.mrb[24].mxu1 %v17131_v33 }
 0x310   : > { %13195 = vmatprep.mubr.bf16.mxu1 %v17152_v14 }
 0x317   : > { %13196 = vmatmul.mubr.bf16.gmra.mrb[28].mxu1 %v17169_v55 }
 0x318   : > { %13215 = vmatprep.mubr.bf16.mxu1 %v16814_v62  ;;  %v14898_v62 = vld [vmem:[#allocation3 + $0xe8] sm:$0xff]  }
 0x31f   : > { %13216 = vmatmul.mubr.bf16.vlgmr.msra.gmra.mrb[0].mxu1 %v16849_v9  ;;  %v14899_v9 = vld [vmem:[#allocation3 + $0xf0] sm:$0xff]  }
 0x320   : > { %13219 = vmatprep.mubr.bf16.mxu1 %v16879_v4  ;;  %13248 = vmatpush3.bf16.msra.mxu1 %v14893_v42  ;;  %v14900_v4 = vld [vmem:[#allocation3 + $0xf8] sm:$0xff]  }
 0x321   : > { %13249 = vmatprep.subr.bf16.mxu1 %v14894_v8 }
 0x324   : > { %13250 = vmatpush3.bf16.msra.mxu1 %v14894_v8  ;;  %v3632_v8 = vrot.slane %v17026_v29, 7 }
 0x325   : > { %13251 = vmatprep.subr.bf16.mxu1 %v14895_v46 }
 0x327   : > { %13220 = vmatmul.mubr.bf16.gmra.mrb[4].mxu1 %v16921_v1  ;;  %v14901_v1 = vld [vmem:[#allocation3 + $0x100] sm:$0xff]  }
 0x328   : > { %13223 = vmatprep.mubr.bf16.mxu1 %v16936_v3  ;;  %13252 = vmatpush3.bf16.msra.mxu1 %v14895_v46  ;;  %v14902_v3 = vld [vmem:[#allocation3 + $0x108] sm:$0xff]   ;;  %v3634_v46 = vrot.slane %v17054_v5, 7 }
 0x329   : > { %13253 = vmatprep.subr.bf16.mxu1 %v14896_v60 }
 0x32c   : > { %13254 = vmatpush3.bf16.msra.mxu1 %v14896_v60  ;;  %v17248_v60 = vld [vmem:[#allocation3 + $0x140] sm:$0xff]  }
 0x32d   : > { %13255 = vmatprep.subr.bf16.mxu1 %v14897_v10 }
 0x32f   : > { %13224 = vmatmul.mubr.bf16.gmra.mrb[8].mxu1 %v16990_v38  ;;  %v17217_v38 = vld [vmem:[#allocation2 + $0x90] sm:$0xff] }
 0x330   : > { %13227 = vmatprep.mubr.bf16.mxu1 %v17022_v21  ;;  %13256 = vmatpush3.bf16.msra.mxu1 %v14897_v10  ;;  %v14904_v21 = vld [vmem:[#allocation3 + $0x118] sm:$0xff]  }
 0x331   : > { %13257 = vmatprep.subr.bf16.mxu1 %v14898_v62 }
 0x334   : > { %13258 = vmatpush3.bf16.msra.mxu1 %v14898_v62 }
 0x335   : > { %13259 = vmatprep.subr.bf16.mxu1 %v14899_v9 }
 0x337   : > { %13228 = vmatmul.mubr.bf16.gmra.mrb[12].mxu1 %v17045_v16  ;;  %v17220_v16 = vld [vmem:[#allocation2 + $0x98] sm:$0xff] }
 0x338   : > { %13231 = vmatprep.mubr.bf16.mxu1 %v17063_v34  ;;  %13260 = vmatpush3.bf16.msra.mxu1 %v14899_v9  ;;  %v17223_v34 = vld [vmem:[#allocation2 + $0xa0] sm:$0xff] }
 0x339   : > { %13261 = vmatprep.subr.bf16.mxu1 %v14900_v4 }
 0x33c   : > { %13262 = vmatpush3.bf16.msra.mxu1 %v14900_v4 }
 0x33d   : > { %13295 = vmatprep.subr.bf16.mxu1 %v14901_v1 }
 0x33f   : > { %13232 = vmatmul.mubr.bf16.gmra.mrb[16].mxu1 %v17085_v0  ;;  %v17226_v0 = vld [vmem:[#allocation2 + $0xa8] sm:$0xff] }
 0x340   : > { %13235 = vmatprep.mubr.bf16.mxu1 %v17115_v51  ;;  %v14903_v51 = vld [vmem:[#allocation3 + $0x110] sm:$0xff]  }
 0x347   : > { %13236 = vmatmul.mubr.bf16.gmra.mrb[20].mxu1 %v17131_v33  ;;  %v14905_v33 = vld [vmem:[#allocation3 + $0x120] sm:$0xff]  }
 0x348   : > { %13239 = vmatprep.mubr.bf16.mxu1 %v17152_v14  ;;  %v14906_v14 = vld [vmem:[#allocation3 + $0x128] sm:$0xff]  }
 0x34f   : > { %13240 = vmatmul.mubr.bf16.gmra.mrb[24].mxu1 %v17169_v55  ;;  %v3624_v55 = vrot.slane %v16966_v30, 7 }
 0x350   : > { %13243 = vmatprep.mubr.bf16.mxu1 %v17178_v40  ;;  %v3626_v40 = vrot.slane %v17011_v19, 7 }
 0x351   : > { %v3625_v36 = vsel %vm19703_vm12, %v19702_v50, %v3624_v55  ;;  %vm19707_vm12 = vmmov %vm19704_vm1  ;;  %v3640_v50 = vrot.slane %v17087_v48, 7 }
 0x352   : > { %v3629_v13 = vsel %vm19704_vm1, %v3626_v40, %v3628_v20  ;;  %v3627_v59 = vsel %vm19706_vm14, %v3624_v55, %v3626_v40  ;;  %v3631_v62 = vsel %vm19707_vm12, %v3628_v20, %v3630_v63  ;;  %vm19708_vm1 = vmmov %vm19701_vm6  ;;  %v3638_v55 = vrot.slane %v17065_v56, 7 }
 0x353   : > { %v3707_v42 = vsel %vm16251_vm8, %v3629_v13, 0.0  ;;  %v3738_v9 = vsel %vm19708_vm1, %v17011_v19, %v3627_v59  ;;  %vm19709_vm14 = vmmov %vm19708_vm1  ;;  %v3644_v59 = vrot.slane %v17089_v39, 7 }
 0x354   : > { %v3739_v4 = vsel %vm19709_vm14, %v16999_v27, %v3707_v42  ;;  %vm19710_vm15 = vmmov %vm19707_vm12 }
 0x355   : > { %vm19711_vm11 = vmmov %vm19708_vm1 }
 0x357   : > { %13244 = vmatmul.mubr.bf16.gmra.mrb[28].mxu1 %v17181_v43 }
 0x358   : > { %13263 = vmatprep.mubr.bf16.mxu1 %v17181_v43 }
 0x35f   : > { %13264 = vmatmul.mubr.bf16.vlgmr.msra.gmra.mrb[0].mxu1 %v17217_v38 }
 0x360   : > { %13267 = vmatprep.mubr.bf16.mxu1 %v17220_v16  ;;  %13296 = vmatpush3.bf16.msra.mxu1 %v14901_v1  ;;  %v3636_v1 = vrot.slane %v17049_v25, 7 }
 0x361   : > { %13297 = vmatprep.subr.bf16.mxu1 %v14902_v3 }
 0x364   : > { %13298 = vmatpush3.bf16.msra.mxu1 %v14902_v3  ;;  %v3633_v3 = vsel %vm19710_vm15, %v3630_v63, %v3632_v8  ;;  %vm19715_vm15 = vnez %v19513_v11 }
 0x365   : > { %13299 = vmatprep.subr.bf16.mxu1 %v14903_v51 }
 0x367   : > { %13268 = vmatmul.mubr.bf16.gmra.mrb[4].mxu1 %v17223_v34 }
 0x368   : > { %13271 = vmatprep.mubr.bf16.mxu1 %v17226_v0  ;;  %13300 = vmatpush3.bf16.msra.mxu1 %v14903_v51  ;;  %v3740_v51 = vsel %vm19711_vm11, %v17006_v35, %v3631_v62 }
 0x369   : > { %13301 = vmatprep.subr.bf16.mxu1 %v14904_v21 }
 0x36c   : > { %13302 = vmatpush3.bf16.msra.mxu1 %v14904_v21 }
 0x36d   : > { %13303 = vmatprep.subr.bf16.mxu1 %v14905_v33 }
 0x36f   : > { %13272 = vmatmul.mubr.bf16.gmra.mrb[8].mxu1 %v16923_v15  ;;  %v14908_v15 = vld [vmem:[#allocation3 + $0x138] sm:$0xff]  }
 0x370   : > { %13275 = vmatprep.mubr.bf16.mxu1 %v16927_v52  ;;  %13304 = vmatpush3.bf16.msra.mxu1 %v14905_v33  ;;  %v3705_v52 = vsel %vm19705_vm5, %v3625_v36, 0.0  ;;  %v3642_v36 = vrot.slane %v17091_v41, 7 }
 0x371   : > { %13305 = vmatprep.subr.bf16.mxu1 %v14906_v14  ;;  %v3737_v10 = vsel %vm19701_vm6, %v16966_v30, %v3705_v52  ;;  %vm19712_vm6 = vmmov %vm19707_vm12  ;;  %vm19713_vm12 = vnez %v19469_v31 }
 0x372   : > { %v17265_v21 = vpack.c.bf16 %v3738_v9, %v3737_v10  ;;  %v3637_v33 = vsel %vm19712_vm6, %v3634_v46, %v3636_v1  ;;  %v3709_v40 = vsel %vm19713_vm12, %v3633_v3, 0.0  ;;  %vm19714_vm1 = vmmov %vm19712_vm6  ;;  %v3646_v9 = vrot.slane %v17096_v44, 7 }
 0x373   : > { %v3711_v20 = vsel %vm19715_vm15, %v3637_v33, 0.0  ;;  %v3741_v13 = vsel %vm19711_vm11, %v17026_v29, %v3709_v40  ;;  %vm19716_vm14 = vmmov %vm19714_vm1 }
 0x374   : > { %13306 = vmatpush3.bf16.msra.mxu1 %v14906_v14  ;;  %v17269_v14 = vpack.c.bf16 %v3740_v51, %v3739_v4  ;;  %vm19717_vm6 = vmmov %vm19711_vm11  ;;  %v3648_v51 = vrot.slane %v17107_v49, 7 }
 0x375   : > { %13307 = vmatprep.subr.bf16.mxu1 %v14907_v12  ;;  %vm19719_vm15 = vmmov %vm19716_vm14 }
 0x376   : > { %v3641_v42 = vsel %vm19719_vm15, %v3638_v55, %v3640_v50  ;;  %vm19721_vm11 = vmmov %vm19716_vm14  ;;  %vm19724_vm15 = vnez %v19546_v37 }
 0x377   : > { %13276 = vmatmul.mubr.bf16.gmra.mrb[12].mxu1 %v16992_v54  ;;  %v3645_v10 = vsel %vm19721_vm11, %v3642_v36, %v3644_v59 }
 0x378   : > { %13279 = vmatprep.mubr.bf16.mxu1 %v16994_v2  ;;  %13308 = vmatpush3.bf16.msra.mxu1 %v14907_v12  ;;  %v3635_v12 = vsel %vm19714_vm1, %v3632_v8, %v3634_v46  ;;  %vm19718_vm1 = vmmov %vm19717_vm6  ;;  %v3715_v3 = vsel %vm19724_vm15, %v3645_v10, 0.0  ;;  %v14917_v10 = vld [vmem:[#allocation5 + $0x40] sm:$0xff]  }
 0x379   : > { %13309 = vmatprep.subr.bf16.mxu1 %v14908_v15  ;;  %v3742_v63 = vsel %vm19717_vm6, %v17054_v5, %v3635_v12  ;;  %v3743_v52 = vsel %vm19718_vm1, %v17049_v25, %v3711_v20  ;;  %vm19720_vm12 = vmmov %vm19718_vm1  ;;  %v3650_v20 = vrot.slane %v17138_v6, 7  ;;  %13391 = vmatprep.subr.bf16.mxu0 %v14917_v10  ;;  %v19853_v25 = vld [vmem:[#allocation29_spill] sm:$0xff] }
 0x37a   : > { %v17296_v46 = vpack.c.bf16 %v3742_v63, %v3741_v13  ;;  %vm19723_vm6 = vmmov %vm19721_vm11  ;;  %13392 = vmatpush3.bf16.msra.mxu0 %v14917_v10 }
 0x37c   : > { %13310 = vmatpush3.bf16.msra.mxu1 %v14908_v15  ;;  %v3639_v15 = vsel %vm19716_vm14, %v3636_v1, %v3638_v55  ;;  %vm19722_vm14 = vnez %v19541_v23  ;;  %v3643_v1 = vsel %vm19723_vm6, %v3640_v50, %v3642_v36 }
 0x37d   : > { %13343 = vmatprep.subr.bf16.mxu1 %v17248_v60  ;;  %v3744_v8 = vsel %vm19720_vm12, %v17065_v56, %v3639_v15  ;;  %v3713_v4 = vsel %vm19722_vm14, %v3641_v42, 0.0  ;;  %vm19725_vm12 = vmmov %vm19718_vm1 }
 0x37e   : > { %v17299_v62 = vpack.c.bf16 %v3744_v8, %v3743_v52  ;;  %v3745_v33 = vsel %vm19725_vm12, %v17087_v48, %v3713_v4  ;;  %vm19726_vm1 = vmmov %vm19723_vm6  ;;  %v14919_v4 = vld [vmem:[#allocation5 + $0x50] sm:$0xff]  }
 0x37f   : > { %13280 = vmatmul.mubr.bf16.gmra.mrb[16].mxu1 %v17265_v21  ;;  %v3647_v55 = vsel %vm19726_vm1, %v3644_v59, %v3646_v9  ;;  %vm19727_vm11 = vmmov %vm19725_vm12 }
 0x380   : > { %13283 = vmatprep.mubr.bf16.mxu1 %v17269_v14  ;;  %v3746_v40 = vsel %vm19727_vm11, %v17091_v41, %v3643_v1  ;;  %vm19728_vm6 = vmmov %vm19727_vm11  ;;  %v14910_v1 = vld [vmem:[#allocation3 + $0x148] sm:$0xff]   ;;  %vm19734_vm11 = vnez %v19564_v58 }
 0x381   : > { %v3747_v12 = vsel %vm19728_vm6, %v17089_v39, %v3715_v3  ;;  %vm19729_vm15 = vmmov %vm19726_vm1  ;;  %v17325_v13 = vpack.c.bf16 %v3746_v40, %v3745_v33  ;;  %v14920_v3 = vld [vmem:[#allocation5 + $0x58] sm:$0xff]   ;;  %v14921_v33 = vld [vmem:[#allocation5 + $0x60] sm:$0xff]  }
 0x382   : > { %v3649_v50 = vsel %vm19729_vm15, %v3646_v9, %v3648_v51  ;;  %vm19730_vm14 = vmmov %vm19728_vm6  ;;  %v14918_v9 = vld [vmem:[#allocation5 + $0x48] sm:$0xff]   ;;  %v14913_v40 = vld [vmem:[#allocation3 + $0x160] sm:$0xff]  }
 0x383   : > { %v3748_v36 = vsel %vm19730_vm14, %v17096_v44, %v3647_v55  ;;  %v3717_v63 = vsel %vm16622_vm10, %v3649_v50, 0.0  ;;  %vm19731_vm12 = vmmov %vm19726_vm1  ;;  %13393 = vmatprep.subr.bf16.mxu0 %v14918_v9  ;;  %v4837_v55 = vld [vmem:[#allocation2 + $0xb0] sm:$0xff]  ;;  %v19813_v44 = vld [vmem:[#allocation23_spill] sm:$0xff] }
 0x384   : > { %v17327_v15 = vpack.c.bf16 %v3748_v36, %v3747_v12  ;;  %v3651_v52 = vsel %vm19731_vm12, %v3648_v51, %v3650_v20  ;;  %vm19732_vm15 = vmmov %vm19728_vm6  ;;  %13394 = vmatpush3.bf16.msra.mxu0 %v14918_v9  ;;  %v14911_v51 = vld [vmem:[#allocation3 + $0x150] sm:$0xff]   ;;  %v4838_v12 = vld [vmem:[#allocation2 + $0xb8] sm:$0xff] }
 0x385   : > { %v3749_v59 = vsel %vm19732_vm15, %v17107_v49, %v3717_v63  ;;  %vm19733_vm14 = vmmov %vm19728_vm6  ;;  %13395 = vmatprep.subr.bf16.mxu0 %v14919_v4  ;;  %v14915_v50 = vld [vmem:[#allocation3 + $0x170] sm:$0xff]   ;;  %v14916_v36 = vld [vmem:[#allocation3 + $0x178] sm:$0xff]  }
 0x386   : > { %v3750_v42 = vsel %vm19733_vm14, %v17138_v6, %v3651_v52  ;;  %vm19735_vm6 = vmmov %vm19726_vm1  ;;  %v5112_v9 = vld [vmem:[#allocation2 + $0xc0] sm:$0xff] }
 0x387   : > { %13284 = vmatmul.mubr.bf16.gmra.mrb[20].mxu1 %v17296_v46  ;;  %v17342_v8 = vpack.c.bf16 %v3750_v42, %v3749_v59  ;;  %vm19736_vm12 = vmmov %vm19733_vm14 }
 0x388   : > { %13287 = vmatprep.mubr.bf16.mxu1 %v17299_v62  ;;  %13396 = vmatpush3.bf16.msra.mxu0 %v14919_v4  ;;  %vm19737_vm15 = vmmov %vm19736_vm12  ;;  %v5113_v4 = vld [vmem:[#allocation2 + $0xc8] sm:$0xff] }
 0x389   : > { %13397 = vmatprep.subr.bf16.mxu0 %v14920_v3  ;;  %vm19738_vm14 = vmmov %vm19726_vm1 }
 0x38c   : > { %13398 = vmatpush3.bf16.msra.mxu0 %v14920_v3 }
 0x38d   : > { %13399 = vmatprep.subr.bf16.mxu0 %v14921_v33 }
 0x38f   : > { %13288 = vmatmul.mubr.bf16.gmra.mrb[24].mxu1 %v17325_v13 }
 0x390   : > { %13291 = vmatprep.mubr.bf16.mxu1 %v17327_v15  ;;  %13400 = vmatpush3.bf16.msra.mxu0 %v14921_v33 }
 0x397   : > { %13292 = vmatmul.mubr.bf16.gmra.mrb[28].mxu1 %v17342_v8 }
 0x398   : > { %13311 = vmatprep.mubr.bf16.mxu1 %v17217_v38  ;;  %v14912_v38 = vld [vmem:[#allocation3 + $0x158] sm:$0xff]  }
 0x39f   : > { %13312 = vmatmul.mubr.bf16.vlgmr.msra.gmra.mrb[0].mxu1 %v17220_v16 }
 0x3a0   : > { %13315 = vmatprep.mubr.bf16.mxu1 %v17223_v34  ;;  %13344 = vmatpush3.bf16.msra.mxu1 %v17248_v60  ;;  %v14914_v60 = vld [vmem:[#allocation3 + $0x168] sm:$0xff]  }
 0x3a1   : > { %13345 = vmatprep.subr.bf16.mxu1 %v14910_v1 }
 0x3a4   : > { %13346 = vmatpush3.bf16.msra.mxu1 %v14910_v1 }
 0x3a5   : > { %13347 = vmatprep.subr.bf16.mxu1 %v14911_v51 }
 0x3a7   : > { %13316 = vmatmul.mubr.bf16.gmra.mrb[4].mxu1 %v17226_v0 }
 0x3a8   : > { %13319 = vmatprep.mubr.bf16.mxu1 %v4837_v55  ;;  %13348 = vmatpush3.bf16.msra.mxu1 %v14911_v51 }
 0x3a9   : > { %13349 = vmatprep.subr.bf16.mxu1 %v14912_v38 }
 0x3ac   : > { %13350 = vmatpush3.bf16.msra.mxu1 %v14912_v38 }
 0x3ad   : > { %13351 = vmatprep.subr.bf16.mxu1 %v14913_v40 }
 0x3af   : > { %13320 = vmatmul.mubr.bf16.gmra.mrb[8].mxu1 %v4838_v12 }
 0x3b0   : > { %13323 = vmatprep.mubr.bf16.mxu1 %v16992_v54  ;;  %13352 = vmatpush3.bf16.msra.mxu1 %v14913_v40  ;;  %v3652_v54 = vrot.slane %v17133_v18, 7 }
 0x3b1   : > { %13353 = vmatprep.subr.bf16.mxu1 %v14914_v60 }
 0x3b2   : > { %v3653_v63 = vsel %vm19726_vm1, %v3650_v20, %v3652_v54  ;;  %vm19739_vm1 = vnez %v19418_v47 }
 0x3b3   : > { %v3719_v52 = vsel %vm19734_vm11, %v3653_v63, 0.0  ;;  %vm19742_vm11 = vmmov %vm19737_vm15 }
 0x3b4   : > { %13354 = vmatpush3.bf16.msra.mxu1 %v14914_v60  ;;  %v3751_v42 = vsel %vm19736_vm12, %v17133_v18, %v3719_v52  ;;  %vm19741_vm12 = vmmov %vm19738_vm14 }
 0x3b5   : > { %13355 = vmatprep.subr.bf16.mxu1 %v14915_v50  ;;  %vm19747_vm8 = vmmov %vm19741_vm12 }
 0x3b7   : > { %13324 = vmatmul.mubr.bf16.gmra.mrb[12].mxu1 %v16994_v2  ;;  %v3654_v2 = vrot.slane %v17135_v28, 7 }
 0x3b8   : > { %13327 = vmatprep.mubr.bf16.mxu1 %v17265_v21  ;;  %13356 = vmatpush3.bf16.msra.mxu1 %v14915_v50 }
 0x3b9   : > { %13357 = vmatprep.subr.bf16.mxu1 %v14916_v36  ;;  %v3655_v59 = vsel %vm19735_vm6, %v3652_v54, %v3654_v2  ;;  %vm19740_vm6 = vcmask 1046528  }
 0x3ba   : > { %v3752_v10 = vsel %vm19737_vm15, %v17135_v28, %v3655_v59  ;;  %vm19744_vm10 = vmmov %vm19740_vm6 }
 0x3bb   : > { %v3800_v20 = vpack.c.bf16 %v3752_v10, %v3751_v42 }
 0x3bc   : > { %13358 = vmatpush3.bf16.msra.mxu1 %v14916_v36 }
 0x3bf   : > { %13328 = vmatmul.mubr.bf16.gmra.mrb[16].mxu1 %v17269_v14 }
 0x3c0   : > { %13331 = vmatprep.mubr.bf16.mxu1 %v17296_v46 }
 0x3c7   : > { %13332 = vmatmul.mubr.bf16.gmra.mrb[20].mxu1 %v17299_v62 }
 0x3c8   : > { %13335 = vmatprep.mubr.bf16.mxu1 %v17325_v13 }
 0x3cf   : > { %13336 = vmatmul.mubr.bf16.gmra.mrb[24].mxu1 %v17327_v15 }
 0x3d0   : > { %13339 = vmatprep.mubr.bf16.mxu1 %v17342_v8 }
 0x3d7   : > { %13340 = vmatmul.mubr.bf16.gmra.mrb[28].mxu1 %v3800_v20 }
 0x3d8   : > { %13359 = vmatprep.mubr.bf16.mxu1 %v17220_v16  ;;  %v14922_v16 = vld [vmem:[#allocation5 + $0x68] sm:$0xff]  }
 0x3d9   : > { %13401 = vmatprep.subr.bf16.mxu0 %v14922_v16 }
 0x3da   : > { %13402 = vmatpush3.bf16.msra.mxu0 %v14922_v16 }
 0x3df   : > { %13360 = vmatmul.mubr.bf16.vlgmr.msra.gmra.mrb[0].mxu1 %v17223_v34  ;;  %v14923_v34 = vld [vmem:[#allocation5 + $0x70] sm:$0xff]  }
 0x3e0   : > { %13363 = vmatprep.mubr.bf16.mxu1 %v17226_v0  ;;  %13403 = vmatprep.subr.bf16.mxu0 %v14923_v34  ;;  %v14924_v0 = vld [vmem:[#allocation5 + $0x78] sm:$0xff]  }
 0x3e1   : > { %13404 = vmatpush3.bf16.msra.mxu0 %v14923_v34 }
 0x3e2   : > { %13405 = vmatprep.subr.bf16.mxu0 %v14924_v0 }
 0x3e5   : > { %13406 = vmatpush3.bf16.msra.mxu0 %v14924_v0 }
 0x3e7   : > { %13364 = vmatmul.mubr.bf16.gmra.mrb[4].mxu1 %v4837_v55 }
 0x3e8   : > { %13367 = vmatprep.mubr.bf16.mxu1 %v4838_v12 }
 0x3ef   : > { %13368 = vmatmul.mubr.bf16.gmra.mrb[8].mxu1 %v5112_v9 }
 0x3f0   : > { %13371 = vmatprep.mubr.bf16.mxu1 %v5113_v4 }
 0x3f7   : > { %13372 = vmatmul.mubr.bf16.gmra.mrb[12].mxu1 %v17265_v21  ;;  %v17384_v21 = vld [vmem:[#allocation5] sm:$0xff]  }
 0x3f8   : > { %13375 = vmatprep.mubr.bf16.mxu1 %v17269_v14  ;;  %13439 = vmatprep.subr.bf16.mxu0 %v17384_v21  ;;  %v17390_v14 = vld [vmem:[%s19113_s4] ss:$0 sm:$0xff] }
 0x3ff   : > { %13376 = vmatmul.mubr.bf16.gmra.mrb[16].mxu1 %v17296_v46 }
 0x400   : > { %13379 = vmatprep.mubr.bf16.mxu1 %v17299_v62 }
 0x407   : > { %13380 = vmatmul.mubr.bf16.gmra.mrb[20].mxu1 %v17325_v13 }
 0x408   : > { %13383 = vmatprep.mubr.bf16.mxu1 %v17327_v15 }
 0x40f   : > { %13384 = vmatmul.mubr.bf16.gmra.mrb[24].mxu1 %v17342_v8 }
 0x410   : > { %13387 = vmatprep.mubr.bf16.mxu1 %v3800_v20 }
 0x417   : > { %13388 = vmatmul.mubr.bf16.gmra.mrb[28].mxu1 %v17181_v43 }
 0x4b2   : > { %v13361_v46 = vpop.f32.mrb[0].mxu1 }
 0x4b3   : > { %v5390_v43 = vadd.f32 %v13361_v46, %v17390_v14  ;;  %v5222_v62 = vpop.f32.mrb[1].mxu1 }
 0x4b4   : > { %v5388_v13 = vadd.f32 %v17390_v14, %v5222_v62  ;;  %v13362_v15 = vpop.f32.mrb[2].mxu1 }
 0x4b5   : > { %v5422_v8 = vmax.f32 %v5390_v43, 0.0  ;;  %v5391_v1 = vadd.f32 %v13362_v15, %v17390_v14  ;;  %v5225_v3 = vpop.f32.mrb[3].mxu1 }
 0x4b6   : > { %v5420_v51 = vmax.f32 %v5388_v13, 0.0  ;;  %v5389_v33 = vadd.f32 %v17390_v14, %v5225_v3 }
 0x4b7   : > { %v17396_v38 = vmax.f32 %v5391_v1, 0.0  ;;  %v5487_v60 = vrot.slane %v5422_v8, 1  ;;  %v5647_v12 = vrot.slane %v5422_v8, 7 }
 0x4b8   : > { %v5644_v55 = vrot.slane %v5420_v51, 7  ;;  %v5421_v40 = vmax.f32 %v5389_v33, 0.0  ;;  %v5484_v54 = vrot.slane %v5420_v51, 1 }
 0x4b9   : > { %v5489_v50 = vrot.slane %v17396_v38, 1  ;;  %v5649_v36 = vrot.slane %v17396_v38, 7 }
 0x4ba   : > { %v5739_v63 = vsel %vm19738_vm14, 0.0, %v5644_v55  ;;  %v5485_v2 = vrot.slane %v5421_v40, 1  ;;  %v5645_v52 = vrot.slane %v5421_v40, 7  ;;  %v13365_v59 = vpop.f32.mrb[4].mxu1  ;;  %vm19743_vm14 = vmmov %vm19742_vm11 }
 0x4bb   : > { %v5740_v42 = vsel %vm19739_vm1, %v5739_v63, 0.0  ;;  %v5490_v10 = vsel %vm19740_vm6, %v5487_v60, %v5489_v50  ;;  %v5650_v20 = vsel %vm19741_vm12, %v5647_v12, %v5649_v36  ;;  %v5394_v9 = vadd.f32 %v13365_v59, %v17390_v14  ;;  %v5238_v4 = vpop.f32.mrb[5].mxu1  ;;  %vm19745_vm1 = vmmov %vm19740_vm6 }
 0x4bc   : > { %v5772_v16 = vsel %vm19737_vm15, %v5420_v51, %v5740_v42  ;;  %v5614_v34 = vsel %vm19742_vm11, %v5422_v8, %v5490_v10  ;;  %v5775_v0 = vsel %vm19743_vm14, %v17396_v38, %v5650_v20  ;;  %v5486_v47 = vsel %vm19744_vm10, %v5484_v54, %v5485_v2  ;;  %v13366_v46 = vpop.f32.mrb[6].mxu1  ;;  %vm19746_vm6 = vmmov %vm19742_vm11 }
 0x4bd   : > { %v5488_v43 = vsel %vm19745_vm1, %v5485_v2, %v5487_v60  ;;  %v5612_v62 = vsel %vm19746_vm6, %v5420_v51, %v5486_v47  ;;  %v5646_v13 = vsel %vm19741_vm12, %v5644_v55, %v5645_v52  ;;  %v5648_v15 = vsel %vm19747_vm8, %v5645_v52, %v5647_v12  ;;  %v5241_v1 = vpop.f32.mrb[7].mxu1  ;;  %vm19748_vm11 = vmmov %vm19746_vm6 }
 0x4be   : > { %v5581_v3 = vsel %vm15529_vm2, %v5488_v43, 0.0  ;;  %v5742_v33 = vsel %vm16106_vm13, %v5648_v15, 0.0  ;;  %v5773_v54 = vsel %vm19748_vm11, %v5421_v40, %v5646_v13  ;;  %vm19749_vm10 = vmmov %vm19746_vm6  ;;  %v5392_v55 = vadd.f32 %v17390_v14, %v5238_v4 }
 0x4bf   : > { %v5613_v60 = vsel %vm19749_vm10, %v5421_v40, %v5581_v3  ;;  %vm19750_vm15 = vmmov %vm19746_vm6  ;;  %v5836_v63 = vpack.c.bf16 %v5773_v54, %v5772_v16  ;;  %v5426_v45 = vmax.f32 %v5394_v9, 0.0  ;;  %v5395_v26 = vadd.f32 %v13366_v46, %v17390_v14 }
 0x4c0   : > { %v5774_v51 = vsel %vm19750_vm15, %v5422_v8, %v5742_v33  ;;  %v17430_v12 = vpack.c.bf16 %v5613_v60, %v5612_v62  ;;  %v5424_v52 = vmax.f32 %v5392_v55, 0.0  ;;  %v5393_v59 = vadd.f32 %v17390_v14, %v5241_v1  ;;  %vm19751_vm2 = vmmov %vm19745_vm1  ;;  %v19753_v33 = vld [vmem:[#allocation45_spill] sm:$0xff] }
 0x4c1   : > { %v5837_v2 = vpack.c.bf16 %v5775_v0, %v5774_v51  ;;  %5852 = vst [vmem:[#allocation2 + $0x90] sm:$0xff] %v5836_v63  ;;  %v17435_v8 = vmax.f32 %v5395_v26, 0.0  ;;  %v5495_v16 = vrot.slane %v5426_v45, 1  ;;  %v5655_v47 = vrot.slane %v5426_v45, 7  ;;  %vm19755_vm1 = vmmov %vm19746_vm6 }
 0x4c2   : > { %v13369_v42 = vpop.f32.mrb[8].mxu1  ;;  %13407 = vmatprep.mubr.bf16.mxu0 %v17430_v12  ;;  %v5491_v40 = vrot.slane %v5424_v52, 1  ;;  %v5651_v10 = vrot.slane %v5424_v52, 7  ;;  %v5425_v20 = vmax.f32 %v5393_v59, 0.0  ;;  %vm19752_vm13 = vnez %v19589_v53  ;;  %vm19756_vm6 = vmmov %vm19755_vm1 }
 0x4c3   : > { %5853 = vst [vmem:[#allocation2 + $0x98] sm:$0xff] %v5837_v2  ;;  %v5254_v4 = vpop.f32.mrb[9].mxu1  ;;  %v5398_v9 = vadd.f32 %v13369_v42, %v17390_v14  ;;  %v5497_v13 = vrot.slane %v17435_v8, 1  ;;  %v5657_v15 = vrot.slane %v17435_v8, 7  ;;  %vm19754_vm14 = vnez %v19753_v33  ;;  %vm19757_vm12 = vmmov %vm19751_vm2  ;;  %v14926_v42 = vld [vmem:[#allocation5 + $0x8] sm:$0xff]  }
 0x4c4   : > { %v5396_v0 = vadd.f32 %v17390_v14, %v5254_v4  ;;  %v13370_v43 = vpop.f32.mrb[10].mxu1  ;;  %v5492_v46 = vsel %vm19751_vm2, %v5489_v50, %v5491_v40  ;;  %v5652_v62 = vsel %vm19747_vm8, %v5649_v36, %v5651_v10  ;;  %v5493_v60 = vrot.slane %v5425_v20, 1  ;;  %vm19758_vm11 = vmmov %vm19747_vm8 }
 0x4c5   : > { %v5257_v1 = vpop.f32.mrb[11].mxu1  ;;  %v5583_v3 = vsel %vm19752_vm13, %v5492_v46, 0.0  ;;  %v5744_v54 = vsel %vm19754_vm14, %v5652_v62, 0.0  ;;  %v5653_v51 = vrot.slane %v5425_v20, 7  ;;  %v5498_v36 = vsel %vm19757_vm12, %v5495_v16, %v5497_v13  ;;  %vm19759_vm10 = vmmov %vm19755_vm1 }
 0x4c6   : > { %v5615_v63 = vsel %vm19755_vm1, %v17396_v38, %v5583_v3  ;;  %v5776_v50 = vsel %vm19756_vm6, %v5424_v52, %v5744_v54  ;;  %v5658_v55 = vsel %vm19758_vm11, %v5655_v47, %v5657_v15  ;;  %v5618_v53 = vsel %vm19759_vm10, %v5426_v45, %v5498_v36  ;;  %vm19760_vm15 = vmmov %vm19755_vm1 }
 0x4c7   : > { %v17454_v2 = vpack.c.bf16 %v5615_v63, %v5614_v34  ;;  %v5779_v26 = vsel %vm19760_vm15, %v17435_v8, %v5658_v55  ;;  %v5494_v59 = vsel %vm19751_vm2, %v5491_v40, %v5493_v60  ;;  %vm19761_vm8 = vmmov %vm19751_vm2  ;;  %v17473_v40 = vmax.f32 %v5398_v9, 0.0 }
 0x4c8   : > { %v5496_v38 = vsel %vm19761_vm8, %v5493_v60, %v5495_v16  ;;  %vm19762_vm13 = vmmov %vm19755_vm1 }
 0x4c9   : > { %v5616_v4 = vsel %vm19762_vm13, %v5424_v52, %v5494_v59  ;;  %vm19763_vm14 = vmmov %vm19758_vm11  ;;  %v5585_v3 = vsel %vm19600_vm3, %v5496_v38, 0.0  ;;  %13408 = vmatmul.mubr.bf16.vlgmr.msra.gmra.mrb[32].mxu0 %v17454_v2  ;;  %v5503_v9 = vrot.slane %v17473_v40, 1  ;;  %v5663_v59 = vrot.slane %v17473_v40, 7 }
 0x4ca   : > { %v5654_v46 = vsel %vm19763_vm14, %v5651_v10, %v5653_v51  ;;  %vm19764_vm1 = vmmov %vm19758_vm11  ;;  %v13373_v36 = vpop.f32.mrb[12].mxu1  ;;  %13440 = vmatpush3.bf16.msra.mxu0 %v17384_v21 }
 0x4cb   : > { %v5656_v34 = vsel %vm19764_vm1, %v5653_v51, %v5655_v47  ;;  %v5777_v63 = vsel %vm19756_vm6, %v5425_v20, %v5654_v46  ;;  %vm19767_vm12 = vmmov %vm19756_vm6  ;;  %v5428_v47 = vmax.f32 %v5396_v0, 0.0  ;;  %v5270_v60 = vpop.f32.mrb[13].mxu1  ;;  %13441 = vmatprep.subr.bf16.mxu0 %v14926_v42  ;;  %v14927_v46 = vld [vmem:[#allocation5 + $0x10] sm:$0xff]   ;;  %v5397_v0 = vadd.f32 %v17390_v14, %v5257_v1 }
 0x4cc   : > { %v5746_v54 = vsel %vm16121_vm0, %v5656_v34, 0.0  ;;  %v5617_v52 = vsel %vm19767_vm12, %v5425_v20, %v5585_v3  ;;  %vm19768_vm11 = vmmov %vm19756_vm6  ;;  %v5838_v16 = vpack.c.bf16 %v5777_v63, %v5776_v50  ;;  %v13374_v38 = vpop.f32.mrb[14].mxu1  ;;  %v5402_v21 = vadd.f32 %v13373_v36, %v17390_v14 }
 0x4cd   : > { %v5778_v10 = vsel %vm19768_vm11, %v5426_v45, %v5746_v54  ;;  %v17481_v51 = vpack.c.bf16 %v5617_v52, %v5616_v4  ;;  %v5499_v20 = vrot.slane %v5428_v47, 1  ;;  %v5659_v34 = vrot.slane %v5428_v47, 7  ;;  %v5273_v50 = vpop.f32.mrb[15].mxu1  ;;  %vm19769_vm3 = vmmov %vm19751_vm2  ;;  %v19772_v52 = vld [vmem:[#allocation47_spill] sm:$0xff] }
 0x4ce   : > { %v5839_v55 = vpack.c.bf16 %v5779_v26, %v5778_v10  ;;  %5854 = vst [vmem:[#allocation2 + $0xa0] sm:$0xff] %v5838_v16  ;;  %v5399_v45 = vadd.f32 %v13370_v43, %v17390_v14  ;;  %v5400_v26 = vadd.f32 %v17390_v14, %v5270_v60  ;;  %v5403_v4 = vadd.f32 %v13374_v38, %v17390_v14  ;;  %vm19770_vm0 = vmmov %vm19764_vm1 }
 0x4cf   : > { %v5401_v62 = vadd.f32 %v17390_v14, %v5273_v50  ;;  %13411 = vmatprep.mubr.bf16.mxu0 %v17481_v51  ;;  %v5500_v3 = vsel %vm19769_vm3, %v5497_v13, %v5499_v20  ;;  %v5660_v33 = vsel %vm19770_vm0, %v5657_v15, %v5659_v34  ;;  %v5429_v43 = vmax.f32 %v5397_v0, 0.0  ;;  %13442 = vmatpush3.bf16.msra.mxu0 %v14926_v42  ;;  %vm19774_vm15 = vmmov %vm19756_vm6  ;;  %v14929_v50 = vld [vmem:[#allocation5 + $0x20] sm:$0xff]  }
 0x4d0   : > { %5855 = vst [vmem:[#allocation2 + $0xa8] sm:$0xff] %v5839_v55  ;;  %v5431_v54 = vmax.f32 %v5399_v45, 0.0  ;;  %v5587_v63 = vsel %vm19611_vm4, %v5500_v3, 0.0  ;;  %vm19773_vm10 = vnez %v19772_v52  ;;  %v17498_v10 = vmax.f32 %v5402_v21, 0.0  ;;  %13443 = vmatprep.subr.bf16.mxu0 %v14927_v46  ;;  %vm19775_vm2 = vmmov %vm19756_vm6  ;;  %v14928_v55 = vld [vmem:[#allocation5 + $0x18] sm:$0xff]  }
 0x4d1   : > { %v5748_v36 = vsel %vm19773_vm10, %v5660_v33, 0.0  ;;  %v17500_v16 = vmax.f32 %v5400_v26, 0.0  ;;  %v5619_v13 = vsel %vm19774_vm15, %v17435_v8, %v5587_v63  ;;  %v5501_v45 = vrot.slane %v5429_v43, 1  ;;  %vm19776_vm4 = vmmov %vm19769_vm3  ;;  %v19782_v33 = vld [vmem:[#allocation19_spill] sm:$0xff] }
 0x4d2   : > { %v5780_v15 = vsel %vm19775_vm2, %v5428_v47, %v5748_v36  ;;  %v5505_v60 = vrot.slane %v5431_v54, 1  ;;  %v5665_v42 = vrot.slane %v5431_v54, 7  ;;  %v17507_v38 = vpack.c.bf16 %v5619_v13, %v5618_v53  ;;  %v13377_v21 = vpop.f32.mrb[16].mxu1  ;;  %vm19777_vm8 = vmmov %vm19770_vm0 }
 0x4d3   : > { %v5661_v0 = vrot.slane %v5429_v43, 7  ;;  %v5507_v8 = vrot.slane %v17500_v16, 1  ;;  %v5286_v1 = vpop.f32.mrb[17].mxu1  ;;  %13444 = vmatpush3.bf16.msra.mxu0 %v14927_v46  ;;  %vm19778_vm13 = vmmov %vm19775_vm2  ;;  %vm19783_vm12 = vnez %v19782_v33  ;;  %v19810_v41 = vrot.slane %v17498_v10, 7 }
 0x4d4   : > { %v5506_v26 = vsel %vm19776_vm4, %v5503_v9, %v5505_v60  ;;  %v5666_v3 = vsel %vm19777_vm8, %v5663_v59, %v5665_v42  ;;  %vm19779_vm14 = vmmov %vm19775_vm2  ;;  %v13378_v13 = vpop.f32.mrb[18].mxu1  ;;  %13412 = vmatmul.mubr.bf16.gmra.mrb[36].mxu0 %v17507_v38  ;;  %13445 = vmatprep.subr.bf16.mxu0 %v14928_v55 }
 0x4d5   : > { %v5622_v53 = vsel %vm19778_vm13, %v17473_v40, %v5506_v26  ;;  %v5783_v63 = vsel %vm19779_vm14, %v5431_v54, %v5666_v3  ;;  %vm19780_vm1 = vmmov %vm19769_vm3  ;;  %v5664_v26 = vsel %vm19770_vm0, %v5661_v0, %v5663_v59  ;;  %v17528_v49 = vpop.f32.mrb[19].mxu1 }
 0x4d6   : > { %v5502_v52 = vsel %vm19780_vm1, %v5499_v20, %v5501_v45  ;;  %vm19781_vm6 = vmmov %vm19780_vm1 }
 0x4d7   : > { %v5504_v36 = vsel %vm19781_vm6, %v5501_v45, %v5503_v9  ;;  %vm19784_vm11 = vmmov %vm19775_vm2  ;;  %v5750_v45 = vsel %vm19627_vm9, %v5664_v26, 0.0  ;;  %13446 = vmatpush3.bf16.msra.mxu0 %v14928_v55  ;;  %v5404_v55 = vadd.f32 %v17390_v14, %v5286_v1  ;;  %v5407_v26 = vadd.f32 %v13378_v13, %v17390_v14 }
 0x4d8   : > { %v5589_v6 = vsel %vm19783_vm12, %v5504_v36, 0.0  ;;  %v5620_v46 = vsel %vm19784_vm11, %v5428_v47, %v5502_v52  ;;  %vm19785_vm3 = vmmov %vm19770_vm0  ;;  %13447 = vmatprep.subr.bf16.mxu0 %v14929_v50  ;;  %v19800_v13 = vrot.slane %v17498_v10, 7 }
 0x4d9   : > { %v5662_v28 = vsel %vm19785_vm3, %v5659_v34, %v5661_v0  ;;  %vm19786_vm10 = vmmov %vm19775_vm2  ;;  %v19791_v0 = vld [vmem:[#allocation21_spill] sm:$0xff] }
 0x4da   : > { %v5621_v9 = vsel %vm19786_vm10, %v5429_v43, %v5589_v6  ;;  %vm19788_vm15 = vmmov %vm19775_vm2  ;;  %vm19792_vm8 = vnez %v19791_v0  ;;  %v17577_v0 = vmax.f32 %v5404_v55, 0.0 }
 0x4db   : > { %v5781_v3 = vsel %vm19788_vm15, %v5429_v43, %v5662_v28  ;;  %vm19789_vm2 = vmmov %vm19780_vm1  ;;  %v17540_v34 = vpack.c.bf16 %v5621_v9, %v5620_v46  ;;  %v5667_v28 = vrot.slane %v17500_v16, 7  ;;  %v17551_v43 = vmax.f32 %v5403_v4, 0.0  ;;  %v13381_v9 = vpop.f32.mrb[20].mxu1  ;;  %13448 = vmatpush3.bf16.msra.mxu0 %v14929_v50 }
 0x4dc   : > { %v5508_v33 = vsel %vm19789_vm2, %v5505_v60, %v5507_v8  ;;  %vm19790_vm4 = vmmov %vm19786_vm10  ;;  %v17542_v59 = vpack.c.bf16 %v5781_v3, %v5780_v15  ;;  %v14930_v60 = vld [vmem:[#allocation5 + $0x28] sm:$0xff]   ;;  %v5433_v15 = vmax.f32 %v5401_v62, 0.0  ;;  %v5406_v46 = vadd.f32 %v13377_v21, %v17390_v14  ;;  %v5302_v1 = vpop.f32.mrb[21].mxu1 }
 0x4dd   : > { %v5782_v47 = vsel %vm19790_vm4, %v17473_v40, %v5750_v45  ;;  %v5591_v52 = vsel %vm19792_vm8, %v5508_v33, 0.0  ;;  %vm19793_vm9 = vmmov %vm19790_vm4  ;;  %13415 = vmatprep.mubr.bf16.mxu0 %v17540_v34  ;;  %v5513_v4 = vrot.slane %v17551_v43, 1  ;;  %v19798_v3 = vrot.slane %v17498_v10, 1  ;;  %13449 = vmatprep.subr.bf16.mxu0 %v14930_v60 }
 0x4de   : > { %v17546_v6 = vpack.c.bf16 %v5783_v63, %v5782_v47  ;;  %v5623_v36 = vsel %vm19793_vm9, %v5431_v54, %v5591_v52  ;;  %5856 = vst [vmem:[#allocation2 + $0xb0] sm:$0xff] %v17542_v59  ;;  %vm19794_vm13 = vmmov %vm19770_vm0  ;;  %v5673_v63 = vrot.slane %v17551_v43, 7  ;;  %v5509_v20 = vrot.slane %v5433_v15, 1  ;;  %v13382_v52 = vpop.f32.mrb[22].mxu1 }
 0x4df   : > { %v17554_v40 = vpack.c.bf16 %v5623_v36, %v5622_v53  ;;  %v5668_v54 = vsel %vm19794_vm13, %v5665_v42, %v5667_v28  ;;  %v19795_v53 = vld [vmem:[#allocation22_spill] sm:$0xff]  ;;  %v5669_v21 = vrot.slane %v5433_v15, 7  ;;  %v17566_v45 = vmax.f32 %v5406_v46, 0.0  ;;  %vm19797_vm1 = vmmov %vm19790_vm4  ;;  %v14931_v36 = vld [vmem:[#allocation5 + $0x30] sm:$0xff]   ;;  %13450 = vmatpush3.bf16.msra.mxu0 %v14930_v60 }
 0x4e0   : > { %5857 = vst [vmem:[#allocation2 + $0xb8] sm:$0xff] %v17546_v6  ;;  %vm19796_vm14 = vnez %v19795_v53  ;;  %vm19799_vm6 = vmmov %vm19789_vm2  ;;  %v19805_v53 = vmov %v19798_v3  ;;  %vm19814_vm9 = vnez %v19813_v44  ;;  %13451 = vmatprep.subr.bf16.mxu0 %v14931_v36  ;;  %v5408_v60 = vadd.f32 %v17390_v14, %v5302_v1 }
 0x4e1   : > { %v5752_v62 = vsel %vm19796_vm14, %v5668_v54, 0.0  ;;  %v5514_v33 = vsel %vm19799_vm6, %v19798_v3, %v5513_v4  ;;  %vm19801_vm12 = vmmov %vm19770_vm0  ;;  %13416 = vmatmul.mubr.bf16.gmra.mrb[40].mxu0 %v17554_v40  ;;  %v5515_v3 = vrot.slane %v17577_v0, 1 }
 0x4e2   : > { %v5784_v42 = vsel %vm19797_vm1, %v17500_v16, %v5752_v62  ;;  %v5674_v47 = vsel %vm19801_vm12, %v19800_v13, %v5673_v63  ;;  %vm19802_vm11 = vmmov %vm19797_vm1  ;;  %v5305_v62 = vpop.f32.mrb[23].mxu1  ;;  %v5440_v39 = vmax.f32 %v5408_v60, 0.0 }
 0x4e3   : > { %v5626_v50 = vsel %vm19802_vm11, %v17498_v10, %v5514_v33  ;;  %vm19803_vm3 = vmmov %vm19797_vm1  ;;  %13452 = vmatpush3.bf16.msra.mxu0 %v14931_v36 }
 0x4e4   : > { %v5787_v46 = vsel %vm19803_vm3, %v17551_v43, %v5674_v47  ;;  %vm19804_vm0 = vmmov %vm19789_vm2 }
 0x4e5   : > { %v5510_v54 = vsel %vm19804_vm0, %v5507_v8, %v5509_v20  ;;  %vm19806_vm10 = vmmov %vm19804_vm0 }
 0x4e6   : > { %v5512_v55 = vsel %vm19806_vm10, %v5509_v20, %v19805_v53  ;;  %vm19808_vm15 = vmmov %vm19797_vm1 }
 0x4e7   : > { %v5593_v13 = vsel %vm19641_vm7, %v5512_v55, 0.0  ;;  %v5624_v18 = vsel %vm19808_vm15, %v17500_v16, %v5510_v54  ;;  %vm19809_vm2 = vmmov %vm19801_vm12  ;;  %v5519_v55 = vrot.slane %v17566_v45, 1 }
 0x4e8   : > { %v5670_v33 = vsel %vm19809_vm2, %v5667_v28, %v5669_v21  ;;  %vm19811_vm4 = vmmov %vm19809_vm2 }
 0x4e9   : > { %v5672_v47 = vsel %vm19811_vm4, %v5669_v21, %v19810_v41  ;;  %vm19812_vm8 = vmmov %vm19797_vm1  ;;  %v5679_v41 = vrot.slane %v17566_v45, 7  ;;  %v14932_v21 = vld [vmem:[#allocation5 + $0x38] sm:$0xff]  }
 0x4ea   : > { %v5625_v8 = vsel %vm19812_vm8, %v5433_v15, %v5593_v13  ;;  %v5754_v20 = vsel %vm19814_vm9, %v5672_v47, 0.0  ;;  %vm19815_vm13 = vmmov %vm19797_vm1  ;;  %v17618_v13 = vmax.f32 %v5407_v26, 0.0  ;;  %13453 = vmatprep.subr.bf16.mxu0 %v14932_v21 }
 0x4eb   : > { %v5785_v53 = vsel %vm19815_vm13, %v5433_v15, %v5670_v33  ;;  %vm19816_vm7 = vmmov %vm19797_vm1  ;;  %v17609_v28 = vpack.c.bf16 %v5625_v8, %v5624_v18  ;;  %v5675_v15 = vrot.slane %v17577_v0, 7  ;;  %v5405_v18 = vadd.f32 %v17390_v14, %v17528_v49  ;;  %13454 = vmatpush3.bf16.msra.mxu0 %v14932_v21 }
 0x4ec   : > { %v5786_v16 = vsel %vm19816_vm7, %v17498_v10, %v5754_v20  ;;  %v17611_v54 = vpack.c.bf16 %v5785_v53, %v5784_v42  ;;  %v5410_v10 = vadd.f32 %v13381_v9, %v17390_v14  ;;  %v5411_v42 = vadd.f32 %v13382_v52, %v17390_v14  ;;  %vm19817_vm14 = vmmov %vm19804_vm0  ;;  %v19819_v9 = vld [vmem:[#allocation26_spill] sm:$0xff] }
 0x4ed   : > { %v17614_v44 = vpack.c.bf16 %v5787_v46, %v5786_v16  ;;  %13419 = vmatprep.mubr.bf16.mxu0 %v17609_v28  ;;  %v13385_v46 = vpop.f32.mrb[24].mxu1  ;;  %v5516_v33 = vsel %vm19817_vm14, %v5513_v4, %v5515_v3  ;;  %vm19818_vm1 = vmmov %vm19809_vm2  ;;  %v5521_v47 = vrot.slane %v17618_v13, 1  ;;  %v5681_v8 = vrot.slane %v17618_v13, 7  ;;  %v17640_v4 = vld [vmem:[#allocation5 + $0x80] sm:$0xff]  }
 0x4ee   : > { %5858 = vst [vmem:[#allocation2 + $0xc0] sm:$0xff] %v17611_v54  ;;  %v5676_v26 = vsel %vm19818_vm1, %v5673_v63, %v5675_v15  ;;  %v17632_v49 = vpop.f32.mrb[25].mxu1  ;;  %vm19820_vm6 = vnez %v19819_v9  ;;  %v5437_v20 = vmax.f32 %v5405_v18, 0.0  ;;  %v17638_v53 = vmax.f32 %v5410_v10, 0.0  ;;  %vm19821_vm12 = vmmov %vm19803_vm3  ;;  %13487 = vmatprep.subr.bf16.mxu0 %v17640_v4 }
 0x4ef   : > { %5859 = vst [vmem:[#allocation2 + $0xc8] sm:$0xff] %v17614_v44  ;;  %v5595_v1 = vsel %vm19820_vm6, %v5516_v33, 0.0  ;;  %v5756_v52 = vsel %vm19705_vm5, %v5676_v26, 0.0  ;;  %v13386_v16 = vpop.f32.mrb[26].mxu1  ;;  %vm19822_vm11 = vmmov %vm19803_vm3  ;;  %vm19835_vm14 = vnez %v19458_v32 }
 0x4f0   : > { %v5627_v63 = vsel %vm19821_vm12, %v17551_v43, %v5595_v1  ;;  %v5788_v36 = vsel %vm19822_vm11, %v17577_v0, %v5756_v52  ;;  %vm19823_vm3 = vmmov %vm19804_vm0  ;;  %v5321_v26 = vpop.f32.mrb[27].mxu1  ;;  %v5517_v43 = vrot.slane %v5437_v20, 1  ;;  %v5677_v1 = vrot.slane %v5437_v20, 7 }
 0x4f1   : > { %v5522_v33 = vsel %vm19823_vm3, %v5519_v55, %v5521_v47  ;;  %vm19824_vm0 = vmmov %vm19818_vm1  ;;  %v17650_v18 = vpack.c.bf16 %v5627_v63, %v5626_v50  ;;  %v5527_v48 = vrot.slane %v17638_v53, 1  ;;  %v5687_v52 = vrot.slane %v17638_v53, 7 }
 0x4f2   : > { %v5682_v24 = vsel %vm19824_vm0, %v5679_v41, %v5681_v8  ;;  %vm19825_vm5 = vmmov %vm19816_vm7  ;;  %v17662_v63 = vmax.f32 %v5411_v42, 0.0 }
 0x4f3   : > { %v5630_v10 = vsel %vm19825_vm5, %v17566_v45, %v5522_v33  ;;  %vm19826_vm10 = vmmov %vm19825_vm5  ;;  %v5409_v33 = vadd.f32 %v17390_v14, %v5305_v62  ;;  %13420 = vmatmul.mubr.bf16.gmra.mrb[44].mxu0 %v17650_v18 }
 0x4f4   : > { %v5791_v9 = vsel %vm19826_vm10, %v17618_v13, %v5682_v24  ;;  %vm19827_vm15 = vmmov %vm19823_vm3  ;;  %v19829_v24 = vld [vmem:[#allocation27_spill] sm:$0xff] }
 0x4f5   : > { %v5518_v5 = vsel %vm19827_vm15, %v5515_v3, %v5517_v43  ;;  %vm19828_vm2 = vmmov %vm19823_vm3  ;;  %vm19830_vm4 = vnez %v19829_v24  ;;  %v13389_v24 = vpop.f32.mrb[28].mxu1 }
 0x4f6   : > { %v5520_v50 = vsel %vm19828_vm2, %v5517_v43, %v5519_v55  ;;  %vm19831_vm8 = vmmov %vm19825_vm5  ;;  %v5523_v43 = vrot.slane %v5440_v39, 1 }
 0x4f7   : > { %v5597_v56 = vsel %vm19830_vm4, %v5520_v50, 0.0  ;;  %v5628_v60 = vsel %vm19831_vm8, %v17577_v0, %v5518_v5  ;;  %vm19832_vm9 = vmmov %vm19824_vm0 }
 0x4f8   : > { %v5678_v21 = vsel %vm19832_vm9, %v5675_v15, %v5677_v1  ;;  %vm19833_vm13 = vmmov %vm19824_vm0  ;;  %v5334_v15 = vpop.f32.mrb[29].mxu1 }
 0x4f9   : > { %v5680_v3 = vsel %vm19833_vm13, %v5677_v1, %v5679_v41  ;;  %vm19834_vm7 = vmmov %vm19825_vm5  ;;  %v5683_v41 = vrot.slane %v5440_v39, 7 }
 0x4fa   : > { %v5629_v55 = vsel %vm19834_vm7, %v5437_v20, %v5597_v56  ;;  %v5758_v62 = vsel %vm19835_vm14, %v5680_v3, 0.0  ;;  %vm19836_vm1 = vmmov %vm19825_vm5  ;;  %v5529_v56 = vrot.slane %v17662_v63, 1  ;;  %v19839_v3 = vld [vmem:[#allocation28_spill] sm:$0xff]  ;;  %vm19843_vm5 = vnez %v19469_v31 }
 0x4fb   : > { %v5789_v42 = vsel %vm19836_vm1, %v5437_v20, %v5678_v21  ;;  %vm19837_vm6 = vmmov %vm19836_vm1  ;;  %v17683_v5 = vpack.c.bf16 %v5629_v55, %v5628_v60  ;;  %v5689_v20 = vrot.slane %v17662_v63, 7  ;;  %v13390_v21 = vpop.f32.mrb[30].mxu1  ;;  %vm19840_vm11 = vnez %v19839_v3 }
 0x4fc   : > { %v5790_v50 = vsel %vm19837_vm6, %v17566_v45, %v5758_v62  ;;  %v17685_v0 = vpack.c.bf16 %v5789_v42, %v5788_v36  ;;  %vm19838_vm12 = vmmov %vm19828_vm2  ;;  %v5441_v60 = vmax.f32 %v5409_v33, 0.0  ;;  %v5414_v36 = vadd.f32 %v13385_v46, %v17390_v14  ;;  %v5337_v55 = vpop.f32.mrb[31].mxu1 }
 0x4fd   : > { %v17687_v1 = vpack.c.bf16 %v5791_v9, %v5790_v50  ;;  %v5524_v32 = vsel %vm19838_vm12, %v5521_v47, %v5523_v43  ;;  %vm19841_vm3 = vmmov %vm19824_vm0  ;;  %13423 = vmatprep.mubr.bf16.mxu0 %v17683_v5  ;;  %v5415_v3 = vadd.f32 %v13386_v16, %v17390_v14  ;;  %vm19856_vm12 = vnez %v19513_v11 }
 0x4fe   : > { %v5599_v29 = vsel %vm19840_vm11, %v5524_v32, 0.0  ;;  %v5684_v45 = vsel %vm19841_vm3, %v5681_v8, %v5683_v41  ;;  %vm19842_vm0 = vmmov %vm19836_vm1  ;;  %v5685_v31 = vrot.slane %v5441_v60, 7  ;;  %v5446_v50 = vmax.f32 %v5414_v36, 0.0 }
 0x4ff   : > { %v5631_v47 = vsel %vm19842_vm0, %v17618_v13, %v5599_v29  ;;  %v5760_v9 = vsel %vm19843_vm5, %v5684_v45, 0.0  ;;  %vm19844_vm10 = vmmov %vm19828_vm2  ;;  %v5525_v13 = vrot.slane %v5441_v60, 1  ;;  %v5412_v32 = vadd.f32 %v17390_v14, %v17632_v49 }
 0x500   : > { %v5530_v62 = vsel %vm19844_vm10, %v5527_v48, %v5529_v56  ;;  %vm19845_vm15 = vmmov %vm19841_vm3  ;;  %v17706_v33 = vpack.c.bf16 %v5631_v47, %v5630_v10  ;;  %v5413_v45 = vadd.f32 %v17390_v14, %v5321_v26  ;;  %v5418_v10 = vadd.f32 %v13389_v24, %v17390_v14 }
 0x501   : > { %v5690_v42 = vsel %vm19845_vm15, %v5687_v52, %v5689_v20  ;;  %vm19846_vm2 = vmmov %vm19842_vm0  ;;  %v5416_v47 = vadd.f32 %v17390_v14, %v5334_v15  ;;  %vm19854_vm1 = vnez %v19853_v25  ;;  %v5444_v15 = vmax.f32 %v5412_v32, 0.0 }
 0x502   : > { %v5792_v8 = vsel %vm19846_vm2, %v5440_v39, %v5760_v9  ;;  %vm19847_vm4 = vmmov %vm19842_vm0  ;;  %13424 = vmatmul.mubr.bf16.gmra.mrb[48].mxu0 %v17706_v33  ;;  %v5695_v11 = vrot.slane %v5446_v50, 7  ;;  %vm19863_vm2 = vnez %v19541_v23 }
 0x503   : > { %v5634_v46 = vsel %vm19847_vm4, %v17638_v53, %v5530_v62  ;;  %vm19848_vm8 = vmmov %vm19842_vm0 }
 0x504   : > { %v5795_v29 = vsel %vm19848_vm8, %v17662_v63, %v5690_v42  ;;  %vm19849_vm9 = vmmov %vm19844_vm10 }
 0x505   : > { %v5526_v9 = vsel %vm19849_vm9, %v5523_v43, %v5525_v13  ;;  %vm19850_vm13 = vmmov %vm19849_vm9 }
 0x506   : > { %v5528_v62 = vsel %vm19850_vm13, %v5525_v13, %v5527_v48  ;;  %vm19851_vm7 = vmmov %vm19841_vm3  ;;  %v5447_v13 = vmax.f32 %v5415_v3, 0.0 }
 0x507   : > { %v5686_v42 = vsel %vm19851_vm7, %v5683_v41, %v5685_v31  ;;  %vm19852_vm14 = vmmov %vm19841_vm3  ;;  %v5601_v49 = vsel %vm19854_vm1, %v5528_v62, 0.0  ;;  %v5531_v62 = vrot.slane %v5444_v15, 1 }
 0x508   : > { %v5688_v36 = vsel %vm19852_vm14, %v5685_v31, %v5687_v52  ;;  %vm19855_vm6 = vmmov %vm19842_vm0  ;;  %v5445_v31 = vmax.f32 %v5413_v45, 0.0  ;;  %v5417_v45 = vadd.f32 %v17390_v14, %v5337_v55 }
 0x509   : > { %v5632_v16 = vsel %vm19855_vm6, %v5440_v39, %v5526_v9  ;;  %v5762_v26 = vsel %vm19856_vm12, %v5688_v36, 0.0  ;;  %vm19857_vm11 = vmmov %vm19842_vm0  ;;  %v5535_v39 = vrot.slane %v5446_v50, 1  ;;  %v17744_v9 = vmax.f32 %v5418_v10, 0.0  ;;  %v19861_v10 = vld [vmem:[#allocation36_spill] sm:$0xff] }
 0x50a   : > { %v5793_v24 = vsel %vm19857_vm11, %v5441_v60, %v5686_v42  ;;  %vm19858_vm3 = vmmov %vm19842_vm0  ;;  %v5794_v48 = vsel %vm19842_vm0, %v17638_v53, %v5762_v26  ;;  %v5691_v42 = vrot.slane %v5444_v15, 7  ;;  %v5419_v36 = vadd.f32 %v13390_v21, %v17390_v14 }
 0x50b   : > { %v5633_v43 = vsel %vm19858_vm3, %v5441_v60, %v5601_v49  ;;  %v17738_v52 = vpack.c.bf16 %v5793_v24, %v5792_v8  ;;  %v17742_v41 = vpack.c.bf16 %v5795_v29, %v5794_v48  ;;  %v17746_v60 = vmax.f32 %v5416_v47, 0.0  ;;  %vm19859_vm5 = vmmov %vm19849_vm9 }
 0x50c   : > { %v17740_v25 = vpack.c.bf16 %v5633_v43, %v5632_v16  ;;  %v5537_v53 = vrot.slane %v5447_v13, 1  ;;  %v5697_v8 = vrot.slane %v5447_v13, 7  ;;  %v5533_v49 = vrot.slane %v5445_v31, 1  ;;  %vm19860_vm10 = vmmov %vm19851_vm7 }
 0x50d   : > { %v5693_v29 = vrot.slane %v5445_v31, 7  ;;  %v5532_v16 = vsel %vm19859_vm5, %v5529_v56, %v5531_v62  ;;  %v5692_v32 = vsel %vm19860_vm10, %v5689_v20, %v5691_v42  ;;  %v5543_v3 = vrot.slane %v17744_v9, 1  ;;  %vm19864_vm4 = vmmov %vm19859_vm5 }
 0x50e   : > { %13427 = vmatprep.mubr.bf16.mxu0 %v17740_v25  ;;  %vm19862_vm15 = vnez %v19861_v10  ;;  %v5764_v21 = vsel %vm19863_vm2, %v5692_v32, 0.0  ;;  %v5538_v26 = vsel %vm19864_vm4, %v5535_v39, %v5537_v53  ;;  %vm19865_vm8 = vmmov %vm19851_vm7  ;;  %v19873_v32 = vld [vmem:[#allocation37_spill] sm:$0xff] }
 0x50f   : > { %v5603_v47 = vsel %vm19862_vm15, %v5532_v16, 0.0  ;;  %v5698_v24 = vsel %vm19865_vm8, %v5695_v11, %v5697_v8  ;;  %vm19866_vm9 = vmmov %vm19842_vm0  ;;  %vm19874_vm11 = vnez %v19873_v32  ;;  %vm19879_vm15 = vnez %v19546_v37 }
 0x510   : > { %v5635_v56 = vsel %vm19866_vm9, %v17662_v63, %v5603_v47  ;;  %vm19867_vm13 = vmmov %vm19842_vm0 }
 0x511   : > { %v5796_v20 = vsel %vm19867_vm13, %v5444_v15, %v5764_v21  ;;  %vm19868_vm7 = vmmov %vm19842_vm0  ;;  %v17769_v43 = vpack.c.bf16 %v5635_v56, %v5634_v46  ;;  %v19882_v56 = vld [vmem:[#allocation38_spill] sm:$0xff] }
 0x512   : > { %v5638_v14 = vsel %vm19868_vm7, %v5446_v50, %v5538_v26  ;;  %vm19869_vm14 = vmmov %vm19842_vm0  ;;  %vm19886_vm7 = vnez %v19556_v22 }
 0x513   : > { %v5799_v55 = vsel %vm19869_vm14, %v5447_v13, %v5698_v24  ;;  %vm19870_vm1 = vmmov %vm19864_vm4  ;;  %13428 = vmatmul.mubr.bf16.gmra.mrb[52].mxu0 %v17769_v43  ;;  %v5449_v24 = vmax.f32 %v5417_v45, 0.0 }
 0x514   : > { %v5534_v23 = vsel %vm19870_vm1, %v5531_v62, %v5533_v49  ;;  %vm19871_vm6 = vmmov %vm19870_vm1 }
 0x515   : > { %v5536_v48 = vsel %vm19871_vm6, %v5533_v49, %v5535_v39  ;;  %vm19872_vm12 = vmmov %vm19865_vm8  ;;  %v5701_v32 = vrot.slane %v5449_v24, 7 }
 0x516   : > { %v5694_v16 = vsel %vm19872_vm12, %v5691_v42, %v5693_v29  ;;  %v5605_v63 = vsel %vm19874_vm11, %v5536_v48, 0.0  ;;  %vm19875_vm3 = vmmov %vm19842_vm0  ;;  %v5539_v42 = vrot.slane %v17746_v60, 1  ;;  %vm19889_vm12 = vnez %v19695_v17 }
 0x517   : > { %v5636_v10 = vsel %vm19875_vm3, %v5444_v15, %v5534_v23  ;;  %vm19876_vm0 = vmmov %vm19865_vm8  ;;  %vm19883_vm8 = vnez %v19882_v56 }
 0x518   : > { %v5696_v47 = vsel %vm19876_vm0, %v5693_v29, %v5695_v11  ;;  %vm19877_vm5 = vmmov %vm19875_vm3  ;;  %v5699_v11 = vrot.slane %v17746_v60, 7  ;;  %v5451_v29 = vmax.f32 %v5419_v36, 0.0 }
 0x519   : > { %v5797_v21 = vsel %vm19877_vm5, %v5445_v31, %v5694_v16  ;;  %vm19878_vm10 = vmmov %vm19875_vm3  ;;  %v5766_v62 = vsel %vm19879_vm15, %v5696_v47, 0.0 }
 0x51a   : > { %v5637_v46 = vsel %vm19878_vm10, %v5445_v31, %v5605_v63  ;;  %v17785_v39 = vpack.c.bf16 %v5797_v21, %v5796_v20  ;;  %vm19880_vm2 = vmmov %vm19875_vm3  ;;  %v5703_v31 = vrot.slane %v17744_v9, 7  ;;  %v5545_v48 = vrot.slane %v5451_v29, 1 }
 0x51b   : > { %v5798_v15 = vsel %vm19880_vm2, %v5446_v50, %v5766_v62  ;;  %v17791_v49 = vpack.c.bf16 %v5637_v46, %v5636_v10  ;;  %vm19881_vm4 = vmmov %vm19870_vm1  ;;  %v5705_v16 = vrot.slane %v5451_v29, 7 }
 0x51c   : > { %v17794_v26 = vpack.c.bf16 %v5799_v55, %v5798_v15  ;;  %v5540_v37 = vsel %vm19881_vm4, %v5537_v53, %v5539_v42  ;;  %vm19884_vm9 = vmmov %vm19876_vm0  ;;  %v5541_v55 = vrot.slane %v5449_v24, 1  ;;  %vm19896_vm4 = vnez %v19697_v57 }
 0x51d   : > { %v5607_v20 = vsel %vm19883_vm8, %v5540_v37, 0.0  ;;  %v5700_v23 = vsel %vm19884_vm9, %v5697_v8, %v5699_v11  ;;  %13431 = vmatprep.mubr.bf16.mxu0 %v17791_v49  ;;  %vm19885_vm13 = vmmov %vm19880_vm2  ;;  %v5546_v8 = vsel %vm19870_vm1, %v5543_v3, %v5545_v48 }
 0x51e   : > { %v5639_v50 = vsel %vm19885_vm13, %v5447_v13, %v5607_v20  ;;  %v5768_v36 = vsel %vm19886_vm7, %v5700_v23, 0.0  ;;  %vm19887_vm14 = vmmov %vm19880_vm2  ;;  %vm19900_vm7 = vnez %v19564_v58  ;;  %v17852_v20 = vld [vmem:[#allocation2] sm:$0xff]  ;;  %v14934_v58 = vld [vmem:[#allocation5 + $0x88] sm:$0xff]  }
 0x51f   : > { %v5800_v53 = vsel %vm19887_vm14, %v17746_v60, %v5768_v36  ;;  %v17809_v45 = vpack.c.bf16 %v5639_v50, %v5638_v14  ;;  %vm19888_vm6 = vmmov %vm19870_vm1  ;;  %v14938_v23 = vld [vmem:[#allocation5 + $0xa8] sm:$0xff]   ;;  %v14943_v50 = vld [vmem:[#allocation5 + $0xd0] sm:$0xff]  }
 0x520   : > { %v5579_v63 = vsel %vm19888_vm6, %v5545_v48, 0.0  ;;  %vm19890_vm11 = vmmov %vm19880_vm2  ;;  %v14941_v48 = vld [vmem:[#allocation5 + $0xc0] sm:$0xff]   ;;  %v14944_v36 = vld [vmem:[#allocation5 + $0xd8] sm:$0xff]   ;;  %vm19287_vm6 = vcmask 1043456  }
 0x521   : > { %v5611_v10 = vsel %vm19889_vm12, %v5579_v63, 0.0  ;;  %v5642_v22 = vsel %vm19890_vm11, %v17744_v9, %v5546_v8  ;;  %vm19891_vm3 = vmmov %vm19876_vm0  ;;  %13432 = vmatmul.mubr.bf16.gmra.mrb[56].mxu0 %v17809_v45  ;;  %v14957_v8 = vld [vmem:[#allocation5 + $0x140] sm:$0xff]   ;;  %v14960_v63 = vld [vmem:[#allocation5 + $0x158] sm:$0xff]  }
 0x522   : > { %v5706_v13 = vsel %vm19891_vm3, %v5703_v31, %v5705_v16  ;;  %vm19892_vm0 = vmmov %vm19870_vm1  ;;  %v14942_v16 = vld [vmem:[#allocation5 + $0xc8] sm:$0xff]  }
 0x523   : > { %v5542_v47 = vsel %vm19892_vm0, %v5539_v42, %v5541_v55  ;;  %vm19893_vm5 = vmmov %vm19880_vm2 }
 0x524   : > { %v5643_v21 = vsel %vm19893_vm5, %v5451_v29, %v5611_v10  ;;  %vm19894_vm10 = vmmov %vm19880_vm2  ;;  %v5640_v17 = vsel %vm19880_vm2, %v17746_v60, %v5542_v47  ;;  %v6888_v10 = vld [vmem:[#allocation2 + $0xb0] sm:$0xff]  ;;  %v6889_v47 = vld [vmem:[#allocation2 + $0xb8] sm:$0xff] }
 0x525   : > { %v5803_v14 = vsel %vm19894_vm10, %v5451_v29, %v5706_v13  ;;  %vm19895_vm15 = vmmov %vm19892_vm0  ;;  %v17828_v62 = vpack.c.bf16 %v5643_v21, %v5642_v22  ;;  %v14961_v22 = vld [vmem:[#allocation5 + $0x160] sm:$0xff]   ;;  %v14962_v13 = vld [vmem:[#allocation5 + $0x168] sm:$0xff]  }
 0x526   : > { %v5544_v46 = vsel %vm19895_vm15, %v5541_v55, %v5543_v3  ;;  %vm19897_vm8 = vmmov %vm19891_vm3  ;;  %v14945_v55 = vld [vmem:[#allocation5 + $0xe0] sm:$0xff]   ;;  %v14963_v21 = vld [vmem:[#allocation5 + $0x170] sm:$0xff]  }
 0x527   : > { %v5609_v15 = vsel %vm19896_vm4, %v5544_v46, 0.0  ;;  %v5702_v37 = vsel %vm19897_vm8, %v5699_v11, %v5701_v32  ;;  %vm19898_vm9 = vmmov %vm19891_vm3  ;;  %vm19953_vm4 = vcmask 1046528  }
 0x528   : > { %v5704_v42 = vsel %vm19898_vm9, %v5701_v32, %v5703_v31  ;;  %vm19899_vm13 = vmmov %vm19880_vm2  ;;  %v14954_v32 = vld [vmem:[#allocation5 + $0x128] sm:$0xff]  }
 0x529   : > { %v5641_v29 = vsel %vm19899_vm13, %v5449_v24, %v5609_v15  ;;  %v5770_v3 = vsel %vm19900_vm7, %v5704_v42, 0.0  ;;  %vm19901_vm14 = vmmov %vm19880_vm2  ;;  %v19904_v42 = vld [vmem:[#allocation31_spill] sm:$0xff] }
 0x52a   : > { %v5801_v60 = vsel %vm19901_vm14, %v5449_v24, %v5702_v37  ;;  %vm19902_vm1 = vmmov %vm19880_vm2  ;;  %v17844_v56 = vpack.c.bf16 %v5641_v29, %v5640_v17  ;;  %v14937_v24 = vld [vmem:[#allocation5 + $0xa0] sm:$0xff]   ;;  %v19903_v17 = vld [vmem:[#allocation25_spill] sm:$0xff] }
 0x52b   : > { %v5802_v57 = vsel %vm19902_vm1, %v17744_v9, %v5770_v3  ;;  %v17846_v11 = vpack.c.bf16 %v5801_v60, %v5800_v53  ;;  %v14936_v9 = vld [vmem:[#allocation5 + $0x98] sm:$0xff]   ;;  %v14955_v53 = vld [vmem:[#allocation5 + $0x130] sm:$0xff]   ;;  %v19905_v60 = vld [vmem:[#allocation30_spill] sm:$0xff] }
 0x52c   : > { %v17848_v31 = vpack.c.bf16 %v5803_v14, %v5802_v57  ;;  %13435 = vmatprep.mubr.bf16.mxu0 %v17844_v56  ;;  %v14964_v14 = vld [vmem:[#allocation5 + $0x178] sm:$0xff]   ;;  %vm19952_vm2 = vmmov %vm19897_vm8 }
 0x52d   : > { %13436 = vmatmul.mubr.bf16.gmra.mrb[60].mxu0 %v17828_v62  ;;  %vm19954_vm8 = vmmov %vm19952_vm2 }
 0x52e   : > { %13455 = vmatprep.mubr.bf16.mxu0 %v17852_v20  ;;  %vm19963_vm1 = vmmov %vm19953_vm4 }
 0x535   : > { %13456 = vmatmul.mubr.bf16.vlgmr.msra.gmra.mrb[32].mxu0 %v17430_v12  ;;  %v14939_v12 = vld [vmem:[#allocation5 + $0xb0] sm:$0xff]  }
 0x536   : > { %13459 = vmatprep.mubr.bf16.mxu0 %v17454_v2  ;;  %13488 = vmatpush3.bf16.msra.mxu0 %v17640_v4  ;;  %v14940_v4 = vld [vmem:[#allocation5 + $0xb8] sm:$0xff]  }
 0x537   : > { %13489 = vmatprep.subr.bf16.mxu0 %v14934_v58 }
 0x53a   : > { %13490 = vmatpush3.bf16.msra.mxu0 %v14934_v58 }
 0x53b   : > { %13491 = vmatprep.subr.bf16.mxu0 %v14935_v7 }
 0x53d   : > { %13460 = vmatmul.mubr.bf16.gmra.mrb[36].mxu0 %v17481_v51 }
 0x53e   : > { %13463 = vmatprep.mubr.bf16.mxu0 %v17507_v38  ;;  %13492 = vmatpush3.bf16.msra.mxu0 %v14935_v7 }
 0x53f   : > { %13493 = vmatprep.subr.bf16.mxu0 %v14936_v9 }
 0x542   : > { %13494 = vmatpush3.bf16.msra.mxu0 %v14936_v9 }
 0x543   : > { %13495 = vmatprep.subr.bf16.mxu0 %v14937_v24 }
 0x545   : > { %13464 = vmatmul.mubr.bf16.gmra.mrb[40].mxu0 %v17540_v34 }
 0x546   : > { %13467 = vmatprep.mubr.bf16.mxu0 %v17554_v40  ;;  %13496 = vmatpush3.bf16.msra.mxu0 %v14937_v24 }
 0x547   : > { %13497 = vmatprep.subr.bf16.mxu0 %v14938_v23 }
 0x54a   : > { %13498 = vmatpush3.bf16.msra.mxu0 %v14938_v23 }
 0x54b   : > { %13499 = vmatprep.subr.bf16.mxu0 %v14939_v12 }
 0x54d   : > { %13468 = vmatmul.mubr.bf16.gmra.mrb[44].mxu0 %v17609_v28 }
 0x54e   : > { %13471 = vmatprep.mubr.bf16.mxu0 %v17650_v18  ;;  %13500 = vmatpush3.bf16.msra.mxu0 %v14939_v12 }
 0x54f   : > { %13501 = vmatprep.subr.bf16.mxu0 %v14940_v4 }
 0x552   : > { %13502 = vmatpush3.bf16.msra.mxu0 %v14940_v4 }
 0x553   : > { %13535 = vmatprep.subr.bf16.mxu0 %v14941_v48 }
 0x555   : > { %13472 = vmatmul.mubr.bf16.gmra.mrb[48].mxu0 %v17683_v5 }
 0x556   : > { %13475 = vmatprep.mubr.bf16.mxu0 %v17706_v33 }
 0x55d   : > { %13476 = vmatmul.mubr.bf16.gmra.mrb[52].mxu0 %v17740_v25 }
 0x55e   : > { %13479 = vmatprep.mubr.bf16.mxu0 %v17769_v43 }
 0x565   : > { %13480 = vmatmul.mubr.bf16.gmra.mrb[56].mxu0 %v17791_v49 }
 0x566   : > { %13483 = vmatprep.mubr.bf16.mxu0 %v17809_v45 }
 0x56d   : > { %13484 = vmatmul.mubr.bf16.gmra.mrb[60].mxu0 %v17844_v56 }
 0x56e   : > { %13503 = vmatprep.mubr.bf16.mxu0 %v17454_v2  ;;  %v14946_v2 = vld [vmem:[#allocation5 + $0xe8] sm:$0xff]  }
 0x575   : > { %13504 = vmatmul.mubr.bf16.vlgmr.msra.gmra.mrb[32].mxu0 %v17481_v51  ;;  %v14947_v51 = vld [vmem:[#allocation5 + $0xf0] sm:$0xff]  }
 0x576   : > { %13507 = vmatprep.mubr.bf16.mxu0 %v17507_v38  ;;  %13536 = vmatpush3.bf16.msra.mxu0 %v14941_v48  ;;  %v14948_v38 = vld [vmem:[#allocation5 + $0xf8] sm:$0xff]  }
 0x577   : > { %13537 = vmatprep.subr.bf16.mxu0 %v14942_v16 }
 0x57a   : > { %13538 = vmatpush3.bf16.msra.mxu0 %v14942_v16 }
 0x57b   : > { %13539 = vmatprep.subr.bf16.mxu0 %v14943_v50 }
 0x57d   : > { %13508 = vmatmul.mubr.bf16.gmra.mrb[36].mxu0 %v17540_v34  ;;  %v14949_v34 = vld [vmem:[#allocation5 + $0x100] sm:$0xff]  }
 0x57e   : > { %13511 = vmatprep.mubr.bf16.mxu0 %v17554_v40  ;;  %13540 = vmatpush3.bf16.msra.mxu0 %v14943_v50  ;;  %v14950_v40 = vld [vmem:[#allocation5 + $0x108] sm:$0xff]  }
 0x57f   : > { %13541 = vmatprep.subr.bf16.mxu0 %v14944_v36 }
 0x582   : > { %13542 = vmatpush3.bf16.msra.mxu0 %v14944_v36  ;;  %v19907_v36 = vld [vmem:[#allocation33_spill] sm:$0xff] }
 0x583   : > { %13543 = vmatprep.subr.bf16.mxu0 %v14945_v55 }
 0x585   : > { %13512 = vmatmul.mubr.bf16.gmra.mrb[40].mxu0 %v17609_v28  ;;  %v6611_v28 = vld [vmem:[#allocation2 + $0x90] sm:$0xff] }
 0x586   : > { %13515 = vmatprep.mubr.bf16.mxu0 %v17650_v18  ;;  %13544 = vmatpush3.bf16.msra.mxu0 %v14945_v55  ;;  %v17888_v18 = vld [vmem:[#allocation2 + $0x98] sm:$0xff] }
 0x587   : > { %13545 = vmatprep.subr.bf16.mxu0 %v14946_v2 }
 0x58a   : > { %13546 = vmatpush3.bf16.msra.mxu0 %v14946_v2 }
 0x58b   : > { %13547 = vmatprep.subr.bf16.mxu0 %v14947_v51 }
 0x58d   : > { %13516 = vmatmul.mubr.bf16.gmra.mrb[44].mxu0 %v17683_v5  ;;  %v14951_v5 = vld [vmem:[#allocation5 + $0x110] sm:$0xff]  }
 0x58e   : > { %13519 = vmatprep.mubr.bf16.mxu0 %v17706_v33  ;;  %13548 = vmatpush3.bf16.msra.mxu0 %v14947_v51  ;;  %v14952_v33 = vld [vmem:[#allocation5 + $0x118] sm:$0xff]  }
 0x58f   : > { %13549 = vmatprep.subr.bf16.mxu0 %v14948_v38 }
 0x592   : > { %13550 = vmatpush3.bf16.msra.mxu0 %v14948_v38  ;;  %v19908_v38 = vld [vmem:[#allocation34_spill] sm:$0xff] }
 0x593   : > { %13583 = vmatprep.subr.bf16.mxu0 %v14949_v34 }
 0x595   : > { %13520 = vmatmul.mubr.bf16.gmra.mrb[48].mxu0 %v17740_v25  ;;  %v17891_v25 = vld [vmem:[#allocation2 + $0xa0] sm:$0xff] }
 0x596   : > { %13523 = vmatprep.mubr.bf16.mxu0 %v17769_v43  ;;  %v17894_v43 = vld [vmem:[#allocation2 + $0xa8] sm:$0xff] }
 0x59d   : > { %13524 = vmatmul.mubr.bf16.gmra.mrb[52].mxu0 %v17791_v49  ;;  %v14953_v49 = vld [vmem:[#allocation5 + $0x120] sm:$0xff]  }
 0x59e   : > { %13527 = vmatprep.mubr.bf16.mxu0 %v17809_v45  ;;  %v14956_v45 = vld [vmem:[#allocation5 + $0x138] sm:$0xff]  }
 0x5a5   : > { %13528 = vmatmul.mubr.bf16.gmra.mrb[56].mxu0 %v17844_v56  ;;  %v19906_v56 = vld [vmem:[#allocation32_spill] sm:$0xff] }
 0x5a6   : > { %13531 = vmatprep.mubr.bf16.mxu0 %v17828_v62 }
 0x5ad   : > { %13532 = vmatmul.mubr.bf16.gmra.mrb[60].mxu0 %v17852_v20 }
 0x5ae   : > { %13551 = vmatprep.mubr.bf16.mxu0 %v17852_v20 }
 0x5b5   : > { %13552 = vmatmul.mubr.bf16.vlgmr.msra.gmra.mrb[32].mxu0 %v6611_v28 }
 0x5b6   : > { %13555 = vmatprep.mubr.bf16.mxu0 %v17888_v18  ;;  %13584 = vmatpush3.bf16.msra.mxu0 %v14949_v34 }
 0x5b7   : > { %13585 = vmatprep.subr.bf16.mxu0 %v14950_v40 }
 0x5ba   : > { %13586 = vmatpush3.bf16.msra.mxu0 %v14950_v40 }
 0x5bb   : > { %13587 = vmatprep.subr.bf16.mxu0 %v14951_v5 }
 0x5bd   : > { %13556 = vmatmul.mubr.bf16.gmra.mrb[36].mxu0 %v17891_v25 }
 0x5be   : > { %13559 = vmatprep.mubr.bf16.mxu0 %v17894_v43  ;;  %13588 = vmatpush3.bf16.msra.mxu0 %v14951_v5  ;;  %v19910_v5 = vld [vmem:[#allocation39_spill] sm:$0xff] }
 0x5bf   : > { %13589 = vmatprep.subr.bf16.mxu0 %v14952_v33 }
 0x5c2   : > { %13590 = vmatpush3.bf16.msra.mxu0 %v14952_v33 }
 0x5c3   : > { %13591 = vmatprep.subr.bf16.mxu0 %v14953_v49 }
 0x5c5   : > { %13560 = vmatmul.mubr.bf16.gmra.mrb[40].mxu0 %v17542_v59  ;;  %v14958_v59 = vld [vmem:[#allocation5 + $0x148] sm:$0xff]  }
 0x5c6   : > { %13563 = vmatprep.mubr.bf16.mxu0 %v17546_v6  ;;  %13592 = vmatpush3.bf16.msra.mxu0 %v14953_v49  ;;  %v14959_v6 = vld [vmem:[#allocation5 + $0x150] sm:$0xff]  }
 0x5c7   : > { %13593 = vmatprep.subr.bf16.mxu0 %v14954_v32 }
 0x5ca   : > { %13594 = vmatpush3.bf16.msra.mxu0 %v14954_v32 }
 0x5cb   : > { %13595 = vmatprep.subr.bf16.mxu0 %v14955_v53 }
 0x5cd   : > { %13564 = vmatmul.mubr.bf16.gmra.mrb[44].mxu0 %v17611_v54 }
 0x5ce   : > { %13567 = vmatprep.mubr.bf16.mxu0 %v17614_v44  ;;  %13596 = vmatpush3.bf16.msra.mxu0 %v14955_v53 }
 0x5cf   : > { %13597 = vmatprep.subr.bf16.mxu0 %v14956_v45 }
 0x5d2   : > { %13598 = vmatpush3.bf16.msra.mxu0 %v14956_v45 }
 0x5d3   : > { %13631 = vmatprep.subr.bf16.mxu0 %v14957_v8 }
 0x5d5   : > { %13568 = vmatmul.mubr.bf16.gmra.mrb[48].mxu0 %v17685_v0 }
 0x5d6   : > { %13571 = vmatprep.mubr.bf16.mxu0 %v17687_v1 }
 0x5dd   : > { %13572 = vmatmul.mubr.bf16.gmra.mrb[52].mxu0 %v17738_v52 }
 0x5de   : > { %13575 = vmatprep.mubr.bf16.mxu0 %v17742_v41 }
 0x5e5   : > { %13576 = vmatmul.mubr.bf16.gmra.mrb[56].mxu0 %v17785_v39 }
 0x5e6   : > { %13579 = vmatprep.mubr.bf16.mxu0 %v17794_v26 }
 0x5ed   : > { %13580 = vmatmul.mubr.bf16.gmra.mrb[60].mxu0 %v17846_v11 }
 0x5ee   : > { %13599 = vmatprep.mubr.bf16.mxu0 %v6611_v28  ;;  %v19909_v28 = vld [vmem:[#allocation35_spill] sm:$0xff] }
 0x5f5   : > { %13600 = vmatmul.mubr.bf16.vlgmr.msra.gmra.mrb[32].mxu0 %v17888_v18 }
 0x5f6   : > { %13603 = vmatprep.mubr.bf16.mxu0 %v17891_v25  ;;  %13632 = vmatpush3.bf16.msra.mxu0 %v14957_v8 }
 0x5f7   : > { %13633 = vmatprep.subr.bf16.mxu0 %v14958_v59 }
 0x5fa   : > { %13634 = vmatpush3.bf16.msra.mxu0 %v14958_v59 }
 0x5fb   : > { %13635 = vmatprep.subr.bf16.mxu0 %v14959_v6 }
 0x5fd   : > { %13604 = vmatmul.mubr.bf16.gmra.mrb[36].mxu0 %v17894_v43 }
 0x5fe   : > { %13607 = vmatprep.mubr.bf16.mxu0 %v6888_v10  ;;  %13636 = vmatpush3.bf16.msra.mxu0 %v14959_v6 }
 0x5ff   : > { %13637 = vmatprep.subr.bf16.mxu0 %v14960_v63 }
 0x602   : > { %13638 = vmatpush3.bf16.msra.mxu0 %v14960_v63 }
 0x603   : > { %13639 = vmatprep.subr.bf16.mxu0 %v14961_v22 }
 0x605   : > { %13608 = vmatmul.mubr.bf16.gmra.mrb[40].mxu0 %v6889_v47 }
 0x606   : > { %13611 = vmatprep.mubr.bf16.mxu0 %v17611_v54  ;;  %13640 = vmatpush3.bf16.msra.mxu0 %v14961_v22  ;;  %v7163_v54 = vld [vmem:[#allocation2 + $0xc0] sm:$0xff]  ;;  %v19911_v22 = vld [vmem:[#allocation15_spill] sm:$0xff] }
 0x607   : > { %13641 = vmatprep.subr.bf16.mxu0 %v14962_v13 }
 0x60a   : > { %13642 = vmatpush3.bf16.msra.mxu0 %v14962_v13 }
 0x60b   : > { %13643 = vmatprep.subr.bf16.mxu0 %v14963_v21 }
 0x60d   : > { %13612 = vmatmul.mubr.bf16.gmra.mrb[44].mxu0 %v17614_v44  ;;  %v7164_v44 = vld [vmem:[#allocation2 + $0xc8] sm:$0xff] }
 0x60e   : > { %13615 = vmatprep.mubr.bf16.mxu0 %v17685_v0  ;;  %13644 = vmatpush3.bf16.msra.mxu0 %v14963_v21 }
 0x60f   : > { %13645 = vmatprep.subr.bf16.mxu0 %v14964_v14 }
 0x612   : > { %13646 = vmatpush3.bf16.msra.mxu0 %v14964_v14  ;;  %v19912_v14 = vld [vmem:[#allocation16_spill] sm:$0xff] }
 0x613   : > { %7859 = vmatprep.subr.bf16.mxu0 %v17852_v20 }
 0x615   : > { %13616 = vmatmul.mubr.bf16.gmra.mrb[48].mxu0 %v17687_v1 }
 0x616   : > { %13619 = vmatprep.mubr.bf16.mxu0 %v17738_v52 }
 0x61d   : > { %13620 = vmatmul.mubr.bf16.gmra.mrb[52].mxu0 %v17742_v41 }
 0x61e   : > { %13623 = vmatprep.mubr.bf16.mxu0 %v17785_v39 }
 0x625   : > { %13624 = vmatmul.mubr.bf16.gmra.mrb[56].mxu0 %v17794_v26 }
 0x626   : > { %13627 = vmatprep.mubr.bf16.mxu0 %v17846_v11 }
 0x62d   : > { %13628 = vmatmul.mubr.bf16.gmra.mrb[60].mxu0 %v17848_v31 }
 0x62e   : > { %13647 = vmatprep.mubr.bf16.mxu0 %v17888_v18 }
 0x635   : > { %13648 = vmatmul.mubr.bf16.vlgmr.msra.gmra.mrb[32].mxu0 %v17891_v25 }
 0x636   : > { %13651 = vmatprep.mubr.bf16.mxu0 %v17894_v43 }
 0x63d   : > { %13652 = vmatmul.mubr.bf16.gmra.mrb[36].mxu0 %v6888_v10 }
 0x63e   : > { %13655 = vmatprep.mubr.bf16.mxu0 %v6889_v47 }
 0x645   : > { %13656 = vmatmul.mubr.bf16.gmra.mrb[40].mxu0 %v7163_v54 }
 0x646   : > { %13659 = vmatprep.mubr.bf16.mxu0 %v7164_v44 }
 0x64d   : > { %13660 = vmatmul.mubr.bf16.gmra.mrb[44].mxu0 %v17685_v0  ;;  %v14967_v0 = vld [vmem:[%s19116_s7 + $0x4] ss:$8 sps:$4 sm:$0xff]  }
 0x64e   : > { %13663 = vmatprep.mubr.bf16.mxu0 %v17687_v1  ;;  %v17940_v1 = vld [vmem:[%s19115_s6] ss:$0 sm:$0xff] }
 0x655   : > { %13664 = vmatmul.mubr.bf16.gmra.mrb[48].mxu0 %v17738_v52 }
 0x656   : > { %13667 = vmatprep.mubr.bf16.mxu0 %v17742_v41 }
 0x65d   : > { %13668 = vmatmul.mubr.bf16.gmra.mrb[52].mxu0 %v17785_v39 }
 0x65e   : > { %13671 = vmatprep.mubr.bf16.mxu0 %v17794_v26 }
 0x665   : > { %13672 = vmatmul.mubr.bf16.gmra.mrb[56].mxu0 %v17846_v11 }
 0x666   : > { %13675 = vmatprep.mubr.bf16.mxu0 %v17848_v31 }
 0x66d   : > { %13676 = vmatmul.mubr.bf16.gmra.mrb[60].mxu0 %v17852_v20 }
 0x66e   : > { %7891 = vmatprep.mubr.bf16.mxu0 %v14967_v0  ;;  %v19913_v0 = vld [vmem:[#allocation48_spill] sm:$0xff] }
 0x708   : > { %v13649_v52 = vpop.f32.mrb[32].mxu0 }
 0x709   : > { %v7441_v41 = vadd.f32 %v13649_v52, %v17940_v1  ;;  %v7273_v39 = vpop.f32.mrb[33].mxu0 }
 0x70a   : > { %v7439_v26 = vadd.f32 %v17940_v1, %v7273_v39  ;;  %v13650_v46 = vpop.f32.mrb[34].mxu0 }
 0x70b   : > { %v7473_v62 = vadd.f32 %v7441_v41, %v19903_v17  ;;  %v7442_v15 = vadd.f32 %v13650_v46, %v17940_v1  ;;  %v7276_v37 = vpop.f32.mrb[35].mxu0  ;;  %v19914_v41 = vld [vmem:[#allocation49_spill] sm:$0xff] }
 0x70c   : > { %v7471_v29 = vadd.f32 %v7439_v26, %v19904_v42  ;;  %v7440_v3 = vadd.f32 %v17940_v1, %v7276_v37 }
 0x70d   : > { %v7474_v57 = vadd.f32 %v7442_v15, %v19905_v60  ;;  %v7505_v31 = vmax.f32 %v7473_v62, 0.0 }
 0x70e   : > { %v7472_v11 = vadd.f32 %v7440_v3, %v19906_v56  ;;  %v7503_v7 = vmax.f32 %v7471_v29, 0.0  ;;  %v19915_v56 = vld [vmem:[#allocation51_spill] sm:$0xff] }
 0x70f   : > { %v7506_v58 = vmax.f32 %v7474_v57, 0.0 }
 0x710   : > { %v7504_v9 = vmax.f32 %v7472_v11, 0.0  ;;  %v13653_v24 = vpop.f32.mrb[36].mxu0 }
 0x711   : > { %v7587_v23 = vpack.c.bf16 %v7506_v58, %v7505_v31  ;;  %v7445_v12 = vadd.f32 %v13653_v24, %v17940_v1  ;;  %v7289_v4 = vpop.f32.mrb[37].mxu0 }
 0x712   : > { %v7586_v48 = vpack.c.bf16 %v7504_v9, %v7503_v7  ;;  %v7443_v16 = vadd.f32 %v17940_v1, %v7289_v4  ;;  %v13654_v50 = vpop.f32.mrb[38].mxu0  ;;  %v19916_v7 = vld [vmem:[#allocation50_spill] sm:$0xff] }
 0x713   : > { %v7477_v55 = vadd.f32 %v7445_v12, %v19907_v36  ;;  %v7446_v2 = vadd.f32 %v13654_v50, %v17940_v1  ;;  %v7292_v51 = vpop.f32.mrb[39].mxu0  ;;  %v19917_v12 = vld [vmem:[#allocation52_spill] sm:$0xff] }
 0x714   : > { %v7475_v34 = vadd.f32 %v7443_v16, %v19908_v38  ;;  %v7444_v40 = vadd.f32 %v17940_v1, %v7292_v51  ;;  %7860 = vmatpush1.bf16.msra.mxu0 %v7586_v48 }
 0x715   : > { %v7478_v18 = vadd.f32 %v7446_v2, %v19909_v28  ;;  %7861 = vmatprep.subr.bf16.mxu0 %v17852_v20  ;;  %v7509_v25 = vmax.f32 %v7477_v55, 0.0 }
 0x716   : > { %v7476_v33 = vadd.f32 %v7444_v40, %v19910_v5  ;;  %v7507_v49 = vmax.f32 %v7475_v34, 0.0 }
 0x717   : > { %v7510_v43 = vmax.f32 %v7478_v18, 0.0 }
 0x718   : > { %v7508_v32 = vmax.f32 %v7476_v33, 0.0  ;;  %v13657_v53 = vpop.f32.mrb[40].mxu0  ;;  %7862 = vmatpush1.bf16.msra.mxu0 %v7587_v23 }
 0x719   : > { %v7589_v45 = vpack.c.bf16 %v7510_v43, %v7509_v25  ;;  %v7449_v8 = vadd.f32 %v13657_v53, %v17940_v1  ;;  %v7305_v59 = vpop.f32.mrb[41].mxu0  ;;  %7863 = vmatprep.subr.bf16.mxu0 %v17852_v20 }
 0x71a   : > { %v7588_v6 = vpack.c.bf16 %v7508_v32, %v7507_v49  ;;  %v7447_v63 = vadd.f32 %v17940_v1, %v7305_v59  ;;  %v13658_v10 = vpop.f32.mrb[42].mxu0 }
 0x71b   : > { %v7481_v13 = vadd.f32 %v7449_v8, %v19911_v22  ;;  %v7450_v47 = vadd.f32 %v13658_v10, %v17940_v1  ;;  %v7308_v21 = vpop.f32.mrb[43].mxu0  ;;  %v19918_v22 = vld [vmem:[#allocation54_spill] sm:$0xff] }
 0x71c   : > { %v7479_v54 = vadd.f32 %v7447_v63, %v19912_v14  ;;  %v7448_v44 = vadd.f32 %v17940_v1, %v7308_v21  ;;  %7864 = vmatpush1.bf16.msra.mxu0 %v7588_v6  ;;  %v19919_v21 = vld [vmem:[#allocation53_spill] sm:$0xff] }
 0x71d   : > { %v7482_v52 = vadd.f32 %v7450_v47, %v19913_v0  ;;  %7865 = vmatprep.subr.bf16.mxu0 %v17852_v20  ;;  %v7513_v26 = vmax.f32 %v7481_v13, 0.0 }
 0x71e   : > { %v7480_v39 = vadd.f32 %v7448_v44, %v19914_v41  ;;  %v7511_v17 = vmax.f32 %v7479_v54, 0.0  ;;  %v19920_v44 = vld [vmem:[#allocation56_spill] sm:$0xff] }
 0x71f   : > { %v7514_v46 = vmax.f32 %v7482_v52, 0.0  ;;  %v19921_v52 = vld [vmem:[#allocation55_spill] sm:$0xff] }
 0x720   : > { %v7512_v62 = vmax.f32 %v7480_v39, 0.0  ;;  %v13661_v15 = vpop.f32.mrb[44].mxu0  ;;  %7866 = vmatpush1.bf16.msra.mxu0 %v7589_v45 }
 0x721   : > { %v7591_v37 = vpack.c.bf16 %v7514_v46, %v7513_v26  ;;  %v7453_v42 = vadd.f32 %v13661_v15, %v17940_v1  ;;  %v7321_v29 = vpop.f32.mrb[45].mxu0  ;;  %7867 = vmatprep.subr.bf16.mxu0 %v17852_v20 }
 0x722   : > { %v7590_v3 = vpack.c.bf16 %v7512_v62, %v7511_v17  ;;  %v7451_v60 = vadd.f32 %v17940_v1, %v7321_v29  ;;  %v13662_v57 = vpop.f32.mrb[46].mxu0 }
 0x723   : > { %v7485_v11 = vadd.f32 %v7453_v42, %v19915_v56  ;;  %v7454_v31 = vadd.f32 %v13662_v57, %v17940_v1  ;;  %v7324_v58 = vpop.f32.mrb[47].mxu0  ;;  %v19922_v57 = vld [vmem:[#allocation58_spill] sm:$0xff] }
 0x724   : > { %v7483_v9 = vadd.f32 %v7451_v60, %v19916_v7  ;;  %v7452_v24 = vadd.f32 %v17940_v1, %v7324_v58  ;;  %7868 = vmatpush1.bf16.msra.mxu0 %v7590_v3  ;;  %v19923_v58 = vld [vmem:[#allocation57_spill] sm:$0xff] }
 0x725   : > { %v7486_v23 = vadd.f32 %v7454_v31, %v16933_v61  ;;  %7869 = vmatprep.subr.bf16.mxu0 %v17852_v20  ;;  %v7517_v48 = vmax.f32 %v7485_v11, 0.0 }
 0x726   : > { %v7484_v4 = vadd.f32 %v7452_v24, %v19917_v12  ;;  %v7515_v50 = vmax.f32 %v7483_v9, 0.0  ;;  %v19924_v24 = vld [vmem:[#allocation60_spill] sm:$0xff]  ;;  %v19925_v12 = vld [vmem:[#allocation59_spill] sm:$0xff] }
 0x727   : > { %v7518_v16 = vmax.f32 %v7486_v23, 0.0 }
 0x728   : > { %v7516_v36 = vmax.f32 %v7484_v4, 0.0  ;;  %v13665_v55 = vpop.f32.mrb[48].mxu0  ;;  %7870 = vmatpush1.bf16.msra.mxu0 %v7591_v37 }
 0x729   : > { %v7593_v2 = vpack.c.bf16 %v7518_v16, %v7517_v48  ;;  %v7457_v51 = vadd.f32 %v13665_v55, %v17940_v1  ;;  %v7337_v38 = vpop.f32.mrb[49].mxu0  ;;  %7871 = vmatprep.subr.bf16.mxu0 %v17852_v20 }
 0x72a   : > { %v7592_v34 = vpack.c.bf16 %v7516_v36, %v7515_v50  ;;  %v7455_v40 = vadd.f32 %v17940_v1, %v7337_v38  ;;  %v13666_v61 = vpop.f32.mrb[50].mxu0 }
 0x72b   : > { %v7489_v28 = vadd.f32 %v7457_v51, %v16999_v27  ;;  %v7458_v18 = vadd.f32 %v13666_v61, %v17940_v1  ;;  %v7340_v5 = vpop.f32.mrb[51].mxu0 }
 0x72c   : > { %v7487_v33 = vadd.f32 %v7455_v40, %v16966_v30  ;;  %v7456_v25 = vadd.f32 %v17940_v1, %v7340_v5  ;;  %7872 = vmatpush1.bf16.msra.mxu0 %v7592_v34 }
 0x72d   : > { %v7490_v43 = vadd.f32 %v7458_v18, %v17006_v35  ;;  %7873 = vmatprep.subr.bf16.mxu0 %v17852_v20  ;;  %v7521_v32 = vmax.f32 %v7489_v28, 0.0  ;;  %v19926_v28 = vld [vmem:[#allocation62_spill] sm:$0xff] }
 0x72e   : > { %v7488_v49 = vadd.f32 %v7456_v25, %v17011_v19  ;;  %v7519_v45 = vmax.f32 %v7487_v33, 0.0  ;;  %v19927_v25 = vld [vmem:[#allocation61_spill] sm:$0xff] }
 0x72f   : > { %v7522_v53 = vmax.f32 %v7490_v43, 0.0 }
 0x730   : > { %v7520_v8 = vmax.f32 %v7488_v49, 0.0  ;;  %v13669_v59 = vpop.f32.mrb[52].mxu0  ;;  %7874 = vmatpush1.bf16.msra.mxu0 %v7593_v2 }
 0x731   : > { %v7595_v27 = vpack.c.bf16 %v7522_v53, %v7521_v32  ;;  %v7461_v6 = vadd.f32 %v13669_v59, %v17940_v1  ;;  %v7353_v63 = vpop.f32.mrb[53].mxu0  ;;  %7875 = vmatprep.subr.bf16.mxu0 %v17852_v20  ;;  %v19928_v32 = vld [vmem:[#allocation63_spill] sm:$0xff] }
 0x732   : > { %v7594_v30 = vpack.c.bf16 %v7520_v8, %v7519_v45  ;;  %v7459_v10 = vadd.f32 %v17940_v1, %v7353_v63  ;;  %v13670_v35 = vpop.f32.mrb[54].mxu0  ;;  %v19929_v45 = vld [vmem:[#allocation64_spill] sm:$0xff] }
 0x733   : > { %v7493_v13 = vadd.f32 %v7461_v6, %v19918_v22  ;;  %v7462_v19 = vadd.f32 %v13670_v35, %v17940_v1  ;;  %v7356_v47 = vpop.f32.mrb[55].mxu0  ;;  %v14968_v35 = vld [vmem:[%s19116_s7 + $0x14] ss:$8 sps:$4 sm:$0xff]   ;;  %v14970_v22 = vld [vmem:[%s19116_s7 + $0x10] ss:$8 sps:$4 sm:$0xff]  }
 0x734   : > { %v7491_v14 = vadd.f32 %v7459_v10, %v19919_v21  ;;  %v7460_v54 = vadd.f32 %v17940_v1, %v7356_v47  ;;  %7876 = vmatpush1.bf16.msra.mxu0 %v7594_v30  ;;  %v14976_v47 = vld [vmem:[%s19116_s7 + $0x30] ss:$8 sps:$4 sm:$0xff]   ;;  %v14977_v21 = vld [vmem:[%s19116_s7 + $0x44] ss:$8 sps:$4 sm:$0xff]  }
 0x735   : > { %v7494_v0 = vadd.f32 %v7462_v19, %v19920_v44  ;;  %7877 = vmatprep.subr.bf16.mxu0 %v17852_v20  ;;  %v7525_v39 = vmax.f32 %v7493_v13, 0.0  ;;  %v14971_v13 = vld [vmem:[%s19116_s7 + $0x24] ss:$8 sps:$4 sm:$0xff]   ;;  %v14974_v19 = vld [vmem:[%s19116_s7 + $0x34] ss:$8 sps:$4 sm:$0xff]  }
 0x736   : > { %v7492_v41 = vadd.f32 %v7460_v54, %v19921_v52  ;;  %v7523_v46 = vmax.f32 %v7491_v14, 0.0  ;;  %v14979_v14 = vld [vmem:[%s19116_s7 + $0x40] ss:$8 sps:$4 sm:$0xff]   ;;  %v14980_v54 = vld [vmem:[%s19116_s7 + $0x54] ss:$8 sps:$4 sm:$0xff]  }
 0x737   : > { %v7526_v26 = vmax.f32 %v7494_v0, 0.0  ;;  %v15028_v44 = vld [vmem:[%s19119_s10] sm:$0xff]   ;;  %v14982_v0 = vld [vmem:[%s19116_s7 + $0x50] ss:$8 sps:$4 sm:$0xff]  }
 0x738   : > { %v7524_v17 = vmax.f32 %v7492_v41, 0.0  ;;  %v13673_v62 = vpop.f32.mrb[56].mxu0  ;;  %7878 = vmatpush1.bf16.msra.mxu0 %v7595_v27  ;;  %13679 = vmatprep.subr.bf16.mxu1 %v15028_v44  ;;  %v14983_v52 = vld [vmem:[%s19116_s7 + $0x64] ss:$8 sps:$4 sm:$0xff]  }
 0x739   : > { %v7597_v15 = vpack.c.bf16 %v7526_v26, %v7525_v39  ;;  %v7465_v37 = vadd.f32 %v13673_v62, %v17940_v1  ;;  %v7369_v42 = vpop.f32.mrb[57].mxu0  ;;  %7879 = vmatprep.subr.bf16.mxu0 %v17852_v20  ;;  %13680 = vmatpush3.bf16.msra.mxu1 %v15028_v44  ;;  %v15032_v41 = vld [vmem:[%s19119_s10 + $0x8] sm:$0xff]   ;;  %v14986_v26 = vld [vmem:[%s19116_s7 + $0x74] ss:$8 sps:$4 sm:$0xff]  }
 0x73a   : > { %v7596_v29 = vpack.c.bf16 %v7524_v17, %v7523_v46  ;;  %v7463_v3 = vadd.f32 %v17940_v1, %v7369_v42  ;;  %v13674_v60 = vpop.f32.mrb[58].mxu0  ;;  %13681 = vmatprep.subr.bf16.mxu1 %v15032_v41  ;;  %v14985_v39 = vld [vmem:[%s19116_s7 + $0x60] ss:$8 sps:$4 sm:$0xff]   ;;  %v15036_v46 = vld [vmem:[%s19119_s10 + $0x10] sm:$0xff]   ;;  %v14989_v62 = vld [vmem:[%s19116_s7 + $0x84] ss:$8 sps:$4 sm:$0xff]  }
 0x73b   : > { %v7497_v56 = vadd.f32 %v7465_v37, %v19922_v57  ;;  %v7466_v11 = vadd.f32 %v13674_v60, %v17940_v1  ;;  %v7372_v31 = vpop.f32.mrb[59].mxu0  ;;  %v14988_v17 = vld [vmem:[%s19116_s7 + $0x70] ss:$8 sps:$4 sm:$0xff]   ;;  %v14991_v37 = vld [vmem:[%s19116_s7 + $0x80] ss:$8 sps:$4 sm:$0xff]  }
 0x73c   : > { %v7495_v7 = vadd.f32 %v7463_v3, %v19923_v58  ;;  %v7464_v9 = vadd.f32 %v17940_v1, %v7372_v31  ;;  %7880 = vmatpush1.bf16.msra.mxu0 %v7596_v29  ;;  %v14992_v42 = vld [vmem:[%s19116_s7 + $0x94] ss:$8 sps:$4 sm:$0xff]   ;;  %v15044_v29 = vld [vmem:[%s19119_s10 + $0x20] sm:$0xff]   ;;  %v14994_v3 = vld [vmem:[%s19116_s7 + $0x90] ss:$8 sps:$4 sm:$0xff]  }
 0x73d   : > { %v7498_v23 = vadd.f32 %v7466_v11, %v19924_v24  ;;  %7881 = vmatprep.subr.bf16.mxu0 %v17852_v20  ;;  %v7529_v48 = vmax.f32 %v7497_v56, 0.0  ;;  %13682 = vmatpush3.bf16.msra.mxu1 %v15032_v41  ;;  %v14995_v60 = vld [vmem:[%s19116_s7 + $0xa4] ss:$8 sps:$4 sm:$0xff]   ;;  %v14997_v56 = vld [vmem:[%s19116_s7 + $0xa0] ss:$8 sps:$4 sm:$0xff]   ;;  %v15049_v24 = vld [vmem:[%s19119_s10 + $0x38] sm:$0xff]  }
 0x73e   : > { %v7496_v4 = vadd.f32 %v7464_v9, %v19925_v12  ;;  %v7527_v50 = vmax.f32 %v7495_v7, 0.0  ;;  %13683 = vmatprep.subr.bf16.mxu1 %v15036_v46  ;;  %v15047_v57 = vld [vmem:[%s19119_s10 + $0x28] sm:$0xff]   ;;  %v14998_v11 = vld [vmem:[%s19116_s7 + $0xb4] ss:$8 sps:$4 sm:$0xff]   ;;  %v15000_v31 = vld [vmem:[%s19116_s7 + $0xb0] ss:$8 sps:$4 sm:$0xff]  }
 0x73f   : > { %v7530_v16 = vmax.f32 %v7498_v23, 0.0  ;;  %v15001_v58 = vld [vmem:[%s19116_s7 + $0xc4] ss:$8 sps:$4 sm:$0xff]   ;;  %v15048_v7 = vld [vmem:[%s19119_s10 + $0x30] sm:$0xff]   ;;  %v15003_v9 = vld [vmem:[%s19116_s7 + $0xc0] ss:$8 sps:$4 sm:$0xff]  }
 0x740   : > { %v7528_v36 = vmax.f32 %v7496_v4, 0.0  ;;  %v13677_v55 = vpop.f32.mrb[60].mxu0  ;;  %7882 = vmatpush1.bf16.msra.mxu0 %v7597_v15  ;;  %v15040_v15 = vld [vmem:[%s19119_s10 + $0x18] sm:$0xff]   ;;  %v18126_v12 = vld [vmem:[%s19117_s8 + $0x140] sm:$0xff]  }
 0x741   : > { %v7599_v2 = vpack.c.bf16 %v7530_v16, %v7529_v48  ;;  %v7469_v51 = vadd.f32 %v13677_v55, %v17940_v1  ;;  %v7385_v38 = vpop.f32.mrb[61].mxu0  ;;  %7883 = vmatprep.subr.bf16.mxu0 %v17852_v20  ;;  %13684 = vmatpush3.bf16.msra.mxu1 %v15036_v46  ;;  %v15004_v23 = vld [vmem:[%s19116_s7 + $0xd4] ss:$8 sps:$4 sm:$0xff]   ;;  %v15006_v4 = vld [vmem:[%s19116_s7 + $0xd0] ss:$8 sps:$4 sm:$0xff]  }
 0x742   : > { %v7598_v34 = vpack.c.bf16 %v7528_v36, %v7527_v50  ;;  %v7467_v40 = vadd.f32 %v17940_v1, %v7385_v38  ;;  %v13678_v61 = vpop.f32.mrb[62].mxu0  ;;  %13685 = vmatprep.subr.bf16.mxu1 %v15040_v15  ;;  %v15007_v48 = vld [vmem:[%s19116_s7 + $0xe4] ss:$8 sps:$4 sm:$0xff]   ;;  %v15009_v16 = vld [vmem:[%s19116_s7 + $0xe0] ss:$8 sps:$4 sm:$0xff]  }
 0x743   : > { %v7501_v18 = vadd.f32 %v7469_v51, %v19926_v28  ;;  %v7470_v5 = vadd.f32 %v13678_v61, %v17940_v1  ;;  %v7388_v33 = vpop.f32.mrb[63].mxu0  ;;  %v15010_v50 = vld [vmem:[%s19116_s7 + $0xf4] ss:$8 sps:$4 sm:$0xff]   ;;  %v15012_v36 = vld [vmem:[%s19116_s7 + $0xf0] ss:$8 sps:$4 sm:$0xff]  }
 0x744   : > { %v7499_v43 = vadd.f32 %v7467_v40, %v19927_v25  ;;  %v7468_v49 = vadd.f32 %v17940_v1, %v7388_v33  ;;  %7884 = vmatpush1.bf16.msra.mxu0 %v7598_v34  ;;  %v14965_v1 = vld [vmem:[%s19116_s7] ss:$8 sps:$4 sm:$0xff]   ;;  %v15013_v55 = vld [vmem:[%s19116_s7 + $0x104] ss:$8 sps:$4 sm:$0xff]   ;;  %v15016_v51 = vld [vmem:[%s19116_s7 + $0x114] ss:$8 sps:$4 sm:$0xff]  }
 0x745   : > { %v7502_v53 = vadd.f32 %v7470_v5, %v19928_v32  ;;  %7885 = vmatprep.subr.bf16.mxu0 %v17852_v20  ;;  %v7533_v59 = vmax.f32 %v7501_v18, 0.0  ;;  %13686 = vmatpush3.bf16.msra.mxu1 %v15040_v15  ;;  %v15018_v38 = vld [vmem:[%s19116_s7 + $0x110] ss:$8 sps:$4 sm:$0xff]   ;;  %v15019_v34 = vld [vmem:[%s19116_s7 + $0x124] ss:$8 sps:$4 sm:$0xff]  }
 0x746   : > { %v7500_v8 = vadd.f32 %v7468_v49, %v19929_v45  ;;  %v7531_v6 = vmax.f32 %v7499_v43, 0.0  ;;  %13687 = vmatprep.subr.bf16.mxu1 %v15044_v29  ;;  %v15021_v40 = vld [vmem:[%s19116_s7 + $0x120] ss:$8 sps:$4 sm:$0xff]   ;;  %v15022_v61 = vld [vmem:[%s19116_s7 + $0x134] ss:$8 sps:$4 sm:$0xff]  }
 0x747   : > { %v7534_v27 = vmax.f32 %v7502_v53, 0.0  ;;  %v15024_v28 = vld [vmem:[%s19116_s7 + $0x130] ss:$8 sps:$4 sm:$0xff]   ;;  %v15025_v18 = vld [vmem:[%s19116_s7 + $0x144] ss:$8 sps:$4 sm:$0xff]  }
 0x748   : > { %v7532_v63 = vmax.f32 %v7500_v8, 0.0  ;;  %7886 = vmatpush1.bf16.msra.mxu0 %v7599_v2  ;;  %v15015_v2 = vld [vmem:[%s19116_s7 + $0x100] ss:$8 sps:$4 sm:$0xff]   ;;  %v15029_v33 = vld [vmem:[%s19116_s7 + $0x154] ss:$8 sps:$4 sm:$0xff]  }
 0x749   : > { %v7601_v30 = vpack.c.bf16 %v7534_v27, %v7533_v59  ;;  %7887 = vmatprep.subr.bf16.mxu0 %v17852_v20  ;;  %13688 = vmatpush3.bf16.msra.mxu1 %v15044_v29  ;;  %v15027_v5 = vld [vmem:[%s19116_s7 + $0x140] ss:$8 sps:$4 sm:$0xff]   ;;  %v15031_v25 = vld [vmem:[%s19116_s7 + $0x150] ss:$8 sps:$4 sm:$0xff]   ;;  %v15033_v43 = vld [vmem:[%s19116_s7 + $0x164] ss:$8 sps:$4 sm:$0xff]  }
 0x74a   : > { %v7600_v10 = vpack.c.bf16 %v7532_v63, %v7531_v6  ;;  %13689 = vmatprep.subr.bf16.mxu1 %v15047_v57  ;;  %v15035_v49 = vld [vmem:[%s19116_s7 + $0x160] ss:$8 sps:$4 sm:$0xff]   ;;  %v15037_v32 = vld [vmem:[%s19116_s7 + $0x174] ss:$8 sps:$4 sm:$0xff]   ;;  %v15039_v53 = vld [vmem:[%s19116_s7 + $0x170] ss:$8 sps:$4 sm:$0xff]  }
 0x74b   : > { %v15041_v45 = vld [vmem:[%s19116_s7 + $0x184] ss:$8 sps:$4 sm:$0xff]   ;;  %v7585_v8 = vld [vmem:[%s19116_s7 + $0x190] sm:$0xff]  ;;  %v15043_v59 = vld [vmem:[%s19116_s7 + $0x180] ss:$8 sps:$4 sm:$0xff]  }
 0x74c   : > { %7888 = vmatpush1.bf16.msra.mxu0 %v7600_v10  ;;  %v11643_v27 = vcombine.high %v7585_v8, %v7585_v8  ;;  %v11642_v6 = vcombine.low %v7585_v8, %v7585_v8  ;;  %v15056_v29 = vld [vmem:[%s19117_s8 + $0x170] sm:$0xff]   ;;  %v15066_v8 = vld [vmem:[%s19117_s8 + $0xc0] sm:$0xff]  }
 0x74d   : > { %7889 = vmatprep.subr.bf16.mxu0 %v17852_v20  ;;  %v14973_v20 = vld [vmem:[%s19116_s7 + $0x20] ss:$8 sps:$4 sm:$0xff]   ;;  %13690 = vmatpush3.bf16.msra.mxu1 %v15047_v57 }
 0x74e   : > { %13691 = vmatprep.subr.bf16.mxu1 %v15048_v7 }
 0x750   : > { %7890 = vmatpush1.bf16.msra.mxu0 %v7601_v30 }
 0x751   : > { %13692 = vmatpush3.bf16.msra.mxu1 %v15048_v7 }
 0x752   : > { %13693 = vmatprep.subr.bf16.mxu1 %v15049_v24 }
 0x753   : > { %7892 = vmatmul.mubr.bf16.vlgmr.msra.gmra.mrb[64].mxu0 %v14965_v1 }
 0x754   : > { %7899 = vmatprep.mubr.bf16.mxu0 %v14968_v35 }
 0x755   : > { %13694 = vmatpush3.bf16.msra.mxu1 %v15049_v24 }
 0x756   : > { %13703 = vmatprep.subr.bf16.mxu1 %v18126_v12 }
 0x75b   : > { %7900 = vmatmul.mubr.bf16.gmra.mrb[68].mxu0 %v14970_v22 }
 0x75c   : > { %7907 = vmatprep.mubr.bf16.mxu0 %v14971_v13 }
 0x763   : > { %7908 = vmatmul.mubr.bf16.gmra.mrb[72].mxu0 %v14973_v20 }
 0x764   : > { %7915 = vmatprep.mubr.bf16.mxu0 %v14974_v19 }
 0x76b   : > { %7916 = vmatmul.mubr.bf16.gmra.mrb[76].mxu0 %v14976_v47 }
 0x76c   : > { %7923 = vmatprep.mubr.bf16.mxu0 %v14977_v21  ;;  %v15051_v21 = vld [vmem:[%s19117_s8 + $0x148] sm:$0xff]  }
 0x773   : > { %7924 = vmatmul.mubr.bf16.gmra.mrb[80].mxu0 %v14979_v14  ;;  %v15052_v14 = vld [vmem:[%s19117_s8 + $0x150] sm:$0xff]  }
 0x774   : > { %7931 = vmatprep.mubr.bf16.mxu0 %v14980_v54 }
 0x77b   : > { %7932 = vmatmul.mubr.bf16.gmra.mrb[84].mxu0 %v14982_v0 }
 0x77c   : > { %7939 = vmatprep.mubr.bf16.mxu0 %v14983_v52 }
 0x783   : > { %7940 = vmatmul.mubr.bf16.gmra.mrb[88].mxu0 %v14985_v39  ;;  %v15053_v39 = vld [vmem:[%s19117_s8 + $0x158] sm:$0xff]  }
 0x784   : > { %7947 = vmatprep.mubr.bf16.mxu0 %v14986_v26  ;;  %v15054_v26 = vld [vmem:[%s19117_s8 + $0x160] sm:$0xff]  }
 0x78b   : > { %7948 = vmatmul.mubr.bf16.gmra.mrb[92].mxu0 %v14988_v17 }
 0x78c   : > { %7955 = vmatprep.mubr.bf16.mxu0 %v14989_v62 }
 0x793   : > { %7956 = vmatmul.mubr.bf16.gmra.mrb[96].mxu0 %v14991_v37 }
 0x794   : > { %7963 = vmatprep.mubr.bf16.mxu0 %v14992_v42  ;;  %v15055_v42 = vld [vmem:[%s19117_s8 + $0x168] sm:$0xff]  }
 0x79b   : > { %7964 = vmatmul.mubr.bf16.gmra.mrb[100].mxu0 %v14994_v3 }
 0x79c   : > { %7971 = vmatprep.mubr.bf16.mxu0 %v14995_v60 }
 0x7a3   : > { %7972 = vmatmul.mubr.bf16.gmra.mrb[104].mxu0 %v14997_v56 }
 0x7a4   : > { %7979 = vmatprep.mubr.bf16.mxu0 %v14998_v11 }
 0x7ab   : > { %7980 = vmatmul.mubr.bf16.gmra.mrb[108].mxu0 %v15000_v31  ;;  %v15057_v31 = vld [vmem:[%s19117_s8 + $0x178] sm:$0xff]  }
 0x7ac   : > { %7987 = vmatprep.mubr.bf16.mxu0 %v15001_v58  ;;  %v15058_v58 = vld [vmem:[%s19117_s8 + $0x100] sm:$0xff]  }
 0x7b3   : > { %7988 = vmatmul.mubr.bf16.gmra.mrb[112].mxu0 %v15003_v9 }
 0x7b4   : > { %7995 = vmatprep.mubr.bf16.mxu0 %v15004_v23 }
 0x7bb   : > { %7996 = vmatmul.mubr.bf16.gmra.mrb[116].mxu0 %v15006_v4  ;;  %v15059_v4 = vld [vmem:[%s19117_s8 + $0x108] sm:$0xff]  }
 0x7bc   : > { %8003 = vmatprep.mubr.bf16.mxu0 %v15007_v48  ;;  %v15060_v48 = vld [vmem:[%s19117_s8 + $0x110] sm:$0xff]  }
 0x7c3   : > { %8004 = vmatmul.mubr.bf16.gmra.mrb[120].mxu0 %v15009_v16 }
 0x7c4   : > { %8011 = vmatprep.mubr.bf16.mxu0 %v15010_v50 }
 0x7cb   : > { %8012 = vmatmul.mubr.bf16.gmra.mrb[124].mxu0 %v15012_v36 }
 0x7cc   : > { %8019 = vmatprep.mubr.bf16.mxu0 %v15013_v55 }
 0x7d3   : > { %8020 = vmatmul.mubr.bf16.gmra.mrb[128].mxu0 %v15015_v2 }
 0x7d4   : > { %8027 = vmatprep.mubr.bf16.mxu0 %v15016_v51  ;;  %v15061_v51 = vld [vmem:[%s19117_s8 + $0x118] sm:$0xff]  }
 0x7db   : > { %8028 = vmatmul.mubr.bf16.gmra.mrb[132].mxu0 %v15018_v38  ;;  %v15062_v38 = vld [vmem:[%s19117_s8 + $0x120] sm:$0xff]  }
 0x7dc   : > { %8035 = vmatprep.mubr.bf16.mxu0 %v15019_v34 }
 0x7e3   : > { %8036 = vmatmul.mubr.bf16.gmra.mrb[136].mxu0 %v15021_v40 }
 0x7e4   : > { %8043 = vmatprep.mubr.bf16.mxu0 %v15022_v61 }
 0x7eb   : > { %8044 = vmatmul.mubr.bf16.gmra.mrb[140].mxu0 %v15024_v28 }
 0x7ec   : > { %8051 = vmatprep.mubr.bf16.mxu0 %v15025_v18 }
 0x7f3   : > { %8052 = vmatmul.mubr.bf16.gmra.mrb[144].mxu0 %v15027_v5  ;;  %v15063_v5 = vld [vmem:[%s19117_s8 + $0x128] sm:$0xff]  }
 0x7f4   : > { %8059 = vmatprep.mubr.bf16.mxu0 %v15029_v33  ;;  %v15064_v33 = vld [vmem:[%s19117_s8 + $0x130] sm:$0xff]  }
 0x7fb   : > { %8060 = vmatmul.mubr.bf16.gmra.mrb[148].mxu0 %v15031_v25 }
 0x7fc   : > { %8067 = vmatprep.mubr.bf16.mxu0 %v15033_v43 }
 0x803   : > { %8068 = vmatmul.mubr.bf16.gmra.mrb[152].mxu0 %v15035_v49 }
 0x804   : > { %8075 = vmatprep.mubr.bf16.mxu0 %v15037_v32 }
 0x80b   : > { %8076 = vmatmul.mubr.bf16.gmra.mrb[156].mxu0 %v15039_v53 }
 0x80c   : > { %8083 = vmatprep.mubr.bf16.mxu0 %v15041_v45  ;;  %v15065_v45 = vld [vmem:[%s19117_s8 + $0x138] sm:$0xff]  }
 0x813   : > { %8084 = vmatmul.mubr.bf16.gmra.mrb[160].mxu0 %v15043_v59 }
 0x814   : > { %8091 = vmatprep.mubr.bf16.mxu0 %v11643_v27 }
 0x81b   : > { %8092 = vmatmul.mubr.bf16.gmra.mrb[164].mxu0 %v11642_v6 }
 0x826   : > { %v7893_v63 = vpop.f32.mrb[64].mxu0 }
 0x827   : > { %v7895_v30 = vpop.f32.mrb[65].mxu0 }
 0x828   : > { %v7896_v10 = vpop.f32.mrb[66].mxu0 }
 0x829   : > { %v18201_v1 = vpack.c.bf16 %v7896_v10, %v7893_v63  ;;  %v7898_v35 = vpop.f32.mrb[67].mxu0  ;;  %v15067_v10 = vld [vmem:[%s19117_s8 + $0xc8] sm:$0xff]  }
 0x82b   : > { %13695 = vmatprep.mubr.bf16.mxu1 %v18201_v1 }
 0x82e   : > { %v7901_v22 = vpop.f32.mrb[68].mxu0 }
 0x82f   : > { %v7903_v13 = vpop.f32.mrb[69].mxu0 }
 0x830   : > { %v7904_v20 = vpop.f32.mrb[70].mxu0 }
 0x831   : > { %v18204_v19 = vpack.c.bf16 %v7904_v20, %v7901_v22  ;;  %v7906_v47 = vpop.f32.mrb[71].mxu0 }
 0x833   : > { %13696 = vmatmul.mubr.bf16.vlgmr.msra.gmra.mrb[32].mxu1 %v18204_v19 }
 0x834   : > { %13704 = vmatpush3.bf16.msra.mxu1 %v18126_v12 }
 0x835   : > { %13705 = vmatprep.subr.bf16.mxu1 %v15051_v21 }
 0x836   : > { %v7909_v54 = vpop.f32.mrb[72].mxu0 }
 0x837   : > { %v7911_v44 = vpop.f32.mrb[73].mxu0 }
 0x838   : > { %v7912_v0 = vpop.f32.mrb[74].mxu0  ;;  %13706 = vmatpush3.bf16.msra.mxu1 %v15051_v21  ;;  %v15069_v21 = vld [vmem:[%s19117_s8 + $0xd8] sm:$0xff]  }
 0x839   : > { %v18214_v52 = vpack.c.bf16 %v7912_v0, %v7909_v54  ;;  %v7914_v41 = vpop.f32.mrb[75].mxu0  ;;  %13707 = vmatprep.subr.bf16.mxu1 %v15052_v14 }
 0x83a   : > { %v15071_v41 = vld [vmem:[%s19117_s8 + $0xe8] sm:$0xff]  }
 0x83b   : > { %13699 = vmatprep.mubr.bf16.mxu1 %v18214_v52 }
 0x83c   : > { %13708 = vmatpush3.bf16.msra.mxu1 %v15052_v14 }
 0x83d   : > { %13709 = vmatprep.subr.bf16.mxu1 %v15053_v39 }
 0x83e   : > { %v7917_v46 = vpop.f32.mrb[76].mxu0 }
 0x83f   : > { %v7919_v17 = vpop.f32.mrb[77].mxu0 }
 0x840   : > { %v7920_v62 = vpop.f32.mrb[78].mxu0  ;;  %13710 = vmatpush3.bf16.msra.mxu1 %v15053_v39  ;;  %v15072_v39 = vld [vmem:[%s19117_s8 + $0xf0] sm:$0xff]  }
 0x841   : > { %v18223_v15 = vpack.c.bf16 %v7920_v62, %v7917_v46  ;;  %v7922_v37 = vpop.f32.mrb[79].mxu0  ;;  %13711 = vmatprep.subr.bf16.mxu1 %v15054_v26 }
 0x842   : > { %v15073_v37 = vld [vmem:[%s19117_s8 + $0xf8] sm:$0xff]  }
 0x843   : > { %13700 = vmatmul.mubr.bf16.gmra.mrb[36].mxu1 %v18223_v15 }
 0x844   : > { %13712 = vmatpush3.bf16.msra.mxu1 %v15054_v26 }
 0x845   : > { %13713 = vmatprep.subr.bf16.mxu1 %v15055_v42 }
 0x846   : > { %v7925_v3 = vpop.f32.mrb[80].mxu0 }
 0x847   : > { %v7927_v60 = vpop.f32.mrb[81].mxu0 }
 0x848   : > { %v7928_v57 = vpop.f32.mrb[82].mxu0  ;;  %13714 = vmatpush3.bf16.msra.mxu1 %v15055_v42  ;;  %v15074_v42 = vld [vmem:[%s19117_s8 + $0x1c0] sm:$0xff]  }
 0x849   : > { %v8103_v56 = vpack.c.bf16 %v7928_v57, %v7925_v3  ;;  %v7930_v11 = vpop.f32.mrb[83].mxu0  ;;  %13715 = vmatprep.subr.bf16.mxu1 %v15056_v29 }
 0x84a   : > { %v15075_v11 = vld [vmem:[%s19117_s8 + $0x1c8] sm:$0xff]  }
 0x84b   : > { %13719 = vmatprep.mubr.bf16.mxu1 %v8103_v56 }
 0x84c   : > { %13716 = vmatpush3.bf16.msra.mxu1 %v15056_v29 }
 0x84d   : > { %13717 = vmatprep.subr.bf16.mxu1 %v15057_v31 }
 0x84e   : > { %v7933_v7 = vpop.f32.mrb[84].mxu0 }
 0x84f   : > { %v7935_v9 = vpop.f32.mrb[85].mxu0 }
 0x850   : > { %v7936_v24 = vpop.f32.mrb[86].mxu0  ;;  %13718 = vmatpush3.bf16.msra.mxu1 %v15057_v31 }
 0x851   : > { %v8104_v23 = vpack.c.bf16 %v7936_v24, %v7933_v7  ;;  %v7938_v12 = vpop.f32.mrb[87].mxu0  ;;  %13727 = vmatprep.subr.bf16.mxu1 %v15058_v58 }
 0x853   : > { %13720 = vmatmul.mubr.bf16.vlgmr.msra.gmra.mrb[40].mxu1 %v8104_v23 }
 0x854   : > { %13728 = vmatpush3.bf16.msra.mxu1 %v15058_v58  ;;  %v15076_v58 = vld [vmem:[%s19117_s8 + $0x1d0] sm:$0xff]  }
 0x855   : > { %13729 = vmatprep.subr.bf16.mxu1 %v15059_v4 }
 0x856   : > { %v7941_v16 = vpop.f32.mrb[88].mxu0 }
 0x857   : > { %v7943_v50 = vpop.f32.mrb[89].mxu0 }
 0x858   : > { %v7944_v36 = vpop.f32.mrb[90].mxu0  ;;  %13730 = vmatpush3.bf16.msra.mxu1 %v15059_v4  ;;  %v15077_v50 = vld [vmem:[%s19117_s8 + $0x1d8] sm:$0xff]  }
 0x859   : > { %v8105_v55 = vpack.c.bf16 %v7944_v36, %v7941_v16  ;;  %v7946_v2 = vpop.f32.mrb[91].mxu0  ;;  %13731 = vmatprep.subr.bf16.mxu1 %v15060_v48  ;;  %v15078_v36 = vld [vmem:[%s19117_s8 + $0x1e0] sm:$0xff]  }
 0x85b   : > { %13723 = vmatprep.mubr.bf16.mxu1 %v8105_v55 }
 0x85c   : > { %13732 = vmatpush3.bf16.msra.mxu1 %v15060_v48 }
 0x85d   : > { %13733 = vmatprep.subr.bf16.mxu1 %v15061_v51 }
 0x85e   : > { %v7949_v34 = vpop.f32.mrb[92].mxu0 }
 0x85f   : > { %v7951_v40 = vpop.f32.mrb[93].mxu0 }
 0x860   : > { %v7952_v61 = vpop.f32.mrb[94].mxu0  ;;  %13734 = vmatpush3.bf16.msra.mxu1 %v15061_v51  ;;  %v15079_v40 = vld [vmem:[%s19117_s8 + $0x1e8] sm:$0xff]  }
 0x861   : > { %v8106_v28 = vpack.c.bf16 %v7952_v61, %v7949_v34  ;;  %v7954_v18 = vpop.f32.mrb[95].mxu0  ;;  %13735 = vmatprep.subr.bf16.mxu1 %v15062_v38  ;;  %v15080_v61 = vld [vmem:[%s19117_s8 + $0x1f0] sm:$0xff]  }
 0x863   : > { %13724 = vmatmul.mubr.bf16.gmra.mrb[44].mxu1 %v8106_v28 }
 0x864   : > { %13736 = vmatpush3.bf16.msra.mxu1 %v15062_v38  ;;  %13743 = vmatprep.mubr.bf16.mxu1 %v18201_v1  ;;  %v15068_v1 = vld [vmem:[%s19117_s8 + $0xd0] sm:$0xff]  }
 0x865   : > { %13737 = vmatprep.subr.bf16.mxu1 %v15063_v5 }
 0x866   : > { %v7957_v25 = vpop.f32.mrb[96].mxu0 }
 0x867   : > { %v7959_v43 = vpop.f32.mrb[97].mxu0 }
 0x868   : > { %13738 = vmatpush3.bf16.msra.mxu1 %v15063_v5  ;;  %v7960_v49 = vpop.f32.mrb[98].mxu0  ;;  %v15081_v43 = vld [vmem:[%s19117_s8 + $0x1f8] sm:$0xff]  }
 0x869   : > { %13739 = vmatprep.subr.bf16.mxu1 %v15064_v33  ;;  %v8107_v32 = vpack.c.bf16 %v7960_v49, %v7957_v25  ;;  %v7962_v53 = vpop.f32.mrb[99].mxu0  ;;  %v15082_v49 = vld [vmem:[%s19117_s8 + $0x200] sm:$0xff]  }
 0x86c   : > { %13740 = vmatpush3.bf16.msra.mxu1 %v15064_v33 }
 0x86d   : > { %13741 = vmatprep.subr.bf16.mxu1 %v15065_v45 }
 0x86e   : > { %v7965_v59 = vpop.f32.mrb[100].mxu0 }
 0x86f   : > { %v7967_v27 = vpop.f32.mrb[101].mxu0 }
 0x870   : > { %13742 = vmatpush3.bf16.msra.mxu1 %v15065_v45  ;;  %v7968_v6 = vpop.f32.mrb[102].mxu0 }
 0x871   : > { %13751 = vmatprep.subr.bf16.mxu1 %v15066_v8  ;;  %v8108_v63 = vpack.c.bf16 %v7968_v6, %v7965_v59  ;;  %v7970_v30 = vpop.f32.mrb[103].mxu0 }
 0x873   : > { %13744 = vmatmul.mubr.bf16.vlgmr.msra.gmra.mrb[40].mxu1 %v18204_v19  ;;  %v15070_v19 = vld [vmem:[%s19117_s8 + $0xe0] sm:$0xff]  }
 0x874   : > { %13747 = vmatprep.mubr.bf16.mxu1 %v18214_v52  ;;  %13752 = vmatpush3.bf16.msra.mxu1 %v15066_v8 }
 0x875   : > { %13753 = vmatprep.subr.bf16.mxu1 %v15067_v10 }
 0x876   : > { %v7973_v35 = vpop.f32.mrb[104].mxu0 }
 0x877   : > { %v7975_v22 = vpop.f32.mrb[105].mxu0 }
 0x878   : > { %13754 = vmatpush3.bf16.msra.mxu1 %v15067_v10  ;;  %v7976_v13 = vpop.f32.mrb[106].mxu0 }
 0x879   : > { %13755 = vmatprep.subr.bf16.mxu1 %v15068_v1  ;;  %v8109_v20 = vpack.c.bf16 %v7976_v13, %v7973_v35  ;;  %v7978_v47 = vpop.f32.mrb[107].mxu0  ;;  %v15084_v35 = vld [vmem:[%s19117_s8 + $0x210] sm:$0xff]  }
 0x87b   : > { %13748 = vmatmul.mubr.bf16.gmra.mrb[44].mxu1 %v18223_v15 }
 0x87c   : > { %13756 = vmatpush3.bf16.msra.mxu1 %v15068_v1  ;;  %13767 = vmatprep.mubr.bf16.mxu1 %v8107_v32 }
 0x87d   : > { %13757 = vmatprep.subr.bf16.mxu1 %v15069_v21 }
 0x87e   : > { %v7981_v14 = vpop.f32.mrb[108].mxu0 }
 0x87f   : > { %v7983_v54 = vpop.f32.mrb[109].mxu0 }
 0x880   : > { %13758 = vmatpush3.bf16.msra.mxu1 %v15069_v21  ;;  %v7984_v44 = vpop.f32.mrb[110].mxu0 }
 0x881   : > { %13759 = vmatprep.subr.bf16.mxu1 %v15070_v19  ;;  %v8110_v0 = vpack.c.bf16 %v7984_v44, %v7981_v14  ;;  %v7986_v52 = vpop.f32.mrb[111].mxu0  ;;  %v15085_v14 = vld [vmem:[%s19117_s8 + $0x218] sm:$0xff]  }
 0x882   : > { %v15086_v52 = vld [vmem:[%s19117_s8 + $0x220] sm:$0xff]  }
 0x884   : > { %13760 = vmatpush3.bf16.msra.mxu1 %v15070_v19 }
 0x885   : > { %13761 = vmatprep.subr.bf16.mxu1 %v15071_v41 }
 0x886   : > { %v7989_v26 = vpop.f32.mrb[112].mxu0 }
 0x887   : > { %v7991_v46 = vpop.f32.mrb[113].mxu0 }
 0x888   : > { %13762 = vmatpush3.bf16.msra.mxu1 %v15071_v41  ;;  %v7992_v17 = vpop.f32.mrb[114].mxu0 }
 0x889   : > { %v18284_v62 = vpack.c.bf16 %v7992_v17, %v7989_v26  ;;  %v7994_v15 = vpop.f32.mrb[115].mxu0  ;;  %13763 = vmatprep.subr.bf16.mxu1 %v15072_v39 }
 0x88b   : > { %8137 = vst [vmem:[#allocation2 + $0x178] sm:$0xff] %v18284_v62 }
 0x88c   : > { %13764 = vmatpush3.bf16.msra.mxu1 %v15072_v39 }
 0x88d   : > { %13765 = vmatprep.subr.bf16.mxu1 %v15073_v37 }
 0x88e   : > { %v7997_v29 = vpop.f32.mrb[116].mxu0 }
 0x88f   : > { %v7999_v3 = vpop.f32.mrb[117].mxu0 }
 0x890   : > { %v8000_v60 = vpop.f32.mrb[118].mxu0  ;;  %13766 = vmatpush3.bf16.msra.mxu1 %v15073_v37  ;;  %v15087_v37 = vld [vmem:[%s19117_s8 + $0x228] sm:$0xff]  }
 0x891   : > { %v18293_v57 = vpack.c.bf16 %v8000_v60, %v7997_v29  ;;  %v8002_v56 = vpop.f32.mrb[119].mxu0  ;;  %13775 = vmatprep.subr.bf16.mxu1 %v15074_v42  ;;  %v15088_v29 = vld [vmem:[%s19117_s8 + $0x230] sm:$0xff]  }
 0x892   : > { %v8697_v31 = vld [vmem:[#allocation2 + $0x178] sm:$0xf0] }
 0x893   : > { %13768 = vmatmul.mubr.bf16.vlgmr.msra.gmra.mrb[40].mxu1 %v8108_v63  ;;  %v8725_v7 = vrot.slane %v8697_v31, 4  ;;  %v8726_v9 = vrot.slane %v18293_v57, 4  ;;  %v15083_v63 = vld [vmem:[%s19117_s8 + $0x208] sm:$0xff]  }
 0x894   : > { %13771 = vmatprep.mubr.bf16.mxu1 %v8109_v20  ;;  %13776 = vmatpush3.bf16.msra.mxu1 %v15074_v42 }
 0x895   : > { %13777 = vmatprep.subr.bf16.mxu1 %v15075_v11  ;;  %v8727_v16 = vsel %vm19287_vm6, %v8725_v7, %v8726_v9  ;;  %v15089_v7 = vld [vmem:[%s19117_s8 + $0x238] sm:$0xff]  }
 0x896   : > { %v8005_v24 = vpop.f32.mrb[120].mxu0 }
 0x897   : > { %v8007_v23 = vpop.f32.mrb[121].mxu0 }
 0x898   : > { %v8008_v12 = vpop.f32.mrb[122].mxu0  ;;  %13778 = vmatpush3.bf16.msra.mxu1 %v15075_v11 }
 0x899   : > { %v18302_v4 = vpack.c.bf16 %v8008_v12, %v8005_v24  ;;  %v8010_v48 = vpop.f32.mrb[123].mxu0  ;;  %13779 = vmatprep.subr.bf16.mxu1 %v15076_v58 }
 0x89b   : > { %13772 = vmatmul.mubr.bf16.gmra.mrb[44].mxu1 %v8110_v0  ;;  %v8728_v53 = vrot.slane %v18302_v4, 4 }
 0x89c   : > { %13780 = vmatpush3.bf16.msra.mxu1 %v15076_v58  ;;  %13791 = vmatprep.mubr.bf16.mxu1 %v8727_v16 }
 0x89d   : > { %13781 = vmatprep.subr.bf16.mxu1 %v15077_v50  ;;  %v8729_v30 = vsel %vm19287_vm6, %v8726_v9, %v8728_v53  ;;  %v15090_v9 = vld [vmem:[%s19117_s8 + $0x180] sm:$0xff]  }
 0x89e   : > { %v8013_v55 = vpop.f32.mrb[124].mxu0 }
 0x89f   : > { %v8015_v2 = vpop.f32.mrb[125].mxu0 }
 0x8a0   : > { %v8016_v51 = vpop.f32.mrb[126].mxu0  ;;  %13782 = vmatpush3.bf16.msra.mxu1 %v15077_v50  ;;  %v15091_v50 = vld [vmem:[%s19117_s8 + $0x188] sm:$0xff]  }
 0x8a1   : > { %v18311_v38 = vpack.c.bf16 %v8016_v51, %v8013_v55  ;;  %v8018_v34 = vpop.f32.mrb[127].mxu0  ;;  %13783 = vmatprep.subr.bf16.mxu1 %v15078_v36 }
 0x8a3   : > { %v8730_v8 = vrot.slane %v18311_v38, 4 }
 0x8a4   : > { %13784 = vmatpush3.bf16.msra.mxu1 %v15078_v36  ;;  %v15092_v36 = vld [vmem:[%s19117_s8 + $0x190] sm:$0xff]  }
 0x8a5   : > { %13785 = vmatprep.subr.bf16.mxu1 %v15079_v40  ;;  %v8731_v10 = vsel %vm19287_vm6, %v8728_v53, %v8730_v8 }
 0x8a6   : > { %v8021_v28 = vpop.f32.mrb[128].mxu0 }
 0x8a7   : > { %v8023_v18 = vpop.f32.mrb[129].mxu0 }
 0x8a8   : > { %v8024_v5 = vpop.f32.mrb[130].mxu0  ;;  %13786 = vmatpush3.bf16.msra.mxu1 %v15079_v40 }
 0x8a9   : > { %v8115_v33 = vpack.c.bf16 %v8024_v5, %v8021_v28  ;;  %v8026_v25 = vpop.f32.mrb[131].mxu0  ;;  %13787 = vmatprep.subr.bf16.mxu1 %v15080_v61 }
 0x8ab   : > { %8141 = vst [vmem:[#allocation2 + $0x198] sm:$0xff] %v8115_v33  ;;  %v15094_v33 = vld [vmem:[%s19117_s8 + $0x1a0] sm:$0xff]  }
 0x8ac   : > { %13788 = vmatpush3.bf16.msra.mxu1 %v15080_v61  ;;  %v15093_v61 = vld [vmem:[%s19117_s8 + $0x198] sm:$0xff]  }
 0x8ad   : > { %13789 = vmatprep.subr.bf16.mxu1 %v15081_v43 }
 0x8ae   : > { %v8029_v32 = vpop.f32.mrb[132].mxu0 }
 0x8af   : > { %v8031_v45 = vpop.f32.mrb[133].mxu0 }
 0x8b0   : > { %v8032_v59 = vpop.f32.mrb[134].mxu0  ;;  %13790 = vmatpush3.bf16.msra.mxu1 %v15081_v43 }
 0x8b1   : > { %v18327_v27 = vpack.c.bf16 %v8032_v59, %v8029_v32  ;;  %v8034_v6 = vpop.f32.mrb[135].mxu0  ;;  %13799 = vmatprep.subr.bf16.mxu1 %v15082_v49  ;;  %v15096_v59 = vld [vmem:[%s19117_s8 + $0x1b0] sm:$0xff]  }
 0x8b2   : > { %v8701_v1 = vld [vmem:[#allocation2 + $0x198] sm:$0xf] }
 0x8b3   : > { %13792 = vmatmul.mubr.bf16.vlgmr.msra.gmra.mrb[40].mxu1 %v8729_v30  ;;  %v8732_v13 = vrot.slane %v8701_v1, 4  ;;  %v9329_v54 = vrot.slane %v18327_v27, 4 }
 0x8b4   : > { %13795 = vmatprep.mubr.bf16.mxu1 %v8731_v10  ;;  %13800 = vmatpush3.bf16.msra.mxu1 %v15082_v49 }
 0x8b5   : > { %13801 = vmatprep.subr.bf16.mxu1 %v15083_v63  ;;  %v8733_v44 = vsel %vm19287_vm6, %v8730_v8, %v8732_v13  ;;  %v15095_v8 = vld [vmem:[%s19117_s8 + $0x1a8] sm:$0xff]  }
 0x8b6   : > { %v8037_v22 = vpop.f32.mrb[136].mxu0 }
 0x8b7   : > { %v8039_v20 = vpop.f32.mrb[137].mxu0 }
 0x8b8   : > { %v8040_v47 = vpop.f32.mrb[138].mxu0  ;;  %13802 = vmatpush3.bf16.msra.mxu1 %v15083_v63 }
 0x8b9   : > { %v8117_v21 = vpack.c.bf16 %v8040_v47, %v8037_v22  ;;  %v8042_v19 = vpop.f32.mrb[139].mxu0  ;;  %13803 = vmatprep.subr.bf16.mxu1 %v15084_v35  ;;  %v15098_v22 = vld [vmem:[%s19117_s8 + $0x40] sm:$0xff]  }
 0x8bb   : > { %13796 = vmatmul.mubr.bf16.gmra.mrb[44].mxu1 %v8733_v44  ;;  %v9331_v0 = vrot.slane %v8117_v21, 4  ;;  %v15099_v44 = vld [vmem:[%s19117_s8 + $0x48] sm:$0xff]  }
 0x8bc   : > { %13804 = vmatpush3.bf16.msra.mxu1 %v15084_v35  ;;  %13815 = vmatprep.mubr.bf16.mxu1 %v18327_v27  ;;  %v15097_v35 = vld [vmem:[%s19117_s8 + $0x1b8] sm:$0xff]  }
 0x8bd   : > { %13805 = vmatprep.subr.bf16.mxu1 %v15085_v14  ;;  %v18349_v41 = vsel %vm19287_vm6, %v9329_v54, %v9331_v0  ;;  %v15113_v27 = vld [vmem:[%s19117_s8 + $0xb8] sm:$0xff]  }
 0x8be   : > { %v8045_v39 = vpop.f32.mrb[140].mxu0 }
 0x8bf   : > { %v8047_v26 = vpop.f32.mrb[141].mxu0 }
 0x8c0   : > { %v8048_v46 = vpop.f32.mrb[142].mxu0  ;;  %13806 = vmatpush3.bf16.msra.mxu1 %v15085_v14  ;;  %v15100_v26 = vld [vmem:[%s19117_s8 + $0x50] sm:$0xff]  }
 0x8c1   : > { %v18351_v17 = vpack.c.bf16 %v8048_v46, %v8045_v39  ;;  %v8050_v15 = vpop.f32.mrb[143].mxu0  ;;  %13807 = vmatprep.subr.bf16.mxu1 %v15086_v52 }
 0x8c3   : > { %v9333_v42 = vrot.slane %v18351_v17, 4 }
 0x8c4   : > { %13808 = vmatpush3.bf16.msra.mxu1 %v15086_v52 }
 0x8c5   : > { %13809 = vmatprep.subr.bf16.mxu1 %v15087_v37  ;;  %v18363_v3 = vsel %vm19287_vm6, %v9331_v0, %v9333_v42 }
 0x8c6   : > { %v8053_v60 = vpop.f32.mrb[144].mxu0 }
 0x8c7   : > { %v8055_v56 = vpop.f32.mrb[145].mxu0 }
 0x8c8   : > { %v8056_v11 = vpop.f32.mrb[146].mxu0  ;;  %13810 = vmatpush3.bf16.msra.mxu1 %v15087_v37  ;;  %v15101_v37 = vld [vmem:[%s19117_s8 + $0x58] sm:$0xff]   ;;  %v15103_v56 = vld [vmem:[%s19117_s8 + $0x68] sm:$0xff]  }
 0x8c9   : > { %v8119_v31 = vpack.c.bf16 %v8056_v11, %v8053_v60  ;;  %13811 = vmatprep.subr.bf16.mxu1 %v15088_v29  ;;  %v8058_v58 = vpop.f32.mrb[147].mxu0  ;;  %v15102_v60 = vld [vmem:[%s19117_s8 + $0x60] sm:$0xff]   ;;  %v15104_v11 = vld [vmem:[%s19117_s8 + $0x70] sm:$0xff]  }
 0x8ca   : > { %v15107_v58 = vld [vmem:[%s19117_s8 + $0x88] sm:$0xff]  }
 0x8cb   : > { %8145 = vst [vmem:[#allocation2 + $0x1b8] sm:$0xff] %v8119_v31 }
 0x8cc   : > { %13812 = vmatpush3.bf16.msra.mxu1 %v15088_v29 }
 0x8cd   : > { %13813 = vmatprep.subr.bf16.mxu1 %v15089_v7 }
 0x8ce   : > { %v8061_v24 = vpop.f32.mrb[148].mxu0 }
 0x8cf   : > { %v8063_v23 = vpop.f32.mrb[149].mxu0 }
 0x8d0   : > { %13814 = vmatpush3.bf16.msra.mxu1 %v15089_v7  ;;  %v8064_v12 = vpop.f32.mrb[150].mxu0  ;;  %v9304_v7 = vld [vmem:[#allocation2 + $0x198] sm:$0xf0] }
 0x8d1   : > { %v18371_v48 = vpack.c.bf16 %v8064_v12, %v8061_v24  ;;  %v8066_v16 = vpop.f32.mrb[151].mxu0  ;;  %13823 = vmatprep.subr.bf16.mxu1 %v15090_v9  ;;  %v9328_v24 = vrot.slane %v9304_v7, 4  ;;  %v15109_v23 = vld [vmem:[%s19117_s8 + $0x98] sm:$0xff]   ;;  %v15111_v12 = vld [vmem:[%s19117_s8 + $0xa8] sm:$0xff]  }
 0x8d2   : > { %v15115_v16 = vld [vmem:[%s19117_s8 + $0x8] sm:$0xff]   ;;  %v19951_v7 = vld [vmem:[#allocation13_spill] sm:$0xff] }
 0x8d3   : > { %8146 = vst [vmem:[#allocation2 + $0x1c0] sm:$0xff] %v18371_v48  ;;  %13816 = vmatmul.mubr.bf16.vlgmr.msra.gmra.mrb[40].mxu1 %v8117_v21 }
 0x8d4   : > { %13819 = vmatprep.mubr.bf16.mxu1 %v18351_v17  ;;  %13824 = vmatpush3.bf16.msra.mxu1 %v15090_v9  ;;  %v15108_v9 = vld [vmem:[%s19117_s8 + $0x90] sm:$0xff]  }
 0x8d5   : > { %13825 = vmatprep.subr.bf16.mxu1 %v15091_v50  ;;  %v15120_v17 = vld [vmem:[%s19117_s8 + $0x30] sm:$0xff]  }
 0x8d6   : > { %v8069_v55 = vpop.f32.mrb[152].mxu0 }
 0x8d7   : > { %v8071_v2 = vpop.f32.mrb[153].mxu0 }
 0x8d8   : > { %v8072_v51 = vpop.f32.mrb[154].mxu0  ;;  %13826 = vmatpush3.bf16.msra.mxu1 %v15091_v50  ;;  %v9305_v50 = vld [vmem:[#allocation2 + $0x1b8] sm:$0xf] }
 0x8d9   : > { %v18381_v34 = vpack.c.bf16 %v8072_v51, %v8069_v55  ;;  %v8074_v40 = vpop.f32.mrb[155].mxu0  ;;  %13827 = vmatprep.subr.bf16.mxu1 %v15092_v36  ;;  %v9335_v55 = vrot.slane %v9305_v50, 4  ;;  %v15117_v2 = vld [vmem:[%s19117_s8 + $0x18] sm:$0xff]   ;;  %v15119_v51 = vld [vmem:[%s19117_s8 + $0x28] sm:$0xff]  }
 0x8da   : > { %v9001_v28 = vld [vmem:[#allocation2 + $0x1c0] sm:$0xf0]  ;;  %v15123_v40 = vld [vmem:[%s19121_s12 + $0x48] sm:$0xff]  }
 0x8db   : > { %13820 = vmatmul.mubr.bf16.gmra.mrb[44].mxu1 %v8119_v31  ;;  %v9028_v18 = vrot.slane %v9001_v28, 4  ;;  %v9029_v5 = vrot.slane %v18381_v34, 4  ;;  %v15106_v31 = vld [vmem:[%s19117_s8 + $0x80] sm:$0xff]   ;;  %v15125_v28 = vld [vmem:[%s19121_s12 + $0x58] sm:$0xff]  }
 0x8dc   : > { %13828 = vmatpush3.bf16.msra.mxu1 %v15092_v36  ;;  %v15116_v36 = vld [vmem:[%s19117_s8 + $0x10] sm:$0xff]  }
 0x8dd   : > { %13829 = vmatprep.subr.bf16.mxu1 %v15093_v61  ;;  %v9030_v25 = vsel %vm19287_vm6, %v9028_v18, %v9029_v5  ;;  %v15127_v18 = vld [vmem:[%s19121_s12 + $0x68] sm:$0xff]  }
 0x8de   : > { %v8077_v43 = vpop.f32.mrb[156].mxu0  ;;  %13839 = vmatprep.mubr.bf16.mxu1 %v9030_v25  ;;  %v18524_v25 = vld [vmem:[%s19121_s12] sm:$0xff]  }
 0x8df   : > { %v8079_v49 = vpop.f32.mrb[157].mxu0 }
 0x8e0   : > { %v8080_v32 = vpop.f32.mrb[158].mxu0  ;;  %13830 = vmatpush3.bf16.msra.mxu1 %v15093_v61  ;;  %v15124_v61 = vld [vmem:[%s19121_s12 + $0x50] sm:$0xff]  }
 0x8e1   : > { %v18391_v53 = vpack.c.bf16 %v8080_v32, %v8077_v43  ;;  %v8082_v45 = vpop.f32.mrb[159].mxu0  ;;  %13831 = vmatprep.subr.bf16.mxu1 %v15094_v33  ;;  %v19930_v43 = vld [vmem:[#allocation10_spill] sm:$0xff] }
 0x8e2   : > { %v1046_v49 = vand.u32 7, %v19930_v43  ;;  %v18531_v32 = vld [vmem:[%s19118_s9] ss:$0 sm:$0xff] }
 0x8e3   : > { %v9031_v20 = vrot.slane %v18391_v53, 4 }
 0x8e4   : > { %13832 = vmatpush3.bf16.msra.mxu1 %v15094_v33  ;;  %v15129_v33 = vld [vmem:[%s19121_s12 + $0x78] sm:$0xff]   ;;  %vm18537_vm12 = vcmp.ne.s32.totalorder %v1046_v49, 0  ;;  %vm18552_vm0 = vcmp.ne.s32.totalorder %v1046_v49, 7 }
 0x8e5   : > { %13833 = vmatprep.subr.bf16.mxu1 %v15095_v8  ;;  %v9032_v52 = vsel %vm19287_vm6, %v9029_v5, %v9031_v20  ;;  %v15128_v5 = vld [vmem:[%s19121_s12 + $0x70] sm:$0xff]  }
 0x8e6   : > { %v8085_v6 = vpop.f32.mrb[160].mxu0 }
 0x8e7   : > { %v8087_v63 = vpop.f32.mrb[161].mxu0 }
 0x8e8   : > { %v8088_v30 = vpop.f32.mrb[162].mxu0  ;;  %13834 = vmatpush3.bf16.msra.mxu1 %v15095_v8  ;;  %v19932_v8 = vld [vmem:[#allocation12_spill] sm:$0xff] }
 0x8e9   : > { %v18399_v10 = vpack.c.bf16 %v8088_v30, %v8085_v6  ;;  %13835 = vmatprep.subr.bf16.mxu1 %v15096_v59  ;;  %v8090_v1 = vpop.f32.mrb[163].mxu0  ;;  %v19933_v6 = vld [vmem:[#allocation11_spill] sm:$0xff] }
 0x8ea   : > { %v1053_v63 = vand.u32 7, %v19933_v6  ;;  %v15152_v1 = vld [vmem:[%s19121_s12 + $0xf0] sm:$0xff]  }
 0x8eb   : > { %v9033_v21 = vrot.slane %v18399_v10, 4 }
 0x8ec   : > { %13836 = vmatpush3.bf16.msra.mxu1 %v15096_v59  ;;  %v1067_v59 = vand.u32 7, %v19932_v8  ;;  %vm18557_vm5 = vcmp.ne.s32.totalorder %v1053_v63, 0  ;;  %vm18561_vm10 = vcmp.ne.s32.totalorder %v1053_v63, 7  ;;  %v15160_v8 = vld [vmem:[%s19121_s12 + $0x130] sm:$0xff]  }
 0x8ed   : > { %13837 = vmatprep.subr.bf16.mxu1 %v15097_v35  ;;  %v9034_v39 = vsel %vm19287_vm6, %v9031_v20, %v9033_v21  ;;  %v19936_v20 = vmov 0 }
 0x8ee   : > { %v8093_v13 = vpop.f32.mrb[164].mxu0  ;;  %vm18544_vm11 = vcmp.ne.s32.totalorder %v1067_v59, 0  ;;  %vm18598_vm13 = vcmp.ne.s32.totalorder %v1067_v59, 7 }
 0x8ef   : > { %v8124_v47 = vpack.c.bf16 %v8093_v13, %v8093_v13  ;;  %v8095_v19 = vpop.f32.mrb[165].mxu0  ;;  %v19937_v20 = vsel %vm18544_vm11, 4294967295, %v19936_v20 }
 0x8f0   : > { %13838 = vmatpush3.bf16.msra.mxu1 %v15097_v35  ;;  %v8096_v14 = vpop.f32.mrb[166].mxu0  ;;  %v19940_v19 = vmov 0 }
 0x8f1   : > { %8150 = vst [vmem:[#allocation2 + $0x1e0] sm:$0xf] %v8124_v47  ;;  %13847 = vmatprep.subr.bf16.mxu1 %v15098_v22  ;;  %v8097_v0 = vpop.f32.mrb[167].mxu0  ;;  %v19941_v19 = vsel %vm18552_vm0, 4294967295, %v19940_v19 }
 0x8f2   : > { %v15153_v0 = vld [vmem:[%s19121_s12 + $0xf8] sm:$0xff]  }
 0x8f3   : > { %13840 = vmatmul.mubr.bf16.vlgmr.msra.gmra.mrb[40].mxu1 %v9032_v52  ;;  %v19944_v52 = vmov 0 }
 0x8f4   : > { %13843 = vmatprep.mubr.bf16.mxu1 %v9034_v39  ;;  %13848 = vmatpush3.bf16.msra.mxu1 %v15098_v22  ;;  %v18541_v22 = vld [vmem:[#allocation2 + $0x1e0] sm:$0xf0]  ;;  %v19945_v52 = vsel %vm18561_vm10, 4294967295, %v19944_v52 }
 0x8f5   : > { %13849 = vmatprep.subr.bf16.mxu1 %v15099_v44 }
 0x8f8   : > { %13850 = vmatpush3.bf16.msra.mxu1 %v15099_v44  ;;  %v9005_v46 = vld [vmem:[#allocation2 + $0x1e0] sm:$0xf] }
 0x8f9   : > { %v9035_v15 = vrot.slane %v9005_v46, 4  ;;  %13851 = vmatprep.subr.bf16.mxu1 %v15100_v26  ;;  %v19946_v46 = vmov 0 }
 0x8fb   : > { %v9036_v29 = vsel %vm19287_vm6, %v9033_v21, %v9035_v15  ;;  %v15157_v21 = vld [vmem:[%s19121_s12 + $0x118] sm:$0xff]  }
 0x8fc   : > { %13844 = vmatmul.mubr.bf16.gmra.mrb[44].mxu1 %v9036_v29 }
 0x8fd   : > { %13852 = vmatpush3.bf16.msra.mxu1 %v15100_v26  ;;  %13863 = vmatprep.mubr.bf16.mxu1 %v18284_v62  ;;  %v15105_v62 = vld [vmem:[%s19117_s8 + $0x78] sm:$0xff]  }
 0x8fe   : > { %13853 = vmatprep.subr.bf16.mxu1 %v15101_v37 }
 0x901   : > { %13854 = vmatpush3.bf16.msra.mxu1 %v15101_v37  ;;  %v19948_v37 = vld [vmem:[#allocation43_spill] sm:$0xff] }
 0x902   : > { %13855 = vmatprep.subr.bf16.mxu1 %v15102_v60  ;;  %v1074_v29 = vand.u32 7, %v19948_v37 }
 0x904   : > { %vm18594_vm9 = vcmp.ne.s32.totalorder %v1074_v29, 0 }
 0x905   : > { %13856 = vmatpush3.bf16.msra.mxu1 %v15102_v60  ;;  %v9802_v60 = vrot.slane %v18541_v22, 4 }
 0x906   : > { %13857 = vmatprep.subr.bf16.mxu1 %v15103_v56 }
 0x909   : > { %13858 = vmatpush3.bf16.msra.mxu1 %v15103_v56 }
 0x90a   : > { %13859 = vmatprep.subr.bf16.mxu1 %v15104_v11 }
 0x90d   : > { %13860 = vmatpush3.bf16.msra.mxu1 %v15104_v11  ;;  %v19949_v11 = vld [vmem:[#allocation44_spill] sm:$0xff] }
 0x90e   : > { %13861 = vmatprep.subr.bf16.mxu1 %v15105_v62 }
 0x911   : > { %13862 = vmatpush3.bf16.msra.mxu1 %v15105_v62  ;;  %v1088_v62 = vand.u32 7, %v19949_v11 }
 0x912   : > { %13871 = vmatprep.subr.bf16.mxu1 %v15106_v31 }
 0x913   : > { %vm18602_vm7 = vcmp.ne.s32.totalorder %v1088_v62, 7 }
 0x914   : > { %13864 = vmatmul.mubr.bf16.vlgmr.msra.gmra.mrb[40].mxu1 %v18293_v57  ;;  %v9330_v57 = vsel %vm19287_vm6, %v9328_v24, %v9329_v54  ;;  %v15114_v54 = vld [vmem:[%s19117_s8] sm:$0xff]  }
 0x915   : > { %13867 = vmatprep.mubr.bf16.mxu1 %v18302_v4  ;;  %13872 = vmatpush3.bf16.msra.mxu1 %v15106_v31  ;;  %v15110_v4 = vld [vmem:[%s19117_s8 + $0xa0] sm:$0xff]  }
 0x916   : > { %13873 = vmatprep.subr.bf16.mxu1 %v15107_v58  ;;  %v19950_v31 = vld [vmem:[#allocation14_spill] sm:$0xff] }
 0x919   : > { %13874 = vmatpush3.bf16.msra.mxu1 %v15107_v58  ;;  %v1095_v58 = vand.u32 7, %v19950_v31 }
 0x91a   : > { %13875 = vmatprep.subr.bf16.mxu1 %v15108_v9 }
 0x91b   : > { %vm18606_vm14 = vcmp.ne.s32.totalorder %v1095_v58, 7 }
 0x91c   : > { %13868 = vmatmul.mubr.bf16.gmra.mrb[44].mxu1 %v18311_v38  ;;  %v15112_v38 = vld [vmem:[%s19117_s8 + $0xb0] sm:$0xff]  }
 0x91d   : > { %13876 = vmatpush3.bf16.msra.mxu1 %v15108_v9  ;;  %13887 = vmatprep.mubr.bf16.mxu1 %v9330_v57  ;;  %v1081_v9 = vand.u32 7, %v19951_v7 }
 0x91e   : > { %13877 = vmatprep.subr.bf16.mxu1 %v15109_v23 }
 0x921   : > { %13878 = vmatpush3.bf16.msra.mxu1 %v15109_v23 }
 0x922   : > { %13879 = vmatprep.subr.bf16.mxu1 %v15110_v4 }
 0x925   : > { %13880 = vmatpush3.bf16.msra.mxu1 %v15110_v4 }
 0x926   : > { %13881 = vmatprep.subr.bf16.mxu1 %v15111_v12 }
 0x929   : > { %13882 = vmatpush3.bf16.msra.mxu1 %v15111_v12 }
 0x92a   : > { %13883 = vmatprep.subr.bf16.mxu1 %v15112_v38 }
 0x92d   : > { %13884 = vmatpush3.bf16.msra.mxu1 %v15112_v38 }
 0x92e   : > { %13885 = vmatprep.subr.bf16.mxu1 %v15113_v27 }
 0x931   : > { %13886 = vmatpush3.bf16.msra.mxu1 %v15113_v27 }
 0x932   : > { %13895 = vmatprep.subr.bf16.mxu1 %v15114_v54 }
 0x934   : > { %13888 = vmatmul.mubr.bf16.vlgmr.msra.gmra.mrb[40].mxu1 %v18349_v41  ;;  %v9336_v41 = vsel %vm19287_vm6, %v9333_v42, %v9335_v55  ;;  %v15121_v42 = vld [vmem:[%s19117_s8 + $0x38] sm:$0xff]   ;;  %vm18666_vm6 = vcmp.ne.s32.totalorder %v1081_v9, 7 }
 0x935   : > { %13891 = vmatprep.mubr.bf16.mxu1 %v18363_v3  ;;  %13896 = vmatpush3.bf16.msra.mxu1 %v15114_v54  ;;  %v15118_v3 = vld [vmem:[%s19117_s8 + $0x20] sm:$0xff]  }
 0x936   : > { %13897 = vmatprep.subr.bf16.mxu1 %v15115_v16 }
 0x939   : > { %13898 = vmatpush3.bf16.msra.mxu1 %v15115_v16 }
 0x93a   : > { %13899 = vmatprep.subr.bf16.mxu1 %v15116_v36 }
 0x93c   : > { %13892 = vmatmul.mubr.bf16.gmra.mrb[44].mxu1 %v9336_v41 }
 0x93d   : > { %13900 = vmatpush3.bf16.msra.mxu1 %v15116_v36  ;;  %13911 = vmatprep.mubr.bf16.mxu1 %v18371_v48  ;;  %v15122_v48 = vld [vmem:[%s19121_s12 + $0x40] sm:$0xff]  }
 0x93e   : > { %13901 = vmatprep.subr.bf16.mxu1 %v15117_v2 }
 0x941   : > { %13902 = vmatpush3.bf16.msra.mxu1 %v15117_v2 }
 0x942   : > { %13903 = vmatprep.subr.bf16.mxu1 %v15118_v3 }
 0x945   : > { %13904 = vmatpush3.bf16.msra.mxu1 %v15118_v3 }
 0x946   : > { %13905 = vmatprep.subr.bf16.mxu1 %v15119_v51 }
 0x949   : > { %13906 = vmatpush3.bf16.msra.mxu1 %v15119_v51 }
 0x94a   : > { %13907 = vmatprep.subr.bf16.mxu1 %v15120_v17 }
 0x94d   : > { %13908 = vmatpush3.bf16.msra.mxu1 %v15120_v17  ;;  %v15158_v17 = vld [vmem:[%s19121_s12 + $0x120] sm:$0xff]  }
 0x94e   : > { %13909 = vmatprep.subr.bf16.mxu1 %v15121_v42 }
 0x951   : > { %13910 = vmatpush3.bf16.msra.mxu1 %v15121_v42  ;;  %v15172_v42 = vld [vmem:[%s19121_s12 + $0x190] sm:$0xff]  }
 0x952   : > { %13919 = vmatprep.subr.bf16.mxu1 %v15122_v48 }
 0x954   : > { %13912 = vmatmul.mubr.bf16.vlgmr.msra.gmra.mrb[40].mxu1 %v18381_v34  ;;  %v15126_v34 = vld [vmem:[%s19121_s12 + $0x60] sm:$0xff]  }
 0x955   : > { %13915 = vmatprep.mubr.bf16.mxu1 %v18391_v53  ;;  %13920 = vmatpush3.bf16.msra.mxu1 %v15122_v48  ;;  %v19931_v53 = vld [vmem:[#allocation42_spill] sm:$0xff] }
 0x956   : > { %13921 = vmatprep.subr.bf16.mxu1 %v15123_v40  ;;  %v1060_v45 = vand.u32 7, %v19931_v53 }
 0x958   : > { %vm18548_vm3 = vcmp.ne.s32.totalorder %v1060_v45, 0  ;;  %vm18565_vm15 = vcmp.ne.s32.totalorder %v1060_v45, 7 }
 0x959   : > { %13922 = vmatpush3.bf16.msra.mxu1 %v15123_v40  ;;  %v19947_v46 = vsel %vm18565_vm15, 4294967295, %v19946_v46  ;;  %v15175_v40 = vld [vmem:[%s19121_s12 + $0x1a8] sm:$0xff]  }
 0x95a   : > { %13923 = vmatprep.subr.bf16.mxu1 %v15124_v61 }
 0x95c   : > { %13916 = vmatmul.mubr.bf16.gmra.mrb[44].mxu1 %v18399_v10 }
 0x95d   : > { %13924 = vmatpush3.bf16.msra.mxu1 %v15124_v61  ;;  %v15176_v61 = vld [vmem:[%s19121_s12 + $0x1b0] sm:$0xff]  }
 0x95e   : > { %13925 = vmatprep.subr.bf16.mxu1 %v15125_v28 }
 0x961   : > { %13926 = vmatpush3.bf16.msra.mxu1 %v15125_v28 }
 0x962   : > { %13927 = vmatprep.subr.bf16.mxu1 %v15126_v34 }
 0x965   : > { %13928 = vmatpush3.bf16.msra.mxu1 %v15126_v34 }
 0x966   : > { %13929 = vmatprep.subr.bf16.mxu1 %v15127_v18 }
 0x969   : > { %13930 = vmatpush3.bf16.msra.mxu1 %v15127_v18 }
 0x96a   : > { %13931 = vmatprep.subr.bf16.mxu1 %v15128_v5 }
 0x96d   : > { %13932 = vmatpush3.bf16.msra.mxu1 %v15128_v5 }
 0x96e   : > { %13933 = vmatprep.subr.bf16.mxu1 %v15129_v33 }
 0x971   : > { %13934 = vmatpush3.bf16.msra.mxu1 %v15129_v33 }
 0x972   : > { %13943 = vmatprep.subr.bf16.mxu1 %v18524_v25 }
 0xa27   : > { %v13913_v30 = vpop.f32.mrb[40].mxu1 }
 0xa28   : > { %v9612_v10 = vadd.f32 %v13913_v30, %v18531_v32  ;;  %v9564_v35 = vpop.f32.mrb[41].mxu1 }
 0xa29   : > { %v9610_v13 = vadd.f32 %v18531_v32, %v9564_v35  ;;  %v13914_v47 = vpop.f32.mrb[42].mxu1  ;;  %v15162_v35 = vld [vmem:[%s19121_s12 + $0x140] sm:$0xff]  }
 0xa2a   : > { %v9620_v14 = vmax.f32 %v9612_v10, 0.0  ;;  %v9613_v44 = vadd.f32 %v13914_v47, %v18531_v32  ;;  %v9567_v39 = vpop.f32.mrb[43].mxu1 }
 0xa2b   : > { %v9618_v26 = vmax.f32 %v9610_v13, 0.0  ;;  %v9611_v15 = vadd.f32 %v18531_v32, %v9567_v39  ;;  %v15173_v39 = vld [vmem:[%s19121_s12 + $0x198] sm:$0xff]  }
 0xa2c   : > { %v18572_v56 = vmax.f32 %v9613_v44, 0.0  ;;  %v9645_v24 = vrot.slane %v9620_v14, 1  ;;  %v9701_v23 = vrot.slane %v9620_v14, 7  ;;  %v15163_v44 = vld [vmem:[%s19121_s12 + $0x148] sm:$0xff]  }
 0xa2d   : > { %v9698_v57 = vrot.slane %v9618_v26, 7  ;;  %v9619_v4 = vmax.f32 %v9611_v15, 0.0  ;;  %v9642_v12 = vrot.slane %v9618_v26, 1 }
 0xa2e   : > { %v18578_v38 = vpack.c.bf16 %v18572_v56, %v9620_v14  ;;  %v9647_v27 = vrot.slane %v18572_v56, 1  ;;  %v9703_v54 = vrot.slane %v18572_v56, 7 }
 0xa2f   : > { %v18583_v16 = vsel %vm19952_vm2, 0.0, %v9698_v57  ;;  %v18585_v50 = vpack.c.bf16 %v9619_v4, %v9618_v26  ;;  %v9643_v36 = vrot.slane %v9619_v4, 1  ;;  %v9699_v55 = vrot.slane %v9619_v4, 7  ;;  %v13917_v2 = vpop.f32.mrb[44].mxu1  ;;  %vm19964_vm2 = vmmov %vm19963_vm1 }
 0xa30   : > { %v18588_v41 = vsel %vm19953_vm4, %v9645_v24, %v9647_v27  ;;  %v18591_v3 = vsel %vm19954_vm8, %v9701_v23, %v9703_v54  ;;  %v9616_v51 = vadd.f32 %v13917_v2, %v18531_v32  ;;  %v9580_v48 = vpop.f32.mrb[45].mxu1  ;;  %v9738_v28 = vsel %vm18537_vm12, %v18583_v16, 0.0  ;;  %vm19965_vm4 = vmmov %vm19954_vm8 }
 0xa31   : > { %v9741_v34 = vsel %vm18544_vm11, %v18591_v3, 0.0  ;;  %9630 = vst [vmem:[#allocation2 + $0x1e8] sm:$0xff] %v18585_v50  ;;  %v18618_v18 = vsel %vm19963_vm1, %v9642_v12, %v9643_v36  ;;  %v18621_v5 = vsel %vm19964_vm2, %v9643_v36, %v9645_v24  ;;  %v13918_v33 = vpop.f32.mrb[46].mxu1  ;;  %v18630_v53 = vsel %vm19965_vm4, %v9698_v57, %v9699_v55  ;;  %vm19966_vm8 = vmmov %vm19965_vm4 }
 0xa32   : > { %v9682_v43 = vsel %vm18552_vm0, %v18618_v18, 0.0  ;;  %v9683_v49 = vsel %vm18561_vm10, %v18621_v5, 0.0  ;;  %v18633_v45 = vsel %vm19966_vm8, %v9699_v55, %v9701_v23  ;;  %vm18635_vm1 = vcmp.ne.s32.totalorder %v1095_v58, 0  ;;  %v9583_v59 = vpop.f32.mrb[47].mxu1 }
 0xa33   : > { %v18639_v6 = vpack.c.bf16 %v9683_v49, %v9682_v43  ;;  %v9739_v63 = vsel %vm18557_vm5, %v18630_v53, 0.0  ;;  %v9740_v30 = vsel %vm18548_vm3, %v18633_v45, 0.0  ;;  %v9624_v10 = vmax.f32 %v9616_v51, 0.0 }
 0xa34   : > { %vm18647_vm2 = vcmp.ne.s32.totalorder %v1081_v9, 0  ;;  %v18651_v22 = vpack.c.bf16 %v9739_v63, %v9738_v28  ;;  %v18653_v13 = vpack.c.bf16 %v9741_v34, %v9740_v30  ;;  %v9614_v47 = vadd.f32 %v18531_v32, %v9580_v48 }
 0xa35   : > { %v9617_v14 = vadd.f32 %v13918_v33, %v18531_v32  ;;  %vm18657_vm4 = vcmp.ne.s32.totalorder %v1088_v62, 0  ;;  %9694 = vst [vmem:[#allocation2 + $0x210] sm:$0xff] %v18639_v6  ;;  %vm18662_vm8 = vcmp.ne.s32.totalorder %v1074_v29, 7  ;;  %v9615_v15 = vadd.f32 %v18531_v32, %v9583_v59 }
 0xa36   : > { %v9803_v37 = vrot.slane %v18585_v50, 4  ;;  %v9684_v56 = vsel %vm18565_vm15, %v18588_v41, 0.0  ;;  %9750 = vst [vmem:[#allocation2 + $0x238] sm:$0xff] %v18651_v22  ;;  %v9653_v11 = vrot.slane %v9624_v10, 1  ;;  %v9622_v62 = vmax.f32 %v9614_v47, 0.0 }
 0xa37   : > { %v9625_v29 = vmax.f32 %v9617_v14, 0.0  ;;  %v9709_v31 = vrot.slane %v9624_v10, 7  ;;  %v9623_v58 = vmax.f32 %v9615_v15, 0.0  ;;  %vm19977_vm10 = vcmask 1043456   ;;  %v15131_v14 = vld [vmem:[%s19121_s12 + $0x8] sm:$0xff]  }
 0xa38   : > { %v9804_v7 = vsel %vm19977_vm10, %v9802_v60, %v9803_v37  ;;  %v18678_v9 = vrot.slane %v18578_v38, 4  ;;  %v9649_v24 = vrot.slane %v9622_v62, 1  ;;  %v9705_v32 = vrot.slane %v9622_v62, 7 }
 0xa39   : > { %v18680_v23 = vpack.c.bf16 %v9625_v29, %v9624_v10  ;;  %v9655_v57 = vrot.slane %v9625_v29, 1  ;;  %13935 = vmatprep.mubr.bf16.mxu1 %v9804_v7  ;;  %v9711_v4 = vrot.slane %v9625_v29, 7  ;;  %v18682_v12 = vpack.c.bf16 %v9623_v58, %v9622_v62 }
 0xa3a   : > { %v9651_v36 = vrot.slane %v9623_v58, 1  ;;  %v9707_v55 = vrot.slane %v9623_v58, 7  ;;  %vm19978_vm15 = vcmask 1046528   ;;  %vm19979_vm0 = vcmask 1040384  }
 0xa3b   : > { %v18685_v2 = vsel %vm19978_vm15, %v9647_v27, %v9649_v24  ;;  %v18688_v51 = vsel %vm19979_vm0, %v9703_v54, %v9705_v32  ;;  %9633 = vst [vmem:[#allocation2 + $0x200] sm:$0xff] %v18680_v23  ;;  %vm19980_vm10 = vmmov %vm19978_vm15 }
 0xa3c   : > { %v18692_v60 = vsel %vm19980_vm10, %v9653_v11, %v9655_v57  ;;  %vm19981_vm11 = vmmov %vm19980_vm10  ;;  %v9685_v28 = vsel %vm18598_vm13, %v18685_v2, 0.0  ;;  %v9742_v27 = vsel %vm18594_vm9, %v18688_v51, 0.0 }
 0xa3d   : > { %v18695_v48 = vsel %vm19981_vm11, %v9655_v57, 0.0  ;;  %v9688_v54 = vsel %vm18602_vm7, %v18692_v60, 0.0  ;;  %v18709_v33 = vpack.c.bf16 %v9685_v28, %v9684_v56  ;;  %vm19982_vm11 = vmmov %vm19979_vm0  ;;  %v15132_v57 = vld [vmem:[%s19121_s12 + $0x10] sm:$0xff]  }
 0xa3e   : > { %v9689_v34 = vsel %vm18606_vm14, %v18695_v48, 0.0  ;;  %v18714_v49 = vsel %vm19982_vm11, %v9709_v31, %v9711_v4  ;;  %vm19983_vm0 = vmmov %vm19980_vm10  ;;  %v15227_v26 = vpack.c.bf16 %v18695_v48, %v18692_v60  ;;  %v15177_v60 = vld [vmem:[%s19121_s12 + $0x1b8] sm:$0xff]   ;;  %v15178_v48 = vld [vmem:[%s19121_s12 + $0x1c0] sm:$0xff]  }
 0xa3f   : > { %v18711_v43 = vpack.c.bf16 %v9689_v34, %v9688_v54  ;;  %v18717_v59 = vsel %vm19983_vm0, %v9649_v24, %v9651_v36  ;;  %v9745_v63 = vsel %vm18635_vm1, %v18714_v49, 0.0  ;;  %vm19984_vm15 = vmmov %vm19983_vm0  ;;  %vm19987_vm0 = vcmask 1043456   ;;  %v15134_v34 = vld [vmem:[%s19121_s12 + $0x20] sm:$0xff]  }
 0xa40   : > { %v18723_v30 = vsel %vm19984_vm15, %v9651_v36, %v9653_v11  ;;  %v9686_v10 = vsel %vm18662_vm8, %v18717_v59, 0.0  ;;  %vm19985_vm10 = vmmov %vm19982_vm11  ;;  %v9806_v62 = vsel %vm19987_vm0, %v9803_v37, %v18678_v9  ;;  %v18752_v24 = vrot.slane %v18682_v12, 4 }
 0xa41   : > { %v18729_v47 = vsel %vm19985_vm10, %v9705_v32, %v9707_v55  ;;  %9697 = vst [vmem:[#allocation2 + $0x228] sm:$0xff] %v18711_v43  ;;  %v9687_v15 = vsel %vm18666_vm6, %v18723_v30, 0.0  ;;  %vm19986_vm11 = vmmov %vm19985_vm10  ;;  %13936 = vmatmul.mubr.bf16.vlgmr.msra.gmra.mrb[32].mxu1 %v9806_v62  ;;  %v9754_v32 = vld [vmem:[#allocation2 + $0x230] sm:$0xf0]  ;;  %v15139_v62 = vld [vmem:[%s19121_s12 + $0x88] sm:$0xff]  }
 0xa42   : > { %v18739_v56 = vsel %vm19986_vm11, %v9707_v55, %v9709_v31  ;;  %v9743_v11 = vsel %vm18647_vm2, %v18729_v47, 0.0  ;;  %v18746_v29 = vpack.c.bf16 %v9687_v15, %v9686_v10  ;;  %13944 = vmatpush3.bf16.msra.mxu1 %v18524_v25  ;;  %vm19988_vm15 = vmmov %vm19987_vm0  ;;  %v9779_v4 = vld [vmem:[#allocation2 + $0x200] sm:$0xf]  ;;  %v9933_v55 = vrot.slane %v9754_v32, 4  ;;  %v15137_v10 = vld [vmem:[%s19121_s12 + $0x38] sm:$0xff]  }
 0xa43   : > { %v9744_v58 = vsel %vm18657_vm4, %v18739_v56, 0.0  ;;  %v9748_v7 = vpack.c.bf16 %v9743_v11, %v9742_v27  ;;  %13945 = vmatprep.subr.bf16.mxu1 %v15131_v14  ;;  %v18760_v37 = vsel %vm19988_vm15, %v18678_v9, %v18752_v24  ;;  %v9809_v36 = vrot.slane %v9779_v4, 4  ;;  %vm19989_vm10 = vmmov %vm19987_vm0  ;;  %v15133_v27 = vld [vmem:[%s19121_s12 + $0x18] sm:$0xff]  }
 0xa44   : > { %v18754_v31 = vpack.c.bf16 %v9745_v63, %v9744_v58  ;;  %13939 = vmatprep.mubr.bf16.mxu1 %v18760_v37  ;;  %v9934_v25 = vrot.slane %v18651_v22, 4  ;;  %vm19990_vm11 = vmmov %vm19987_vm0  ;;  %v15135_v22 = vld [vmem:[%s19121_s12 + $0x28] sm:$0xff]   ;;  %v15136_v63 = vld [vmem:[%s19121_s12 + $0x30] sm:$0xff]   ;;  %v18790_v15 = vrot.slane %v18653_v13, 4 }
 0xa45   : > { %v9810_v28 = vsel %vm19989_vm10, %v18752_v24, %v9809_v36  ;;  %v18792_v11 = vrot.slane %v9748_v7, 4  ;;  %vm19991_vm15 = vmmov %vm19987_vm0  ;;  %v10059_v13 = vld [vmem:[#allocation2 + $0x208] sm:$0xf0]  ;;  %v15140_v7 = vld [vmem:[%s19121_s12 + $0x90] sm:$0xff]  }
 0xa46   : > { %9753 = vst [vmem:[#allocation2 + $0x250] sm:$0xff] %v18754_v31  ;;  %13946 = vmatpush3.bf16.msra.mxu1 %v15131_v14  ;;  %v9935_v54 = vsel %vm19990_vm11, %v9933_v55, %v9934_v25  ;;  %v15138_v14 = vld [vmem:[%s19121_s12 + $0x80] sm:$0xff]   ;;  %v9937_v58 = vsel %vm19987_vm0, %v9934_v25, %v18790_v15  ;;  %v10086_v36 = vrot.slane %v10059_v13, 4  ;;  %v10087_v55 = vrot.slane %v18639_v6, 4  ;;  %v15141_v25 = vld [vmem:[%s19121_s12 + $0x98] sm:$0xff]   ;;  %vm19992_vm10 = vmmov %vm19987_vm0 }
 0xa47   : > { %13947 = vmatprep.subr.bf16.mxu1 %v15132_v57  ;;  %v18802_v32 = vsel %vm19991_vm15, %v18790_v15, %v18792_v11  ;;  %vm19993_vm11 = vmmov %vm19987_vm0  ;;  %v15143_v6 = vld [vmem:[%s19121_s12 + $0xa8] sm:$0xff]  }
 0xa48   : > { %vm19994_vm15 = vmmov %vm19987_vm0 }
 0xa49   : > { %13940 = vmatmul.mubr.bf16.gmra.mrb[36].mxu1 %v9810_v28 }
 0xa4a   : > { %13948 = vmatpush3.bf16.msra.mxu1 %v15132_v57  ;;  %13959 = vmatprep.mubr.bf16.mxu1 %v9935_v54  ;;  %v15142_v54 = vld [vmem:[%s19121_s12 + $0xa0] sm:$0xff]  }
 0xa4b   : > { %13949 = vmatprep.subr.bf16.mxu1 %v15133_v27 }
 0xa4d   : > { %v9758_v57 = vld [vmem:[#allocation2 + $0x250] sm:$0xf] }
 0xa4e   : > { %13950 = vmatpush3.bf16.msra.mxu1 %v15133_v27  ;;  %v9940_v4 = vrot.slane %v9758_v57, 4  ;;  %v10088_v27 = vsel %vm19993_vm11, %v10086_v36, %v10087_v55  ;;  %vm15205_vm11 = vmpackc.low %vm18557_vm5, %vm18537_vm12  ;;  %v15206_v36 = vpack.c.bf16 %v18630_v53, %v18583_v16  ;;  %v15154_v16 = vld [vmem:[%s19121_s12 + $0x100] sm:$0xff]   ;;  %v15155_v53 = vld [vmem:[%s19121_s12 + $0x108] sm:$0xff]   ;;  %vm19996_vm12 = vnez %v19937_v20 }
 0xa4f   : > { %13951 = vmatprep.subr.bf16.mxu1 %v15134_v34  ;;  %vm15208_vm5 = vmpackc.low %vm19996_vm12, %vm18548_vm3  ;;  %v15156_v20 = vld [vmem:[%s19121_s12 + $0x110] sm:$0xff]  }
 0xa50   : > { %v9941_v28 = vsel %vm19992_vm10, %v18792_v11, %v9940_v4  ;;  %vm19995_vm10 = vmmov %vm19987_vm0 }
 0xa51   : > { %vm15214_vm3 = vmpackc.low %vm18635_vm1, %vm18657_vm4  ;;  %vm19998_vm1 = vnez %v19945_v52  ;;  %v15167_v52 = vld [vmem:[%s19121_s12 + $0x168] sm:$0xff]   ;;  %vm19999_vm4 = vnez %v19947_v46  ;;  %v10637_v46 = vld [vmem:[#allocation2 + $0x238] sm:$0xf0] }
 0xa52   : > { %13952 = vmatpush3.bf16.msra.mxu1 %v15134_v34  ;;  %v15144_v34 = vld [vmem:[%s19121_s12 + $0xb0] sm:$0xff]  }
 0xa53   : > { %13953 = vmatprep.subr.bf16.mxu1 %v15135_v22 }
 0xa56   : > { %13954 = vmatpush3.bf16.msra.mxu1 %v15135_v22  ;;  %v15145_v22 = vld [vmem:[%s19121_s12 + $0xb8] sm:$0xff]  }
 0xa57   : > { %13955 = vmatprep.subr.bf16.mxu1 %v15136_v63 }
 0xa5a   : > { %13956 = vmatpush3.bf16.msra.mxu1 %v15136_v63  ;;  %v15146_v63 = vld [vmem:[%s19121_s12 + $0xc0] sm:$0xff]  }
 0xa5b   : > { %13957 = vmatprep.subr.bf16.mxu1 %v15137_v10 }
 0xa5e   : > { %13958 = vmatpush3.bf16.msra.mxu1 %v15137_v10  ;;  %v18831_v10 = vrot.slane %v18709_v33, 4  ;;  %v10063_v33 = vld [vmem:[#allocation2 + $0x228] sm:$0xf] }
 0xa5f   : > { %13967 = vmatprep.subr.bf16.mxu1 %v15138_v14  ;;  %v10093_v13 = vrot.slane %v10063_v33, 4  ;;  %v15221_v33 = vpack.c.bf16 %v18685_v2, %v18588_v41  ;;  %v10664_v41 = vrot.slane %v10637_v46, 4 }
 0xa61   : > { %13960 = vmatmul.mubr.bf16.vlgmr.msra.gmra.mrb[32].mxu1 %v9937_v58  ;;  %v10090_v58 = vsel %vm19987_vm0, %v10087_v55, %v18831_v10  ;;  %v15150_v55 = vld [vmem:[%s19121_s12 + $0xe0] sm:$0xff]   ;;  %vm15211_vm0 = vmpackc.low %vm18647_vm2, %vm18594_vm9  ;;  %vm19997_vm9 = vnez %v19941_v19  ;;  %v15195_v19 = vld [vmem:[%s19123_s14 + $0x8] sm:$0xff]  }
 0xa62   : > { %13963 = vmatprep.mubr.bf16.mxu1 %v18802_v32  ;;  %13968 = vmatpush3.bf16.msra.mxu1 %v15138_v14  ;;  %v18834_v14 = vrot.slane %v18746_v29, 4  ;;  %v15148_v29 = vld [vmem:[%s19121_s12 + $0xd0] sm:$0xff]   ;;  %vm15217_vm2 = vmpackc.low %vm19998_vm1, %vm19997_vm9  ;;  %vm15307_vm9 = vmmov 0  }
 0xa63   : > { %13969 = vmatprep.subr.bf16.mxu1 %v15139_v62 }
 0xa64   : > { %v18844_v57 = vsel %vm19994_vm15, %v18831_v10, %v18834_v14  ;;  %v10094_v4 = vsel %vm19995_vm10, %v18834_v14, %v10093_v13  ;;  %vm15220_vm15 = vmpackc.low %vm18598_vm13, %vm19999_vm4  ;;  %vm20000_vm13 = vcmask 1043456  }
 0xa65   : > { %vm15223_vm10 = vmpackc.low %vm18666_vm6, %vm18662_vm8  ;;  %v10666_v2 = vsel %vm20000_vm13, %v10664_v41, %v18790_v15  ;;  %v15179_v15 = vld [vmem:[%s19121_s12 + $0x1c8] sm:$0xff]  }
 0xa66   : > { %13970 = vmatpush3.bf16.msra.mxu1 %v15139_v62  ;;  %v15147_v62 = vld [vmem:[%s19121_s12 + $0xc8] sm:$0xff]   ;;  %vm15226_vm6 = vmpackc.low %vm18606_vm14, %vm18602_vm7 }
 0xa67   : > { %13971 = vmatprep.subr.bf16.mxu1 %v15140_v7  ;;  %vm20001_vm7 = vmmov %vm20000_vm13 }
 0xa68   : > { %vm20002_vm14 = vmmov %vm20001_vm7 }
 0xa69   : > { %13964 = vmatmul.mubr.bf16.gmra.mrb[36].mxu1 %v9941_v28  ;;  %v15209_v28 = vpack.c.bf16 %v18591_v3, %v18633_v45  ;;  %v15215_v3 = vpack.c.bf16 %v18714_v49, %v18739_v56  ;;  %v15159_v45 = vld [vmem:[%s19121_s12 + $0x128] sm:$0xff]   ;;  %v15165_v49 = vld [vmem:[%s19121_s12 + $0x158] sm:$0xff]   ;;  %v15306_v56 = vmov 0.0   ;;  %vm20003_vm8 = vmmov %vm20001_vm7 }
 0xa6a   : > { %13972 = vmatpush3.bf16.msra.mxu1 %v15140_v7  ;;  %13983 = vmatprep.mubr.bf16.mxu1 %v10088_v27  ;;  %v15149_v7 = vld [vmem:[%s19121_s12 + $0xd8] sm:$0xff]   ;;  %v15212_v27 = vpack.c.bf16 %v18729_v47, %v18688_v51  ;;  %v15164_v51 = vld [vmem:[%s19121_s12 + $0x150] sm:$0xff]   ;;  %v15166_v47 = vld [vmem:[%s19121_s12 + $0x160] sm:$0xff]  }
 0xa6b   : > { %13973 = vmatprep.subr.bf16.mxu1 %v15141_v25  ;;  %14135 = vmatprep.subr.bf16.mxu0 %v15306_v56  ;;  %vm20005_vm12 = vmmov %vm20001_vm7 }
 0xa6c   : > { %14151 = vmatprep.mubr.msk.bf16.mxu0 %vm15307_vm9, %v15306_v56 }
 0xa6e   : > { %13974 = vmatpush3.bf16.msra.mxu1 %v15141_v25  ;;  %v15151_v25 = vld [vmem:[%s19121_s12 + $0xe8] sm:$0xff]  }
 0xa6f   : > { %13975 = vmatprep.subr.bf16.mxu1 %v15142_v54 }
 0xa72   : > { %13976 = vmatpush3.bf16.msra.mxu1 %v15142_v54  ;;  %v15197_v54 = vld [vmem:[%s19123_s14 + $0x18] sm:$0xff]  }
 0xa73   : > { %13977 = vmatprep.subr.bf16.mxu1 %v15143_v6 }
 0xa76   : > { %13978 = vmatpush3.bf16.msra.mxu1 %v15143_v6  ;;  %v15169_v6 = vld [vmem:[%s19121_s12 + $0x178] sm:$0xff]  }
 0xa77   : > { %13979 = vmatprep.subr.bf16.mxu1 %v15144_v34 }
 0xa7a   : > { %13980 = vmatpush3.bf16.msra.mxu1 %v15144_v34  ;;  %v15198_v34 = vld [vmem:[%s19123_s14 + $0x20] sm:$0xff]  }
 0xa7b   : > { %13981 = vmatprep.subr.bf16.mxu1 %v15145_v22 }
 0xa7e   : > { %13982 = vmatpush3.bf16.msra.mxu1 %v15145_v22  ;;  %v15170_v22 = vld [vmem:[%s19121_s12 + $0x180] sm:$0xff]  }
 0xa7f   : > { %13991 = vmatprep.subr.bf16.mxu1 %v15146_v63 }
 0xa81   : > { %13984 = vmatmul.mubr.bf16.vlgmr.msra.gmra.mrb[32].mxu1 %v10090_v58  ;;  %v15200_v58 = vld [vmem:[%s19123_s14 + $0x30] sm:$0xff]  }
 0xa82   : > { %13987 = vmatprep.mubr.bf16.mxu1 %v18844_v57  ;;  %13992 = vmatpush3.bf16.msra.mxu1 %v15146_v63  ;;  %v15199_v63 = vld [vmem:[%s19123_s14 + $0x28] sm:$0xff]  }
 0xa83   : > { %13993 = vmatprep.subr.bf16.mxu1 %v15147_v62 }
 0xa86   : > { %13994 = vmatpush3.bf16.msra.mxu1 %v15147_v62  ;;  %v15171_v62 = vld [vmem:[%s19121_s12 + $0x188] sm:$0xff]  }
 0xa87   : > { %13995 = vmatprep.subr.bf16.mxu1 %v15148_v29 }
 0xa89   : > { %13988 = vmatmul.mubr.bf16.gmra.mrb[36].mxu1 %v10094_v4  ;;  %v10798_v4 = vld [vmem:[#allocation2 + $0x1e8] sm:$0xf0] }
 0xa8a   : > { %13996 = vmatpush3.bf16.msra.mxu1 %v15148_v29  ;;  %15207 = vmatprep.mubr.msk.bf16.mxu1 %vm15205_vm11, %v15206_v36  ;;  %v15224_v29 = vpack.c.bf16 %v18723_v30, %v18717_v59  ;;  %v15174_v59 = vld [vmem:[%s19121_s12 + $0x1a0] sm:$0xff]   ;;  %v10669_v30 = vrot.slane %v18754_v31, 4  ;;  %v15180_v31 = vld [vmem:[%s19121_s12 + $0x1d0] sm:$0xff]   ;;  %vm20004_vm11 = vmmov %vm20001_vm7 }
 0xa8b   : > { %13997 = vmatprep.subr.bf16.mxu1 %v15149_v7 }
 0xa8c   : > { %v10670_v13 = vsel %vm20001_vm7, %v18792_v11, %v10669_v30 }
 0xa8e   : > { %13998 = vmatpush3.bf16.msra.mxu1 %v15149_v7  ;;  %v10641_v7 = vld [vmem:[#allocation2 + $0x258] sm:$0xf] }
 0xa8f   : > { %13999 = vmatprep.subr.bf16.mxu1 %v15150_v55  ;;  %v10671_v36 = vrot.slane %v10641_v7, 4 }
 0xa92   : > { %14000 = vmatpush3.bf16.msra.mxu1 %v15150_v55  ;;  %v10825_v55 = vrot.slane %v10798_v4, 4 }
 0xa93   : > { %14001 = vmatprep.subr.bf16.mxu1 %v15151_v25 }
 0xa94   : > { %v10827_v11 = vsel %vm20003_vm8, %v10825_v55, %v18678_v9  ;;  %v15185_v9 = vld [vmem:[%s19121_s12 + $0x1f8] sm:$0xff]  }
 0xa96   : > { %14002 = vmatpush3.bf16.msra.mxu1 %v15151_v25  ;;  %v10672_v25 = vsel %vm20002_vm14, %v10669_v30, %v10671_v36 }
 0xa97   : > { %14003 = vmatprep.subr.bf16.mxu1 %v15152_v1 }
 0xa9a   : > { %14004 = vmatpush3.bf16.msra.mxu1 %v15152_v1  ;;  %v15182_v1 = vld [vmem:[%s19121_s12 + $0x1e0] sm:$0xff]  }
 0xa9b   : > { %14005 = vmatprep.subr.bf16.mxu1 %v15153_v0 }
 0xa9e   : > { %14006 = vmatpush3.bf16.msra.mxu1 %v15153_v0  ;;  %v15183_v0 = vld [vmem:[%s19121_s12 + $0x1e8] sm:$0xff]  }
 0xa9f   : > { %14015 = vmatprep.subr.bf16.mxu1 %v15154_v16 }
 0xaa1   : > { %15210 = vmatmul.mubr.msk.bf16.vlgmr.msra.gmra.mrb[32].mxu1 %vm15208_vm5, %v15209_v28  ;;  %v10830_v28 = vrot.slane %v18680_v23, 4  ;;  %vm20006_vm5 = vmmov %vm20001_vm7 }
 0xaa2   : > { %15213 = vmatprep.mubr.msk.bf16.mxu1 %vm15211_vm0, %v15212_v27  ;;  %14016 = vmatpush3.bf16.msra.mxu1 %v15154_v16  ;;  %v15184_v16 = vld [vmem:[%s19121_s12 + $0x1f0] sm:$0xff]   ;;  %v15187_v27 = vld [vmem:[%s19121_s12 + $0x208] sm:$0xff]   ;;  %vm20007_vm0 = vmmov %vm20006_vm5 }
 0xaa3   : > { %14017 = vmatprep.subr.bf16.mxu1 %v15155_v53 }
 0xaa6   : > { %14018 = vmatpush3.bf16.msra.mxu1 %v15155_v53  ;;  %v15186_v53 = vld [vmem:[%s19121_s12 + $0x200] sm:$0xff]  }
 0xaa7   : > { %14019 = vmatprep.subr.bf16.mxu1 %v15156_v20 }
 0xaa9   : > { %15216 = vmatmul.mubr.msk.bf16.gmra.mrb[36].mxu1 %vm15214_vm3, %v15215_v3  ;;  %v10959_v3 = vld [vmem:[#allocation2 + $0x210] sm:$0xf0]  ;;  %vm20008_vm3 = vmmov %vm20007_vm0 }
 0xaaa   : > { %14020 = vmatpush3.bf16.msra.mxu1 %v15156_v20  ;;  %14031 = vmatprep.mubr.bf16.mxu1 %v18585_v50  ;;  %v15161_v50 = vld [vmem:[%s19121_s12 + $0x138] sm:$0xff]   ;;  %v10831_v20 = vsel %vm20004_vm11, %v18752_v24, %v10830_v28 }
 0xaab   : > { %14021 = vmatprep.subr.bf16.mxu1 %v15157_v21 }
 0xaae   : > { %14022 = vmatpush3.bf16.msra.mxu1 %v15157_v21  ;;  %v10802_v21 = vld [vmem:[#allocation2 + $0x208] sm:$0xf] }
 0xaaf   : > { %14023 = vmatprep.subr.bf16.mxu1 %v15158_v17 }
 0xab2   : > { %14024 = vmatpush3.bf16.msra.mxu1 %v15158_v17  ;;  %v10832_v17 = vrot.slane %v10802_v21, 4 }
 0xab3   : > { %14025 = vmatprep.subr.bf16.mxu1 %v15159_v45 }
 0xab6   : > { %14026 = vmatpush3.bf16.msra.mxu1 %v15159_v45  ;;  %v10986_v45 = vrot.slane %v10959_v3, 4 }
 0xab7   : > { %14027 = vmatprep.subr.bf16.mxu1 %v15160_v8 }
 0xab8   : > { %v10988_v24 = vsel %vm20006_vm5, %v10986_v45, %v18831_v10  ;;  %v15193_v10 = vld [vmem:[%s19121_s12 + $0x238] sm:$0xff]  }
 0xaba   : > { %14028 = vmatpush3.bf16.msra.mxu1 %v15160_v8  ;;  %v10833_v8 = vsel %vm20005_vm12, %v10830_v28, %v10832_v17  ;;  %v12055_v17 = vld [vmem:[%s19124_s15] ss:$0 sm:$0xff] }
 0xabb   : > { %14029 = vmatprep.subr.bf16.mxu1 %v15161_v50 }
 0xabe   : > { %14030 = vmatpush3.bf16.msra.mxu1 %v15161_v50  ;;  %v15190_v50 = vld [vmem:[%s19121_s12 + $0x220] sm:$0xff]  }
 0xabf   : > { %14039 = vmatprep.subr.bf16.mxu1 %v15162_v35 }
 0xac1   : > { %14032 = vmatmul.mubr.bf16.vlgmr.msra.gmra.mrb[32].mxu1 %v18578_v38  ;;  %v15194_v38 = vld [vmem:[%s19123_s14] sm:$0xff]  }
 0xac2   : > { %14035 = vmatprep.mubr.bf16.mxu1 %v18682_v12  ;;  %14040 = vmatpush3.bf16.msra.mxu1 %v15162_v35  ;;  %v15218_v12 = vpack.c.bf16 %v18621_v5, %v18618_v18  ;;  %v15196_v18 = vld [vmem:[%s19123_s14 + $0x10] sm:$0xff]   ;;  %v15191_v35 = vld [vmem:[%s19121_s12 + $0x228] sm:$0xff]  }
 0xac3   : > { %14041 = vmatprep.subr.bf16.mxu1 %v15163_v44  ;;  %14136 = vmatpush3.bf16.msra.mxu0 %v15194_v38  ;;  %v15168_v5 = vld [vmem:[%s19121_s12 + $0x170] sm:$0xff]  }
 0xac4   : > { %14137 = vmatprep.subr.bf16.mxu0 %v15306_v56  ;;  %v10963_v38 = vld [vmem:[#allocation2 + $0x230] sm:$0xf] }
 0xac6   : > { %14042 = vmatpush3.bf16.msra.mxu1 %v15163_v44  ;;  %v15192_v44 = vld [vmem:[%s19121_s12 + $0x230] sm:$0xff]  }
 0xac7   : > { %14043 = vmatprep.subr.bf16.mxu1 %v15164_v51  ;;  %14138 = vmatpush3.bf16.msra.mxu0 %v15195_v19  ;;  %v15201_v19 = vld [vmem:[%s19123_s14 + $0x38] sm:$0xff]  }
 0xac8   : > { %14139 = vmatprep.subr.bf16.mxu0 %v15306_v56 }
 0xac9   : > { %14036 = vmatmul.mubr.bf16.gmra.mrb[36].mxu1 %v18680_v23  ;;  %v15188_v23 = vld [vmem:[%s19121_s12 + $0x210] sm:$0xff]  }
 0xaca   : > { %14044 = vmatpush3.bf16.msra.mxu1 %v15164_v51  ;;  %15219 = vmatprep.mubr.msk.bf16.mxu1 %vm15217_vm2, %v15218_v12  ;;  %v10991_v51 = vrot.slane %v18711_v43, 4  ;;  %v10993_v12 = vrot.slane %v10963_v38, 4  ;;  %v11644_v43 = vld [vmem:[%s19120_s11] ss:$0 sm:$0xff] }
 0xacb   : > { %14045 = vmatprep.subr.bf16.mxu1 %v15165_v49  ;;  %14140 = vmatpush3.bf16.msra.mxu0 %v15196_v18 }
 0xacc   : > { %14141 = vmatprep.subr.bf16.mxu0 %v15306_v56 }
 0xace   : > { %14046 = vmatpush3.bf16.msra.mxu1 %v15165_v49  ;;  %v10992_v49 = vsel %vm20007_vm0, %v18834_v14, %v10991_v51  ;;  %v12054_v14 = vld [vmem:[%s19122_s13] ss:$0 sm:$0xff] }
 0xacf   : > { %14047 = vmatprep.subr.bf16.mxu1 %v15166_v47  ;;  %14142 = vmatpush3.bf16.msra.mxu0 %v15197_v54 }
 0xad0   : > { %14143 = vmatprep.subr.bf16.mxu0 %v15306_v56 }
 0xad2   : > { %14048 = vmatpush3.bf16.msra.mxu1 %v15166_v47  ;;  %v10994_v47 = vsel %vm20008_vm3, %v10991_v51, %v10993_v12 }
 0xad3   : > { %14049 = vmatprep.subr.bf16.mxu1 %v15167_v52  ;;  %14144 = vmatpush3.bf16.msra.mxu0 %v15198_v34 }
 0xad4   : > { %14145 = vmatprep.subr.bf16.mxu0 %v15306_v56 }
 0xad6   : > { %14050 = vmatpush3.bf16.msra.mxu1 %v15167_v52 }
 0xad7   : > { %14051 = vmatprep.subr.bf16.mxu1 %v15168_v5  ;;  %14146 = vmatpush3.bf16.msra.mxu0 %v15199_v63 }
 0xad8   : > { %14147 = vmatprep.subr.bf16.mxu0 %v15306_v56 }
 0xada   : > { %14052 = vmatpush3.bf16.msra.mxu1 %v15168_v5 }
 0xadb   : > { %14053 = vmatprep.subr.bf16.mxu1 %v15169_v6  ;;  %14148 = vmatpush3.bf16.msra.mxu0 %v15200_v58 }
 0xadc   : > { %14149 = vmatprep.subr.bf16.mxu0 %v15306_v56 }
 0xade   : > { %14054 = vmatpush3.bf16.msra.mxu1 %v15169_v6 }
 0xadf   : > { %14063 = vmatprep.subr.bf16.mxu1 %v15170_v22  ;;  %14150 = vmatpush3.bf16.msra.mxu0 %v15201_v19 }
 0xae1   : > { %15222 = vmatmul.mubr.msk.bf16.vlgmr.msra.gmra.mrb[32].mxu1 %vm15220_vm15, %v15221_v33 }
 0xae2   : > { %15225 = vmatprep.mubr.msk.bf16.mxu1 %vm15223_vm10, %v15224_v29  ;;  %14064 = vmatpush3.bf16.msra.mxu1 %v15170_v22 }
 0xae3   : > { %14065 = vmatprep.subr.bf16.mxu1 %v15171_v62 }
 0xae6   : > { %14066 = vmatpush3.bf16.msra.mxu1 %v15171_v62 }
 0xae7   : > { %14067 = vmatprep.subr.bf16.mxu1 %v15172_v42 }
 0xae9   : > { %15228 = vmatmul.mubr.msk.bf16.gmra.mrb[36].mxu1 %vm15226_vm6, %v15227_v26 }
 0xaea   : > { %14068 = vmatpush3.bf16.msra.mxu1 %v15172_v42  ;;  %14079 = vmatprep.mubr.bf16.mxu1 %v10666_v2 }
 0xaeb   : > { %14069 = vmatprep.subr.bf16.mxu1 %v15173_v39 }
 0xaee   : > { %14070 = vmatpush3.bf16.msra.mxu1 %v15173_v39 }
 0xaef   : > { %14071 = vmatprep.subr.bf16.mxu1 %v15174_v59 }
 0xaf2   : > { %14072 = vmatpush3.bf16.msra.mxu1 %v15174_v59 }
 0xaf3   : > { %14073 = vmatprep.subr.bf16.mxu1 %v15175_v40 }
 0xaf6   : > { %14074 = vmatpush3.bf16.msra.mxu1 %v15175_v40 }
 0xaf7   : > { %14075 = vmatprep.subr.bf16.mxu1 %v15176_v61 }
 0xafa   : > { %14076 = vmatpush3.bf16.msra.mxu1 %v15176_v61 }
 0xafb   : > { %14077 = vmatprep.subr.bf16.mxu1 %v15177_v60 }
 0xafe   : > { %14078 = vmatpush3.bf16.msra.mxu1 %v15177_v60 }
 0xaff   : > { %14087 = vmatprep.subr.bf16.mxu1 %v15178_v48 }
 0xb01   : > { %14080 = vmatmul.mubr.bf16.vlgmr.msra.gmra.mrb[32].mxu1 %v18802_v32  ;;  %v15181_v32 = vld [vmem:[%s19121_s12 + $0x1d8] sm:$0xff]  }
 0xb02   : > { %14083 = vmatprep.mubr.bf16.mxu1 %v10670_v13  ;;  %14088 = vmatpush3.bf16.msra.mxu1 %v15178_v48 }
 0xb03   : > { %14089 = vmatprep.subr.bf16.mxu1 %v15179_v15 }
 0xb06   : > { %14090 = vmatpush3.bf16.msra.mxu1 %v15179_v15 }
 0xb07   : > { %14091 = vmatprep.subr.bf16.mxu1 %v15180_v31 }
 0xb09   : > { %14084 = vmatmul.mubr.bf16.gmra.mrb[36].mxu1 %v10672_v25 }
 0xb0a   : > { %14092 = vmatpush3.bf16.msra.mxu1 %v15180_v31  ;;  %14103 = vmatprep.mubr.bf16.mxu1 %v10827_v11 }
 0xb0b   : > { %14093 = vmatprep.subr.bf16.mxu1 %v15181_v32 }
 0xb0e   : > { %14094 = vmatpush3.bf16.msra.mxu1 %v15181_v32 }
 0xb0f   : > { %14095 = vmatprep.subr.bf16.mxu1 %v15182_v1 }
 0xb12   : > { %14096 = vmatpush3.bf16.msra.mxu1 %v15182_v1 }
 0xb13   : > { %14097 = vmatprep.subr.bf16.mxu1 %v15183_v0 }
 0xb16   : > { %14098 = vmatpush3.bf16.msra.mxu1 %v15183_v0 }
 0xb17   : > { %14099 = vmatprep.subr.bf16.mxu1 %v15184_v16 }
 0xb1a   : > { %14100 = vmatpush3.bf16.msra.mxu1 %v15184_v16 }
 0xb1b   : > { %14101 = vmatprep.subr.bf16.mxu1 %v15185_v9 }
 0xb1e   : > { %14102 = vmatpush3.bf16.msra.mxu1 %v15185_v9 }
 0xb1f   : > { %14111 = vmatprep.subr.bf16.mxu1 %v15186_v53 }
 0xb21   : > { %14104 = vmatmul.mubr.bf16.vlgmr.msra.gmra.mrb[32].mxu1 %v18760_v37  ;;  %v15189_v37 = vld [vmem:[%s19121_s12 + $0x218] sm:$0xff]  }
 0xb22   : > { %14107 = vmatprep.mubr.bf16.mxu1 %v10831_v20  ;;  %14112 = vmatpush3.bf16.msra.mxu1 %v15186_v53 }
 0xb23   : > { %14113 = vmatprep.subr.bf16.mxu1 %v15187_v27 }
 0xb26   : > { %14114 = vmatpush3.bf16.msra.mxu1 %v15187_v27 }
 0xb27   : > { %14115 = vmatprep.subr.bf16.mxu1 %v15188_v23 }
 0xb29   : > { %14108 = vmatmul.mubr.bf16.gmra.mrb[36].mxu1 %v10833_v8 }
 0xb2a   : > { %14116 = vmatpush3.bf16.msra.mxu1 %v15188_v23  ;;  %14127 = vmatprep.mubr.bf16.mxu1 %v10988_v24 }
 0xb2b   : > { %14117 = vmatprep.subr.bf16.mxu1 %v15189_v37 }
 0xb2e   : > { %14118 = vmatpush3.bf16.msra.mxu1 %v15189_v37 }
 0xb2f   : > { %14119 = vmatprep.subr.bf16.mxu1 %v15190_v50 }
 0xb32   : > { %14120 = vmatpush3.bf16.msra.mxu1 %v15190_v50 }
 0xb33   : > { %14121 = vmatprep.subr.bf16.mxu1 %v15191_v35 }
 0xb36   : > { %14122 = vmatpush3.bf16.msra.mxu1 %v15191_v35 }
 0xb37   : > { %14123 = vmatprep.subr.bf16.mxu1 %v15192_v44 }
 0xb3a   : > { %14124 = vmatpush3.bf16.msra.mxu1 %v15192_v44 }
 0xb3b   : > { %14125 = vmatprep.subr.bf16.mxu1 %v15193_v10 }
 0xb3e   : > { %14126 = vmatpush3.bf16.msra.mxu1 %v15193_v10 }
 0xb41   : > { %14128 = vmatmul.mubr.bf16.vlgmr.msra.gmra.mrb[32].mxu1 %v18844_v57 }
 0xb42   : > { %14131 = vmatprep.mubr.bf16.mxu1 %v10992_v49 }
 0xb49   : > { %14132 = vmatmul.mubr.bf16.gmra.mrb[36].mxu1 %v10994_v47 }
 0xc14   : > { %v14129_v57 = vpop.f32.mrb[32].mxu1 }
 0xc15   : > { %v11081_v52 = vpop.f32.mrb[33].mxu1  ;;  %v14155_v18 = vadd.f32 %v14129_v57, %v11644_v43 }
 0xc16   : > { %v14157_v5 = vadd.f32 %v11644_v43, %v11081_v52  ;;  %v14130_v54 = vpop.f32.mrb[34].mxu1 }
 0xc17   : > { %v14159_v6 = vadd.f32 %v14130_v54, %v11644_v43  ;;  %v11084_v34 = vpop.f32.mrb[35].mxu1  ;;  %v14156_v62 = vadd.f32 %v14155_v18, %v12054_v14 }
 0xc18   : > { %v14158_v22 = vadd.f32 %v14157_v5, %v12054_v14  ;;  %v14161_v63 = vadd.f32 %v11644_v43, %v11084_v34 }
 0xc19   : > { %v14160_v58 = vadd.f32 %v14159_v6, %v12054_v14  ;;  %v11145_v41 = vmax.f32 %v14156_v62, 0.0 }
 0xc1a   : > { %v14162_v56 = vadd.f32 %v14161_v63, %v12054_v14  ;;  %v11143_v33 = vmax.f32 %v14158_v22, 0.0 }
 0xc1b   : > { %v11146_v40 = vmax.f32 %v14160_v58, 0.0 }
 0xc1c   : > { %v11144_v29 = vmax.f32 %v14162_v56, 0.0  ;;  %v14133_v46 = vpop.f32.mrb[36].mxu1 }
 0xc1d   : > { %v11097_v42 = vpop.f32.mrb[37].mxu1  ;;  %v14163_v26 = vadd.f32 %v14133_v46, %v11644_v43 }
 0xc1e   : > { %v11151_v39 = vadd.f32 %v11144_v29, %v11143_v33  ;;  %v14165_v2 = vadd.f32 %v11644_v43, %v11097_v42  ;;  %v14134_v59 = vpop.f32.mrb[38].mxu1 }
 0xc1f   : > { %v11100_v61 = vpop.f32.mrb[39].mxu1  ;;  %v14167_v30 = vadd.f32 %v14134_v59, %v11644_v43  ;;  %v14164_v13 = vadd.f32 %v14163_v26, %v12054_v14 }
 0xc20   : > { %v11152_v60 = vadd.f32 %v11151_v39, %v11145_v41  ;;  %v14166_v48 = vadd.f32 %v14165_v2, %v12054_v14  ;;  %v14169_v15 = vadd.f32 %v11644_v43, %v11100_v61 }
 0xc21   : > { %v14168_v55 = vadd.f32 %v14167_v30, %v12054_v14  ;;  %v11149_v25 = vmax.f32 %v14164_v13, 0.0 }
 0xc22   : > { %v11147_v7 = vmax.f32 %v14166_v48, 0.0  ;;  %v11153_v4 = vadd.f32 %v11152_v60, %v11146_v40  ;;  %v14170_v31 = vadd.f32 %v14169_v15, %v12054_v14 }
 0xc23   : > { %v11150_v1 = vmax.f32 %v14168_v55, 0.0 }
 0xc24   : > { %v11154_v36 = vadd.f32 %v11153_v4, %v11147_v7  ;;  %v11148_v32 = vmax.f32 %v14170_v31, 0.0 }
 0xc26   : > { %v11155_v11 = vadd.f32 %v11154_v36, %v11148_v32 }
 0xc28   : > { %v11156_v0 = vadd.f32 %v11155_v11, %v11149_v25 }
 0xc2a   : > { %v11157_v16 = vadd.f32 %v11156_v0, %v11150_v1 }
 0xc2c   : > { %v11158_v9 = vrot.slane %v11157_v16, 4 }
 0xc2e   : > { %v11159_v53 = vadd.f32 %v11158_v9, %v11157_v16 }
 0xc30   : > { %v11160_v28 = vrot.slane %v11159_v53, 2 }
 0xc32   : > { %v11161_v27 = vadd.f32 %v11160_v28, %v11159_v53 }
 0xc34   : > { %v11162_v20 = vrot.slane %v11161_v27, 1 }
 0xc36   : > { %v11163_v21 = vadd.f32 %v11162_v20, %v11161_v27 }
 0xc38   : > { %v11164_v3 = vmul.f32 0.015625, %v11163_v21 }
 0xc3a   : > { %v11165_v23 = vpack.c.bf16 %v11164_v3, %v11164_v3 }
 0xc3c   : > { %14152 = vmatmul.mubr.bf16.vlgmr.msra.gmra.mrb[168].mxu0 %v11165_v23 }
 0xd0f   : > { %v11271_v45 = vpop.f32.mrb[168].mxu0 }
 0xd10   : > { %v11272_v37 = vadd.f32 %v12055_v17, %v11271_v45  ;;  %v14153_v8 = vpop.f32.mrb[169].mxu0 }
 0xd11   : > { %v11274_v24 = vpop.f32.mrb[170].mxu0 }
 0xd12   : > { %11277 = vst [vmem:[%s549_s28] sm:$0xff] %v11272_v37  ;;  %v14154_v50 = vpop.f32.mrb[171].mxu0 }
 0xd13 PF: > { %s20010_s26 = sld [smem:[#allocation9_spill]] }
 0xd19   : > { %s28_s21 = sadd.s32 1, %s20010_s26  }
 0xd1a   : > { %p25_p5 = scmp.ge.s32.totalorder %s28_s21, 4  }
 0xd1c   :  { %27 = sbr.rel (!%p25_p5) target bundleno = 5 (0x5), region = 154 }
 0xd23   :  { %11297 = vsyncpa [#allocation4], 1 }
 0xd24   :  { %11299 = vsyncpa [#allocation4 + $0x1], 1 }
 0xd25   :  { %11300 = vsyncpa [#allocation6], 1 }

</bundles_post_ra>
